<compile_context>
chip_gen: v7x
topology: tpu7x:2x2x1
jax: 0.10.0
libtpu: 0.0.40
codegen_flags: <defaults>
</compile_context>

<pallas_src>
import jax
import jax.numpy as jnp
from jax.experimental import pallas as pl
from jax.experimental.pallas import tpu as pltpu


# ----------------------------------------------------------------------------
# VGG19 slice configuration (torchvision vgg19.features[0:30])
# Each slice is a list of conv (cin, cout) entries and 'M' for MaxPool2d(2,2).
# ----------------------------------------------------------------------------
VGG_SLICES = [
    [(3, 64)],                                               # slice1: feats 0..1
    [(64, 64), 'M', (64, 128)],                              # slice2: feats 2..6
    [(128, 128), 'M', (128, 256)],                           # slice3: feats 7..11
    [(256, 256), (256, 256), (256, 256), 'M', (256, 512)],   # slice4: feats 12..20
    [(512, 512), (512, 512), (512, 512), 'M', (512, 512)],   # slice5: feats 21..29
]

_ACT_DTYPE = jnp.bfloat16


# ----------------------------------------------------------------------------
# VMEM budget (generation-aware)
# ----------------------------------------------------------------------------
def _vmem_budget_bytes():
    phys = None
    try:
        info = pltpu.get_tpu_info()
        for attr in ("vmem_capacity_bytes", "vmem_size_bytes", "vmem_bytes"):
            v = getattr(info, attr, None)
            if isinstance(v, int) and v > 0:
                phys = v
                break
    except Exception:
        phys = None
    if phys is None:
        phys = 64 * 1024 * 1024        # conservative default: v7x per-core VMEM
    return int(phys * 3 // 4)          # leave headroom for compiler scratch


def _chain_vmem_bytes(ops, n, h, w, cin):
    """Rough VMEM estimate for one fused chain starting at (n, h, w, cin)."""
    total = n * (h + 2) * (w + 2) * cin * 2      # halo pad scratch (bf16)
    total += n * h * w * cin * 2                 # input block (bf16)
    ch, cw, cc = h, w, cin
    peak_act = 0
    for op in ops:
        if op == 'M':
            ch //= 2
            cw //= 2
        else:
            ci, co = op
            total += 9 * ci * co * 2 + co * 4    # bf16 weights + f32 bias
            peak_act = max(peak_act, n * ch * cw * co * (4 + 2))  # f32 acc + bf16
            cc = co
    total += n * ch * cw * cc * 2                # output block (bf16)
    return total + peak_act


def _split_slice_into_chains(items, n, h, w, cin, budget):
    """Greedily split a slice into fused chains whose VMEM estimate fits."""
    chains, cur = [], []
    cur_shape = (h, w, cin)      # shape at the entry of the current chain
    run_shape = (h, w, cin)      # shape after the ops already in the chain
    for item in items:
        cand_ops = [it[0] for it in cur] + [item[0]]
        if cur and _chain_vmem_bytes(cand_ops, n, *cur_shape) > budget:
            chains.append(cur)
            cur, cur_shape = [], run_shape
        cur.append(item)
        rh, rw, rc = run_shape
        if item[0] == 'M':
            run_shape = (rh // 2, rw // 2, rc)
        else:
            run_shape = (rh, rw, item[0][1])
    if cur:
        chains.append(cur)
    return chains


# ----------------------------------------------------------------------------
# In-kernel building blocks (operate on values + VMEM refs, traced once)
# ----------------------------------------------------------------------------
def _conv3x3_bias_relu(x, w_ref, b_ref, pad_ref):
    """3x3 conv (pad=1) + bias + ReLU.

    x:       (N, H, W, Cin) bf16 value
    w_ref:   (9, Cin, Cout) bf16 taps (dy-major, dx-minor)
    b_ref:   (1, Cout)      f32 bias
    pad_ref: (N, H0+2, W0+2, Cin) bf16 VMEM scratch (H0 >= H, W0 >= W)
    returns: (N, H, W, Cout) bf16
    """
    n, h, w, cin = x.shape
    cout = w_ref.shape[-1]

    # In-kernel zero halo: zero the scratch and store the tile into its interior.
    pad_ref[...] = jnp.zeros_like(pad_ref)
    pad_ref[:, 1:h + 1, 1:w + 1, :] = x

    # 9 shifted-slab matmuls on the MXU; batch folded into M = N*H*W,
    # f32 accumulation, bf16 operands.
    acc = jnp.zeros((n * h * w, cout), jnp.float32)
    for dy in range(3):
        for dx in range(3):
            patch = pad_ref[:, dy:dy + h, dx:dx + w, :].reshape(n * h * w, cin)
            acc = acc + jnp.dot(patch, w_ref[dy * 3 + dx],
                                preferred_element_type=jnp.float32)
    acc = acc + b_ref[...]                       # broadcast (1, Cout), f32
    return jnp.maximum(acc, 0.0).astype(x.dtype).reshape(n, h, w, cout)


def _maxpool2(x):
    """2x2 max pool, stride 2 (floor mode), on an NHWC value."""
    n, h, w, c = x.shape
    xr = x.reshape(n, h // 2, 2, w, c)
    xh = jnp.maximum(xr[:, :, 0], xr[:, :, 1])
    xw = xh.reshape(n, h // 2, w // 2, 2, c)
    return jnp.maximum(xw[:, :, :, 0], xw[:, :, :, 1])


def _make_chain_kernel(ops):
    """Fused kernel for a chain of ops ('M' or (cin, cout)).

    Ref order: (x_ref, w0, b0, w1, b1, ..., o_ref, pad_ref).
    Inter-layer activations never leave VMEM/vregs.
    """
    def kernel(*refs):
        x_ref, o_ref, pad_ref = refs[0], refs[-2], refs[-1]
        wb_refs = refs[1:-2]
        x = x_ref[...]                           # (N, H, W, Cin) bf16
        wi = 0
        for op in ops:
            if op == 'M':
                x = _maxpool2(x)
            else:
                w_ref = wb_refs[2 * wi]
                b_ref = wb_refs[2 * wi + 1]
                wi += 1
                x = _conv3x3_bias_relu(x, w_ref, b_ref, pad_ref)
        o_ref[...] = x
    return kernel


# ----------------------------------------------------------------------------
# pallas_call wrapper for one fused chain
# ----------------------------------------------------------------------------
def _run_chain(x, chain_items, vmem_limit):
    n, h0, w0, cin0 = x.shape
    ops = tuple(it[0] for it in chain_items)

    operands = [x]
    flops = 0
    h, w, c = h0, w0, cin0
    for op, param in chain_items:
        if op == 'M':
            h //= 2
            w //= 2
        else:
            ci, co = op
            # within any fused chain of a VGG slice the conv input width is constant
            assert ci == cin0, "fused chain requires a constant conv input width"
            wk, bk = param
            operands.extend([wk, bk])
            flops += 2 * n * h * w * 9 * ci * co
            c = co

    out_shape = jax.ShapeDtypeStruct((n, h, w, c), x.dtype)
    bytes_accessed = sum(int(a.size) * a.dtype.itemsize for a in operands)
    bytes_accessed += int(n * h * w * c) * x.dtype.itemsize

    vmem_spec = pl.BlockSpec(memory_space=pltpu.MemorySpace.VMEM)
    return pl.pallas_call(
        _make_chain_kernel(ops),
        out_shape=out_shape,
        in_specs=[vmem_spec] * len(operands),
        out_specs=vmem_spec,
        scratch_shapes=[pltpu.VMEM((n, h0 + 2, w0 + 2, cin0), x.dtype)],
        compiler_params=pltpu.CompilerParams(vmem_limit_bytes=int(vmem_limit)),
        cost_estimate=pl.CostEstimate(flops=int(flops), transcendentals=0,
                                      bytes_accessed=int(bytes_accessed)),
    )(*operands)


# ----------------------------------------------------------------------------
# Parameters & forward
# ----------------------------------------------------------------------------
def init_vgg19_params(key):
    """Deterministic He-normal init of all conv weights/biases.

    Returns kernel-ready params: per slice, a list of ('M', None) or
    ((cin, cout), (w_bf16 (9, Cin, Cout), b_f32 (1, Cout))).
    """
    params = []
    for slice_cfg in VGG_SLICES:
        items = []
        for entry in slice_cfg:
            if entry == 'M':
                items.append(('M', None))
            else:
                cin, cout = entry
                key, kw, kb = jax.random.split(key, 3)
                w = jax.random.normal(kw, (3, 3, cin, cout), jnp.float32)
                w = w * jnp.sqrt(2.0 / (9.0 * cin))
                b = jax.random.normal(kb, (1, cout), jnp.float32) * 0.01
                wk = w.reshape(9, cin, cout).astype(_ACT_DTYPE)   # bf16 taps
                items.append(((cin, cout), (wk, b)))              # bias stays f32
        params.append(items)
    return params


def vgg19_forward(x_nchw, params):
    """Equivalent of Vgg19.forward: returns [h_relu1 .. h_relu5] (each NCHW, f32)."""
    budget = _vmem_budget_bytes()
    x = jnp.transpose(x_nchw, (0, 2, 3, 1)).astype(_ACT_DTYPE)    # NCHW -> NHWC bf16
    outs = []
    for slice_items in params:
        n, h, w, c = x.shape
        for chain in _split_slice_into_chains(slice_items, n, h, w, c, budget):
            x = _run_chain(x, chain, budget)
        outs.append(jnp.transpose(x, (0, 3, 1, 2)).astype(jnp.float32))
    return outs


# ----------------------------------------------------------------------------
if __name__ == "__main__":
    key = jax.random.PRNGKey(0)
    key, kx = jax.random.split(key)

    # NCHW, 3 input channels (VGG), 16x16 spatial so 4 maxpools leave a 1x1 map.
    x = jax.random.normal(kx, (2, 3, 16, 16), jnp.float32)

    params = init_vgg19_params(key)
    outs = vgg19_forward(x, params)
    outs = [jax.block_until_ready(o) for o in outs]

    expected = [(2, 64, 16, 16), (2, 128, 8, 8), (2, 256, 4, 4),
                (2, 512, 2, 2), (2, 512, 1, 1)]
    assert [tuple(o.shape) for o in outs] == expected, \
        f"shape mismatch: {[o.shape for o in outs]}"
    assert all(bool(jnp.all(jnp.isfinite(o))) for o in outs)

    print("KERNEL_OK")
</pallas_src>

<mosaic_0001>
module attributes {stable_mosaic.version = 11 : i64} {
  func.func @kernel(%arg0: memref<2x16x16x3xbf16, #tpu.memory_space<vmem>>, %arg1: memref<9x3x64xbf16, #tpu.memory_space<vmem>>, %arg2: memref<1x64xf32, #tpu.memory_space<vmem>>, %arg3: memref<2x16x16x64xbf16, #tpu.memory_space<vmem>>, %arg4: memref<2x18x18x3xbf16, #tpu.memory_space<vmem>>) attributes {dimension_semantics = [], scalar_prefetch = 0 : i64, scratch_operands = 1 : i64, tpu.core_type = #tpu.core_type<tc>} {
    %c0 = arith.constant 0 : index
    %c0_0 = arith.constant 0 : index
    %c0_1 = arith.constant 0 : index
    %c0_2 = arith.constant 0 : index
    %0 = vector.load %arg0[%c0, %c0_0, %c0_1, %c0_2] : memref<2x16x16x3xbf16, #tpu.memory_space<vmem>>, vector<2x16x16x3xbf16>
    %cst = arith.constant 0.000000e+00 : bf16
    %1 = vector.broadcast %cst : bf16 to vector<2x18x18x3xbf16>
    %c0_3 = arith.constant 0 : index
    %c0_4 = arith.constant 0 : index
    %c0_5 = arith.constant 0 : index
    %c0_6 = arith.constant 0 : index
    %2 = vector.load %arg4[%c0_3, %c0_4, %c0_5, %c0_6] : memref<2x18x18x3xbf16, #tpu.memory_space<vmem>>, vector<2x18x18x3xbf16>
    tpu.vector_store %arg4[%c0_3, %c0_4, %c0_5, %c0_6], %1 {strides = array<i32>} : memref<2x18x18x3xbf16, #tpu.memory_space<vmem>>, vector<2x18x18x3xbf16>,
    %c0_7 = arith.constant 0 : index
    %c1 = arith.constant 1 : index
    %c1_8 = arith.constant 1 : index
    %c0_9 = arith.constant 0 : index
    %3 = vector.load %arg4[%c0_7, %c1, %c1_8, %c0_9] : memref<2x18x18x3xbf16, #tpu.memory_space<vmem>>, vector<2x16x16x3xbf16>
    tpu.vector_store %arg4[%c0_7, %c1, %c1_8, %c0_9], %0 {strides = array<i32>} : memref<2x18x18x3xbf16, #tpu.memory_space<vmem>>, vector<2x16x16x3xbf16>,
    %cst_10 = arith.constant 0.000000e+00 : f32
    %4 = vector.broadcast %cst_10 : f32 to vector<512x64xf32>
    %c0_11 = arith.constant 0 : index
    %c0_12 = arith.constant 0 : index
    %c0_13 = arith.constant 0 : index
    %c0_14 = arith.constant 0 : index
    %5 = vector.load %arg4[%c0_11, %c0_12, %c0_13, %c0_14] : memref<2x18x18x3xbf16, #tpu.memory_space<vmem>>, vector<2x16x16x3xbf16>
    %6 = vector.shape_cast %5 : vector<2x16x16x3xbf16> to vector<512x3xbf16>
    %c0_15 = arith.constant 0 : index
    %c0_16 = arith.constant 0 : index
    %c0_17 = arith.constant 0 : index
    %7 = vector.load %arg1[%c0_15, %c0_16, %c0_17] : memref<9x3x64xbf16, #tpu.memory_space<vmem>>, vector<1x3x64xbf16>
    %8 = vector.shape_cast %7 : vector<1x3x64xbf16> to vector<3x64xbf16>
    %cst_18 = arith.constant dense<0.000000e+00> : vector<512x64xf32>
    %9 = tpu.matmul %6, %8, %cst_18 {dimension_numbers = #tpu.dot_dimension_numbers<[1], [0], [0], [1], [0, 0, 1, 1], [], []>} : vector<512x3xbf16>, vector<3x64xbf16>, vector<512x64xf32> -> vector<512x64xf32>
    %10 = arith.addf %4, %9 : vector<512x64xf32>
    %c0_19 = arith.constant 0 : index
    %c0_20 = arith.constant 0 : index
    %c1_21 = arith.constant 1 : index
    %c0_22 = arith.constant 0 : index
    %11 = vector.load %arg4[%c0_19, %c0_20, %c1_21, %c0_22] : memref<2x18x18x3xbf16, #tpu.memory_space<vmem>>, vector<2x16x16x3xbf16>
    %12 = vector.shape_cast %11 : vector<2x16x16x3xbf16> to vector<512x3xbf16>
    %c1_23 = arith.constant 1 : index
    %c0_24 = arith.constant 0 : index
    %c0_25 = arith.constant 0 : index
    %13 = vector.load %arg1[%c1_23, %c0_24, %c0_25] : memref<9x3x64xbf16, #tpu.memory_space<vmem>>, vector<1x3x64xbf16>
    %14 = vector.shape_cast %13 : vector<1x3x64xbf16> to vector<3x64xbf16>
    %cst_26 = arith.constant dense<0.000000e+00> : vector<512x64xf32>
    %15 = tpu.matmul %12, %14, %cst_26 {dimension_numbers = #tpu.dot_dimension_numbers<[1], [0], [0], [1], [0, 0, 1, 1], [], []>} : vector<512x3xbf16>, vector<3x64xbf16>, vector<512x64xf32> -> vector<512x64xf32>
    %16 = arith.addf %10, %15 : vector<512x64xf32>
    %c0_27 = arith.constant 0 : index
    %c0_28 = arith.constant 0 : index
    %c2 = arith.constant 2 : index
    %c0_29 = arith.constant 0 : index
    %17 = vector.load %arg4[%c0_27, %c0_28, %c2, %c0_29] : memref<2x18x18x3xbf16, #tpu.memory_space<vmem>>, vector<2x16x16x3xbf16>
    %18 = vector.shape_cast %17 : vector<2x16x16x3xbf16> to vector<512x3xbf16>
    %c2_30 = arith.constant 2 : index
    %c0_31 = arith.constant 0 : index
    %c0_32 = arith.constant 0 : index
    %19 = vector.load %arg1[%c2_30, %c0_31, %c0_32] : memref<9x3x64xbf16, #tpu.memory_space<vmem>>, vector<1x3x64xbf16>
    %20 = vector.shape_cast %19 : vector<1x3x64xbf16> to vector<3x64xbf16>
    %cst_33 = arith.constant dense<0.000000e+00> : vector<512x64xf32>
    %21 = tpu.matmul %18, %20, %cst_33 {dimension_numbers = #tpu.dot_dimension_numbers<[1], [0], [0], [1], [0, 0, 1, 1], [], []>} : vector<512x3xbf16>, vector<3x64xbf16>, vector<512x64xf32> -> vector<512x64xf32>
    %22 = arith.addf %16, %21 : vector<512x64xf32>
    %c0_34 = arith.constant 0 : index
    %c1_35 = arith.constant 1 : index
    %c0_36 = arith.constant 0 : index
    %c0_37 = arith.constant 0 : index
    %23 = vector.load %arg4[%c0_34, %c1_35, %c0_36, %c0_37] : memref<2x18x18x3xbf16, #tpu.memory_space<vmem>>, vector<2x16x16x3xbf16>
    %24 = vector.shape_cast %23 : vector<2x16x16x3xbf16> to vector<512x3xbf16>
    %c3 = arith.constant 3 : index
    %c0_38 = arith.constant 0 : index
    %c0_39 = arith.constant 0 : index
    %25 = vector.load %arg1[%c3, %c0_38, %c0_39] : memref<9x3x64xbf16, #tpu.memory_space<vmem>>, vector<1x3x64xbf16>
    %26 = vector.shape_cast %25 : vector<1x3x64xbf16> to vector<3x64xbf16>
    %cst_40 = arith.constant dense<0.000000e+00> : vector<512x64xf32>
    %27 = tpu.matmul %24, %26, %cst_40 {dimension_numbers = #tpu.dot_dimension_numbers<[1], [0], [0], [1], [0, 0, 1, 1], [], []>} : vector<512x3xbf16>, vector<3x64xbf16>, vector<512x64xf32> -> vector<512x64xf32>
    %28 = arith.addf %22, %27 : vector<512x64xf32>
    %c0_41 = arith.constant 0 : index
    %c1_42 = arith.constant 1 : index
    %c1_43 = arith.constant 1 : index
    %c0_44 = arith.constant 0 : index
    %29 = vector.load %arg4[%c0_41, %c1_42, %c1_43, %c0_44] : memref<2x18x18x3xbf16, #tpu.memory_space<vmem>>, vector<2x16x16x3xbf16>
    %30 = vector.shape_cast %29 : vector<2x16x16x3xbf16> to vector<512x3xbf16>
    %c4 = arith.constant 4 : index
    %c0_45 = arith.constant 0 : index
    %c0_46 = arith.constant 0 : index
    %31 = vector.load %arg1[%c4, %c0_45, %c0_46] : memref<9x3x64xbf16, #tpu.memory_space<vmem>>, vector<1x3x64xbf16>
    %32 = vector.shape_cast %31 : vector<1x3x64xbf16> to vector<3x64xbf16>
    %cst_47 = arith.constant dense<0.000000e+00> : vector<512x64xf32>
    %33 = tpu.matmul %30, %32, %cst_47 {dimension_numbers = #tpu.dot_dimension_numbers<[1], [0], [0], [1], [0, 0, 1, 1], [], []>} : vector<512x3xbf16>, vector<3x64xbf16>, vector<512x64xf32> -> vector<512x64xf32>
    %34 = arith.addf %28, %33 : vector<512x64xf32>
    %c0_48 = arith.constant 0 : index
    %c1_49 = arith.constant 1 : index
    %c2_50 = arith.constant 2 : index
    %c0_51 = arith.constant 0 : index
    %35 = vector.load %arg4[%c0_48, %c1_49, %c2_50, %c0_51] : memref<2x18x18x3xbf16, #tpu.memory_space<vmem>>, vector<2x16x16x3xbf16>
    %36 = vector.shape_cast %35 : vector<2x16x16x3xbf16> to vector<512x3xbf16>
    %c5 = arith.constant 5 : index
    %c0_52 = arith.constant 0 : index
    %c0_53 = arith.constant 0 : index
    %37 = vector.load %arg1[%c5, %c0_52, %c0_53] : memref<9x3x64xbf16, #tpu.memory_space<vmem>>, vector<1x3x64xbf16>
    %38 = vector.shape_cast %37 : vector<1x3x64xbf16> to vector<3x64xbf16>
    %cst_54 = arith.constant dense<0.000000e+00> : vector<512x64xf32>
    %39 = tpu.matmul %36, %38, %cst_54 {dimension_numbers = #tpu.dot_dimension_numbers<[1], [0], [0], [1], [0, 0, 1, 1], [], []>} : vector<512x3xbf16>, vector<3x64xbf16>, vector<512x64xf32> -> vector<512x64xf32>
    %40 = arith.addf %34, %39 : vector<512x64xf32>
    %c0_55 = arith.constant 0 : index
    %c2_56 = arith.constant 2 : index
    %c0_57 = arith.constant 0 : index
    %c0_58 = arith.constant 0 : index
    %41 = vector.load %arg4[%c0_55, %c2_56, %c0_57, %c0_58] : memref<2x18x18x3xbf16, #tpu.memory_space<vmem>>, vector<2x16x16x3xbf16>
    %42 = vector.shape_cast %41 : vector<2x16x16x3xbf16> to vector<512x3xbf16>
    %c6 = arith.constant 6 : index
    %c0_59 = arith.constant 0 : index
    %c0_60 = arith.constant 0 : index
    %43 = vector.load %arg1[%c6, %c0_59, %c0_60] : memref<9x3x64xbf16, #tpu.memory_space<vmem>>, vector<1x3x64xbf16>
    %44 = vector.shape_cast %43 : vector<1x3x64xbf16> to vector<3x64xbf16>
    %cst_61 = arith.constant dense<0.000000e+00> : vector<512x64xf32>
    %45 = tpu.matmul %42, %44, %cst_61 {dimension_numbers = #tpu.dot_dimension_numbers<[1], [0], [0], [1], [0, 0, 1, 1], [], []>} : vector<512x3xbf16>, vector<3x64xbf16>, vector<512x64xf32> -> vector<512x64xf32>
    %46 = arith.addf %40, %45 : vector<512x64xf32>
    %c0_62 = arith.constant 0 : index
    %c2_63 = arith.constant 2 : index
    %c1_64 = arith.constant 1 : index
    %c0_65 = arith.constant 0 : index
    %47 = vector.load %arg4[%c0_62, %c2_63, %c1_64, %c0_65] : memref<2x18x18x3xbf16, #tpu.memory_space<vmem>>, vector<2x16x16x3xbf16>
    %48 = vector.shape_cast %47 : vector<2x16x16x3xbf16> to vector<512x3xbf16>
    %c7 = arith.constant 7 : index
    %c0_66 = arith.constant 0 : index
    %c0_67 = arith.constant 0 : index
    %49 = vector.load %arg1[%c7, %c0_66, %c0_67] : memref<9x3x64xbf16, #tpu.memory_space<vmem>>, vector<1x3x64xbf16>
    %50 = vector.shape_cast %49 : vector<1x3x64xbf16> to vector<3x64xbf16>
    %cst_68 = arith.constant dense<0.000000e+00> : vector<512x64xf32>
    %51 = tpu.matmul %48, %50, %cst_68 {dimension_numbers = #tpu.dot_dimension_numbers<[1], [0], [0], [1], [0, 0, 1, 1], [], []>} : vector<512x3xbf16>, vector<3x64xbf16>, vector<512x64xf32> -> vector<512x64xf32>
    %52 = arith.addf %46, %51 : vector<512x64xf32>
    %c0_69 = arith.constant 0 : index
    %c2_70 = arith.constant 2 : index
    %c2_71 = arith.constant 2 : index
    %c0_72 = arith.constant 0 : index
    %53 = vector.load %arg4[%c0_69, %c2_70, %c2_71, %c0_72] : memref<2x18x18x3xbf16, #tpu.memory_space<vmem>>, vector<2x16x16x3xbf16>
    %54 = vector.shape_cast %53 : vector<2x16x16x3xbf16> to vector<512x3xbf16>
    %c8 = arith.constant 8 : index
    %c0_73 = arith.constant 0 : index
    %c0_74 = arith.constant 0 : index
    %55 = vector.load %arg1[%c8, %c0_73, %c0_74] : memref<9x3x64xbf16, #tpu.memory_space<vmem>>, vector<1x3x64xbf16>
    %56 = vector.shape_cast %55 : vector<1x3x64xbf16> to vector<3x64xbf16>
    %cst_75 = arith.constant dense<0.000000e+00> : vector<512x64xf32>
    %57 = tpu.matmul %54, %56, %cst_75 {dimension_numbers = #tpu.dot_dimension_numbers<[1], [0], [0], [1], [0, 0, 1, 1], [], []>} : vector<512x3xbf16>, vector<3x64xbf16>, vector<512x64xf32> -> vector<512x64xf32>
    %58 = arith.addf %52, %57 : vector<512x64xf32>
    %c0_76 = arith.constant 0 : index
    %c0_77 = arith.constant 0 : index
    %59 = vector.load %arg2[%c0_76, %c0_77] : memref<1x64xf32, #tpu.memory_space<vmem>>, vector<1x64xf32>
    %60 = vector.broadcast %59 : vector<1x64xf32> to vector<512x64xf32>
    %61 = arith.addf %58, %60 : vector<512x64xf32>
    %cst_78 = arith.constant 0.000000e+00 : f32
    %62 = vector.broadcast %cst_78 : f32 to vector<512x64xf32>
    %63 = arith.maximumf %61, %62 : vector<512x64xf32>
    %64 = arith.truncf %63 : vector<512x64xf32> to vector<512x64xbf16>
    %65 = vector.shape_cast %64 : vector<512x64xbf16> to vector<2x16x16x64xbf16>
    %c0_79 = arith.constant 0 : index
    %c0_80 = arith.constant 0 : index
    %c0_81 = arith.constant 0 : index
    %c0_82 = arith.constant 0 : index
    %66 = vector.load %arg3[%c0_79, %c0_80, %c0_81, %c0_82] : memref<2x16x16x64xbf16, #tpu.memory_space<vmem>>, vector<2x16x16x64xbf16>
    tpu.vector_store %arg3[%c0_79, %c0_80, %c0_81, %c0_82], %65 {strides = array<i32>} : memref<2x16x16x64xbf16, #tpu.memory_space<vmem>>, vector<2x16x16x64xbf16>,
    return
  }
}

</mosaic_0001>

<bundles_post_ra>
// kernel: tpu_custom_call.1
= control target key start
LH: loop header
LB: loop body
LE: loop exit
PB: predicated region body
PF: predicated region fallthrough
CT: control target
= control target key end

     0   :  { %vm2126_vm0 = vcmask 1040384   ;;  %vm2127_vm1 = vcmask 1041408   ;;  %vm80_vm2 = vcmask 19456   ;;  %v12827_v1 = vmov 65535   ;;  %s15969_s0 = inlined_call_operand.vmem [shape: bf16[2,16,16,3], index: 0, kind: input, shape index: {}]   ;;  %s15970_s1 = inlined_call_operand.vmem [shape: bf16[9,3,64], index: 1, kind: input, shape index: {}]   ;;  %s15971_s2 = inlined_call_operand.vmem [shape: f32[1,64], index: 2, kind: input, shape index: {}]   ;;  %s15972_s3 = inlined_call_operand.hbm [shape: bf16[2,16,16,64], index: 3, kind: output, shape index: {}]  }
   0x1   :  { %v12855_v0 = vld [vmem:[%s15970_s1 + $0x2] sm:$0x3]  ;;  %v2128_v2 = vsel %vm2126_vm0, 4294967295, %v12827_v1  ;;  %v12860_v3 = vld [vmem:[%s15970_s1 + $0x8] sm:$0x3]  ;;  %vm83_vm3 = vcmask 16384  }
   0x2   :  { %v12862_v4 = vsel %vm2127_vm1, %v2128_v2, 0  ;;  %v12828_v5 = vmov 0   ;;  %v16_v8 = vld [vmem:[%s15969_s0] sm:$0xf]  ;;  %v17_v9 = vld [vmem:[%s15969_s0 + $0x4] sm:$0xf] }
   0x3   :  { %81 = vst.msk [vmem:[#allocation2] sm:$0xf] %vm80_vm2, %v12828_v5  ;;  %82 = vst.msk [vmem:[#allocation2 + $0x4] sm:$0xf] %vm80_vm2, %v12828_v5  ;;  %v2131_v6 = vand.u32 %v12855_v0, %v12862_v4  ;;  %v13084_v7 = vand.u32 %v12860_v3, %v12862_v4  ;;  %vm190_vm4 = vsmask.f32 256 }
   0x4   :  { %84 = vst.msk [vmem:[#allocation2 + $0x8] sm:$0x1] %vm83_vm3, %v12828_v5  ;;  %87 = vst.msk [vmem:[#allocation2 + $0x14] sm:$0x1] %vm83_vm3, %v12828_v5  ;;  %vm191_vm5 = vsmask.f32 4368 }
   0x5   :  { %85 = vst.msk [vmem:[#allocation2 + $0xc] sm:$0xf] %vm80_vm2, %v12828_v5  ;;  %86 = vst.msk [vmem:[#allocation2 + $0x10] sm:$0xf] %vm80_vm2, %v12828_v5  ;;  %v194_v10 = vshrl.u32 %v16_v8, 16  ;;  %v197_v11 = vshll.u32 %v16_v8, 16  ;;  %11410 = vmatprep.subr.bf16.mxu1 %v2131_v6  ;;  %11674 = vmatprep.subr.bf16.mxu0 %v13084_v7 }
   0x6   :  { %88 = vst.msk [vmem:[#allocation2 + $0x18] sm:$0xf] %vm80_vm2, %v12828_v5  ;;  %89 = vst.msk [vmem:[#allocation2 + $0x1c] sm:$0xf] %vm80_vm2, %v12828_v5  ;;  %v202_v12 = vshrl.u32 %v17_v9, 16  ;;  %v205_v13 = vshll.u32 %v17_v9, 16  ;;  %11411 = vmatpush3.bf16.msra.mxu1 %v2131_v6  ;;  %11675 = vmatpush3.bf16.msra.mxu0 %v13084_v7 }
   0x7   :  { %90 = vst.msk [vmem:[#allocation2 + $0x20] sm:$0x1] %vm83_vm3, %v12828_v5  ;;  %93 = vst.msk [vmem:[#allocation2 + $0x2c] sm:$0x1] %vm83_vm3, %v12828_v5  ;;  %vm835_vm6 = vsmask.f32 7938 }
   0x8   :  { %91 = vst.msk [vmem:[#allocation2 + $0x24] sm:$0xf] %vm80_vm2, %v12828_v5  ;;  %92 = vst.msk [vmem:[#allocation2 + $0x28] sm:$0xf] %vm80_vm2, %v12828_v5  ;;  %v1127_v14 = vld [vmem:[%s15970_s1] sm:$0x3] }
   0x9   :  { %94 = vst.msk [vmem:[#allocation2 + $0x30] sm:$0xf] %vm80_vm2, %v12828_v5  ;;  %95 = vst.msk [vmem:[#allocation2 + $0x34] sm:$0xf] %vm80_vm2, %v12828_v5  ;;  %v196_v15 = vrot.slane %v194_v10, 7  ;;  %v204_v16 = vrot.slane %v202_v12, 7  ;;  %v13098_v17 = vand.u32 %v12862_v4, %v1127_v14 }
   0xa   :  { %96 = vst.msk [vmem:[#allocation2 + $0x38] sm:$0x1] %vm83_vm3, %v12828_v5  ;;  %99 = vst.msk [vmem:[#allocation2 + $0x44] sm:$0x1] %vm83_vm3, %v12828_v5  ;;  %v10692_v18 = vld [vmem:[%s15970_s1 + $0xa] sm:$0x3] }
   0xb   :  { %97 = vst.msk [vmem:[#allocation2 + $0x3c] sm:$0xf] %vm80_vm2, %v12828_v5  ;;  %98 = vst.msk [vmem:[#allocation2 + $0x40] sm:$0xf] %vm80_vm2, %v12828_v5  ;;  %v18_v19 = vld [vmem:[%s15969_s0 + $0x8] sm:$0xf]  ;;  %v13113_v21 = vand.u32 %v10692_v18, %v12862_v4  ;;  %v199_v23 = vor.u32 %v197_v11, %v196_v15  ;;  %v207_v25 = vor.u32 %v205_v13, %v204_v16  ;;  %11476 = vmatprep.subr.bf16.mxu1 %v13098_v17 }
   0xc   :  { %100 = vst.msk [vmem:[#allocation2 + $0x48] sm:$0xf] %vm80_vm2, %v12828_v5  ;;  %101 = vst.msk [vmem:[#allocation2 + $0x4c] sm:$0xf] %vm80_vm2, %v12828_v5  ;;  %vm1160_vm7 = vsmask.f32 3328 }
   0xd   :  { %102 = vst.msk [vmem:[#allocation2 + $0x50] sm:$0x1] %vm83_vm3, %v12828_v5  ;;  %105 = vst.msk [vmem:[#allocation2 + $0x5c] sm:$0x1] %vm83_vm3, %v12828_v5  ;;  %vm1161_vm8 = vsmask.f32 7440  ;;  %11740 = vmatprep.subr.bf16.mxu0 %v13113_v21 }
   0xe   :  { %103 = vst.msk [vmem:[#allocation2 + $0x54] sm:$0xf] %vm80_vm2, %v12828_v5  ;;  %104 = vst.msk [vmem:[#allocation2 + $0x58] sm:$0xf] %vm80_vm2, %v12828_v5  ;;  %v211_v22 = vshrl.u32 %v18_v19, 16  ;;  %v200_v24 = vrot.slane %v196_v15, 4 }
   0xf   :  { %106 = vst.msk [vmem:[#allocation2 + $0x60] sm:$0xf] %vm80_vm2, %v12828_v5  ;;  %107 = vst.msk [vmem:[#allocation2 + $0x64] sm:$0xf] %vm80_vm2, %v12828_v5  ;;  %v209_v26 = vrot.slane %v204_v16, 4  ;;  %v214_v42 = vshll.u32 %v18_v19, 16 }
  0x10   :  { %108 = vst.msk [vmem:[#allocation2 + $0x68] sm:$0x1] %vm83_vm3, %v12828_v5  ;;  %111 = vst.msk [vmem:[#allocation2 + $0x74] sm:$0x1] %vm83_vm3, %v12828_v5  ;;  %v19_v28 = vld [vmem:[%s15969_s0 + $0xc] sm:$0xf] }
  0x11   :  { %109 = vst.msk [vmem:[#allocation2 + $0x6c] sm:$0xf] %vm80_vm2, %v12828_v5  ;;  %110 = vst.msk [vmem:[#allocation2 + $0x70] sm:$0xf] %vm80_vm2, %v12828_v5  ;;  %v1063_v29 = vld [vmem:[#allocation2] sm:$0xf] }
  0x12   :  { %112 = vst.msk [vmem:[#allocation2 + $0x78] sm:$0xf] %vm80_vm2, %v12828_v5  ;;  %113 = vst.msk [vmem:[#allocation2 + $0x7c] sm:$0xf] %vm80_vm2, %v12828_v5  ;;  %v1064_v30 = vld [vmem:[#allocation2 + $0x4] sm:$0xf] }
  0x13   :  { %114 = vst.msk [vmem:[#allocation2 + $0x80] sm:$0x1] %vm83_vm3, %v12828_v5  ;;  %117 = vst.msk [vmem:[#allocation2 + $0x8c] sm:$0x1] %vm83_vm3, %v12828_v5  ;;  %v1128_v31 = vld [vmem:[#allocation2 + $0x8] sm:$0x1] }
  0x14   :  { %115 = vst.msk [vmem:[#allocation2 + $0x84] sm:$0xf] %vm80_vm2, %v12828_v5  ;;  %116 = vst.msk [vmem:[#allocation2 + $0x88] sm:$0xf] %vm80_vm2, %v12828_v5  ;;  %v1164_v32 = vshrl.u32 %v1063_v29, 16  ;;  %v1167_v33 = vshll.u32 %v1063_v29, 16 }
  0x15   :  { %118 = vst.msk [vmem:[#allocation2 + $0x90] sm:$0xf] %vm80_vm2, %v12828_v5  ;;  %119 = vst.msk [vmem:[#allocation2 + $0x94] sm:$0xf] %vm80_vm2, %v12828_v5  ;;  %v1173_v34 = vshll.u32 %v1064_v30, 16  ;;  %v1177_v35 = vshrl.u32 %v1064_v30, 16 }
  0x16   :  { %120 = vst.msk [vmem:[#allocation2 + $0x98] sm:$0x1] %vm83_vm3, %v12828_v5  ;;  %123 = vst.msk [vmem:[#allocation2 + $0xa4] sm:$0x1] %vm83_vm3, %v12828_v5  ;;  %v837_v36 = vld [vmem:[#allocation2 + $0xc] sm:$0xf] }
  0x17   :  { %121 = vst.msk [vmem:[#allocation2 + $0x9c] sm:$0xf] %vm80_vm2, %v12828_v5  ;;  %122 = vst.msk [vmem:[#allocation2 + $0xa0] sm:$0xf] %vm80_vm2, %v12828_v5  ;;  %v1183_v38 = vshll.u32 %v1128_v31, 16  ;;  %v1166_v44 = vrot.slane %v1164_v32, 4 }
  0x18   :  { %124 = vst.msk [vmem:[#allocation2 + $0xa8] sm:$0xf] %vm80_vm2, %v12828_v5  ;;  %125 = vst.msk [vmem:[#allocation2 + $0xac] sm:$0xf] %vm80_vm2, %v12828_v5  ;;  %v843_v41 = vld [vmem:[#allocation2 + $0x14] sm:$0x1] }
  0x19   :  { %126 = vst.msk [vmem:[#allocation2 + $0xb0] sm:$0x1] %vm83_vm3, %v12828_v5  ;;  %129 = vst.msk [vmem:[#allocation2 + $0xbc] sm:$0x1] %vm83_vm3, %v12828_v5  ;;  %v20_v43 = vld [vmem:[%s15969_s0 + $0x10] sm:$0xf] }
  0x1a   :  { %127 = vst.msk [vmem:[#allocation2 + $0xb4] sm:$0xf] %vm80_vm2, %v12828_v5  ;;  %128 = vst.msk [vmem:[#allocation2 + $0xb8] sm:$0xf] %vm80_vm2, %v12828_v5  ;;  %v1169_v45 = vrot.slane %v1167_v33, 5  ;;  %v1175_v46 = vrot.slane %v1173_v34, 5 }
  0x1b   :  { %130 = vst.msk [vmem:[#allocation2 + $0xc0] sm:$0xf] %vm80_vm2, %v12828_v5  ;;  %131 = vst.msk [vmem:[#allocation2 + $0xc4] sm:$0xf] %vm80_vm2, %v12828_v5  ;;  %v1179_v47 = vrot.slane %v1177_v35, 4  ;;  %v1185_v48 = vrot.slane %v1183_v38, 5 }
  0x1c   :  { %132 = vst.msk [vmem:[#allocation2 + $0xc8] sm:$0x1] %vm83_vm3, %v12828_v5  ;;  %135 = vst.msk [vmem:[#allocation2 + $0xd4] sm:$0x1] %vm83_vm3, %v12828_v5  ;;  %v213_v50 = vrot.slane %v211_v22, 7  ;;  %v219_v51 = vshrl.u32 %v19_v28, 16  ;;  %v1170_v52 = vor.u32 %v1169_v45, %v1166_v44 }
  0x1d   :  { %133 = vst.msk [vmem:[#allocation2 + $0xcc] sm:$0xf] %vm80_vm2, %v12828_v5  ;;  %134 = vst.msk [vmem:[#allocation2 + $0xd0] sm:$0xf] %vm80_vm2, %v12828_v5  ;;  %v1180_v53 = vor.u32 %v1179_v47, %v1175_v46  ;;  %v222_v54 = vshll.u32 %v19_v28, 16  ;;  %v228_v56 = vshrl.u32 %v20_v43, 16 }
  0x1e   :  { %136 = vst.msk [vmem:[#allocation2 + $0xd8] sm:$0xf] %vm80_vm2, %v12828_v5  ;;  %137 = vst.msk [vmem:[#allocation2 + $0xdc] sm:$0xf] %vm80_vm2, %v12828_v5  ;;  %v846_v55 = vld [vmem:[#allocation2 + $0x18] sm:$0xf]  ;;  %v216_v58 = vor.u32 %v214_v42, %v213_v50 }
  0x1f   :  { %138 = vst.msk [vmem:[#allocation2 + $0xe0] sm:$0x1] %vm83_vm3, %v12828_v5  ;;  %141 = vst.msk [vmem:[#allocation2 + $0xec] sm:$0x1] %vm83_vm3, %v12828_v5  ;;  %v217_v59 = vrot.slane %v213_v50, 4  ;;  %v221_v60 = vrot.slane %v219_v51, 7 }
  0x20   :  { %139 = vst.msk [vmem:[#allocation2 + $0xe4] sm:$0xf] %vm80_vm2, %v12828_v5  ;;  %140 = vst.msk [vmem:[#allocation2 + $0xe8] sm:$0xf] %vm80_vm2, %v12828_v5  ;;  %v231_v61 = vshll.u32 %v20_v43, 16  ;;  %v1171_v62 = vrot.slane %v1170_v52, 4 }
  0x21   :  { %142 = vst.msk [vmem:[#allocation2 + $0xf0] sm:$0xf] %vm80_vm2, %v12828_v5  ;;  %143 = vst.msk [vmem:[#allocation2 + $0xf4] sm:$0xf] %vm80_vm2, %v12828_v5  ;;  %v1181_v63 = vrot.slane %v1180_v53, 4  ;;  %v13148_v1 = vrot.slane %v228_v56, 7  ;;  %v224_v2 = vor.u32 %v222_v54, %v221_v60 }
  0x22   :  { %144 = vst.msk [vmem:[#allocation2 + $0xf8] sm:$0x1] %vm83_vm3, %v12828_v5  ;;  %147 = vst.msk [vmem:[#allocation2 + $0x104] sm:$0x1] %vm83_vm3, %v12828_v5  ;;  %v850_v0 = vld [vmem:[#allocation2 + $0x20] sm:$0x1] }
  0x23   :  { %145 = vst.msk [vmem:[#allocation2 + $0xfc] sm:$0xf] %vm80_vm2, %v12828_v5  ;;  %146 = vst.msk [vmem:[#allocation2 + $0x100] sm:$0xf] %vm80_vm2, %v12828_v5  ;;  %v226_v3 = vrot.slane %v221_v60, 4  ;;  %vm2029_vm13 = vcmask 23552   ;;  %v233_v9 = vor.u32 %v231_v61, %v13148_v1 }
  0x24   :  { %148 = vst.msk [vmem:[#allocation2 + $0x108] sm:$0xf] %vm80_vm2, %v12828_v5  ;;  %149 = vst.msk [vmem:[#allocation2 + $0x10c] sm:$0xf] %vm80_vm2, %v12828_v5  ;;  %v853_v10 = vld [vmem:[#allocation2 + $0x24] sm:$0xf] }
  0x25   :  { %150 = vst.msk [vmem:[#allocation2 + $0x110] sm:$0x1] %vm83_vm3, %v12828_v5  ;;  %153 = vst.msk [vmem:[#allocation2 + $0x11c] sm:$0x1] %vm83_vm3, %v12828_v5  ;;  %vm3066_vm14 = vcmask 1042432   ;;  %vm3067_vm15 = vcmask 1046532  }
  0x26   :  { %151 = vst.msk [vmem:[#allocation2 + $0x114] sm:$0xf] %vm80_vm2, %v12828_v5  ;;  %152 = vst.msk [vmem:[#allocation2 + $0x118] sm:$0xf] %vm80_vm2, %v12828_v5 }
  0x27   :  { %154 = vst.msk [vmem:[#allocation2 + $0x120] sm:$0xf] %vm80_vm2, %v12828_v5  ;;  %155 = vst.msk [vmem:[#allocation2 + $0x124] sm:$0xf] %vm80_vm2, %v12828_v5 }
  0x28   :  { %156 = vst.msk [vmem:[#allocation2 + $0x128] sm:$0x1] %vm83_vm3, %v12828_v5  ;;  %159 = vst.msk [vmem:[#allocation2 + $0x134] sm:$0x1] %vm83_vm3, %v12828_v5 }
  0x29   :  { %157 = vst.msk [vmem:[#allocation2 + $0x12c] sm:$0xf] %vm80_vm2, %v12828_v5  ;;  %158 = vst.msk [vmem:[#allocation2 + $0x130] sm:$0xf] %vm80_vm2, %v12828_v5 }
  0x2a   :  { %160 = vst.msk [vmem:[#allocation2 + $0x138] sm:$0xf] %vm80_vm2, %v12828_v5  ;;  %161 = vst.msk [vmem:[#allocation2 + $0x13c] sm:$0xf] %vm80_vm2, %v12828_v5 }
  0x2b   :  { %162 = vst.msk [vmem:[#allocation2 + $0x140] sm:$0x1] %vm83_vm3, %v12828_v5  ;;  %165 = vst.msk [vmem:[#allocation2 + $0x14c] sm:$0x1] %vm83_vm3, %v12828_v5 }
  0x2c   :  { %163 = vst.msk [vmem:[#allocation2 + $0x144] sm:$0xf] %vm80_vm2, %v12828_v5  ;;  %164 = vst.msk [vmem:[#allocation2 + $0x148] sm:$0xf] %vm80_vm2, %v12828_v5 }
  0x2d   :  { %166 = vst.msk [vmem:[#allocation2 + $0x150] sm:$0xf] %vm80_vm2, %v12828_v5  ;;  %167 = vst.msk [vmem:[#allocation2 + $0x154] sm:$0xf] %vm80_vm2, %v12828_v5 }
  0x2e   :  { %168 = vst.msk [vmem:[#allocation2 + $0x158] sm:$0x1] %vm83_vm3, %v12828_v5  ;;  %171 = vst.msk [vmem:[#allocation2 + $0x164] sm:$0x1] %vm83_vm3, %v12828_v5 }
  0x2f   :  { %169 = vst.msk [vmem:[#allocation2 + $0x15c] sm:$0xf] %vm80_vm2, %v12828_v5  ;;  %170 = vst.msk [vmem:[#allocation2 + $0x160] sm:$0xf] %vm80_vm2, %v12828_v5 }
  0x30   :  { %172 = vst.msk [vmem:[#allocation2 + $0x168] sm:$0xf] %vm80_vm2, %v12828_v5  ;;  %173 = vst.msk [vmem:[#allocation2 + $0x16c] sm:$0xf] %vm80_vm2, %v12828_v5 }
  0x31   :  { %174 = vst.msk [vmem:[#allocation2 + $0x170] sm:$0x1] %vm83_vm3, %v12828_v5  ;;  %177 = vst.msk [vmem:[#allocation2 + $0x17c] sm:$0x1] %vm83_vm3, %v12828_v5 }
  0x32   :  { %175 = vst.msk [vmem:[#allocation2 + $0x174] sm:$0xf] %vm80_vm2, %v12828_v5  ;;  %176 = vst.msk [vmem:[#allocation2 + $0x178] sm:$0xf] %vm80_vm2, %v12828_v5 }
  0x33   :  { %178 = vst.msk [vmem:[#allocation2 + $0x180] sm:$0xf] %vm80_vm2, %v12828_v5  ;;  %179 = vst.msk [vmem:[#allocation2 + $0x184] sm:$0xf] %vm80_vm2, %v12828_v5 }
  0x34   :  { %180 = vst.msk [vmem:[#allocation2 + $0x188] sm:$0x1] %vm83_vm3, %v12828_v5  ;;  %183 = vst.msk [vmem:[#allocation2 + $0x194] sm:$0x1] %vm83_vm3, %v12828_v5 }
  0x35   :  { %181 = vst.msk [vmem:[#allocation2 + $0x18c] sm:$0xf] %vm80_vm2, %v12828_v5  ;;  %182 = vst.msk [vmem:[#allocation2 + $0x190] sm:$0xf] %vm80_vm2, %v12828_v5 }
  0x36   :  { %184 = vst.msk [vmem:[#allocation2 + $0x198] sm:$0xf] %vm80_vm2, %v12828_v5  ;;  %185 = vst.msk [vmem:[#allocation2 + $0x19c] sm:$0xf] %vm80_vm2, %v12828_v5 }
  0x37   :  { %186 = vst.msk [vmem:[#allocation2 + $0x1a0] sm:$0x1] %vm83_vm3, %v12828_v5  ;;  %189 = vst.msk [vmem:[#allocation2 + $0x1ac] sm:$0x1] %vm83_vm3, %v12828_v5 }
  0x38   :  { %187 = vst.msk [vmem:[#allocation2 + $0x1a4] sm:$0xf] %vm80_vm2, %v12828_v5  ;;  %188 = vst.msk [vmem:[#allocation2 + $0x1a8] sm:$0xf] %vm80_vm2, %v12828_v5 }
  0x39   :  { %15994 = vst [vmem:[#allocation6_spill] sm:$0xff] %v13084_v7  ;;  %vm13108_vm9 = vmor %vm190_vm4, %vm191_vm5 }
  0x3a   :  { %vm13117_vm10 = vmand %vm80_vm2, %vm835_vm6  ;;  %v208_v39 = vsel %vm13108_vm9, %v200_v24, %v207_v25  ;;  %v225_v15 = vsel %vm13108_vm9, %v217_v59, %v224_v2  ;;  %v21_v59 = vld [vmem:[%s15969_s0 + $0x14] sm:$0xf] }
  0x3b   :  { %vm13128_vm11 = vmand %vm83_vm3, %vm190_vm4  ;;  %v838_v40 = vsel %vm13117_vm10, %v199_v23, %v837_v36  ;;  %840 = vst.msk [vmem:[#allocation2 + $0x10] sm:$0xf] %vm80_vm2, %v208_v39  ;;  %v847_v5 = vsel %vm13117_vm10, %v216_v58, %v846_v55  ;;  %v854_v28 = vsel %vm13117_vm10, %v233_v9, %v853_v10 }
  0x3c   :  { %839 = vst [vmem:[#allocation2 + $0xc] sm:$0xf] %v838_v40  ;;  %v844_v49 = vsel %vm13128_vm11, %v209_v26, %v843_v41  ;;  %vm13144_vm12 = vmor %vm1160_vm7, %vm1161_vm8  ;;  %v851_v16 = vsel %vm13128_vm11, %v226_v3, %v850_v0 }
  0x3d   :  { %845 = vst [vmem:[#allocation2 + $0x14] sm:$0x1] %v844_v49  ;;  %v1176_v6 = vsel %vm13144_vm12, %v1171_v62, %v1175_v46  ;;  %v1186_v8 = vsel %vm13144_vm12, %v1181_v63, %v1185_v48  ;;  %848 = vst [vmem:[#allocation2 + $0x18] sm:$0xf] %v847_v5 }
  0x3e   :  { %v10305_v11 = vcombine.low %v1176_v6, %v1186_v8  ;;  %849 = vst.msk [vmem:[#allocation2 + $0x1c] sm:$0xf] %vm80_vm2, %v225_v15  ;;  %852 = vst [vmem:[#allocation2 + $0x20] sm:$0x1] %v851_v16  ;;  %v234_v16 = vrot.slane %v13148_v1, 4 }
  0x3f   :  { %855 = vst [vmem:[#allocation2 + $0x24] sm:$0xf] %v854_v28  ;;  %vm13615_vm0 = vmor %vm3066_vm14, %vm3067_vm15 }
  0x40   :  { %11412 = vmatprep.mubr.msk.bf16.mxu1 %vm2029_vm13, %v10305_v11 }
  0x42   :  { %v1066_v13 = vld [vmem:[#allocation2 + $0x10] sm:$0xf] }
  0x43   :  { %v1065_v12 = vld [vmem:[#allocation2 + $0xc] sm:$0xf]  ;;  %v1197_v22 = vshll.u32 %v1066_v13, 16  ;;  %v1201_v23 = vshrl.u32 %v1066_v13, 16  ;;  %v13163_v25 = vld [vmem:[#allocation2 + $0x10] sm:$0xf] }
  0x44   :  { %v4521_v14 = vld [vmem:[#allocation2 + $0xc] sm:$0xf]  ;;  %v1188_v18 = vshrl.u32 %v1065_v12, 16  ;;  %v1191_v19 = vshll.u32 %v1065_v12, 16  ;;  %v1129_v24 = vld [vmem:[#allocation2 + $0x14] sm:$0x1] }
  0x45   :  { %v4618_v26 = vshrl.u32 %v4521_v14, 16  ;;  %v1199_v31 = vrot.slane %v1197_v22, 5  ;;  %v1203_v32 = vrot.slane %v1201_v23, 4  ;;  %v13167_v33 = vld [vmem:[#allocation2 + $0x14] sm:$0x1]  ;;  %v1207_v34 = vshll.u32 %v1129_v24, 16 }
  0x46   :  { %v1190_v29 = vrot.slane %v1188_v18, 4  ;;  %v1193_v30 = vrot.slane %v1191_v19, 5  ;;  %v4621_v36 = vshll.u32 %v4521_v14, 16  ;;  %v4627_v40 = vshll.u32 %v13163_v25, 16  ;;  %v4524_v45 = vld [vmem:[#allocation2 + $0x18] sm:$0xf] }
  0x47   :  { %v4620_v35 = vrot.slane %v4618_v26, 4  ;;  %v1204_v39 = vor.u32 %v1203_v32, %v1199_v31  ;;  %v4631_v41 = vshrl.u32 %v13163_v25, 16  ;;  %v1209_v42 = vrot.slane %v1207_v34, 5  ;;  %v4525_v52 = vld [vmem:[#allocation2 + $0x1c] sm:$0xf] }
  0x48   :  { %v1194_v38 = vor.u32 %v1193_v30, %v1190_v29  ;;  %v4623_v43 = vrot.slane %v4621_v36, 5  ;;  %v4637_v44 = vshll.u32 %v13167_v33, 16  ;;  %v4629_v48 = vrot.slane %v4627_v40, 5  ;;  %v4526_v53 = vld [vmem:[#allocation2 + $0x20] sm:$0x1] }
  0x49   :  { %v1205_v47 = vrot.slane %v1204_v39, 4  ;;  %v4633_v49 = vrot.slane %v4631_v41, 4  ;;  %v4642_v58 = vshrl.u32 %v4524_v45, 16  ;;  %v4645_v62 = vshll.u32 %v4524_v45, 16  ;;  %v1067_v6 = vld [vmem:[#allocation2 + $0x18] sm:$0xf] }
  0x4a   :  { %v1195_v46 = vrot.slane %v1194_v38, 4  ;;  %v4624_v50 = vor.u32 %v4623_v43, %v4620_v35  ;;  %v4639_v51 = vrot.slane %v4637_v44, 5  ;;  %v4651_v63 = vshll.u32 %v4525_v52, 16  ;;  %v1068_v11 = vld [vmem:[#allocation2 + $0x1c] sm:$0xf] }
  0x4b   :  { %v1210_v55 = vsel %vm13144_vm12, %v1205_v47, %v1209_v42  ;;  %v4634_v56 = vor.u32 %v4633_v49, %v4629_v48  ;;  %v4644_v2 = vrot.slane %v4642_v58, 4  ;;  %v4655_v3 = vshrl.u32 %v4525_v52, 16  ;;  %v1130_v15 = vld [vmem:[#allocation2 + $0x20] sm:$0x1]  ;;  %v857_v40 = vld [vmem:[#allocation2 + $0x2c] sm:$0x1] }
  0x4c   :  { %v1200_v54 = vsel %vm13144_vm12, %v1195_v46, %v1199_v31  ;;  %v4625_v61 = vrot.slane %v4624_v50, 4  ;;  %v4661_v5 = vshll.u32 %v4526_v53, 16  ;;  %v4647_v9 = vrot.slane %v4645_v62, 5  ;;  %v4527_v45 = vld [vmem:[#allocation2 + $0x24] sm:$0xf] }
  0x4d   :  { %v10306_v60 = vcombine.low %v1200_v54, %v1210_v55  ;;  %v4635_v0 = vrot.slane %v4634_v56, 4  ;;  %v4653_v10 = vrot.slane %v4651_v63, 5  ;;  %v236_v12 = vshrl.u32 %v21_v59, 16  ;;  %v22_v50 = vld [vmem:[%s15969_s0 + $0x18] sm:$0xf] }
  0x4e   :  { %v4630_v8 = vsel %vm13144_vm12, %v4625_v61, %v4629_v48  ;;  %v4657_v14 = vrot.slane %v4655_v3, 4  ;;  %v239_v18 = vshll.u32 %v21_v59, 16  ;;  %v4648_v22 = vor.u32 %v4647_v9, %v4644_v2  ;;  %v23_v55 = vld [vmem:[%s15969_s0 + $0x1c] sm:$0xf]  ;;  %v24_v2 = vld [vmem:[%s15969_s0 + $0x20] sm:$0xf] }
  0x4f   :  { %11413 = vmatmul.mubr.msk.bf16.vlgmr.msra.gmra.mrb[0].mxu1 %vm2029_vm13, %v10306_v60  ;;  %v4640_v13 = vsel %vm13144_vm12, %v4635_v0, %v4639_v51  ;;  %v4663_v23 = vrot.slane %v4661_v5, 5  ;;  %v1212_v24 = vshrl.u32 %v1067_v6, 16  ;;  %v1215_v28 = vshll.u32 %v1067_v6, 16 }
  0x50   :  { %11477 = vmatpush3.bf16.msra.mxu1 %v13098_v17  ;;  %v10596_v19 = vcombine.low %v4630_v8, %v4640_v13  ;;  %v4658_v26 = vor.u32 %v4657_v14, %v4653_v10  ;;  %v1221_v29 = vshll.u32 %v1068_v11, 16  ;;  %v1225_v30 = vshrl.u32 %v1068_v11, 16  ;;  %v1069_v17 = vld [vmem:[#allocation2 + $0x24] sm:$0xf]  ;;  %v860_v14 = vld [vmem:[#allocation2 + $0x30] sm:$0xf] }
  0x51   :  { %v4649_v31 = vrot.slane %v4648_v22, 4  ;;  %v1214_v32 = vrot.slane %v1212_v24, 4  ;;  %v1231_v34 = vshll.u32 %v1130_v15, 16  ;;  %v238_v35 = vrot.slane %v236_v12, 7  ;;  %v864_v24 = vld [vmem:[#allocation2 + $0x38] sm:$0x1] }
  0x52   :  { %11676 = vmatprep.mubr.msk.bf16.mxu0 %vm2029_vm13, %v10596_v19  ;;  %v4659_v36 = vrot.slane %v4658_v26, 4  ;;  %v1217_v38 = vrot.slane %v1215_v28, 5  ;;  %v1223_v39 = vrot.slane %v1221_v29, 5  ;;  %v1227_v1 = vrot.slane %v1225_v30, 4  ;;  %v25_v19 = vld [vmem:[%s15969_s0 + $0x24] sm:$0xf] }
  0x53   :  { %v4654_v41 = vsel %vm13144_vm12, %v4649_v31, %v4653_v10  ;;  %v1233_v42 = vrot.slane %v1231_v34, 5  ;;  %v241_v43 = vor.u32 %v239_v18, %v238_v35  ;;  %v243_v44 = vrot.slane %v238_v35, 4 }
  0x54   :  { %v4664_v46 = vsel %vm13144_vm12, %v4659_v36, %v4663_v23  ;;  %v1218_v47 = vor.u32 %v1217_v38, %v1214_v32  ;;  %v1228_v48 = vor.u32 %v1227_v1, %v1223_v39  ;;  %v1236_v49 = vshrl.u32 %v1069_v17, 16 }
  0x55   :  { %v10597_v51 = vcombine.low %v4654_v41, %v4664_v46  ;;  %v242_v52 = vsel %vm13108_vm9, %v234_v16, %v241_v43  ;;  %v858_v53 = vsel %vm13128_vm11, %v243_v44, %v857_v40  ;;  %v1239_v54 = vshll.u32 %v1069_v17, 16 }
  0x56   :  { %v1219_v56 = vrot.slane %v1218_v47, 4  ;;  %v1229_v58 = vrot.slane %v1228_v48, 4  ;;  %856 = vst.msk [vmem:[#allocation2 + $0x28] sm:$0xf] %vm80_vm2, %v242_v52  ;;  %859 = vst [vmem:[#allocation2 + $0x2c] sm:$0x1] %v858_v53 }
  0x57   :  { %v1238_v59 = vrot.slane %v1236_v49, 4  ;;  %v4666_v60 = vshrl.u32 %v4527_v45, 16  ;;  %11677 = vmatmul.mubr.msk.bf16.vlgmr.msra.gmra.mrb[0].mxu0 %vm2029_vm13, %v10597_v51  ;;  %v1241_v61 = vrot.slane %v1239_v54, 5  ;;  %v4669_v62 = vshll.u32 %v4527_v45, 16  ;;  %v867_v47 = vld [vmem:[#allocation2 + $0x3c] sm:$0xf] }
  0x58   :  { %v245_v63 = vshrl.u32 %v22_v50, 16  ;;  %v248_v0 = vshll.u32 %v22_v50, 16  ;;  %11741 = vmatpush3.bf16.msra.mxu0 %v13113_v21  ;;  %v1224_v3 = vsel %vm13144_vm12, %v1219_v56, %v1223_v39  ;;  %v1234_v5 = vsel %vm13144_vm12, %v1229_v58, %v1233_v42  ;;  %v13225_v52 = vld [vmem:[%s15969_s0 + $0x28] sm:$0xf] }
  0x59   :  { %v253_v6 = vshrl.u32 %v23_v55, 16  ;;  %v10307_v8 = vcombine.low %v1224_v3, %v1234_v5  ;;  %v4668_v9 = vrot.slane %v4666_v60, 4  ;;  %v4671_v10 = vrot.slane %v4669_v62, 5 }
  0x5a   :  { %v247_v11 = vrot.slane %v245_v63, 7  ;;  %v256_v13 = vshll.u32 %v23_v55, 16  ;;  %v262_v15 = vshrl.u32 %v24_v2, 16  ;;  %v1242_v16 = vor.u32 %v1241_v61, %v1238_v59 }
  0x5b   :  { %v255_v12 = vrot.slane %v253_v6, 7  ;;  %11416 = vmatprep.mubr.msk.bf16.mxu1 %vm2029_vm13, %v10307_v8  ;;  %v265_v28 = vshll.u32 %v24_v2, 16  ;;  %v4672_v32 = vor.u32 %v4671_v10, %v4668_v9  ;;  %v270_v39 = vshrl.u32 %v25_v19, 16 }
  0x5c   :  { %v250_v18 = vor.u32 %v248_v0, %v247_v11  ;;  %v251_v21 = vrot.slane %v247_v11, 4  ;;  %v264_v26 = vrot.slane %v262_v15, 7  ;;  %v1243_v43 = vrot.slane %v1242_v16, 4  ;;  %v13240_v15 = vld [vmem:[%s15969_s0 + $0x2c] sm:$0xf] }
  0x5d   :  { %v258_v22 = vor.u32 %v256_v13, %v255_v12  ;;  %v260_v23 = vrot.slane %v255_v12, 4  ;;  %v1070_v29 = vld [vmem:[#allocation2 + $0x28] sm:$0xf]  ;;  %v1131_v30 = vld [vmem:[#allocation2 + $0x2c] sm:$0x1]  ;;  %v4673_v48 = vrot.slane %v4672_v32, 4 }
  0x5e   :  { %v4528_v31 = vld [vmem:[#allocation2 + $0x28] sm:$0xf]  ;;  %v861_v34 = vsel %vm13117_vm10, %v250_v18, %v860_v14  ;;  %v1245_v35 = vshll.u32 %v1070_v29, 16  ;;  %v1249_v17 = vshrl.u32 %v1070_v29, 16  ;;  %v1255_v36 = vshll.u32 %v1131_v30, 16 }
  0x5f   :  { %v4529_v38 = vld [vmem:[#allocation2 + $0x2c] sm:$0x1]  ;;  %862 = vst [vmem:[#allocation2 + $0x30] sm:$0xf] %v861_v34  ;;  %v4675_v1 = vshll.u32 %v4528_v31, 16  ;;  %v4679_v40 = vshrl.u32 %v4528_v31, 16  ;;  %v259_v42 = vsel %vm13108_vm9, %v251_v21, %v258_v22  ;;  %v865_v46 = vsel %vm13128_vm11, %v260_v23, %v864_v24 }
  0x60   :  { %v4685_v41 = vshll.u32 %v4529_v38, 16  ;;  %v1247_v44 = vrot.slane %v1245_v35, 5  ;;  %v1251_v45 = vrot.slane %v1249_v17, 4  ;;  %863 = vst.msk [vmem:[#allocation2 + $0x34] sm:$0xf] %vm80_vm2, %v259_v42  ;;  %v267_v51 = vor.u32 %v265_v28, %v264_v26 }
  0x61   :  { %v4677_v49 = vrot.slane %v4675_v1, 5  ;;  %v4681_v50 = vrot.slane %v4679_v40, 4  ;;  %866 = vst [vmem:[#allocation2 + $0x38] sm:$0x1] %v865_v46  ;;  %v1257_v54 = vrot.slane %v1255_v36, 5  ;;  %v272_v56 = vrot.slane %v270_v39, 7 }
  0x62   :  { %v1252_v53 = vor.u32 %v1251_v45, %v1247_v44  ;;  %v4687_v55 = vrot.slane %v4685_v41, 5  ;;  %v268_v59 = vrot.slane %v264_v26, 4  ;;  %v273_v60 = vshll.u32 %v25_v19, 16  ;;  %v871_v24 = vld [vmem:[#allocation2 + $0x44] sm:$0x1] }
  0x63   :  { %v4682_v58 = vor.u32 %v4681_v50, %v4677_v49  ;;  %v868_v61 = vsel %vm13117_vm10, %v267_v51, %v867_v47  ;;  %v1248_v62 = vsel %vm13144_vm12, %v1243_v43, %v1247_v44  ;;  %v277_v0 = vrot.slane %v272_v56, 4 }
  0x64   :  { %v1253_v63 = vrot.slane %v1252_v53, 4  ;;  %869 = vst [vmem:[#allocation2 + $0x3c] sm:$0xf] %v868_v61  ;;  %v279_v2 = vshrl.u32 %v13225_v52, 16  ;;  %v4678_v3 = vsel %vm13144_vm12, %v4673_v48, %v4677_v49  ;;  %v275_v9 = vor.u32 %v273_v60, %v272_v56 }
  0x65   :  { %v4683_v5 = vrot.slane %v4682_v58, 4  ;;  %v282_v10 = vshll.u32 %v13225_v52, 16  ;;  %v287_v45 = vshrl.u32 %v13240_v15, 16  ;;  %v872_v49 = vsel %vm13128_vm11, %v277_v0, %v871_v24  ;;  %v31_v52 = vld [vmem:[%s15969_s0 + $0x3c] sm:$0xf] }
  0x66   :  { %v4530_v6 = vld [vmem:[#allocation2 + $0x30] sm:$0xf]  ;;  %v1258_v11 = vsel %vm13144_vm12, %v1253_v63, %v1257_v54  ;;  %v276_v23 = vsel %vm13108_vm9, %v268_v59, %v275_v9  ;;  %873 = vst [vmem:[#allocation2 + $0x44] sm:$0x1] %v872_v49 }
  0x67   :  { %v1071_v8 = vld [vmem:[#allocation2 + $0x30] sm:$0xf]  ;;  %v4690_v12 = vshrl.u32 %v4530_v6, 16  ;;  %v4693_v13 = vshll.u32 %v4530_v6, 16  ;;  %v10308_v16 = vcombine.low %v1248_v62, %v1258_v11  ;;  %v4688_v18 = vsel %vm13144_vm12, %v4683_v5, %v4687_v55  ;;  %v4531_v21 = vld [vmem:[#allocation2 + $0x34] sm:$0xf] }
  0x68   :  { %v1260_v14 = vshrl.u32 %v1071_v8, 16  ;;  %v1072_v19 = vld [vmem:[#allocation2 + $0x34] sm:$0xf]  ;;  %v1263_v22 = vshll.u32 %v1071_v8, 16  ;;  %v10598_v26 = vcombine.low %v4678_v3, %v4688_v18  ;;  %v4532_v28 = vld [vmem:[#allocation2 + $0x38] sm:$0x1] }
  0x69   :  { %v4692_v29 = vrot.slane %v4690_v12, 4  ;;  %v4695_v30 = vrot.slane %v4693_v13, 5  ;;  %v4699_v31 = vshll.u32 %v4531_v21, 16  ;;  %870 = vst.msk [vmem:[#allocation2 + $0x40] sm:$0xf] %vm80_vm2, %v276_v23  ;;  %11417 = vmatmul.mubr.msk.bf16.gmra.mrb[4].mxu1 %vm2029_vm13, %v10308_v16  ;;  %v4703_v32 = vshrl.u32 %v4531_v21, 16 }
  0x6a   :  { %v4709_v34 = vshll.u32 %v4532_v28, 16  ;;  %v1132_v35 = vld [vmem:[#allocation2 + $0x38] sm:$0x1]  ;;  %v1262_v17 = vrot.slane %v1260_v14, 4  ;;  %v1265_v36 = vrot.slane %v1263_v22, 5  ;;  %11680 = vmatprep.mubr.msk.bf16.mxu0 %vm2029_vm13, %v10598_v26  ;;  %v1269_v1 = vshll.u32 %v1072_v19, 16 }
  0x6b   :  { %v4696_v38 = vor.u32 %v4695_v30, %v4692_v29  ;;  %v4701_v39 = vrot.slane %v4699_v31, 5  ;;  %v1273_v40 = vshrl.u32 %v1072_v19, 16  ;;  %v4705_v41 = vrot.slane %v4703_v32, 4  ;;  %v1073_v44 = vld [vmem:[#allocation2 + $0x3c] sm:$0xf] }
  0x6c   :  { %v1266_v42 = vor.u32 %v1265_v36, %v1262_v17  ;;  %v1279_v43 = vshll.u32 %v1132_v35, 16  ;;  %v1271_v47 = vrot.slane %v1269_v1, 5  ;;  %v4533_v50 = vld [vmem:[#allocation2 + $0x3c] sm:$0xf]  ;;  %v4711_v53 = vrot.slane %v4709_v34, 5 }
  0x6d   :  { %v4697_v46 = vrot.slane %v4696_v38, 4  ;;  %v1275_v48 = vrot.slane %v1273_v40, 4  ;;  %v4706_v51 = vor.u32 %v4705_v41, %v4701_v39  ;;  %v1284_v55 = vshrl.u32 %v1073_v44, 16  ;;  %v1133_v29 = vld [vmem:[#allocation2 + $0x44] sm:$0x1] }
  0x6e   :  { %v1267_v54 = vrot.slane %v1266_v42, 4  ;;  %v1281_v58 = vrot.slane %v1279_v43, 5  ;;  %v1287_v59 = vshll.u32 %v1073_v44, 16  ;;  %v4714_v60 = vshrl.u32 %v4533_v50, 16  ;;  %v4535_v31 = vld [vmem:[#allocation2 + $0x44] sm:$0x1] }
  0x6f   :  { %v1276_v56 = vor.u32 %v1275_v48, %v1271_v47  ;;  %v4702_v61 = vsel %vm13144_vm12, %v4697_v46, %v4701_v39  ;;  %v4707_v62 = vrot.slane %v4706_v51, 4  ;;  %v1286_v5 = vrot.slane %v1284_v55, 4  ;;  %v874_v38 = vld [vmem:[#allocation2 + $0x48] sm:$0xf]  ;;  %v28_v39 = vld [vmem:[%s15969_s0 + $0x30] sm:$0xf] }
  0x70   :  { %v1272_v63 = vsel %vm13144_vm12, %v1267_v54, %v1271_v47  ;;  %v1074_v3 = vld [vmem:[#allocation2 + $0x40] sm:$0xf]  ;;  %v1289_v8 = vrot.slane %v1287_v59, 5  ;;  %v4716_v13 = vrot.slane %v4714_v60, 4  ;;  %v4717_v14 = vshll.u32 %v4533_v50, 16 }
  0x71   :  { %v4534_v0 = vld [vmem:[#allocation2 + $0x40] sm:$0xf]  ;;  %v1277_v6 = vrot.slane %v1276_v56, 4  ;;  %v1293_v9 = vshll.u32 %v1074_v3, 16  ;;  %v1297_v11 = vshrl.u32 %v1074_v3, 16  ;;  %v4712_v12 = vsel %vm13144_vm12, %v4707_v62, %v4711_v53 }
  0x72   :  { %v4723_v16 = vshll.u32 %v4534_v0, 16  ;;  %v10599_v18 = vcombine.low %v4702_v61, %v4712_v12  ;;  %v1290_v19 = vor.u32 %v1289_v8, %v1286_v5  ;;  %v4719_v26 = vrot.slane %v4717_v14, 5  ;;  %v878_v43 = vld [vmem:[#allocation2 + $0x50] sm:$0x1]  ;;  %v29_v44 = vld [vmem:[%s15969_s0 + $0x34] sm:$0xf] }
  0x73   :  { %v1282_v21 = vsel %vm13144_vm12, %v1277_v6, %v1281_v58  ;;  %v1295_v22 = vrot.slane %v1293_v9, 5  ;;  %v1299_v24 = vrot.slane %v1297_v11, 4  ;;  %v4727_v32 = vshrl.u32 %v4534_v0, 16  ;;  %v30_v50 = vld [vmem:[%s15969_s0 + $0x38] sm:$0xf] }
  0x74   :  { %v10309_v23 = vcombine.low %v1272_v63, %v1282_v21  ;;  %v4725_v28 = vrot.slane %v4723_v16, 5  ;;  %11681 = vmatmul.mubr.msk.bf16.gmra.mrb[4].mxu0 %vm2029_vm13, %v10599_v18  ;;  %v1291_v30 = vrot.slane %v1290_v19, 4  ;;  %v1303_v35 = vshll.u32 %v1133_v29, 16  ;;  %v881_v63 = vld [vmem:[#allocation2 + $0x54] sm:$0xf] }
  0x75   :  { %v1300_v34 = vor.u32 %v1299_v24, %v1295_v22  ;;  %v4720_v17 = vor.u32 %v4719_v26, %v4716_v13  ;;  %v4733_v36 = vshll.u32 %v4535_v31, 16  ;;  %v4729_v40 = vrot.slane %v4727_v32, 4  ;;  %v885_v11 = vld [vmem:[#allocation2 + $0x5c] sm:$0x1]  ;;  %v888_v21 = vld [vmem:[#allocation2 + $0x60] sm:$0xf] }
  0x76   :  { %11420 = vmatprep.mubr.msk.bf16.mxu1 %vm2029_vm13, %v10309_v23  ;;  %v1296_v1 = vsel %vm13144_vm12, %v1291_v30, %v1295_v22  ;;  %v281_v41 = vrot.slane %v279_v2, 7  ;;  %v289_v42 = vrot.slane %v287_v45, 7  ;;  %v1305_v47 = vrot.slane %v1303_v35, 5  ;;  %v13301_v26 = vld [vmem:[%s15969_s0 + $0x44] sm:$0xf] }
  0x77   :  { %v1301_v46 = vrot.slane %v1300_v34, 4  ;;  %v4721_v48 = vrot.slane %v4720_v17, 4  ;;  %v4735_v49 = vrot.slane %v4733_v36, 5  ;;  %v4730_v51 = vor.u32 %v4729_v40, %v4725_v28 }
  0x78   :  { %v284_v53 = vor.u32 %v282_v10, %v281_v41  ;;  %v285_v54 = vrot.slane %v281_v41, 4  ;;  %v290_v2 = vshll.u32 %v13240_v15, 16  ;;  %v294_v56 = vrot.slane %v289_v42, 4  ;;  %v32_v10 = vld [vmem:[%s15969_s0 + $0x40] sm:$0xf] }
  0x79   :  { %v1306_v45 = vsel %vm13144_vm12, %v1301_v46, %v1305_v47  ;;  %v4726_v55 = vsel %vm13144_vm12, %v4721_v48, %v4725_v28  ;;  %v296_v58 = vshrl.u32 %v28_v39, 16  ;;  %v4731_v60 = vrot.slane %v4730_v51, 4 }
  0x7a   :  { %v10310_v59 = vcombine.low %v1296_v1, %v1306_v45  ;;  %v292_v61 = vor.u32 %v290_v2, %v289_v42  ;;  %v875_v62 = vsel %vm13117_vm10, %v284_v53, %v874_v38  ;;  %v879_v15 = vsel %vm13128_vm11, %v294_v56, %v878_v43  ;;  %v892_v1 = vld [vmem:[#allocation2 + $0x68] sm:$0x1] }
  0x7b   :  { %876 = vst [vmem:[#allocation2 + $0x48] sm:$0xf] %v875_v62  ;;  %v298_v3 = vrot.slane %v296_v58, 7  ;;  %v299_v5 = vshll.u32 %v28_v39, 16  ;;  %v304_v0 = vshrl.u32 %v29_v44, 16  ;;  %v4736_v6 = vsel %vm13144_vm12, %v4731_v60, %v4735_v49 }
  0x7c   :  { %11421 = vmatmul.mubr.msk.bf16.gmra.mrb[8].mxu1 %vm2029_vm13, %v10310_v59  ;;  %v293_v8 = vsel %vm13108_vm9, %v285_v54, %v292_v61  ;;  %880 = vst [vmem:[#allocation2 + $0x50] sm:$0x1] %v879_v15  ;;  %v307_v9 = vshll.u32 %v29_v44, 16  ;;  %v313_v12 = vshrl.u32 %v30_v50, 16  ;;  %v10600_v13 = vcombine.low %v4726_v55, %v4736_v6 }
  0x7d   :  { %877 = vst.msk [vmem:[#allocation2 + $0x4c] sm:$0xf] %vm80_vm2, %v293_v8  ;;  %v301_v14 = vor.u32 %v299_v5, %v298_v3  ;;  %v302_v16 = vrot.slane %v298_v3, 4  ;;  %v306_v18 = vrot.slane %v304_v0, 7  ;;  %v316_v22 = vshll.u32 %v30_v50, 16 }
  0x7e   :  { %v315_v19 = vrot.slane %v313_v12, 7  ;;  %v321_v23 = vshrl.u32 %v31_v52, 16  ;;  %v324_v24 = vshll.u32 %v31_v52, 16  ;;  %11684 = vmatprep.mubr.msk.bf16.mxu0 %vm2029_vm13, %v10600_v13  ;;  %v330_v31 = vshrl.u32 %v32_v10, 16  ;;  %v895_v5 = vld [vmem:[#allocation2 + $0x6c] sm:$0xf] }
  0x7f   :  { %v309_v28 = vor.u32 %v307_v9, %v306_v18  ;;  %v311_v29 = vrot.slane %v306_v18, 4  ;;  %v882_v30 = vsel %vm13117_vm10, %v301_v14, %v881_v63  ;;  %v333_v17 = vshll.u32 %v32_v10, 16 }
  0x80   :  { %883 = vst [vmem:[#allocation2 + $0x54] sm:$0xf] %v882_v30  ;;  %v318_v32 = vor.u32 %v316_v22, %v315_v19  ;;  %v319_v34 = vrot.slane %v315_v19, 4  ;;  %v323_v35 = vrot.slane %v321_v23, 7  ;;  %v6065_v36 = vrot.slane %v13163_v25, 5 }
  0x81   :  { %v310_v38 = vsel %vm13108_vm9, %v302_v16, %v309_v28  ;;  %v886_v39 = vsel %vm13128_vm11, %v311_v29, %v885_v11  ;;  %v13311_v40 = vrot.slane %v330_v31, 7  ;;  %v338_v47 = vshrl.u32 %v13301_v26, 16 }
  0x82   :  { %v4536_v41 = vld [vmem:[#allocation2 + $0x48] sm:$0xf]  ;;  %884 = vst.msk [vmem:[#allocation2 + $0x58] sm:$0xf] %vm80_vm2, %v310_v38  ;;  %887 = vst [vmem:[#allocation2 + $0x5c] sm:$0x1] %v886_v39  ;;  %v326_v43 = vor.u32 %v324_v24, %v323_v35  ;;  %v889_v46 = vsel %vm13117_vm10, %v318_v32, %v888_v21 }
  0x83   :  { %v1075_v42 = vld [vmem:[#allocation2 + $0x48] sm:$0xf]  ;;  %v328_v44 = vrot.slane %v323_v35, 4  ;;  %v4538_v48 = vld [vmem:[#allocation2 + $0x50] sm:$0x1]  ;;  %v4738_v49 = vshrl.u32 %v4536_v41, 16  ;;  %v335_v51 = vor.u32 %v333_v17, %v13311_v40 }
  0x84   :  { %v4741_v50 = vshll.u32 %v4536_v41, 16  ;;  %890 = vst [vmem:[#allocation2 + $0x60] sm:$0xf] %v889_v46  ;;  %v341_v53 = vshll.u32 %v13301_v26, 16  ;;  %v4537_v54 = vld [vmem:[#allocation2 + $0x4c] sm:$0xf]  ;;  %v327_v56 = vsel %vm13108_vm9, %v319_v34, %v326_v43 }
  0x85   :  { %v4757_v2 = vshll.u32 %v4538_v48, 16  ;;  %v1076_v45 = vld [vmem:[#allocation2 + $0x4c] sm:$0xf]  ;;  %v1308_v55 = vshrl.u32 %v1075_v42, 16  ;;  %v893_v58 = vsel %vm13128_vm11, %v328_v44, %v892_v1  ;;  %v4740_v59 = vrot.slane %v4738_v49, 4 }
  0x86   :  { %v4743_v60 = vrot.slane %v4741_v50, 5  ;;  %v4747_v61 = vshll.u32 %v4537_v54, 16  ;;  %v4751_v62 = vshrl.u32 %v4537_v54, 16  ;;  %v1134_v63 = vld [vmem:[#allocation2 + $0x50] sm:$0x1]  ;;  %v1311_v15 = vshll.u32 %v1075_v42, 16 }
  0x87   :  { %891 = vst.msk [vmem:[#allocation2 + $0x64] sm:$0xf] %vm80_vm2, %v327_v56  ;;  %894 = vst [vmem:[#allocation2 + $0x68] sm:$0x1] %v893_v58  ;;  %v4759_v52 = vrot.slane %v4757_v2, 5  ;;  %v1310_v10 = vrot.slane %v1308_v55, 4  ;;  %v896_v24 = vsel %vm13117_vm10, %v335_v51, %v895_v5 }
  0x88   :  { %v1317_v3 = vshll.u32 %v1076_v45, 16  ;;  %v4744_v0 = vor.u32 %v4743_v60, %v4740_v59  ;;  %v4749_v6 = vrot.slane %v4747_v61, 5  ;;  %v4753_v8 = vrot.slane %v4751_v62, 4  ;;  %v1077_v11 = vld [vmem:[#allocation2 + $0x54] sm:$0xf] }
  0x89   :  { %v1321_v9 = vshrl.u32 %v1076_v45, 16  ;;  %v1313_v12 = vrot.slane %v1311_v15, 5  ;;  %v1327_v14 = vshll.u32 %v1134_v63, 16  ;;  %v1332_v16 = vshrl.u32 %v1077_v11, 16  ;;  %v1078_v22 = vld [vmem:[#allocation2 + $0x58] sm:$0xf] }
  0x8a   :  { %v1319_v13 = vrot.slane %v1317_v3, 5  ;;  %v4745_v18 = vrot.slane %v4744_v0, 4  ;;  %v4754_v21 = vor.u32 %v4753_v8, %v4749_v6  ;;  %v1135_v23 = vld [vmem:[#allocation2 + $0x5c] sm:$0x1]  ;;  %v1335_v31 = vshll.u32 %v1077_v11, 16 }
  0x8b   :  { %v1323_v19 = vrot.slane %v1321_v9, 4  ;;  %v1314_v28 = vor.u32 %v1313_v12, %v1310_v10  ;;  %v1329_v29 = vrot.slane %v1327_v14, 5  ;;  %v1334_v30 = vrot.slane %v1332_v16, 4  ;;  %v4539_v32 = vld [vmem:[#allocation2 + $0x54] sm:$0xf] }
  0x8c   :  { %897 = vst [vmem:[#allocation2 + $0x6c] sm:$0xf] %v896_v24  ;;  %v4750_v34 = vsel %vm13144_vm12, %v4745_v18, %v4749_v6  ;;  %v4755_v35 = vrot.slane %v4754_v21, 4  ;;  %v1341_v38 = vshll.u32 %v1078_v22, 16  ;;  %v1337_v1 = vrot.slane %v1335_v31, 5 }
  0x8d   :  { %v1324_v17 = vor.u32 %v1323_v19, %v1319_v13  ;;  %v1315_v39 = vrot.slane %v1314_v28, 4  ;;  %v1345_v41 = vshrl.u32 %v1078_v22, 16  ;;  %v1351_v42 = vshll.u32 %v1135_v23, 16  ;;  %v4540_v48 = vld [vmem:[#allocation2 + $0x58] sm:$0xf] }
  0x8e   :  { %v4760_v43 = vsel %vm13144_vm12, %v4755_v35, %v4759_v52  ;;  %v1343_v46 = vrot.slane %v1341_v38, 5  ;;  %v4762_v49 = vshrl.u32 %v4539_v32, 16  ;;  %v1338_v54 = vor.u32 %v1337_v1, %v1334_v30  ;;  %v4541_v45 = vld [vmem:[#allocation2 + $0x5c] sm:$0x1]  ;;  %v4542_v55 = vld [vmem:[#allocation2 + $0x60] sm:$0xf] }
  0x8f   :  { %v1325_v44 = vrot.slane %v1324_v17, 4  ;;  %v10601_v50 = vcombine.low %v4750_v34, %v4760_v43  ;;  %v1320_v51 = vsel %vm13144_vm12, %v1315_v39, %v1319_v13  ;;  %v1347_v2 = vrot.slane %v1345_v41, 4  ;;  %v4543_v5 = vld [vmem:[#allocation2 + $0x64] sm:$0xf]  ;;  %v4544_v11 = vld [vmem:[#allocation2 + $0x68] sm:$0x1] }
  0x90   :  { %v1353_v58 = vrot.slane %v1351_v42, 5  ;;  %v4764_v59 = vrot.slane %v4762_v49, 4  ;;  %v4765_v60 = vshll.u32 %v4539_v32, 16  ;;  %v1339_v62 = vrot.slane %v1338_v54, 4  ;;  %v1079_v21 = vld [vmem:[#allocation2 + $0x60] sm:$0xf] }
  0x91   :  { %v1330_v56 = vsel %vm13144_vm12, %v1325_v44, %v1329_v29  ;;  %11685 = vmatmul.mubr.msk.bf16.gmra.mrb[8].mxu0 %vm2029_vm13, %v10601_v50  ;;  %v1348_v63 = vor.u32 %v1347_v2, %v1343_v46  ;;  %v4771_v52 = vshll.u32 %v4540_v48, 16  ;;  %v4775_v15 = vshrl.u32 %v4540_v48, 16  ;;  %v1080_v32 = vld [vmem:[#allocation2 + $0x64] sm:$0xf]  ;;  %v1136_v38 = vld [vmem:[#allocation2 + $0x68] sm:$0x1] }
  0x92   :  { %v10311_v61 = vcombine.low %v1320_v51, %v1330_v56  ;;  %v4767_v10 = vrot.slane %v4765_v60, 5  ;;  %v4781_v3 = vshll.u32 %v4541_v45, 16  ;;  %v4786_v0 = vshrl.u32 %v4542_v55, 16 }
  0x93   :  { %v1344_v6 = vsel %vm13144_vm12, %v1339_v62, %v1343_v46  ;;  %v1349_v8 = vrot.slane %v1348_v63, 4  ;;  %v4773_v9 = vrot.slane %v4771_v52, 5  ;;  %v4789_v12 = vshll.u32 %v4542_v55, 16  ;;  %v1081_v45 = vld [vmem:[#allocation2 + $0x6c] sm:$0xf] }
  0x94   :  { %11424 = vmatprep.mubr.msk.bf16.mxu1 %vm2029_vm13, %v10311_v61  ;;  %v4768_v13 = vor.u32 %v4767_v10, %v4764_v59  ;;  %v4777_v14 = vrot.slane %v4775_v15, 4  ;;  %v4783_v16 = vrot.slane %v4781_v3, 5  ;;  %v4788_v18 = vrot.slane %v4786_v0, 4  ;;  %v4545_v60 = vld [vmem:[#allocation2 + $0x6c] sm:$0xf] }
  0x95   :  { %v1354_v19 = vsel %vm13144_vm12, %v1349_v8, %v1353_v58  ;;  %v4791_v22 = vrot.slane %v4789_v12, 5  ;;  %v4795_v23 = vshll.u32 %v4543_v5, 16  ;;  %v4799_v24 = vshrl.u32 %v4543_v5, 16  ;;  %v899_v3 = vld [vmem:[#allocation2 + $0x74] sm:$0x1] }
  0x96   :  { %v10312_v28 = vcombine.low %v1344_v6, %v1354_v19  ;;  %v4769_v29 = vrot.slane %v4768_v13, 4  ;;  %v4778_v30 = vor.u32 %v4777_v14, %v4773_v9  ;;  %v4805_v31 = vshll.u32 %v4544_v11, 16  ;;  %v34_v12 = vld [vmem:[%s15969_s0 + $0x48] sm:$0xf] }
  0x97   :  { %v4792_v34 = vor.u32 %v4791_v22, %v4788_v18  ;;  %v4797_v35 = vrot.slane %v4795_v23, 5  ;;  %v4801_v17 = vrot.slane %v4799_v24, 4  ;;  %v1356_v39 = vshrl.u32 %v1079_v21, 16  ;;  %v36_v18 = vld [vmem:[%s15969_s0 + $0x50] sm:$0xf] }
  0x98   :  { %11425 = vmatmul.mubr.msk.bf16.gmra.mrb[12].mxu1 %vm2029_vm13, %v10312_v28  ;;  %v4774_v1 = vsel %vm13144_vm12, %v4769_v29, %v4773_v9  ;;  %v4779_v41 = vrot.slane %v4778_v30, 4  ;;  %v4807_v42 = vrot.slane %v4805_v31, 5  ;;  %v1359_v43 = vshll.u32 %v1079_v21, 16 }
  0x99   :  { %v4793_v44 = vrot.slane %v4792_v34, 4  ;;  %v4802_v46 = vor.u32 %v4801_v17, %v4797_v35  ;;  %v1358_v48 = vrot.slane %v1356_v39, 4  ;;  %v1365_v49 = vshll.u32 %v1080_v32, 16  ;;  %v37_v34 = vld [vmem:[%s15969_s0 + $0x54] sm:$0xf] }
  0x9a   :  { %v4784_v50 = vsel %vm13144_vm12, %v4779_v41, %v4783_v16  ;;  %v1361_v51 = vrot.slane %v1359_v43, 5  ;;  %v1369_v54 = vshrl.u32 %v1080_v32, 16  ;;  %v1375_v2 = vshll.u32 %v1136_v38, 16  ;;  %v906_v43 = vld [vmem:[#allocation2 + $0x80] sm:$0x1] }
  0x9b   :  { %v10602_v55 = vcombine.low %v4774_v1, %v4784_v50  ;;  %v4798_v56 = vsel %vm13144_vm12, %v4793_v44, %v4797_v35  ;;  %v4803_v58 = vrot.slane %v4802_v46, 4  ;;  %v1367_v59 = vrot.slane %v1365_v49, 5  ;;  %v902_v1 = vld [vmem:[#allocation2 + $0x78] sm:$0xf] }
  0x9c   :  { %v1362_v61 = vor.u32 %v1361_v51, %v1358_v48  ;;  %v1371_v62 = vrot.slane %v1369_v54, 4  ;;  %v1377_v63 = vrot.slane %v1375_v2, 5  ;;  %v336_v52 = vrot.slane %v13311_v40, 4  ;;  %v35_v40 = vld [vmem:[%s15969_s0 + $0x4c] sm:$0xf] }
  0x9d   :  { %11688 = vmatprep.mubr.msk.bf16.mxu0 %vm2029_vm13, %v10602_v55  ;;  %v4808_v10 = vsel %vm13144_vm12, %v4803_v58, %v4807_v42  ;;  %v340_v15 = vrot.slane %v338_v47, 7  ;;  %v1380_v5 = vshrl.u32 %v1081_v45, 16  ;;  %v1383_v0 = vshll.u32 %v1081_v45, 16  ;;  %v38_v54 = vld [vmem:[%s15969_s0 + $0x58] sm:$0xf] }
  0x9e   :  { %v10603_v6 = vcombine.low %v4798_v56, %v4808_v10  ;;  %v1363_v8 = vrot.slane %v1362_v61, 4  ;;  %v1372_v9 = vor.u32 %v1371_v62, %v1367_v59  ;;  %v4810_v11 = vshrl.u32 %v4545_v60, 16  ;;  %v10757_v56 = vld [vmem:[%s15970_s1 + $0xc] sm:$0x3]  ;;  %v909_v10 = vld [vmem:[#allocation2 + $0x84] sm:$0xf] }
  0x9f   :  { %v343_v13 = vor.u32 %v341_v53, %v340_v15  ;;  %v345_v14 = vrot.slane %v340_v15, 4  ;;  %v1382_v47 = vrot.slane %v1380_v5, 4  ;;  %v1385_v16 = vrot.slane %v1383_v0, 5  ;;  %v913_v15 = vld [vmem:[#allocation2 + $0x8c] sm:$0x1] }
  0xa0   :  { %11689 = vmatmul.mubr.msk.bf16.gmra.mrb[12].mxu0 %vm2029_vm13, %v10603_v6  ;;  %v1368_v21 = vsel %vm13144_vm12, %v1363_v8, %v1367_v59  ;;  %v1373_v19 = vrot.slane %v1372_v9, 4  ;;  %v4812_v22 = vrot.slane %v4810_v11, 4  ;;  %v4813_v23 = vshll.u32 %v4545_v60, 16 }
  0xa1   :  { %v6068_v24 = vrot.slane %v13167_v33, 5  ;;  %v344_v26 = vsel %vm13108_vm9, %v336_v52, %v343_v13  ;;  %v900_v53 = vsel %vm13128_vm11, %v345_v14, %v899_v3  ;;  %v347_v28 = vshrl.u32 %v34_v12, 16 }
  0xa2   :  { %v1378_v29 = vsel %vm13144_vm12, %v1373_v19, %v1377_v63  ;;  %898 = vst.msk [vmem:[#allocation2 + $0x70] sm:$0xf] %vm80_vm2, %v344_v26  ;;  %901 = vst [vmem:[#allocation2 + $0x74] sm:$0x1] %v900_v53  ;;  %v4815_v30 = vrot.slane %v4813_v23, 5  ;;  %v350_v31 = vshll.u32 %v34_v12, 16  ;;  %v1386_v17 = vor.u32 %v1385_v16, %v1382_v47 }
  0xa3   :  { %v355_v32 = vshrl.u32 %v35_v40, 16  ;;  %v10313_v35 = vcombine.low %v1368_v21, %v1378_v29  ;;  %v349_v38 = vrot.slane %v347_v28, 7  ;;  %v358_v39 = vshll.u32 %v35_v40, 16  ;;  %v13402_v16 = vld [vmem:[%s15969_s0 + $0x5c] sm:$0xf] }
  0xa4   :  { %v4816_v41 = vor.u32 %v4815_v30, %v4812_v22  ;;  %v364_v44 = vshrl.u32 %v36_v18, 16  ;;  %v367_v46 = vshll.u32 %v36_v18, 16  ;;  %v372_v50 = vshrl.u32 %v37_v34, 16 }
  0xa5   :  { %v357_v42 = vrot.slane %v355_v32, 7  ;;  %11428 = vmatprep.mubr.msk.bf16.mxu1 %vm2029_vm13, %v10313_v35  ;;  %v352_v48 = vor.u32 %v350_v31, %v349_v38  ;;  %v353_v49 = vrot.slane %v349_v38, 4  ;;  %v375_v51 = vshll.u32 %v37_v34, 16 }
  0xa6   :  { %v366_v55 = vrot.slane %v364_v44, 7  ;;  %v13385_v58 = vrot.slane %v1386_v17, 4  ;;  %v13387_v59 = vrot.slane %v4816_v41, 4  ;;  %v374_v61 = vrot.slane %v372_v50, 7 }
  0xa7   :  { %v360_v2 = vor.u32 %v358_v39, %v357_v42  ;;  %v362_v45 = vrot.slane %v357_v42, 4  ;;  %v903_v60 = vsel %vm13117_vm10, %v352_v48, %v902_v1  ;;  %v381_v3 = vshrl.u32 %v38_v54, 16 }
  0xa8   :  { %904 = vst [vmem:[#allocation2 + $0x78] sm:$0xf] %v903_v60  ;;  %v370_v52 = vrot.slane %v366_v55, 4  ;;  %v369_v8 = vor.u32 %v367_v46, %v366_v55  ;;  %v377_v9 = vor.u32 %v375_v51, %v374_v61  ;;  %v13397_v11 = vand.u32 %v10757_v56, %v12862_v4 }
  0xa9   :  { %v361_v62 = vsel %vm13108_vm9, %v353_v49, %v360_v2  ;;  %v907_v63 = vsel %vm13128_vm11, %v362_v45, %v906_v43  ;;  %v1082_v5 = vld [vmem:[#allocation2 + $0x70] sm:$0xf]  ;;  %v1137_v0 = vld [vmem:[#allocation2 + $0x74] sm:$0x1]  ;;  %v379_v22 = vrot.slane %v374_v61, 4  ;;  %v384_v28 = vshll.u32 %v38_v54, 16 }
  0xaa   :  { %v4546_v6 = vld [vmem:[#allocation2 + $0x70] sm:$0xf]  ;;  %905 = vst.msk [vmem:[#allocation2 + $0x7c] sm:$0xf] %vm80_vm2, %v361_v62  ;;  %908 = vst [vmem:[#allocation2 + $0x80] sm:$0x1] %v907_v63  ;;  %v378_v19 = vsel %vm13108_vm9, %v370_v52, %v377_v9  ;;  %11806 = vmatprep.subr.bf16.mxu0 %v13397_v11  ;;  %v910_v31 = vsel %vm13117_vm10, %v369_v8, %v909_v10 }
  0xab   :  { %v1389_v12 = vshll.u32 %v1082_v5, 16  ;;  %v1393_v40 = vshrl.u32 %v1082_v5, 16  ;;  %v1399_v13 = vshll.u32 %v1137_v0, 16  ;;  %v4547_v14 = vld [vmem:[#allocation2 + $0x74] sm:$0x1]  ;;  %v4819_v47 = vshll.u32 %v4546_v6, 16 }
  0xac   :  { %v4823_v18 = vshrl.u32 %v4546_v6, 16  ;;  %v4829_v21 = vshll.u32 %v4547_v14, 16  ;;  %912 = vst.msk [vmem:[#allocation2 + $0x88] sm:$0xf] %vm80_vm2, %v378_v19  ;;  %v914_v32 = vsel %vm13128_vm11, %v379_v22, %v913_v15  ;;  %911 = vst [vmem:[#allocation2 + $0x84] sm:$0xf] %v910_v31 }
  0xad   :  { %v1391_v23 = vrot.slane %v1389_v12, 5  ;;  %v1395_v26 = vrot.slane %v1393_v40, 4  ;;  %v4821_v53 = vrot.slane %v4819_v47, 5  ;;  %v1401_v29 = vrot.slane %v1399_v13, 5  ;;  %915 = vst [vmem:[#allocation2 + $0x8c] sm:$0x1] %v914_v32 }
  0xae   :  { %v4825_v30 = vrot.slane %v4823_v18, 4  ;;  %v4831_v35 = vrot.slane %v4829_v21, 5  ;;  %v13412_v17 = vrot.slane %v381_v3, 7  ;;  %v389_v42 = vshrl.u32 %v13402_v16, 16 }
  0xaf   :  { %v1396_v34 = vor.u32 %v1395_v26, %v1391_v23  ;;  %v1392_v38 = vsel %vm13144_vm12, %v13385_v58, %v1391_v23  ;;  %v4548_v1 = vld [vmem:[#allocation2 + $0x78] sm:$0xf]  ;;  %v392_v43 = vshll.u32 %v13402_v16, 16  ;;  %v4822_v46 = vsel %vm13144_vm12, %v13387_v59, %v4821_v53  ;;  %v13469_v16 = vld [vmem:[%s15969_s0 + $0x6c] sm:$0xf] }
  0xb0   :  { %v4826_v39 = vor.u32 %v4825_v30, %v4821_v53  ;;  %v1083_v41 = vld [vmem:[#allocation2 + $0x78] sm:$0xf]  ;;  %v4834_v50 = vshrl.u32 %v4548_v1, 16  ;;  %v13423_v51 = vor.u32 %v384_v28, %v13412_v17  ;;  %v4837_v2 = vshll.u32 %v4548_v1, 16 }
  0xb1   :  { %v1397_v44 = vrot.slane %v1396_v34, 4  ;;  %v4549_v48 = vld [vmem:[#allocation2 + $0x7c] sm:$0xf]  ;;  %v4550_v49 = vld [vmem:[#allocation2 + $0x80] sm:$0x1]  ;;  %v1404_v62 = vshrl.u32 %v1083_v41, 16 }
  0xb2   :  { %v4827_v54 = vrot.slane %v4826_v39, 4  ;;  %v4843_v45 = vshll.u32 %v4549_v48, 16  ;;  %v4847_v55 = vshrl.u32 %v4549_v48, 16  ;;  %v4836_v58 = vrot.slane %v4834_v50, 4  ;;  %v1084_v61 = vld [vmem:[#allocation2 + $0x7c] sm:$0xf] }
  0xb3   :  { %v1402_v56 = vsel %vm13144_vm12, %v1397_v44, %v1401_v29  ;;  %v4853_v60 = vshll.u32 %v4550_v49, 16  ;;  %v4839_v52 = vrot.slane %v4837_v2, 5  ;;  %v1138_v15 = vld [vmem:[#allocation2 + $0x80] sm:$0x1]  ;;  %v1406_v6 = vrot.slane %v1404_v62, 4 }
  0xb4   :  { %v10314_v63 = vcombine.low %v1392_v38, %v1402_v56  ;;  %v4832_v59 = vsel %vm13144_vm12, %v4827_v54, %v4831_v35  ;;  %v4845_v10 = vrot.slane %v4843_v45, 5  ;;  %v4849_v5 = vrot.slane %v4847_v55, 4  ;;  %v1085_v13 = vld [vmem:[#allocation2 + $0x84] sm:$0xf]  ;;  %v1086_v18 = vld [vmem:[#allocation2 + $0x88] sm:$0xf] }
  0xb5   :  { %v10604_v3 = vcombine.low %v4822_v46, %v4832_v59  ;;  %v4855_v0 = vrot.slane %v4853_v60, 5  ;;  %v4840_v8 = vor.u32 %v4839_v52, %v4836_v58  ;;  %v1407_v9 = vshll.u32 %v1083_v41, 16  ;;  %v1139_v28 = vld [vmem:[#allocation2 + $0x8c] sm:$0x1]  ;;  %v4551_v1 = vld [vmem:[#allocation2 + $0x84] sm:$0xf] }
  0xb6   :  { %11429 = vmatmul.mubr.msk.bf16.gmra.mrb[16].mxu1 %vm2029_vm13, %v10314_v63  ;;  %v1413_v12 = vshll.u32 %v1084_v61, 16  ;;  %v1417_v40 = vshrl.u32 %v1084_v61, 16  ;;  %v4850_v14 = vor.u32 %v4849_v5, %v4845_v10  ;;  %v1423_v47 = vshll.u32 %v1138_v15, 16  ;;  %v4552_v49 = vld [vmem:[#allocation2 + $0x88] sm:$0xf] }
  0xb7   :  { %11692 = vmatprep.mubr.msk.bf16.mxu0 %vm2029_vm13, %v10604_v3  ;;  %v1428_v21 = vshrl.u32 %v1085_v13, 16  ;;  %v1431_v19 = vshll.u32 %v1085_v13, 16  ;;  %v4841_v22 = vrot.slane %v4840_v8, 4  ;;  %v1409_v23 = vrot.slane %v1407_v9, 5  ;;  %v4553_v60 = vld [vmem:[#allocation2 + $0x8c] sm:$0x1] }
  0xb8   :  { %v1415_v26 = vrot.slane %v1413_v12, 5  ;;  %v1419_v53 = vrot.slane %v1417_v40, 4  ;;  %v4851_v29 = vrot.slane %v4850_v14, 4  ;;  %v1425_v30 = vrot.slane %v1423_v47, 5  ;;  %v40_v15 = vld [vmem:[%s15969_s0 + $0x60] sm:$0xf] }
  0xb9   :  { %v1430_v31 = vrot.slane %v1428_v21, 4  ;;  %v1433_v32 = vrot.slane %v1431_v19, 5  ;;  %v4846_v34 = vsel %vm13144_vm12, %v4841_v22, %v4845_v10  ;;  %v1410_v35 = vor.u32 %v1409_v23, %v1406_v6  ;;  %v916_v10 = vld [vmem:[#allocation2 + $0x90] sm:$0xf]  ;;  %v920_v13 = vld [vmem:[#allocation2 + $0x98] sm:$0x1] }
  0xba   :  { %v1420_v38 = vor.u32 %v1419_v53, %v1415_v26  ;;  %v1437_v39 = vshll.u32 %v1086_v18, 16  ;;  %v4856_v41 = vsel %vm13144_vm12, %v4851_v29, %v4855_v0  ;;  %v1441_v46 = vshrl.u32 %v1086_v18, 16  ;;  %v41_v14 = vld [vmem:[%s15969_s0 + $0x64] sm:$0xf] }
  0xbb   :  { %v1434_v44 = vor.u32 %v1433_v32, %v1430_v31  ;;  %v1447_v48 = vshll.u32 %v1139_v28, 16  ;;  %v10605_v50 = vcombine.low %v4846_v34, %v4856_v41  ;;  %v1411_v54 = vrot.slane %v1410_v35, 4  ;;  %v42_v28 = vld [vmem:[%s15969_s0 + $0x68] sm:$0xf]  ;;  %v923_v41 = vld [vmem:[#allocation2 + $0x9c] sm:$0xf] }
  0xbc   :  { %v1421_v2 = vrot.slane %v1420_v38, 4  ;;  %v1439_v45 = vrot.slane %v1437_v39, 5  ;;  %v1443_v56 = vrot.slane %v1441_v46, 4  ;;  %v4858_v61 = vshrl.u32 %v4551_v1, 16 }
  0xbd   :  { %v1435_v55 = vrot.slane %v1434_v44, 4  ;;  %v1449_v58 = vrot.slane %v1447_v48, 5  ;;  %11693 = vmatmul.mubr.msk.bf16.gmra.mrb[16].mxu0 %vm2029_vm13, %v10605_v50  ;;  %v1416_v62 = vsel %vm13144_vm12, %v1411_v54, %v1415_v26  ;;  %v4861_v59 = vshll.u32 %v4551_v1, 16  ;;  %v927_v50 = vld [vmem:[#allocation2 + $0xa4] sm:$0x1] }
  0xbe   :  { %v1426_v63 = vsel %vm13144_vm12, %v1421_v2, %v1425_v30  ;;  %v4867_v52 = vshll.u32 %v4552_v49, 16  ;;  %v1444_v0 = vor.u32 %v1443_v56, %v1439_v45  ;;  %v4860_v6 = vrot.slane %v4858_v61, 4  ;;  %v13478_v56 = vld [vmem:[#allocation2 + $0x20] sm:$0x1] }
  0xbf   :  { %v10315_v3 = vcombine.low %v1416_v62, %v1426_v63  ;;  %v1440_v5 = vsel %vm13144_vm12, %v1435_v55, %v1439_v45  ;;  %v4863_v8 = vrot.slane %v4861_v59, 5  ;;  %v4871_v12 = vshrl.u32 %v4552_v49, 16 }
  0xc0   :  { %v4869_v9 = vrot.slane %v4867_v52, 5  ;;  %v4877_v40 = vshll.u32 %v4553_v60, 16  ;;  %v1445_v47 = vrot.slane %v1444_v0, 4  ;;  %v387_v18 = vrot.slane %v13412_v17, 4 }
  0xc1   :  { %11432 = vmatprep.mubr.msk.bf16.mxu1 %vm2029_vm13, %v10315_v3  ;;  %v391_v21 = vrot.slane %v389_v42, 7  ;;  %v917_v19 = vsel %vm13117_vm10, %v13423_v51, %v916_v10  ;;  %v4864_v22 = vor.u32 %v4863_v8, %v4860_v6  ;;  %v4873_v23 = vrot.slane %v4871_v12, 4 }
  0xc2   :  { %v4879_v26 = vrot.slane %v4877_v40, 5  ;;  %918 = vst [vmem:[#allocation2 + $0x90] sm:$0xf] %v917_v19  ;;  %v398_v53 = vshrl.u32 %v40_v15, 16  ;;  %v1450_v29 = vsel %vm13144_vm12, %v1445_v47, %v1449_v58  ;;  %v401_v30 = vshll.u32 %v40_v15, 16 }
  0xc3   :  { %v394_v17 = vor.u32 %v392_v43, %v391_v21  ;;  %v396_v42 = vrot.slane %v391_v21, 4  ;;  %v10316_v31 = vcombine.low %v1440_v5, %v1450_v29  ;;  %v4865_v32 = vrot.slane %v4864_v22, 4  ;;  %v13471_v43 = vld [vmem:[#allocation2 + $0x1c] sm:$0xf]  ;;  %v13498_v47 = vld [vmem:[%s15969_s0 + $0x70] sm:$0xf] }
  0xc4   :  { %v4874_v51 = vor.u32 %v4873_v23, %v4869_v9  ;;  %v400_v34 = vrot.slane %v398_v53, 7  ;;  %v406_v39 = vshrl.u32 %v41_v14, 16  ;;  %v409_v1 = vshll.u32 %v41_v14, 16 }
  0xc5   :  { %v395_v35 = vsel %vm13108_vm9, %v387_v18, %v394_v17  ;;  %v921_v38 = vsel %vm13128_vm11, %v396_v42, %v920_v13  ;;  %v6072_v44 = vrot.slane %v13471_v43, 5  ;;  %11433 = vmatmul.mubr.msk.bf16.gmra.mrb[20].mxu1 %vm2029_vm13, %v10316_v31  ;;  %v4870_v46 = vsel %vm13144_vm12, %v4865_v32, %v4869_v9  ;;  %v930_v9 = vld [vmem:[#allocation2 + $0xa8] sm:$0xf] }
  0xc6   :  { %v4875_v48 = vrot.slane %v4874_v51, 4  ;;  %919 = vst.msk [vmem:[#allocation2 + $0x94] sm:$0xf] %vm80_vm2, %v395_v35  ;;  %922 = vst [vmem:[#allocation2 + $0x98] sm:$0x1] %v921_v38  ;;  %v403_v49 = vor.u32 %v401_v30, %v400_v34  ;;  %v404_v54 = vrot.slane %v400_v34, 4 }
  0xc7   :  { %v408_v2 = vrot.slane %v406_v39, 7  ;;  %v415_v45 = vshrl.u32 %v42_v28, 16  ;;  %v418_v55 = vshll.u32 %v42_v28, 16  ;;  %v6075_v58 = vrot.slane %v13478_v56, 5 }
  0xc8   :  { %v4880_v60 = vsel %vm13144_vm12, %v4875_v48, %v4879_v26  ;;  %v924_v61 = vsel %vm13117_vm10, %v403_v49, %v923_v41  ;;  %v423_v62 = vshrl.u32 %v13469_v16, 16  ;;  %v426_v14 = vshll.u32 %v13469_v16, 16 }
  0xc9   :  { %v10606_v63 = vcombine.low %v4870_v46, %v4880_v60  ;;  %v4554_v59 = vld [vmem:[#allocation2 + $0x90] sm:$0xf]  ;;  %v411_v10 = vor.u32 %v409_v1, %v408_v2  ;;  %v413_v15 = vrot.slane %v408_v2, 4  ;;  %925 = vst [vmem:[#allocation2 + $0x9c] sm:$0xf] %v924_v61  ;;  %v13486_v3 = vrot.slane %v415_v45, 7 }
  0xca   :  { %v1087_v52 = vld [vmem:[#allocation2 + $0x90] sm:$0xf]  ;;  %v4882_v5 = vshrl.u32 %v4554_v59, 16  ;;  %v4885_v0 = vshll.u32 %v4554_v59, 16  ;;  %v432_v46 = vshrl.u32 %v13498_v47, 16 }
  0xcb   :  { %v1452_v6 = vshrl.u32 %v1087_v52, 16  ;;  %v1455_v8 = vshll.u32 %v1087_v52, 16  ;;  %11696 = vmatprep.mubr.msk.bf16.mxu0 %vm2029_vm13, %v10606_v63  ;;  %v412_v12 = vsel %vm13108_vm9, %v404_v54, %v411_v10  ;;  %v928_v40 = vsel %vm13128_vm11, %v413_v15, %v927_v50 }
  0xcc   :  { %v420_v13 = vor.u32 %v418_v55, %v13486_v3  ;;  %v4884_v18 = vrot.slane %v4882_v5, 4  ;;  %v4887_v21 = vrot.slane %v4885_v0, 5  ;;  %926 = vst.msk [vmem:[#allocation2 + $0xa0] sm:$0xf] %vm80_vm2, %v412_v12  ;;  %929 = vst [vmem:[#allocation2 + $0xa4] sm:$0x1] %v928_v40 }
  0xcd   :  { %v1454_v19 = vrot.slane %v1452_v6, 4  ;;  %v1457_v22 = vrot.slane %v1455_v8, 5  ;;  %v4555_v23 = vld [vmem:[#allocation2 + $0x94] sm:$0xf]  ;;  %v4556_v26 = vld [vmem:[#allocation2 + $0x98] sm:$0x1] }
  0xce   :  { %v1088_v53 = vld [vmem:[#allocation2 + $0x94] sm:$0xf]  ;;  %v931_v28 = vsel %vm13117_vm10, %v420_v13, %v930_v9  ;;  %v4888_v29 = vor.u32 %v4887_v21, %v4884_v18  ;;  %v4891_v17 = vshll.u32 %v4555_v23, 16  ;;  %v4895_v42 = vshrl.u32 %v4555_v23, 16  ;;  %v1140_v31 = vld [vmem:[#allocation2 + $0x98] sm:$0x1] }
  0xcf   :  { %v4901_v30 = vshll.u32 %v4556_v26, 16  ;;  %932 = vst [vmem:[#allocation2 + $0xa8] sm:$0xf] %v931_v28  ;;  %v1458_v32 = vor.u32 %v1457_v22, %v1454_v19  ;;  %v1461_v51 = vshll.u32 %v1088_v53, 16  ;;  %v1465_v34 = vshrl.u32 %v1088_v53, 16 }
  0xd0   :  { %v1471_v35 = vshll.u32 %v1140_v31, 16  ;;  %v4889_v38 = vrot.slane %v4888_v29, 4  ;;  %v4893_v39 = vrot.slane %v4891_v17, 5  ;;  %v4897_v1 = vrot.slane %v4895_v42, 4  ;;  %v1089_v41 = vld [vmem:[#allocation2 + $0x9c] sm:$0xf] }
  0xd1   :  { %v1459_v48 = vrot.slane %v1458_v32, 4  ;;  %v1463_v49 = vrot.slane %v1461_v51, 5  ;;  %v1467_v50 = vrot.slane %v1465_v34, 4  ;;  %v421_v54 = vrot.slane %v13486_v3, 4  ;;  %v4557_v61 = vld [vmem:[#allocation2 + $0x9c] sm:$0xf] }
  0xd2   :  { %v4898_v2 = vor.u32 %v4897_v1, %v4893_v39  ;;  %v4903_v45 = vrot.slane %v4901_v30, 5  ;;  %v1476_v55 = vshrl.u32 %v1089_v41, 16  ;;  %v1479_v60 = vshll.u32 %v1089_v41, 16  ;;  %v47_v3 = vld [vmem:[%s15969_s0 + $0x7c] sm:$0xf] }
  0xd3   :  { %v4894_v63 = vsel %vm13144_vm12, %v4889_v38, %v4893_v39  ;;  %v1464_v59 = vsel %vm13144_vm12, %v1459_v48, %v1463_v49  ;;  %v1468_v52 = vor.u32 %v1467_v50, %v1463_v49  ;;  %v1473_v10 = vrot.slane %v1471_v35, 5  ;;  %v1090_v15 = vld [vmem:[#allocation2 + $0xa0] sm:$0xf]  ;;  %v1141_v5 = vld [vmem:[#allocation2 + $0xa4] sm:$0x1] }
  0xd4   :  { %v4899_v0 = vrot.slane %v4898_v2, 4  ;;  %v1478_v6 = vrot.slane %v1476_v55, 4  ;;  %v1481_v8 = vrot.slane %v1479_v60, 5  ;;  %v1485_v9 = vshll.u32 %v1090_v15, 16  ;;  %v4558_v18 = vld [vmem:[#allocation2 + $0xa0] sm:$0xf] }
  0xd5   :  { %v1469_v12 = vrot.slane %v1468_v52, 4  ;;  %v1489_v40 = vshrl.u32 %v1090_v15, 16  ;;  %v1495_v13 = vshll.u32 %v1141_v5, 16  ;;  %v4906_v21 = vshrl.u32 %v4557_v61, 16  ;;  %v4559_v26 = vld [vmem:[#allocation2 + $0xa4] sm:$0x1] }
  0xd6   :  { %v4904_v19 = vsel %vm13144_vm12, %v4899_v0, %v4903_v45  ;;  %v1482_v22 = vor.u32 %v1481_v8, %v1478_v6  ;;  %v1487_v23 = vrot.slane %v1485_v9, 5  ;;  %v4909_v53 = vshll.u32 %v4557_v61, 16  ;;  %v4560_v28 = vld [vmem:[#allocation2 + $0xa8] sm:$0xf]  ;;  %v45_v5 = vld [vmem:[%s15969_s0 + $0x74] sm:$0xf] }
  0xd7   :  { %v10607_v29 = vcombine.low %v4894_v63, %v4904_v19  ;;  %v1474_v17 = vsel %vm13144_vm12, %v1469_v12, %v1473_v10  ;;  %v1491_v42 = vrot.slane %v1489_v40, 4  ;;  %v1497_v30 = vrot.slane %v1495_v13, 5  ;;  %v1091_v2 = vld [vmem:[#allocation2 + $0xa8] sm:$0xf]  ;;  %v934_v63 = vld [vmem:[#allocation2 + $0xb0] sm:$0x1] }
  0xd8   :  { %v10317_v31 = vcombine.low %v1464_v59, %v1474_v17  ;;  %v1483_v32 = vrot.slane %v1482_v22, 4  ;;  %v4908_v51 = vrot.slane %v4906_v21, 4  ;;  %v4911_v34 = vrot.slane %v4909_v53, 5  ;;  %v46_v40 = vld [vmem:[%s15969_s0 + $0x78] sm:$0xf] }
  0xd9   :  { %11697 = vmatmul.mubr.msk.bf16.gmra.mrb[20].mxu0 %vm2029_vm13, %v10607_v29  ;;  %v1492_v35 = vor.u32 %v1491_v42, %v1487_v23  ;;  %v4915_v38 = vshll.u32 %v4558_v18, 16  ;;  %v4919_v39 = vshrl.u32 %v4558_v18, 16  ;;  %v4925_v1 = vshll.u32 %v4559_v26, 16  ;;  %v937_v22 = vld [vmem:[#allocation2 + $0xb4] sm:$0xf] }
  0xda   :  { %11436 = vmatprep.mubr.msk.bf16.mxu1 %vm2029_vm13, %v10317_v31  ;;  %v1488_v41 = vsel %vm13144_vm12, %v1483_v32, %v1487_v23  ;;  %v4912_v48 = vor.u32 %v4911_v34, %v4908_v51  ;;  %v425_v49 = vrot.slane %v423_v62, 7  ;;  %v4930_v50 = vshrl.u32 %v4560_v28, 16  ;;  %v941_v34 = vld [vmem:[#allocation2 + $0xbc] sm:$0x1] }
  0xdb   :  { %v1493_v45 = vrot.slane %v1492_v35, 4  ;;  %v4917_v55 = vrot.slane %v4915_v38, 5  ;;  %v4921_v60 = vrot.slane %v4919_v39, 4  ;;  %v4927_v61 = vrot.slane %v4925_v1, 5 }
  0xdc   :  { %v4913_v59 = vrot.slane %v4912_v48, 4  ;;  %v428_v52 = vor.u32 %v426_v14, %v425_v49  ;;  %v430_v10 = vrot.slane %v425_v49, 4  ;;  %v4932_v15 = vrot.slane %v4930_v50, 4 }
  0xdd   :  { %v1498_v62 = vsel %vm13144_vm12, %v1493_v45, %v1497_v30  ;;  %v4922_v0 = vor.u32 %v4921_v60, %v4917_v55  ;;  %v4933_v6 = vshll.u32 %v4560_v28, 16  ;;  %v1500_v8 = vshrl.u32 %v1091_v2, 16 }
  0xde   :  { %v10318_v9 = vcombine.low %v1488_v41, %v1498_v62  ;;  %v4918_v12 = vsel %vm13144_vm12, %v4913_v59, %v4917_v55  ;;  %v429_v16 = vsel %vm13108_vm9, %v421_v54, %v428_v52  ;;  %v935_v14 = vsel %vm13128_vm11, %v430_v10, %v934_v63  ;;  %v944_v55 = vld [vmem:[#allocation2 + $0xc0] sm:$0xf] }
  0xdf   :  { %v4923_v13 = vrot.slane %v4922_v0, 4  ;;  %933 = vst.msk [vmem:[#allocation2 + $0xac] sm:$0xf] %vm80_vm2, %v429_v16  ;;  %936 = vst [vmem:[#allocation2 + $0xb0] sm:$0x1] %v935_v14  ;;  %v4935_v18 = vrot.slane %v4933_v6, 5 }
  0xe0   :  { %v1502_v21 = vrot.slane %v1500_v8, 4  ;;  %v1503_v19 = vshll.u32 %v1091_v2, 16  ;;  %11437 = vmatmul.mubr.msk.bf16.gmra.mrb[24].mxu1 %vm2029_vm13, %v10318_v9  ;;  %v434_v54 = vrot.slane %v432_v46, 7  ;;  %v435_v23 = vshll.u32 %v13498_v47, 16  ;;  %v13563_v16 = vld [vmem:[#allocation2 + $0xd8] sm:$0xf] }
  0xe1   :  { %v440_v26 = vshrl.u32 %v45_v5, 16  ;;  %v443_v53 = vshll.u32 %v45_v5, 16  ;;  %v4928_v28 = vsel %vm13144_vm12, %v4923_v13, %v4927_v61  ;;  %v4936_v29 = vor.u32 %v4935_v18, %v4932_v15 }
  0xe2   :  { %v1505_v17 = vrot.slane %v1503_v19, 5  ;;  %v449_v42 = vshrl.u32 %v46_v40, 16  ;;  %v10608_v30 = vcombine.low %v4918_v12, %v4928_v28  ;;  %v437_v31 = vor.u32 %v435_v23, %v434_v54 }
  0xe3   :  { %v438_v32 = vrot.slane %v434_v54, 4  ;;  %v442_v51 = vrot.slane %v440_v26, 7  ;;  %v13549_v35 = vrot.slane %v6072_v44, 4  ;;  %v13551_v46 = vrot.slane %v4936_v29, 4 }
  0xe4   :  { %v451_v47 = vrot.slane %v449_v42, 7  ;;  %v452_v38 = vshll.u32 %v46_v40, 16  ;;  %11700 = vmatprep.mubr.msk.bf16.mxu0 %vm2029_vm13, %v10608_v30  ;;  %v938_v41 = vsel %vm13117_vm10, %v437_v31, %v937_v22  ;;  %v457_v48 = vshrl.u32 %v47_v3, 16 }
  0xe5   :  { %v445_v39 = vor.u32 %v443_v53, %v442_v51  ;;  %v447_v1 = vrot.slane %v442_v51, 4  ;;  %v1506_v49 = vor.u32 %v1505_v17, %v1502_v21  ;;  %939 = vst [vmem:[#allocation2 + $0xb4] sm:$0xf] %v938_v41  ;;  %v460_v45 = vshll.u32 %v47_v3, 16  ;;  %v948_v21 = vld [vmem:[#allocation2 + $0xc8] sm:$0x1] }
  0xe6   :  { %v454_v50 = vor.u32 %v452_v38, %v451_v47  ;;  %v455_v2 = vrot.slane %v451_v47, 4  ;;  %v4561_v60 = vld [vmem:[#allocation2 + $0xac] sm:$0xf]  ;;  %v4562_v61 = vld [vmem:[#allocation2 + $0xb0] sm:$0x1]  ;;  %v459_v9 = vrot.slane %v457_v48, 7 }
  0xe7   :  { %v1092_v63 = vld [vmem:[#allocation2 + $0xac] sm:$0xf]  ;;  %v446_v59 = vsel %vm13108_vm9, %v438_v32, %v445_v39  ;;  %v942_v52 = vsel %vm13128_vm11, %v447_v1, %v941_v34  ;;  %v4939_v10 = vshll.u32 %v4561_v60, 16  ;;  %v4943_v15 = vshrl.u32 %v4561_v60, 16  ;;  %v1142_v62 = vld [vmem:[#allocation2 + $0xb0] sm:$0x1] }
  0xe8   :  { %v4949_v5 = vshll.u32 %v4562_v61, 16  ;;  %v1509_v0 = vshll.u32 %v1092_v63, 16  ;;  %940 = vst.msk [vmem:[#allocation2 + $0xb8] sm:$0xf] %vm80_vm2, %v446_v59  ;;  %943 = vst [vmem:[#allocation2 + $0xbc] sm:$0x1] %v942_v52  ;;  %v945_v12 = vsel %vm13117_vm10, %v454_v50, %v944_v55  ;;  %v462_v3 = vor.u32 %v460_v45, %v459_v9 }
  0xe9   :  { %v1513_v6 = vshrl.u32 %v1092_v63, 16  ;;  %v1519_v8 = vshll.u32 %v1142_v62, 16  ;;  %v4941_v14 = vrot.slane %v4939_v10, 5  ;;  %v4945_v40 = vrot.slane %v4943_v15, 4  ;;  %946 = vst [vmem:[#allocation2 + $0xc0] sm:$0xf] %v945_v12 }
  0xea   :  { %v1507_v13 = vrot.slane %v1506_v49, 4  ;;  %v1511_v18 = vrot.slane %v1509_v0, 5  ;;  %v4951_v19 = vrot.slane %v4949_v5, 5  ;;  %v464_v54 = vrot.slane %v459_v9, 4 }
  0xeb   :  { %v1515_v22 = vrot.slane %v1513_v6, 4  ;;  %v4942_v23 = vsel %vm13144_vm12, %v13551_v46, %v4941_v14  ;;  %v4946_v26 = vor.u32 %v4945_v40, %v4941_v14  ;;  %v1521_v53 = vrot.slane %v1519_v8, 5 }
  0xec   :  { %v1548_v28 = vshrl.u32 %v13563_v16, 16  ;;  %v1093_v17 = vld [vmem:[#allocation2 + $0xb4] sm:$0xf]  ;;  %v463_v30 = vsel %vm13108_vm9, %v455_v2, %v462_v3  ;;  %v949_v31 = vsel %vm13128_vm11, %v464_v54, %v948_v21  ;;  %v1551_v32 = vshll.u32 %v13563_v16, 16 }
  0xed   :  { %v1516_v29 = vor.u32 %v1515_v22, %v1511_v18  ;;  %v4563_v42 = vld [vmem:[#allocation2 + $0xb4] sm:$0xf]  ;;  %v4947_v51 = vrot.slane %v4946_v26, 4  ;;  %v1524_v34 = vshrl.u32 %v1093_v17, 16  ;;  %v1527_v47 = vshll.u32 %v1093_v17, 16 }
  0xee   :  { %v4954_v38 = vshrl.u32 %v4563_v42, 16  ;;  %947 = vst.msk [vmem:[#allocation2 + $0xc4] sm:$0xf] %vm80_vm2, %v463_v30  ;;  %950 = vst [vmem:[#allocation2 + $0xc8] sm:$0x1] %v949_v31  ;;  %v1512_v46 = vsel %vm13144_vm12, %v1507_v13, %v1511_v18  ;;  %v4957_v48 = vshll.u32 %v4563_v42, 16 }
  0xef   :  { %v1517_v39 = vrot.slane %v1516_v29, 4  ;;  %v1094_v1 = vld [vmem:[#allocation2 + $0xb8] sm:$0xf]  ;;  %v1143_v41 = vld [vmem:[#allocation2 + $0xbc] sm:$0x1]  ;;  %v4952_v49 = vsel %vm13144_vm12, %v4947_v51, %v4951_v19  ;;  %v1526_v50 = vrot.slane %v1524_v34, 4 }
  0xf0   :  { %v1529_v2 = vrot.slane %v1527_v47, 5  ;;  %v1533_v45 = vshll.u32 %v1094_v1, 16  ;;  %v4564_v55 = vld [vmem:[#allocation2 + $0xb8] sm:$0xf]  ;;  %v10609_v60 = vcombine.low %v4942_v23, %v4952_v49  ;;  %v1537_v63 = vshrl.u32 %v1094_v1, 16 }
  0xf1   :  { %v1522_v61 = vsel %vm13144_vm12, %v1517_v39, %v1521_v53  ;;  %v1543_v59 = vshll.u32 %v1143_v41, 16  ;;  %v4565_v52 = vld [vmem:[#allocation2 + $0xbc] sm:$0x1]  ;;  %v4566_v10 = vld [vmem:[#allocation2 + $0xc0] sm:$0xf]  ;;  %v4956_v0 = vrot.slane %v4954_v38, 4 }
  0xf2   :  { %v10319_v15 = vcombine.low %v1512_v46, %v1522_v61  ;;  %v1530_v5 = vor.u32 %v1529_v2, %v1526_v50  ;;  %v1535_v62 = vrot.slane %v1533_v45, 5  ;;  %11701 = vmatmul.mubr.msk.bf16.gmra.mrb[24].mxu0 %vm2029_vm13, %v10609_v60  ;;  %v1539_v6 = vrot.slane %v1537_v63, 4  ;;  %v1096_v34 = vld [vmem:[#allocation2 + $0xdc] sm:$0xf]  ;;  %v48_v47 = vld [vmem:[%s15969_s0 + $0x80] sm:$0xf] }
  0xf3   :  { %v1545_v8 = vrot.slane %v1543_v59, 5  ;;  %v4959_v9 = vrot.slane %v4957_v48, 5  ;;  %v4963_v12 = vshll.u32 %v4564_v55, 16  ;;  %v4967_v40 = vshrl.u32 %v4564_v55, 16  ;;  %v1144_v2 = vld [vmem:[#allocation2 + $0xe0] sm:$0x1] }
  0xf4   :  { %11440 = vmatprep.mubr.msk.bf16.mxu1 %vm2029_vm13, %v10319_v15  ;;  %v1531_v14 = vrot.slane %v1530_v5, 4  ;;  %v4973_v13 = vshll.u32 %v4565_v52, 16  ;;  %v4978_v18 = vshrl.u32 %v4566_v10, 16  ;;  %v1540_v21 = vor.u32 %v1539_v6, %v1535_v62  ;;  %v49_v63 = vld [vmem:[%s15969_s0 + $0x84] sm:$0xf] }
  0xf5   :  { %v4960_v19 = vor.u32 %v4959_v9, %v4956_v0  ;;  %v4965_v22 = vrot.slane %v4963_v12, 5  ;;  %v4567_v3 = vld [vmem:[#allocation2 + $0xc4] sm:$0xf]  ;;  %v4568_v54 = vld [vmem:[#allocation2 + $0xc8] sm:$0x1]  ;;  %v4981_v23 = vshll.u32 %v4566_v10, 16 }
  0xf6   :  { %v1536_v26 = vsel %vm13144_vm12, %v1531_v14, %v1535_v62  ;;  %v4969_v53 = vrot.slane %v4967_v40, 4  ;;  %v4975_v29 = vrot.slane %v4973_v13, 5  ;;  %v4980_v17 = vrot.slane %v4978_v18, 4  ;;  %v951_v13 = vld [vmem:[#allocation2 + $0xe4] sm:$0xf] }
  0xf7   :  { %v1541_v42 = vrot.slane %v1540_v21, 4  ;;  %v4961_v30 = vrot.slane %v4960_v19, 4  ;;  %v4983_v31 = vrot.slane %v4981_v23, 5  ;;  %v4987_v51 = vshll.u32 %v4567_v3, 16  ;;  %v5935_v18 = vld [vmem:[#allocation2 + $0xc] sm:$0xe] }
  0xf8   :  { %v4970_v38 = vor.u32 %v4969_v53, %v4965_v22  ;;  %v4991_v46 = vshrl.u32 %v4567_v3, 16  ;;  %v4997_v39 = vshll.u32 %v4568_v54, 16  ;;  %v1550_v1 = vrot.slane %v1548_v28, 4  ;;  %v5936_v54 = vld [vmem:[#allocation2 + $0x18] sm:$0xe] }
  0xf9   :  { %v1546_v41 = vsel %vm13144_vm12, %v1541_v42, %v1545_v8  ;;  %v4966_v48 = vsel %vm13144_vm12, %v4961_v30, %v4965_v22  ;;  %v4984_v49 = vor.u32 %v4983_v31, %v4980_v17  ;;  %v4989_v50 = vrot.slane %v4987_v51, 5  ;;  %v50_v51 = vld [vmem:[%s15969_s0 + $0x88] sm:$0xf] }
  0xfa   :  { %v10320_v45 = vcombine.low %v1536_v26, %v1546_v41  ;;  %v4971_v55 = vrot.slane %v4970_v38, 4  ;;  %v4993_v60 = vrot.slane %v4991_v46, 4  ;;  %v4999_v61 = vrot.slane %v4997_v39, 5 }
  0xfb   :  { %v4985_v59 = vrot.slane %v4984_v49, 4  ;;  %v1553_v28 = vrot.slane %v1551_v32, 5  ;;  %v1557_v52 = vshll.u32 %v1096_v34, 16  ;;  %v1561_v10 = vshrl.u32 %v1096_v34, 16  ;;  %v51_v49 = vld [vmem:[%s15969_s0 + $0x8c] sm:$0xf] }
  0xfc   :  { %11441 = vmatmul.mubr.msk.bf16.gmra.mrb[28].mxu1 %vm2029_vm13, %v10320_v45  ;;  %v4976_v15 = vsel %vm13144_vm12, %v4971_v55, %v4975_v29  ;;  %v4994_v5 = vor.u32 %v4993_v60, %v4989_v50  ;;  %v1567_v62 = vshll.u32 %v1144_v2, 16  ;;  %v466_v0 = vshrl.u32 %v48_v47, 16  ;;  %v955_v29 = vld [vmem:[#allocation2 + $0xec] sm:$0x1]  ;;  %v52_v60 = vld [vmem:[%s15969_s0 + $0x90] sm:$0xf] }
  0xfd   :  { %v10610_v6 = vcombine.low %v4966_v48, %v4976_v15  ;;  %v4990_v8 = vsel %vm13144_vm12, %v4985_v59, %v4989_v50  ;;  %v1554_v9 = vor.u32 %v1553_v28, %v1550_v1  ;;  %v1559_v12 = vrot.slane %v1557_v52, 5 }
  0xfe   :  { %v4995_v14 = vrot.slane %v4994_v5, 4  ;;  %v1563_v40 = vrot.slane %v1561_v10, 4  ;;  %v1569_v16 = vrot.slane %v1567_v62, 5  ;;  %v468_v32 = vrot.slane %v466_v0, 7 }
  0xff   :  { %11704 = vmatprep.mubr.msk.bf16.mxu0 %vm2029_vm13, %v10610_v6  ;;  %v1555_v21 = vrot.slane %v1554_v9, 4  ;;  %v469_v19 = vshll.u32 %v48_v47, 16  ;;  %v474_v22 = vshrl.u32 %v49_v63, 16  ;;  %v477_v3 = vshll.u32 %v49_v63, 16 }
 0x100   :  { %v5000_v23 = vsel %vm13144_vm12, %v4995_v14, %v4999_v61  ;;  %v1564_v26 = vor.u32 %v1563_v40, %v1559_v12  ;;  %v472_v53 = vrot.slane %v468_v32, 4  ;;  %v10660_v47 = vrot.slane %v5935_v18, 9 }
 0x101   :  { %v10611_v17 = vcombine.low %v4990_v8, %v5000_v23  ;;  %v1560_v42 = vsel %vm13144_vm12, %v1555_v21, %v1559_v12  ;;  %v471_v30 = vor.u32 %v469_v19, %v468_v32  ;;  %v476_v31 = vrot.slane %v474_v22, 7 }
 0x102   :  { %v1565_v34 = vrot.slane %v1564_v26, 4  ;;  %v6067_v38 = vrot.slane %v6065_v36, 4  ;;  %v10661_v48 = vrot.slane %v5936_v54, 9  ;;  %v6066_v2 = vsel %vm13615_vm0, %v10660_v47, %v6065_v36 }
 0x103   :  { %11705 = vmatmul.mubr.msk.bf16.gmra.mrb[28].mxu0 %vm2029_vm13, %v10611_v17  ;;  %v479_v46 = vor.u32 %v477_v3, %v476_v31  ;;  %v481_v39 = vrot.slane %v476_v31, 4  ;;  %v952_v1 = vsel %vm13117_vm10, %v471_v30, %v951_v13  ;;  %v6076_v55 = vsel %vm13615_vm0, %v13549_v35, %v6075_v58 }
 0x104   :  { %v1570_v50 = vsel %vm13144_vm12, %v1565_v34, %v1569_v16  ;;  %953 = vst [vmem:[#allocation2 + $0xe4] sm:$0xf] %v952_v1  ;;  %v6069_v45 = vsel %vm13615_vm0, %v6067_v38, %v6068_v24 }
 0x105   :  { %8 = vsyncpa [#allocation4], 0  ;;  %v10321_v25 = vcombine.low %v1560_v42, %v1570_v50  ;;  %v480_v36 = vsel %vm13108_vm9, %v472_v53, %v479_v46  ;;  %v956_v33 = vsel %vm13128_vm11, %v481_v39, %v955_v29  ;;  %v10693_v61 = vcombine.low %v6066_v2, %v6069_v45  ;;  %v53_v24 = vld [vmem:[%s15969_s0 + $0x94] sm:$0xf]  ;;  %v5937_v59 = vld [vmem:[#allocation2 + $0x24] sm:$0xe] }
 0x106   :  { %954 = vst.msk [vmem:[#allocation2 + $0xe8] sm:$0xf] %vm80_vm2, %v480_v36  ;;  %957 = vst [vmem:[#allocation2 + $0xec] sm:$0x1] %v956_v33  ;;  %v6073_v56 = vsel %vm13615_vm0, %v10661_v48, %v6072_v44  ;;  %v483_v58 = vshrl.u32 %v50_v51, 16  ;;  %v486_v35 = vshll.u32 %v50_v51, 16 }
 0x107   :  { %v491_v63 = vshrl.u32 %v51_v49, 16  ;;  %11444 = vmatprep.mubr.msk.bf16.mxu1 %vm2029_vm13, %v10321_v25  ;;  %11742 = vmatprep.mubr.msk.bf16.mxu0 %vm2029_vm13, %v10693_v61  ;;  %v10694_v28 = vcombine.low %v6073_v56, %v6076_v55  ;;  %v494_v52 = vshll.u32 %v51_v49, 16  ;;  %v500_v10 = vshrl.u32 %v52_v60, 16  ;;  %v958_v43 = vld [vmem:[#allocation2 + $0xf0] sm:$0xf] }
 0x108   :  { %v503_v15 = vshll.u32 %v52_v60, 16  ;;  %v485_v5 = vrot.slane %v483_v58, 7  ;;  %v508_v0 = vshrl.u32 %v53_v24, 16  ;;  %v511_v6 = vshll.u32 %v53_v24, 16  ;;  %v12589_v44 = vld [vmem:[#allocation2 + $0x28] sm:$0xf] }
 0x109   :  { %v493_v62 = vrot.slane %v491_v63, 7  ;;  %v502_v8 = vrot.slane %v500_v10, 7  ;;  %v10662_v9 = vrot.slane %v5937_v59, 9  ;;  %v6079_v12 = vrot.slane %v12589_v44, 5  ;;  %v12590_v14 = vld [vmem:[#allocation2 + $0x2c] sm:$0x1] }
 0x10a   :  { %v6082_v40 = vrot.slane %v12590_v14, 5  ;;  %v488_v16 = vor.u32 %v486_v35, %v485_v5  ;;  %v489_v32 = vrot.slane %v485_v5, 4  ;;  %v962_v21 = vld [vmem:[#allocation2 + $0xf8] sm:$0x1]  ;;  %v965_v19 = vld [vmem:[#allocation2 + $0xfc] sm:$0xf] }
 0x10b   :  { %v496_v13 = vor.u32 %v494_v52, %v493_v62  ;;  %v498_v18 = vrot.slane %v493_v62, 4  ;;  %v1097_v22 = vld [vmem:[#allocation2 + $0xe4] sm:$0xf]  ;;  %11743 = vmatmul.mubr.msk.bf16.vlgmr.msra.gmra.mrb[0].mxu0 %vm2029_vm13, %v10694_v28  ;;  %v505_v3 = vor.u32 %v503_v15, %v502_v8  ;;  %v506_v54 = vrot.slane %v502_v8, 4  ;;  %v5938_v31 = vld [vmem:[#allocation2 + $0x30] sm:$0xe] }
 0x10c   :  { %v510_v23 = vrot.slane %v508_v0, 7  ;;  %v6080_v26 = vsel %vm13615_vm0, %v10662_v9, %v6079_v12  ;;  %v1572_v53 = vshrl.u32 %v1097_v22, 16  ;;  %v1575_v29 = vshll.u32 %v1097_v22, 16  ;;  %11807 = vmatpush3.bf16.msra.mxu0 %v13397_v11  ;;  %v969_v30 = vld [vmem:[#allocation2 + $0x104] sm:$0x1] }
 0x10d   :  { %v497_v17 = vsel %vm13108_vm9, %v489_v32, %v496_v13  ;;  %v959_v42 = vsel %vm13117_vm10, %v488_v16, %v958_v43  ;;  %v1098_v51 = vld [vmem:[#allocation2 + $0xe8] sm:$0xf]  ;;  %v1145_v34 = vld [vmem:[#allocation2 + $0xec] sm:$0x1]  ;;  %v963_v47 = vsel %vm13128_vm11, %v498_v18, %v962_v21  ;;  %v966_v11 = vsel %vm13117_vm10, %v505_v3, %v965_v19  ;;  %v54_v60 = vld [vmem:[%s15969_s0 + $0x98] sm:$0xf] }
 0x10e   :  { %960 = vst [vmem:[#allocation2 + $0xf0] sm:$0xf] %v959_v42  ;;  %961 = vst.msk [vmem:[#allocation2 + $0xf4] sm:$0xf] %vm80_vm2, %v497_v17  ;;  %v513_v38 = vor.u32 %v511_v6, %v510_v23  ;;  %v515_v46 = vrot.slane %v510_v23, 4  ;;  %v1574_v39 = vrot.slane %v1572_v53, 4 }
 0x10f   :  { %v1577_v1 = vrot.slane %v1575_v29, 5  ;;  %v1581_v48 = vshll.u32 %v1098_v51, 16  ;;  %v1585_v49 = vshrl.u32 %v1098_v51, 16  ;;  %964 = vst [vmem:[#allocation2 + $0xf8] sm:$0x1] %v963_v47  ;;  %v1591_v50 = vshll.u32 %v1145_v34, 16 }
 0x110   :  { %967 = vst [vmem:[#allocation2 + $0xfc] sm:$0xf] %v966_v11  ;;  %v514_v2 = vsel %vm13108_vm9, %v506_v54, %v513_v38  ;;  %v970_v45 = vsel %vm13128_vm11, %v515_v46, %v969_v30  ;;  %v6081_v55 = vrot.slane %v6079_v12, 4  ;;  %v10663_v61 = vrot.slane %v5938_v31, 9  ;;  %v13678_v24 = vld [vmem:[%s15969_s0 + $0x9c] sm:$0xf] }
 0x111   :  { %v1578_v25 = vor.u32 %v1577_v1, %v1574_v39  ;;  %v1583_v36 = vrot.slane %v1581_v48, 5  ;;  %v1587_v33 = vrot.slane %v1585_v49, 4  ;;  %968 = vst.msk [vmem:[#allocation2 + $0x100] sm:$0xf] %vm80_vm2, %v514_v2  ;;  %971 = vst [vmem:[#allocation2 + $0x104] sm:$0x1] %v970_v45 }
 0x112   :  { %v1593_v56 = vrot.slane %v1591_v50, 5  ;;  %v6083_v58 = vsel %vm13615_vm0, %v6081_v55, %v6082_v40  ;;  %v12591_v35 = vld [vmem:[#allocation2 + $0x34] sm:$0xf]  ;;  %v12592_v59 = vld [vmem:[#allocation2 + $0x38] sm:$0x1]  ;;  %v517_v5 = vshrl.u32 %v54_v60, 16 }
 0x113   :  { %v6086_v63 = vrot.slane %v12591_v35, 5  ;;  %v6089_v28 = vrot.slane %v12592_v59, 5  ;;  %v1579_v52 = vrot.slane %v1578_v25, 4  ;;  %v1588_v10 = vor.u32 %v1587_v33, %v1583_v36  ;;  %v972_v50 = vld [vmem:[#allocation2 + $0x108] sm:$0xf] }
 0x114   :  { %v10695_v15 = vcombine.low %v6080_v26, %v6083_v58  ;;  %v520_v0 = vshll.u32 %v54_v60, 16  ;;  %v525_v6 = vshrl.u32 %v13678_v24, 16  ;;  %v13688_v14 = vrot.slane %v517_v5, 7  ;;  %v56_v2 = vld [vmem:[%s15969_s0 + $0xa0] sm:$0xf] }
 0x115   :  { %v6088_v62 = vrot.slane %v6086_v63, 4  ;;  %v1584_v43 = vsel %vm13144_vm12, %v1579_v52, %v1583_v36  ;;  %v1589_v8 = vrot.slane %v1588_v10, 4  ;;  %v1099_v9 = vld [vmem:[#allocation2 + $0xf0] sm:$0xf]  ;;  %v1100_v44 = vld [vmem:[#allocation2 + $0xf4] sm:$0xf]  ;;  %v6087_v12 = vsel %vm13615_vm0, %v10663_v61, %v6086_v63 }
 0x116   :  { %11746 = vmatprep.mubr.msk.bf16.mxu0 %vm2029_vm13, %v10695_v15  ;;  %v1146_v40 = vld [vmem:[#allocation2 + $0xf8] sm:$0x1]  ;;  %v1596_v16 = vshrl.u32 %v1099_v9, 16  ;;  %v1599_v32 = vshll.u32 %v1099_v9, 16  ;;  %v1605_v13 = vshll.u32 %v1100_v44, 16  ;;  %v1609_v18 = vshrl.u32 %v1100_v44, 16 }
 0x117   :  { %v1594_v21 = vsel %vm13144_vm12, %v1589_v8, %v1593_v56  ;;  %v1615_v19 = vshll.u32 %v1146_v40, 16  ;;  %v1101_v22 = vld [vmem:[#allocation2 + $0xfc] sm:$0xf]  ;;  %v6090_v3 = vsel %vm13615_vm0, %v6088_v62, %v6089_v28  ;;  %v522_v54 = vor.u32 %v520_v0, %v13688_v14  ;;  %v57_v36 = vld [vmem:[%s15969_s0 + $0xa4] sm:$0xf] }
 0x118   :  { %v10322_v23 = vcombine.low %v1584_v43, %v1594_v21  ;;  %v1598_v26 = vrot.slane %v1596_v16, 4  ;;  %v1601_v53 = vrot.slane %v1599_v32, 5  ;;  %v1607_v29 = vrot.slane %v1605_v13, 5  ;;  %v1102_v17 = vld [vmem:[#allocation2 + $0x100] sm:$0xf] }
 0x119   :  { %v1611_v42 = vrot.slane %v1609_v18, 4  ;;  %v1617_v30 = vrot.slane %v1615_v19, 5  ;;  %v1147_v31 = vld [vmem:[#allocation2 + $0x104] sm:$0x1]  ;;  %v1620_v51 = vshrl.u32 %v1101_v22, 16  ;;  %v1623_v34 = vshll.u32 %v1101_v22, 16 }
 0x11a   :  { %11445 = vmatmul.mubr.msk.bf16.gmra.mrb[32].mxu1 %vm2029_vm13, %v10322_v23  ;;  %v1602_v47 = vor.u32 %v1601_v53, %v1598_v26  ;;  %v1629_v38 = vshll.u32 %v1102_v17, 16  ;;  %v1633_v46 = vshrl.u32 %v1102_v17, 16  ;;  %v1639_v11 = vshll.u32 %v1147_v31, 16  ;;  %v976_v35 = vld [vmem:[#allocation2 + $0x110] sm:$0x1] }
 0x11b   :  { %v1612_v39 = vor.u32 %v1611_v42, %v1607_v29  ;;  %v1622_v1 = vrot.slane %v1620_v51, 4  ;;  %v1625_v48 = vrot.slane %v1623_v34, 5  ;;  %v10696_v49 = vcombine.low %v6087_v12, %v6090_v3  ;;  %v5939_v10 = vld [vmem:[#allocation2 + $0x3c] sm:$0xe]  ;;  %v5940_v44 = vld [vmem:[#allocation2 + $0x48] sm:$0xe] }
 0x11c   :  { %v1603_v45 = vrot.slane %v1602_v47, 4  ;;  %v1631_v55 = vrot.slane %v1629_v38, 5  ;;  %v1635_v60 = vrot.slane %v1633_v46, 4  ;;  %v1641_v25 = vrot.slane %v1639_v11, 5  ;;  %v979_v18 = vld [vmem:[#allocation2 + $0x114] sm:$0xf] }
 0x11d   :  { %v1613_v33 = vrot.slane %v1612_v39, 4  ;;  %v1626_v61 = vor.u32 %v1625_v48, %v1622_v1  ;;  %11747 = vmatmul.mubr.msk.bf16.gmra.mrb[4].mxu0 %vm2029_vm13, %v10696_v49  ;;  %v523_v56 = vrot.slane %v13688_v14, 4  ;;  %v527_v58 = vrot.slane %v525_v6, 7  ;;  %v983_v21 = vld [vmem:[#allocation2 + $0x11c] sm:$0x1] }
 0x11e   :  { %v1608_v63 = vsel %vm13144_vm12, %v1603_v45, %v1607_v29  ;;  %v1636_v59 = vor.u32 %v1635_v60, %v1631_v55  ;;  %v528_v28 = vshll.u32 %v13678_v24, 16  ;;  %v973_v52 = vsel %vm13117_vm10, %v522_v54, %v972_v50  ;;  %v12593_v26 = vld [vmem:[#allocation2 + $0x40] sm:$0xf]  ;;  %v12594_v29 = vld [vmem:[#allocation2 + $0x44] sm:$0x1] }
 0x11f   :  { %v1618_v15 = vsel %vm13144_vm12, %v1613_v33, %v1617_v30  ;;  %v1627_v5 = vrot.slane %v1626_v61, 4  ;;  %v532_v62 = vrot.slane %v527_v58, 4  ;;  %974 = vst [vmem:[#allocation2 + $0x108] sm:$0xf] %v973_v52  ;;  %v534_v0 = vshrl.u32 %v56_v2, 16 }
 0x120   :  { %v10323_v43 = vcombine.low %v1608_v63, %v1618_v15  ;;  %v1637_v6 = vrot.slane %v1636_v59, 4  ;;  %v530_v8 = vor.u32 %v528_v28, %v527_v58  ;;  %v537_v9 = vshll.u32 %v56_v2, 16  ;;  %v12595_v30 = vld [vmem:[#allocation2 + $0x4c] sm:$0xf]  ;;  %v12596_v38 = vld [vmem:[#allocation2 + $0x50] sm:$0x1] }
 0x121   :  { %v1632_v12 = vsel %vm13144_vm12, %v1627_v5, %v1631_v55  ;;  %v977_v24 = vsel %vm13128_vm11, %v532_v62, %v976_v35  ;;  %v536_v14 = vrot.slane %v534_v0, 7  ;;  %v542_v40 = vshrl.u32 %v57_v36, 16  ;;  %v58_v11 = vld [vmem:[%s15969_s0 + $0xa8] sm:$0xf]  ;;  %v59_v2 = vld [vmem:[%s15969_s0 + $0xac] sm:$0xf] }
 0x122   :  { %11448 = vmatprep.mubr.msk.bf16.mxu1 %vm2029_vm13, %v10323_v43  ;;  %v1642_v16 = vsel %vm13144_vm12, %v1637_v6, %v1641_v25  ;;  %v531_v32 = vsel %vm13108_vm9, %v523_v56, %v530_v8  ;;  %978 = vst [vmem:[#allocation2 + $0x110] sm:$0x1] %v977_v24  ;;  %v545_v13 = vshll.u32 %v57_v36, 16  ;;  %v10664_v19 = vrot.slane %v5939_v10, 9  ;;  %v60_v58 = vld [vmem:[%s15969_s0 + $0xb0] sm:$0xf] }
 0x123   :  { %v10324_v22 = vcombine.low %v1632_v12, %v1642_v16  ;;  %975 = vst.msk [vmem:[#allocation2 + $0x10c] sm:$0xf] %vm80_vm2, %v531_v32  ;;  %v539_v3 = vor.u32 %v537_v9, %v536_v14  ;;  %v540_v54 = vrot.slane %v536_v14, 4  ;;  %v544_v23 = vrot.slane %v542_v40, 7  ;;  %v986_v9 = vld [vmem:[#allocation2 + $0x120] sm:$0xf] }
 0x124   :  { %v6093_v53 = vrot.slane %v12593_v26, 5  ;;  %v6096_v17 = vrot.slane %v12594_v29, 5  ;;  %v10665_v42 = vrot.slane %v5940_v44, 9  ;;  %v6100_v31 = vrot.slane %v12595_v30, 5  ;;  %v61_v26 = vld [vmem:[%s15969_s0 + $0xb4] sm:$0xf] }
 0x125   :  { %11449 = vmatmul.mubr.msk.bf16.gmra.mrb[36].mxu1 %vm2029_vm13, %v10324_v22  ;;  %v547_v51 = vor.u32 %v545_v13, %v544_v23  ;;  %v549_v34 = vrot.slane %v544_v23, 4  ;;  %v980_v47 = vsel %vm13117_vm10, %v539_v3, %v979_v18  ;;  %v6103_v46 = vrot.slane %v12596_v38, 5  ;;  %v990_v23 = vld [vmem:[#allocation2 + $0x128] sm:$0x1] }
 0x126   :  { %v1103_v39 = vld [vmem:[#allocation2 + $0x108] sm:$0xf]  ;;  %981 = vst [vmem:[#allocation2 + $0x114] sm:$0xf] %v980_v47  ;;  %v6094_v1 = vsel %vm13615_vm0, %v10664_v19, %v6093_v53  ;;  %v6095_v48 = vrot.slane %v6093_v53, 4  ;;  %v6101_v49 = vsel %vm13615_vm0, %v10665_v42, %v6100_v31  ;;  %v6102_v50 = vrot.slane %v6100_v31, 4 }
 0x127   :  { %v1644_v45 = vshrl.u32 %v1103_v39, 16  ;;  %v1647_v55 = vshll.u32 %v1103_v39, 16  ;;  %v548_v60 = vsel %vm13108_vm9, %v540_v54, %v547_v51  ;;  %v984_v25 = vsel %vm13128_vm11, %v549_v34, %v983_v21 }
 0x128   :  { %982 = vst.msk [vmem:[#allocation2 + $0x118] sm:$0xf] %vm80_vm2, %v548_v60  ;;  %985 = vst [vmem:[#allocation2 + $0x11c] sm:$0x1] %v984_v25  ;;  %v6097_v36 = vsel %vm13615_vm0, %v6095_v48, %v6096_v17  ;;  %v6104_v33 = vsel %vm13615_vm0, %v6102_v50, %v6103_v46  ;;  %v551_v61 = vshrl.u32 %v58_v11, 16  ;;  %v554_v56 = vshll.u32 %v58_v11, 16 }
 0x129   :  { %v1148_v35 = vld [vmem:[#allocation2 + $0x110] sm:$0x1]  ;;  %v1646_v63 = vrot.slane %v1644_v45, 4  ;;  %v1649_v59 = vrot.slane %v1647_v55, 5  ;;  %v10697_v28 = vcombine.low %v6094_v1, %v6097_v36  ;;  %v10698_v52 = vcombine.low %v6101_v49, %v6104_v33  ;;  %v993_v46 = vld [vmem:[#allocation2 + $0x12c] sm:$0xf] }
 0x12a   :  { %v1104_v10 = vld [vmem:[#allocation2 + $0x10c] sm:$0xf]  ;;  %v1663_v15 = vshll.u32 %v1148_v35, 16  ;;  %v553_v5 = vrot.slane %v551_v61, 7  ;;  %v559_v62 = vshrl.u32 %v59_v2, 16  ;;  %v562_v0 = vshll.u32 %v59_v2, 16 }
 0x12b   :  { %v1650_v43 = vor.u32 %v1649_v59, %v1646_v63  ;;  %v1653_v6 = vshll.u32 %v1104_v10, 16  ;;  %v1657_v8 = vshrl.u32 %v1104_v10, 16  ;;  %11750 = vmatprep.mubr.msk.bf16.mxu0 %vm2029_vm13, %v10697_v28  ;;  %v568_v44 = vshrl.u32 %v60_v58, 16  ;;  %v5941_v11 = vld [vmem:[#allocation2 + $0x54] sm:$0xe] }
 0x12c   :  { %v1665_v12 = vrot.slane %v1663_v15, 5  ;;  %11751 = vmatmul.mubr.msk.bf16.gmra.mrb[8].mxu0 %vm2029_vm13, %v10698_v52  ;;  %v556_v24 = vor.u32 %v554_v56, %v553_v5  ;;  %v557_v14 = vrot.slane %v553_v5, 4  ;;  %v561_v40 = vrot.slane %v559_v62, 7  ;;  %v5942_v50 = vld [vmem:[#allocation2 + $0x60] sm:$0xe] }
 0x12d   :  { %v1651_v16 = vrot.slane %v1650_v43, 4  ;;  %v1655_v32 = vrot.slane %v1653_v6, 5  ;;  %v1659_v13 = vrot.slane %v1657_v8, 4  ;;  %v1105_v18 = vld [vmem:[#allocation2 + $0x114] sm:$0xf]  ;;  %v13748_v21 = vrot.slane %v568_v44, 7 }
 0x12e   :  { %v1668_v19 = vshrl.u32 %v1105_v18, 16  ;;  %v1671_v22 = vshll.u32 %v1105_v18, 16  ;;  %v564_v3 = vor.u32 %v562_v0, %v561_v40  ;;  %v566_v54 = vrot.slane %v561_v40, 4  ;;  %v12597_v10 = vld [vmem:[#allocation2 + $0x58] sm:$0xf] }
 0x12f   :  { %v1656_v53 = vsel %vm13144_vm12, %v1651_v16, %v1655_v32  ;;  %v1660_v29 = vor.u32 %v1659_v13, %v1655_v32  ;;  %v1106_v17 = vld [vmem:[#allocation2 + $0x118] sm:$0xf]  ;;  %v1149_v42 = vld [vmem:[#allocation2 + $0x11c] sm:$0x1]  ;;  %v987_v30 = vsel %vm13117_vm10, %v556_v24, %v986_v9  ;;  %v571_v31 = vshll.u32 %v60_v58, 16 }
 0x130   :  { %v1670_v51 = vrot.slane %v1668_v19, 4  ;;  %v1673_v34 = vrot.slane %v1671_v22, 5  ;;  %v1677_v47 = vshll.u32 %v1106_v17, 16  ;;  %v1681_v38 = vshrl.u32 %v1106_v17, 16  ;;  %988 = vst [vmem:[#allocation2 + $0x120] sm:$0xf] %v987_v30 }
 0x131   :  { %v1661_v39 = vrot.slane %v1660_v29, 4  ;;  %v1687_v1 = vshll.u32 %v1149_v42, 16  ;;  %v565_v48 = vsel %vm13108_vm9, %v557_v14, %v564_v3  ;;  %v991_v49 = vsel %vm13128_vm11, %v566_v54, %v990_v23  ;;  %v997_v0 = vld [vmem:[#allocation2 + $0x134] sm:$0x1]  ;;  %v12598_v43 = vld [vmem:[#allocation2 + $0x5c] sm:$0x1] }
 0x132   :  { %v1674_v2 = vor.u32 %v1673_v34, %v1670_v51  ;;  %v1679_v45 = vrot.slane %v1677_v47, 5  ;;  %v1683_v55 = vrot.slane %v1681_v38, 4  ;;  %989 = vst.msk [vmem:[#allocation2 + $0x124] sm:$0xf] %vm80_vm2, %v565_v48  ;;  %992 = vst [vmem:[#allocation2 + $0x128] sm:$0x1] %v991_v49  ;;  %v573_v60 = vor.u32 %v571_v31, %v13748_v21 }
 0x133   :  { %v1666_v25 = vsel %vm13144_vm12, %v1661_v39, %v1665_v12  ;;  %v1689_v36 = vrot.slane %v1687_v1, 5  ;;  %v574_v33 = vrot.slane %v13748_v21, 4  ;;  %v576_v61 = vshrl.u32 %v61_v26, 16  ;;  %v12599_v13 = vld [vmem:[#allocation2 + $0x64] sm:$0xf] }
 0x134   :  { %v10325_v56 = vcombine.low %v1656_v53, %v1666_v25  ;;  %v1675_v58 = vrot.slane %v1674_v2, 4  ;;  %v1684_v35 = vor.u32 %v1683_v55, %v1679_v45  ;;  %v579_v63 = vshll.u32 %v61_v26, 16  ;;  %v62_v26 = vld [vmem:[%s15969_s0 + $0xb8] sm:$0xf]  ;;  %v63_v30 = vld [vmem:[%s15969_s0 + $0xbc] sm:$0xf] }
 0x135   :  { %v578_v59 = vrot.slane %v576_v61, 7  ;;  %v994_v28 = vsel %vm13117_vm10, %v573_v60, %v993_v46  ;;  %v10666_v52 = vrot.slane %v5941_v11, 9  ;;  %v6107_v15 = vrot.slane %v12597_v10, 5  ;;  %v12600_v39 = vld [vmem:[#allocation2 + $0x68] sm:$0x1] }
 0x136   :  { %11452 = vmatprep.mubr.msk.bf16.mxu1 %vm2029_vm13, %v10325_v56  ;;  %v1680_v5 = vsel %vm13144_vm12, %v1675_v58, %v1679_v45  ;;  %v1685_v62 = vrot.slane %v1684_v35, 4  ;;  %995 = vst [vmem:[#allocation2 + $0x12c] sm:$0xf] %v994_v28  ;;  %v6110_v6 = vrot.slane %v12598_v43, 5  ;;  %v10667_v8 = vrot.slane %v5942_v50, 9 }
 0x137   :  { %v1107_v9 = vld [vmem:[#allocation2 + $0x120] sm:$0xf]  ;;  %v581_v44 = vor.u32 %v579_v63, %v578_v59  ;;  %v583_v12 = vrot.slane %v578_v59, 4  ;;  %v6108_v24 = vsel %vm13615_vm0, %v10666_v52, %v6107_v15  ;;  %v6109_v14 = vrot.slane %v6107_v15, 4  ;;  %v1000_v35 = vld [vmem:[#allocation2 + $0x138] sm:$0xf] }
 0x138   :  { %v1690_v40 = vsel %vm13144_vm12, %v1685_v62, %v1689_v36  ;;  %v1692_v16 = vshrl.u32 %v1107_v9, 16  ;;  %v1695_v32 = vshll.u32 %v1107_v9, 16  ;;  %v6114_v18 = vrot.slane %v12599_v13, 5  ;;  %v64_v10 = vld [vmem:[%s15969_s0 + $0xc0] sm:$0xf] }
 0x139   :  { %v10326_v21 = vcombine.low %v1680_v5, %v1690_v40  ;;  %v1108_v19 = vld [vmem:[#allocation2 + $0x124] sm:$0xf]  ;;  %v1150_v22 = vld [vmem:[#allocation2 + $0x128] sm:$0x1]  ;;  %v582_v3 = vsel %vm13108_vm9, %v574_v33, %v581_v44  ;;  %v998_v54 = vsel %vm13128_vm11, %v583_v12, %v997_v0  ;;  %v6111_v23 = vsel %vm13615_vm0, %v6109_v14, %v6110_v6 }
 0x13a   :  { %v1694_v53 = vrot.slane %v1692_v16, 4  ;;  %v1697_v29 = vrot.slane %v1695_v32, 5  ;;  %v1701_v17 = vshll.u32 %v1108_v19, 16  ;;  %v1705_v42 = vshrl.u32 %v1108_v19, 16  ;;  %996 = vst.msk [vmem:[#allocation2 + $0x130] sm:$0xf] %vm80_vm2, %v582_v3 }
 0x13b   :  { %999 = vst [vmem:[#allocation2 + $0x134] sm:$0x1] %v998_v54  ;;  %11453 = vmatmul.mubr.msk.bf16.gmra.mrb[40].mxu1 %vm2029_vm13, %v10326_v21  ;;  %v1711_v31 = vshll.u32 %v1150_v22, 16  ;;  %v10699_v51 = vcombine.low %v6108_v24, %v6111_v23  ;;  %v6115_v34 = vsel %vm13615_vm0, %v10667_v8, %v6114_v18  ;;  %v6116_v47 = vrot.slane %v6114_v18, 4  ;;  %v1004_v24 = vld [vmem:[#allocation2 + $0x140] sm:$0x1] }
 0x13c   :  { %v1698_v38 = vor.u32 %v1697_v29, %v1694_v53  ;;  %v1703_v46 = vrot.slane %v1701_v17, 5  ;;  %v1707_v11 = vrot.slane %v1705_v42, 4  ;;  %v6117_v1 = vrot.slane %v12600_v39, 5  ;;  %v65_v14 = vld [vmem:[%s15969_s0 + $0xc4] sm:$0xf] }
 0x13d   :  { %v1713_v48 = vrot.slane %v1711_v31, 5  ;;  %v1109_v49 = vld [vmem:[#allocation2 + $0x12c] sm:$0xf]  ;;  %11754 = vmatprep.mubr.msk.bf16.mxu0 %vm2029_vm13, %v10699_v51  ;;  %v585_v50 = vshrl.u32 %v62_v26, 16  ;;  %v588_v2 = vshll.u32 %v62_v26, 16  ;;  %v593_v45 = vshrl.u32 %v63_v30, 16 }
 0x13e   :  { %v1699_v55 = vrot.slane %v1698_v38, 4  ;;  %v1708_v60 = vor.u32 %v1707_v11, %v1703_v46  ;;  %v1716_v25 = vshrl.u32 %v1109_v49, 16  ;;  %v1719_v36 = vshll.u32 %v1109_v49, 16  ;;  %v5943_v18 = vld [vmem:[#allocation2 + $0x6c] sm:$0xe] }
 0x13f   :  { %v6118_v33 = vsel %vm13615_vm0, %v6116_v47, %v6117_v1  ;;  %v587_v61 = vrot.slane %v585_v50, 7  ;;  %v595_v56 = vrot.slane %v593_v45, 7  ;;  %v596_v58 = vshll.u32 %v63_v30, 16  ;;  %v5944_v21 = vld [vmem:[#allocation2 + $0x78] sm:$0xe] }
 0x140   :  { %v1704_v63 = vsel %vm13144_vm12, %v1699_v55, %v1703_v46  ;;  %v1709_v59 = vrot.slane %v1708_v60, 4  ;;  %v1718_v28 = vrot.slane %v1716_v25, 4  ;;  %v1721_v52 = vrot.slane %v1719_v36, 5  ;;  %v12601_v47 = vld [vmem:[#allocation2 + $0x70] sm:$0xf] }
 0x141   :  { %v1110_v15 = vld [vmem:[#allocation2 + $0x130] sm:$0xf]  ;;  %v10700_v62 = vcombine.low %v6115_v34, %v6118_v33  ;;  %v590_v0 = vor.u32 %v588_v2, %v587_v61  ;;  %v591_v43 = vrot.slane %v587_v61, 4  ;;  %v598_v6 = vor.u32 %v596_v58, %v595_v56  ;;  %v12602_v46 = vld [vmem:[#allocation2 + $0x74] sm:$0x1] }
 0x142   :  { %v1151_v5 = vld [vmem:[#allocation2 + $0x134] sm:$0x1]  ;;  %v1714_v8 = vsel %vm13144_vm12, %v1709_v59, %v1713_v48  ;;  %v1722_v9 = vor.u32 %v1721_v52, %v1718_v28  ;;  %v1725_v44 = vshll.u32 %v1110_v15, 16  ;;  %v1729_v12 = vshrl.u32 %v1110_v15, 16  ;;  %v1007_v48 = vld [vmem:[#allocation2 + $0x144] sm:$0xf] }
 0x143   :  { %v10327_v40 = vcombine.low %v1704_v63, %v1714_v8  ;;  %v1735_v16 = vshll.u32 %v1151_v5, 16  ;;  %11755 = vmatmul.mubr.msk.bf16.gmra.mrb[12].mxu0 %vm2029_vm13, %v10700_v62  ;;  %v599_v32 = vsel %vm13108_vm9, %v591_v43, %v598_v6  ;;  %v600_v13 = vrot.slane %v595_v56, 4  ;;  %v12603_v50 = vld [vmem:[#allocation2 + $0x7c] sm:$0xf]  ;;  %v1011_v60 = vld [vmem:[#allocation2 + $0x14c] sm:$0x1] }
 0x144   :  { %v1723_v19 = vrot.slane %v1722_v9, 4  ;;  %v1727_v22 = vrot.slane %v1725_v44, 5  ;;  %v1731_v3 = vrot.slane %v1729_v12, 4  ;;  %v1001_v54 = vsel %vm13117_vm10, %v590_v0, %v1000_v35  ;;  %1003 = vst.msk [vmem:[#allocation2 + $0x13c] sm:$0xf] %vm80_vm2, %v599_v32 }
 0x145   :  { %11456 = vmatprep.mubr.msk.bf16.mxu1 %vm2029_vm13, %v10327_v40  ;;  %v1737_v23 = vrot.slane %v1735_v16, 5  ;;  %1002 = vst [vmem:[#allocation2 + $0x138] sm:$0xf] %v1001_v54  ;;  %v1005_v26 = vsel %vm13128_vm11, %v600_v13, %v1004_v24  ;;  %v602_v53 = vshrl.u32 %v64_v10, 16  ;;  %v605_v29 = vshll.u32 %v64_v10, 16 }
 0x146   :  { %v1728_v17 = vsel %vm13144_vm12, %v1723_v19, %v1727_v22  ;;  %v1732_v42 = vor.u32 %v1731_v3, %v1727_v22  ;;  %1006 = vst [vmem:[#allocation2 + $0x140] sm:$0x1] %v1005_v26  ;;  %v610_v30 = vshrl.u32 %v65_v14, 16  ;;  %v613_v31 = vshll.u32 %v65_v14, 16  ;;  %v66_v10 = vld [vmem:[%s15969_s0 + $0xc8] sm:$0xf] }
 0x147   :  { %v604_v51 = vrot.slane %v602_v53, 7  ;;  %v10668_v34 = vrot.slane %v5943_v18, 9  ;;  %v6121_v38 = vrot.slane %v12601_v47, 5  ;;  %v6124_v11 = vrot.slane %v12602_v46, 5  ;;  %v67_v6 = vld [vmem:[%s15969_s0 + $0xcc] sm:$0xf] }
 0x148   :  { %v1733_v39 = vrot.slane %v1732_v42, 4  ;;  %v612_v1 = vrot.slane %v610_v30, 7  ;;  %v10669_v49 = vrot.slane %v5944_v21, 9  ;;  %v6128_v2 = vrot.slane %v12603_v50, 5  ;;  %v13838_v8 = vld [vmem:[%s15969_s0 + $0xd0] sm:$0xf] }
 0x149   :  { %v607_v45 = vor.u32 %v605_v29, %v604_v51  ;;  %v608_v55 = vrot.slane %v604_v51, 4  ;;  %v6122_v25 = vsel %vm13615_vm0, %v10668_v34, %v6121_v38  ;;  %v6123_v36 = vrot.slane %v6121_v38, 4  ;;  %v12604_v14 = vld [vmem:[#allocation2 + $0x80] sm:$0x1]  ;;  %v13845_v21 = vld [vmem:[%s15969_s0 + $0xd4] sm:$0xf] }
 0x14a   :  { %v1738_v33 = vsel %vm13144_vm12, %v1733_v39, %v1737_v23  ;;  %v615_v61 = vor.u32 %v613_v31, %v612_v1  ;;  %v617_v56 = vrot.slane %v612_v1, 4  ;;  %v6129_v58 = vsel %vm13615_vm0, %v10669_v49, %v6128_v2  ;;  %v1014_v23 = vld [vmem:[#allocation2 + $0x150] sm:$0xf] }
 0x14b   :  { %v10328_v35 = vcombine.low %v1728_v17, %v1738_v33  ;;  %v1112_v63 = vld [vmem:[#allocation2 + $0x13c] sm:$0xf]  ;;  %v1008_v59 = vsel %vm13117_vm10, %v607_v45, %v1007_v48  ;;  %v6125_v28 = vsel %vm13615_vm0, %v6123_v36, %v6124_v11  ;;  %v6130_v52 = vrot.slane %v6128_v2, 4 }
 0x14c   :  { %v1111_v15 = vld [vmem:[#allocation2 + $0x138] sm:$0xf]  ;;  %v1749_v5 = vshll.u32 %v1112_v63, 16  ;;  %v1753_v62 = vshrl.u32 %v1112_v63, 16  ;;  %v616_v0 = vsel %vm13108_vm9, %v608_v55, %v615_v61  ;;  %1009 = vst [vmem:[#allocation2 + $0x144] sm:$0xf] %v1008_v59  ;;  %v1012_v43 = vsel %vm13128_vm11, %v617_v56, %v1011_v60 }
 0x14d   :  { %11457 = vmatmul.mubr.msk.bf16.gmra.mrb[44].mxu1 %vm2029_vm13, %v10328_v35  ;;  %v1152_v9 = vld [vmem:[#allocation2 + $0x140] sm:$0x1]  ;;  %v1740_v44 = vshrl.u32 %v1111_v15, 16  ;;  %v1743_v12 = vshll.u32 %v1111_v15, 16  ;;  %1010 = vst.msk [vmem:[#allocation2 + $0x148] sm:$0xf] %vm80_vm2, %v616_v0  ;;  %v10701_v24 = vcombine.low %v6122_v25, %v6125_v28 }
 0x14e   :  { %1013 = vst [vmem:[#allocation2 + $0x14c] sm:$0x1] %v1012_v43  ;;  %v6131_v40 = vrot.slane %v12604_v14, 5  ;;  %v1751_v16 = vrot.slane %v1749_v5, 5  ;;  %v1755_v32 = vrot.slane %v1753_v62, 4  ;;  %v1759_v13 = vshll.u32 %v1152_v9, 16 }
 0x14f   :  { %v619_v18 = vshrl.u32 %v66_v10, 16  ;;  %v1742_v19 = vrot.slane %v1740_v44, 4  ;;  %v1745_v22 = vrot.slane %v1743_v12, 5  ;;  %11758 = vmatprep.mubr.msk.bf16.mxu0 %vm2029_vm13, %v10701_v24  ;;  %v622_v54 = vshll.u32 %v66_v10, 16  ;;  %v5945_v10 = vld [vmem:[#allocation2 + $0x84] sm:$0xe] }
 0x150   :  { %v6132_v3 = vsel %vm13615_vm0, %v6130_v52, %v6131_v40  ;;  %v1756_v26 = vor.u32 %v1755_v32, %v1751_v16  ;;  %v1761_v53 = vrot.slane %v1759_v13, 5  ;;  %v627_v30 = vshrl.u32 %v67_v6, 16  ;;  %v1021_v52 = vld [vmem:[#allocation2 + $0x15c] sm:$0xf]  ;;  %v5946_v40 = vld [vmem:[#allocation2 + $0x90] sm:$0xe] }
 0x151   :  { %v10702_v29 = vcombine.low %v6129_v58, %v6132_v3  ;;  %v621_v17 = vrot.slane %v619_v18, 7  ;;  %v1746_v42 = vor.u32 %v1745_v22, %v1742_v19  ;;  %v630_v31 = vshll.u32 %v67_v6, 16  ;;  %v1018_v58 = vld [vmem:[#allocation2 + $0x158] sm:$0x1]  ;;  %v12605_v18 = vld [vmem:[#allocation2 + $0x88] sm:$0xf] }
 0x152   :  { %v636_v51 = vshrl.u32 %v13838_v8, 16  ;;  %v1757_v34 = vrot.slane %v1756_v26, 4  ;;  %v639_v46 = vshll.u32 %v13838_v8, 16  ;;  %v629_v1 = vrot.slane %v627_v30, 7  ;;  %v12606_v26 = vld [vmem:[#allocation2 + $0x8c] sm:$0x1] }
 0x153   :  { %11759 = vmatmul.mubr.msk.bf16.gmra.mrb[16].mxu0 %vm2029_vm13, %v10702_v29  ;;  %v624_v47 = vor.u32 %v622_v54, %v621_v17  ;;  %v625_v38 = vrot.slane %v621_v17, 4  ;;  %v1747_v11 = vrot.slane %v1746_v42, 4  ;;  %v1113_v39 = vld [vmem:[#allocation2 + $0x144] sm:$0xf]  ;;  %v644_v49 = vshrl.u32 %v13845_v21, 16 }
 0x154   :  { %v638_v48 = vrot.slane %v636_v51, 7  ;;  %v1762_v50 = vsel %vm13144_vm12, %v1757_v34, %v1761_v53  ;;  %v1114_v2 = vld [vmem:[#allocation2 + $0x148] sm:$0xf]  ;;  %v1764_v55 = vshrl.u32 %v1113_v39, 16  ;;  %v1767_v60 = vshll.u32 %v1113_v39, 16 }
 0x155   :  { %v1153_v45 = vld [vmem:[#allocation2 + $0x14c] sm:$0x1]  ;;  %v1015_v25 = vsel %vm13117_vm10, %v624_v47, %v1014_v23  ;;  %v1752_v36 = vsel %vm13144_vm12, %v1747_v11, %v1751_v16  ;;  %v1773_v33 = vshll.u32 %v1114_v2, 16  ;;  %v1777_v61 = vshrl.u32 %v1114_v2, 16  ;;  %v1025_v23 = vld [vmem:[#allocation2 + $0x164] sm:$0x1] }
 0x156   :  { %v1783_v56 = vshll.u32 %v1153_v45, 16  ;;  %1016 = vst [vmem:[#allocation2 + $0x150] sm:$0xf] %v1015_v25  ;;  %v10329_v35 = vcombine.low %v1752_v36, %v1762_v50  ;;  %v1766_v63 = vrot.slane %v1764_v55, 4  ;;  %v1769_v59 = vrot.slane %v1767_v60, 5 }
 0x157   :  { %v632_v28 = vor.u32 %v630_v31, %v629_v1  ;;  %v1775_v15 = vrot.slane %v1773_v33, 5  ;;  %v1779_v5 = vrot.slane %v1777_v61, 4  ;;  %v634_v0 = vrot.slane %v629_v1, 4  ;;  %v70_v31 = vld [vmem:[%s15969_s0 + $0xd8] sm:$0xf] }
 0x158   :  { %v1785_v62 = vrot.slane %v1783_v56, 5  ;;  %11460 = vmatprep.mubr.msk.bf16.mxu1 %vm2029_vm13, %v10329_v35  ;;  %v1770_v43 = vor.u32 %v1769_v59, %v1766_v63  ;;  %v641_v8 = vor.u32 %v639_v46, %v638_v48  ;;  %v642_v9 = vrot.slane %v638_v48, 4  ;;  %v12607_v1 = vld [vmem:[#allocation2 + $0x94] sm:$0xf]  ;;  %v12608_v55 = vld [vmem:[#allocation2 + $0x98] sm:$0x1] }
 0x159   :  { %v633_v6 = vsel %vm13108_vm9, %v625_v38, %v632_v28  ;;  %v1780_v44 = vor.u32 %v1779_v5, %v1775_v15  ;;  %v1019_v12 = vsel %vm13128_vm11, %v634_v0, %v1018_v58  ;;  %v646_v24 = vrot.slane %v644_v49, 7  ;;  %v71_v49 = vld [vmem:[%s15969_s0 + $0xdc] sm:$0xf] }
 0x15a   :  { %1017 = vst.msk [vmem:[#allocation2 + $0x154] sm:$0xf] %vm80_vm2, %v633_v6  ;;  %v647_v14 = vshll.u32 %v13845_v21, 16  ;;  %v1771_v16 = vrot.slane %v1770_v43, 4  ;;  %1020 = vst [vmem:[#allocation2 + $0x158] sm:$0x1] %v1019_v12  ;;  %v1022_v32 = vsel %vm13117_vm10, %v641_v8, %v1021_v52 }
 0x15b   :  { %v10670_v13 = vrot.slane %v5945_v10, 9  ;;  %v6135_v19 = vrot.slane %v12605_v18, 5  ;;  %v1781_v22 = vrot.slane %v1780_v44, 4  ;;  %v651_v54 = vrot.slane %v646_v24, 4  ;;  %1023 = vst [vmem:[#allocation2 + $0x15c] sm:$0xf] %v1022_v32 }
 0x15c   :  { %v649_v3 = vor.u32 %v647_v14, %v646_v24  ;;  %v6138_v53 = vrot.slane %v12606_v26, 5  ;;  %v1776_v29 = vsel %vm13144_vm12, %v1771_v16, %v1775_v15  ;;  %v10671_v30 = vrot.slane %v5946_v40, 9  ;;  %v1028_v14 = vld [vmem:[#allocation2 + $0x168] sm:$0xf]  ;;  %v72_v40 = vld [vmem:[%s15969_s0 + $0xe0] sm:$0xf] }
 0x15d   :  { %v1115_v21 = vld [vmem:[#allocation2 + $0x150] sm:$0xf]  ;;  %v6136_v17 = vsel %vm13615_vm0, %v10670_v13, %v6135_v19  ;;  %v6137_v42 = vrot.slane %v6135_v19, 4  ;;  %v1786_v51 = vsel %vm13144_vm12, %v1781_v22, %v1785_v62  ;;  %v1026_v11 = vsel %vm13128_vm11, %v651_v54, %v1025_v23 }
 0x15e   :  { %v1788_v34 = vshrl.u32 %v1115_v21, 16  ;;  %v1791_v47 = vshll.u32 %v1115_v21, 16  ;;  %v650_v38 = vsel %vm13108_vm9, %v642_v9, %v649_v3  ;;  %v10330_v46 = vcombine.low %v1776_v29, %v1786_v51  ;;  %1027 = vst [vmem:[#allocation2 + $0x164] sm:$0x1] %v1026_v11 }
 0x15f   :  { %1024 = vst.msk [vmem:[#allocation2 + $0x160] sm:$0xf] %vm80_vm2, %v650_v38  ;;  %v6139_v39 = vsel %vm13615_vm0, %v6137_v42, %v6138_v53  ;;  %v6142_v48 = vrot.slane %v12607_v1, 5  ;;  %v6145_v60 = vrot.slane %v12608_v55, 5  ;;  %v653_v61 = vshrl.u32 %v70_v31, 16 }
 0x160   :  { %v1790_v50 = vrot.slane %v1788_v34, 4  ;;  %v1793_v2 = vrot.slane %v1791_v47, 5  ;;  %v10703_v45 = vcombine.low %v6136_v17, %v6139_v39  ;;  %11461 = vmatmul.mubr.msk.bf16.gmra.mrb[48].mxu1 %vm2029_vm13, %v10330_v46  ;;  %v656_v56 = vshll.u32 %v70_v31, 16  ;;  %v73_v17 = vld [vmem:[%s15969_s0 + $0xe4] sm:$0xf] }
 0x161   :  { %v1116_v25 = vld [vmem:[#allocation2 + $0x154] sm:$0xf]  ;;  %v6143_v36 = vsel %vm13615_vm0, %v10671_v30, %v6142_v48  ;;  %v6144_v33 = vrot.slane %v6142_v48, 4  ;;  %v1154_v58 = vld [vmem:[#allocation2 + $0x158] sm:$0x1]  ;;  %v661_v28 = vshrl.u32 %v71_v49, 16 }
 0x162   :  { %v1794_v35 = vor.u32 %v1793_v2, %v1790_v50  ;;  %v1797_v63 = vshll.u32 %v1116_v25, 16  ;;  %v1801_v59 = vshrl.u32 %v1116_v25, 16  ;;  %11762 = vmatprep.mubr.msk.bf16.mxu0 %vm2029_vm13, %v10703_v45  ;;  %v1807_v52 = vshll.u32 %v1154_v58, 16  ;;  %v1117_v10 = vld [vmem:[#allocation2 + $0x15c] sm:$0xf] }
 0x163   :  { %v6146_v15 = vsel %vm13615_vm0, %v6144_v33, %v6145_v60  ;;  %v655_v5 = vrot.slane %v653_v61, 7  ;;  %v664_v62 = vshll.u32 %v71_v49, 16  ;;  %v1812_v8 = vshrl.u32 %v1117_v10, 16  ;;  %v1032_v47 = vld [vmem:[#allocation2 + $0x170] sm:$0x1] }
 0x164   :  { %v1795_v0 = vrot.slane %v1794_v35, 4  ;;  %v1799_v43 = vrot.slane %v1797_v63, 5  ;;  %v1803_v6 = vrot.slane %v1801_v59, 4  ;;  %v1809_v9 = vrot.slane %v1807_v52, 5  ;;  %v5947_v38 = vld [vmem:[#allocation2 + $0x9c] sm:$0xe] }
 0x165   :  { %v1815_v44 = vshll.u32 %v1117_v10, 16  ;;  %v10704_v12 = vcombine.low %v6143_v36, %v6146_v15  ;;  %v658_v24 = vor.u32 %v656_v56, %v655_v5  ;;  %v1814_v18 = vrot.slane %v1812_v8, 4  ;;  %v1155_v22 = vld [vmem:[#allocation2 + $0x164] sm:$0x1]  ;;  %v5948_v48 = vld [vmem:[#allocation2 + $0xa8] sm:$0xe] }
 0x166   :  { %v1800_v16 = vsel %vm13144_vm12, %v1795_v0, %v1799_v43  ;;  %v1804_v32 = vor.u32 %v1803_v6, %v1799_v43  ;;  %v1118_v13 = vld [vmem:[#allocation2 + $0x160] sm:$0xf]  ;;  %v659_v19 = vrot.slane %v655_v5, 4  ;;  %v663_v26 = vrot.slane %v661_v28, 7  ;;  %v1035_v55 = vld [vmem:[#allocation2 + $0x174] sm:$0xf] }
 0x167   :  { %v1817_v3 = vrot.slane %v1815_v44, 5  ;;  %v1821_v54 = vshll.u32 %v1118_v13, 16  ;;  %v1825_v23 = vshrl.u32 %v1118_v13, 16  ;;  %11763 = vmatmul.mubr.msk.bf16.gmra.mrb[20].mxu0 %vm2029_vm13, %v10704_v12  ;;  %v1831_v29 = vshll.u32 %v1155_v22, 16  ;;  %v12609_v28 = vld [vmem:[#allocation2 + $0xa0] sm:$0xf] }
 0x168   :  { %v1805_v53 = vrot.slane %v1804_v32, 4  ;;  %v1029_v21 = vsel %vm13117_vm10, %v658_v24, %v1028_v14  ;;  %v670_v42 = vshrl.u32 %v72_v40, 16  ;;  %v666_v34 = vor.u32 %v664_v62, %v663_v26  ;;  %v12610_v10 = vld [vmem:[#allocation2 + $0xa4] sm:$0x1]  ;;  %v1039_v62 = vld [vmem:[#allocation2 + $0x17c] sm:$0x1] }
 0x169   :  { %v1818_v30 = vor.u32 %v1817_v3, %v1814_v18  ;;  %v1823_v31 = vrot.slane %v1821_v54, 5  ;;  %v1827_v51 = vrot.slane %v1825_v23, 4  ;;  %1030 = vst [vmem:[#allocation2 + $0x168] sm:$0xf] %v1029_v21  ;;  %v1833_v11 = vrot.slane %v1831_v29, 5 }
 0x16a   :  { %v1810_v46 = vsel %vm13144_vm12, %v1805_v53, %v1809_v9  ;;  %v668_v39 = vrot.slane %v663_v26, 4  ;;  %v672_v1 = vrot.slane %v670_v42, 7  ;;  %v667_v45 = vsel %vm13108_vm9, %v659_v19, %v666_v34  ;;  %v12611_v43 = vld [vmem:[#allocation2 + $0xac] sm:$0xf]  ;;  %v12612_v8 = vld [vmem:[#allocation2 + $0xb0] sm:$0x1] }
 0x16b   :  { %v10331_v49 = vcombine.low %v1800_v16, %v1810_v46  ;;  %v1819_v50 = vrot.slane %v1818_v30, 4  ;;  %v1828_v2 = vor.u32 %v1827_v51, %v1823_v31  ;;  %1031 = vst.msk [vmem:[#allocation2 + $0x16c] sm:$0xf] %vm80_vm2, %v667_v45  ;;  %v673_v25 = vshll.u32 %v72_v40, 16  ;;  %v74_v16 = vld [vmem:[%s15969_s0 + $0xe8] sm:$0xf] }
 0x16c   :  { %v1033_v60 = vsel %vm13128_vm11, %v668_v39, %v1032_v47  ;;  %v676_v36 = vrot.slane %v672_v1, 4  ;;  %v678_v33 = vshrl.u32 %v73_v17, 16  ;;  %v681_v58 = vshll.u32 %v73_v17, 16  ;;  %v75_v26 = vld [vmem:[%s15969_s0 + $0xec] sm:$0xf] }
 0x16d   :  { %11464 = vmatprep.mubr.msk.bf16.mxu1 %vm2029_vm13, %v10331_v49  ;;  %v1824_v61 = vsel %vm13144_vm12, %v1819_v50, %v1823_v31  ;;  %v1829_v56 = vrot.slane %v1828_v2, 4  ;;  %1034 = vst [vmem:[#allocation2 + $0x170] sm:$0x1] %v1033_v60  ;;  %v10672_v35 = vrot.slane %v5947_v38, 9  ;;  %v675_v63 = vor.u32 %v673_v25, %v672_v1  ;;  %v76_v1 = vld [vmem:[%s15969_s0 + $0xf0] sm:$0xf] }
 0x16e   :  { %v680_v59 = vrot.slane %v678_v33, 7  ;;  %v6149_v52 = vrot.slane %v12609_v28, 5  ;;  %v6152_v15 = vrot.slane %v12610_v10, 5  ;;  %v10673_v0 = vrot.slane %v5948_v48, 9 }
 0x16f   :  { %v1834_v5 = vsel %vm13144_vm12, %v1829_v56, %v1833_v11  ;;  %v6156_v6 = vrot.slane %v12611_v43, 5  ;;  %v6159_v9 = vrot.slane %v12612_v8, 5  ;;  %v1036_v40 = vsel %vm13117_vm10, %v675_v63, %v1035_v55 }
 0x170   :  { %v10332_v44 = vcombine.low %v1824_v61, %v1834_v5  ;;  %v13917_v12 = vld [vmem:[#allocation2 + $0x168] sm:$0xf]  ;;  %v683_v24 = vor.u32 %v681_v58, %v680_v59  ;;  %v685_v14 = vrot.slane %v680_v59, 4  ;;  %1037 = vst [vmem:[#allocation2 + $0x174] sm:$0xf] %v1036_v40  ;;  %v6150_v18 = vsel %vm13615_vm0, %v10672_v35, %v6149_v52 }
 0x171   :  { %v1836_v32 = vshrl.u32 %v13917_v12, 16  ;;  %v1839_v13 = vshll.u32 %v13917_v12, 16  ;;  %v6151_v19 = vrot.slane %v6149_v52, 4  ;;  %v6157_v54 = vsel %vm13615_vm0, %v10673_v0, %v6156_v6  ;;  %v1046_v35 = vld [vmem:[#allocation2 + $0x188] sm:$0x1] }
 0x172   :  { %11465 = vmatmul.mubr.msk.bf16.gmra.mrb[52].mxu1 %vm2029_vm13, %v10332_v44  ;;  %v684_v22 = vsel %vm13108_vm9, %v676_v36, %v683_v24  ;;  %v1040_v3 = vsel %vm13128_vm11, %v685_v14, %v1039_v62  ;;  %v6158_v23 = vrot.slane %v6156_v6, 4  ;;  %v13938_v53 = vld [vmem:[#allocation2 + $0x16c] sm:$0xf]  ;;  %v687_v42 = vshrl.u32 %v74_v16, 16  ;;  %v1042_v36 = vld [vmem:[#allocation2 + $0x180] sm:$0xf] }
 0x173   :  { %v1838_v29 = vrot.slane %v1836_v32, 4  ;;  %v1841_v21 = vrot.slane %v1839_v13, 5  ;;  %1038 = vst.msk [vmem:[#allocation2 + $0x178] sm:$0xf] %vm80_vm2, %v684_v22  ;;  %1041 = vst [vmem:[#allocation2 + $0x17c] sm:$0x1] %v1040_v3  ;;  %v6153_v17 = vsel %vm13615_vm0, %v6151_v19, %v6152_v15 }
 0x174   :  { %v1156_v30 = vld [vmem:[#allocation2 + $0x170] sm:$0x1]  ;;  %v1845_v31 = vshll.u32 %v13938_v53, 16  ;;  %v1849_v51 = vshrl.u32 %v13938_v53, 16  ;;  %v10705_v34 = vcombine.low %v6150_v18, %v6153_v17  ;;  %v6160_v47 = vsel %vm13615_vm0, %v6158_v23, %v6159_v9  ;;  %v77_v14 = vld [vmem:[%s15969_s0 + $0xf4] sm:$0xf] }
 0x175   :  { %v1842_v38 = vor.u32 %v1841_v21, %v1838_v29  ;;  %v1855_v46 = vshll.u32 %v1156_v30, 16  ;;  %v10706_v11 = vcombine.low %v6157_v54, %v6160_v47  ;;  %v689_v39 = vrot.slane %v687_v42, 7  ;;  %v5949_v18 = vld [vmem:[#allocation2 + $0xb4] sm:$0xe]  ;;  %v1049_v17 = vld [vmem:[#allocation2 + $0x18c] sm:$0xf] }
 0x176   :  { %v1847_v48 = vrot.slane %v1845_v31, 5  ;;  %v1851_v49 = vrot.slane %v1849_v51, 4  ;;  %11766 = vmatprep.mubr.msk.bf16.mxu0 %vm2029_vm13, %v10705_v34  ;;  %v690_v50 = vshll.u32 %v74_v16, 16  ;;  %v695_v2 = vshrl.u32 %v75_v26, 16  ;;  %v12613_v51 = vld [vmem:[#allocation2 + $0xb8] sm:$0xf] }
 0x177   :  { %v1843_v45 = vrot.slane %v1842_v38, 4  ;;  %v1857_v55 = vrot.slane %v1855_v46, 5  ;;  %11767 = vmatmul.mubr.msk.bf16.gmra.mrb[24].mxu0 %vm2029_vm13, %v10706_v11  ;;  %v693_v60 = vrot.slane %v689_v39, 4  ;;  %v698_v25 = vshll.u32 %v75_v26, 16  ;;  %v13952_v61 = vld [vmem:[#allocation2 + $0x174] sm:$0xf] }
 0x178   :  { %v1852_v33 = vor.u32 %v1851_v49, %v1847_v48  ;;  %v692_v56 = vor.u32 %v690_v50, %v689_v39  ;;  %v697_v58 = vrot.slane %v695_v2, 7  ;;  %v704_v63 = vshrl.u32 %v76_v1, 16  ;;  %v5950_v47 = vld [vmem:[#allocation2 + $0xc0] sm:$0xe]  ;;  %v12614_v39 = vld [vmem:[#allocation2 + $0xbc] sm:$0x1] }
 0x179   :  { %v1848_v59 = vsel %vm13144_vm12, %v1843_v45, %v1847_v48  ;;  %v1860_v28 = vshrl.u32 %v13952_v61, 16  ;;  %v1863_v52 = vshll.u32 %v13952_v61, 16  ;;  %v707_v10 = vshll.u32 %v76_v1, 16  ;;  %v1053_v50 = vld [vmem:[#allocation2 + $0x194] sm:$0x1] }
 0x17a   :  { %v1853_v15 = vrot.slane %v1852_v33, 4  ;;  %v13958_v5 = vld [vmem:[#allocation2 + $0x178] sm:$0xf]  ;;  %v1157_v62 = vld [vmem:[#allocation2 + $0x17c] sm:$0x1]  ;;  %v700_v0 = vor.u32 %v698_v25, %v697_v58  ;;  %v702_v43 = vrot.slane %v697_v58, 4  ;;  %v1043_v6 = vsel %vm13117_vm10, %v692_v56, %v1042_v36 }
 0x17b   :  { %v1862_v8 = vrot.slane %v1860_v28, 4  ;;  %v1865_v9 = vrot.slane %v1863_v52, 5  ;;  %v1869_v44 = vshll.u32 %v13958_v5, 16  ;;  %v1873_v24 = vshrl.u32 %v13958_v5, 16  ;;  %1044 = vst [vmem:[#allocation2 + $0x180] sm:$0xf] %v1043_v6 }
 0x17c   :  { %v1858_v40 = vsel %vm13144_vm12, %v1853_v15, %v1857_v55  ;;  %v1879_v16 = vshll.u32 %v1157_v62, 16  ;;  %v701_v32 = vsel %vm13108_vm9, %v693_v60, %v700_v0  ;;  %v1047_v13 = vsel %vm13128_vm11, %v702_v43, %v1046_v35  ;;  %v4570_v0 = vld [vmem:[#allocation2 + $0xe8] sm:$0xf]  ;;  %v5951_v43 = vld [vmem:[#allocation2 + $0xe4] sm:$0xe] }
 0x17d   :  { %v10333_v19 = vcombine.low %v1848_v59, %v1858_v40  ;;  %v1866_v22 = vor.u32 %v1865_v9, %v1862_v8  ;;  %v1871_v3 = vrot.slane %v1869_v44, 5  ;;  %v1875_v54 = vrot.slane %v1873_v24, 4  ;;  %1045 = vst.msk [vmem:[#allocation2 + $0x184] sm:$0xf] %vm80_vm2, %v701_v32  ;;  %1048 = vst [vmem:[#allocation2 + $0x188] sm:$0x1] %v1047_v13 }
 0x17e   :  { %v1881_v23 = vrot.slane %v1879_v16, 5  ;;  %v706_v26 = vrot.slane %v704_v63, 7  ;;  %v712_v29 = vshrl.u32 %v77_v14, 16  ;;  %v715_v21 = vshll.u32 %v77_v14, 16  ;;  %v10465_v24 = vld [vmem:[%s15970_s1 + $0x4] sm:$0x3] }
 0x17f   :  { %11468 = vmatprep.mubr.msk.bf16.mxu1 %vm2029_vm13, %v10333_v19  ;;  %v1867_v42 = vrot.slane %v1866_v22, 4  ;;  %v1876_v30 = vor.u32 %v1875_v54, %v1871_v3  ;;  %v10674_v31 = vrot.slane %v5949_v18, 9  ;;  %v6163_v34 = vrot.slane %v12613_v51, 5  ;;  %v12615_v40 = vld [vmem:[#allocation2 + $0xc4] sm:$0xf] }
 0x180   :  { %v709_v38 = vor.u32 %v707_v10, %v706_v26  ;;  %v710_v46 = vrot.slane %v706_v26, 4  ;;  %v714_v11 = vrot.slane %v712_v29, 7  ;;  %v6166_v1 = vrot.slane %v12614_v39, 5  ;;  %v12616_v32 = vld [vmem:[#allocation2 + $0xc8] sm:$0x1] }
 0x181   :  { %v1872_v48 = vsel %vm13144_vm12, %v1867_v42, %v1871_v3  ;;  %v1877_v49 = vrot.slane %v1876_v30, 4  ;;  %v6164_v2 = vsel %vm13615_vm0, %v10674_v31, %v6163_v34  ;;  %v6165_v45 = vrot.slane %v6163_v34, 4  ;;  %v4571_v3 = vld [vmem:[#allocation2 + $0xec] sm:$0x1] }
 0x182   :  { %v13979_v55 = vld [vmem:[#allocation2 + $0x180] sm:$0xf]  ;;  %v717_v60 = vor.u32 %v715_v21, %v714_v11  ;;  %v719_v25 = vrot.slane %v714_v11, 4  ;;  %v1050_v36 = vsel %vm13117_vm10, %v709_v38, %v1049_v17  ;;  %v10675_v33 = vrot.slane %v5950_v47, 9 }
 0x183   :  { %v1882_v56 = vsel %vm13144_vm12, %v1877_v49, %v1881_v23  ;;  %v1884_v58 = vshrl.u32 %v13979_v55, 16  ;;  %v1887_v35 = vshll.u32 %v13979_v55, 16  ;;  %1051 = vst [vmem:[#allocation2 + $0x18c] sm:$0xf] %v1050_v36  ;;  %v6167_v63 = vsel %vm13615_vm0, %v6165_v45, %v6166_v1 }
 0x184   :  { %v10334_v59 = vcombine.low %v1872_v48, %v1882_v56  ;;  %v13989_v28 = vld [vmem:[#allocation2 + $0x184] sm:$0xf]  ;;  %v1158_v52 = vld [vmem:[#allocation2 + $0x188] sm:$0x1]  ;;  %v718_v10 = vsel %vm13108_vm9, %v710_v46, %v717_v60  ;;  %v1054_v15 = vsel %vm13128_vm11, %v719_v25, %v1053_v50  ;;  %v10707_v62 = vcombine.low %v6164_v2, %v6167_v63  ;;  %v14021_v2 = vld [vmem:[#allocation2 + $0xf4] sm:$0xf] }
 0x185   :  { %v1886_v6 = vrot.slane %v1884_v58, 4  ;;  %v1889_v8 = vrot.slane %v1887_v35, 5  ;;  %v1893_v9 = vshll.u32 %v13989_v28, 16  ;;  %v1897_v44 = vshrl.u32 %v13989_v28, 16  ;;  %1052 = vst.msk [vmem:[#allocation2 + $0x190] sm:$0xf] %vm80_vm2, %v718_v10 }
 0x186   :  { %1055 = vst [vmem:[#allocation2 + $0x194] sm:$0x1] %v1054_v15  ;;  %11469 = vmatmul.mubr.msk.bf16.gmra.mrb[56].mxu1 %vm2029_vm13, %v10334_v59  ;;  %v1903_v14 = vshll.u32 %v1158_v52, 16  ;;  %11770 = vmatprep.mubr.msk.bf16.mxu0 %vm2029_vm13, %v10707_v62  ;;  %v6170_v16 = vrot.slane %v12615_v40, 5  ;;  %v6173_v13 = vrot.slane %v12616_v32, 5  ;;  %v14006_v29 = vand.u32 %v10465_v24, %v12862_v4 }
 0x187   :  { %v1890_v18 = vor.u32 %v1889_v8, %v1886_v6  ;;  %v1895_v19 = vrot.slane %v1893_v9, 5  ;;  %v1899_v22 = vrot.slane %v1897_v44, 4  ;;  %v10676_v42 = vrot.slane %v5951_v43, 9  ;;  %v14030_v59 = vld [vmem:[#allocation2 + $0xf8] sm:$0x1] }
 0x188   :  { %v1905_v54 = vrot.slane %v1903_v14, 5  ;;  %v6171_v23 = vsel %vm13615_vm0, %v10675_v33, %v6170_v16  ;;  %v6172_v26 = vrot.slane %v6170_v16, 4  ;;  %v6177_v30 = vrot.slane %v4570_v0, 5  ;;  %11542 = vmatprep.subr.bf16.mxu1 %v14006_v29  ;;  %v5952_v33 = vld [vmem:[#allocation2 + $0xf0] sm:$0xe] }
 0x189   :  { %v1891_v21 = vrot.slane %v1890_v18, 4  ;;  %v1900_v17 = vor.u32 %v1899_v22, %v1895_v19  ;;  %v6180_v34 = vrot.slane %v4571_v3, 5  ;;  %v4576_v62 = vld [vmem:[#allocation2 + $0x100] sm:$0xf]  ;;  %v4577_v0 = vld [vmem:[#allocation2 + $0x104] sm:$0x1] }
 0x18a   :  { %v14008_v31 = vld [vmem:[#allocation2 + $0x18c] sm:$0xf]  ;;  %v6174_v51 = vsel %vm13615_vm0, %v6172_v26, %v6173_v13  ;;  %v6178_v49 = vsel %vm13615_vm0, %v10676_v42, %v6177_v30  ;;  %v6179_v50 = vrot.slane %v6177_v30, 4  ;;  %v5953_v43 = vld [vmem:[#allocation2 + $0xfc] sm:$0xe]  ;;  %v10677_v8 = vrot.slane %v5952_v33, 9 }
 0x18b   :  { %v1896_v47 = vsel %vm13144_vm12, %v1891_v21, %v1895_v19  ;;  %v1901_v38 = vrot.slane %v1900_v17, 4  ;;  %v1908_v46 = vshrl.u32 %v14008_v31, 16  ;;  %v1911_v11 = vshll.u32 %v14008_v31, 16  ;;  %v4580_v9 = vld [vmem:[#allocation2 + $0x110] sm:$0x1] }
 0x18c   :  { %v14017_v39 = vld [vmem:[#allocation2 + $0x190] sm:$0xf]  ;;  %v10708_v48 = vcombine.low %v6171_v23, %v6174_v51  ;;  %v6181_v63 = vsel %vm13615_vm0, %v6179_v50, %v6180_v34  ;;  %v5954_v44 = vld [vmem:[#allocation2 + $0x108] sm:$0xe]  ;;  %v6184_v14 = vrot.slane %v14021_v2, 5  ;;  %v6187_v40 = vrot.slane %v14030_v59, 5 }
 0x18d   :  { %v1159_v1 = vld [vmem:[#allocation2 + $0x194] sm:$0x1]  ;;  %v1906_v45 = vsel %vm13144_vm12, %v1901_v38, %v1905_v54  ;;  %v1910_v60 = vrot.slane %v1908_v46, 4  ;;  %v1913_v25 = vrot.slane %v1911_v11, 5  ;;  %v1917_v36 = vshll.u32 %v14017_v39, 16 }
 0x18e   :  { %v10335_v56 = vcombine.low %v1896_v47, %v1906_v45  ;;  %v1921_v58 = vshrl.u32 %v14017_v39, 16  ;;  %v1927_v35 = vshll.u32 %v1159_v1, 16  ;;  %11771 = vmatmul.mubr.msk.bf16.gmra.mrb[28].mxu0 %vm2029_vm13, %v10708_v48  ;;  %v10709_v15 = vcombine.low %v6178_v49, %v6181_v63  ;;  %v4579_v13 = vld [vmem:[#allocation2 + $0x10c] sm:$0xf]  ;;  %v12617_v19 = vld [vmem:[#allocation2] sm:$0xf] }
 0x18f   :  { %v1914_v52 = vor.u32 %v1913_v25, %v1910_v60  ;;  %v1919_v10 = vrot.slane %v1917_v36, 5  ;;  %v14038_v22 = vld [vmem:[#allocation2 + $0x4] sm:$0xf]  ;;  %v6185_v54 = vsel %vm13615_vm0, %v10677_v8, %v6184_v14  ;;  %v6186_v23 = vrot.slane %v6184_v14, 4  ;;  %v5955_v30 = vld [vmem:[#allocation2 + $0x114] sm:$0xe] }
 0x190   :  { %11472 = vmatprep.mubr.msk.bf16.mxu1 %vm2029_vm13, %v10335_v56  ;;  %v1923_v6 = vrot.slane %v1921_v58, 4  ;;  %11774 = vmatprep.mubr.msk.bf16.mxu0 %vm2029_vm13, %v10709_v15  ;;  %v1929_v32 = vrot.slane %v1927_v35, 5  ;;  %v10369_v3 = vcombine.low %v12617_v19, %v14038_v22  ;;  %v10678_v21 = vrot.slane %v5953_v43, 9  ;;  %v4582_v46 = vld [vmem:[#allocation2 + $0x118] sm:$0xf] }
 0x191   :  { %v1915_v24 = vrot.slane %v1914_v52, 4  ;;  %v6191_v17 = vrot.slane %v4576_v62, 5  ;;  %v6194_v42 = vrot.slane %v4577_v0, 5  ;;  %v6188_v51 = vsel %vm13615_vm0, %v6186_v23, %v6187_v40  ;;  %v4583_v50 = vld [vmem:[#allocation2 + $0x11c] sm:$0x1] }
 0x192   :  { %v1924_v16 = vor.u32 %v1923_v6, %v1919_v10  ;;  %v10679_v34 = vrot.slane %v5954_v44, 9  ;;  %v6198_v47 = vrot.slane %v4579_v13, 5  ;;  %v6201_v38 = vrot.slane %v4580_v9, 5  ;;  %v4585_v25 = vld [vmem:[#allocation2 + $0x124] sm:$0xf] }
 0x193   :  { %v1920_v18 = vsel %vm13144_vm12, %v1915_v24, %v1919_v10  ;;  %v10710_v1 = vcombine.low %v6185_v54, %v6188_v51  ;;  %v6192_v48 = vsel %vm13615_vm0, %v10678_v21, %v6191_v17  ;;  %v6193_v49 = vrot.slane %v6191_v17, 4  ;;  %v4588_v10 = vld [vmem:[#allocation2 + $0x130] sm:$0xf]  ;;  %v4586_v0 = vld [vmem:[#allocation2 + $0x128] sm:$0x1] }
 0x194   :  { %v1925_v26 = vrot.slane %v1924_v16, 4  ;;  %v6200_v60 = vrot.slane %v6198_v47, 4  ;;  %v10680_v33 = vrot.slane %v5955_v30, 9  ;;  %v6205_v56 = vrot.slane %v4582_v46, 5  ;;  %v5956_v43 = vld [vmem:[#allocation2 + $0x120] sm:$0xe] }
 0x195   :  { %v6195_v36 = vsel %vm13615_vm0, %v6193_v49, %v6194_v42  ;;  %v6199_v35 = vsel %vm13615_vm0, %v10679_v34, %v6198_v47  ;;  %v6208_v52 = vrot.slane %v4583_v50, 5  ;;  %v6212_v6 = vrot.slane %v4585_v25, 5  ;;  %v4589_v8 = vld [vmem:[#allocation2 + $0x134] sm:$0x1]  ;;  %v5957_v9 = vld [vmem:[#allocation2 + $0x12c] sm:$0xe] }
 0x196   :  { %v1930_v11 = vsel %vm13144_vm12, %v1925_v26, %v1929_v32  ;;  %11775 = vmatmul.mubr.msk.bf16.gmra.mrb[32].mxu0 %vm2029_vm13, %v10710_v1  ;;  %v10711_v58 = vcombine.low %v6192_v48, %v6195_v36  ;;  %v6202_v63 = vsel %vm13615_vm0, %v6200_v60, %v6201_v38  ;;  %v6206_v15 = vsel %vm13615_vm0, %v10680_v33, %v6205_v56  ;;  %v12619_v44 = vld [vmem:[#allocation2 + $0xc] sm:$0xf]  ;;  %v14061_v24 = vld [vmem:[#allocation2 + $0x10] sm:$0xf]  ;;  %v12621_v54 = vld [vmem:[#allocation2 + $0x18] sm:$0xf] }
 0x197   :  { %v10336_v45 = vcombine.low %v1920_v18, %v1930_v11  ;;  %v6207_v62 = vrot.slane %v6205_v56, 4  ;;  %v10370_v14 = vcombine.low %v12619_v44, %v14061_v24  ;;  %v10712_v40 = vcombine.low %v6199_v35, %v6202_v63  ;;  %v14066_v23 = vld [vmem:[#allocation2 + $0x1c] sm:$0xf]  ;;  %v4594_v51 = vld [vmem:[#allocation2 + $0x148] sm:$0xf] }
 0x198   :  { %11778 = vmatprep.mubr.msk.bf16.mxu0 %vm2029_vm13, %v10711_v58  ;;  %v6219_v32 = vrot.slane %v4588_v10, 5  ;;  %v10681_v18 = vrot.slane %v5956_v43, 9  ;;  %v6214_v19 = vrot.slane %v6212_v6, 4  ;;  %v10371_v26 = vcombine.low %v12621_v54, %v14066_v23  ;;  %v4591_v30 = vld [vmem:[#allocation2 + $0x13c] sm:$0xf] }
 0x199   :  { %11473 = vmatmul.mubr.msk.bf16.gmra.mrb[60].mxu1 %vm2029_vm13, %v10336_v45  ;;  %v6209_v16 = vsel %vm13615_vm0, %v6207_v62, %v6208_v52  ;;  %v10682_v21 = vrot.slane %v5957_v9, 9  ;;  %v6222_v42 = vrot.slane %v4589_v8, 5  ;;  %v6226_v38 = vrot.slane %v4591_v30, 5  ;;  %v4592_v1 = vld [vmem:[#allocation2 + $0x140] sm:$0x1] }
 0x19a   :  { %11478 = vmatprep.mubr.msk.bf16.mxu1 %vm2029_vm13, %v10369_v3  ;;  %v10713_v13 = vcombine.low %v6206_v15, %v6209_v16  ;;  %v6215_v3 = vrot.slane %v4586_v0, 5  ;;  %v6221_v17 = vrot.slane %v6219_v32, 4  ;;  %v6213_v34 = vsel %vm13615_vm0, %v10681_v18, %v6212_v6  ;;  %v5958_v48 = vld [vmem:[#allocation2 + $0x138] sm:$0xe]  ;;  %v4595_v50 = vld [vmem:[#allocation2 + $0x14c] sm:$0x1] }
 0x19b   :  { %v6220_v46 = vsel %vm13615_vm0, %v10682_v21, %v6219_v32  ;;  %v6233_v49 = vrot.slane %v4594_v51, 5  ;;  %v5959_v45 = vld [vmem:[#allocation2 + $0x144] sm:$0xe]  ;;  %v14082_v25 = vld [vmem:[#allocation2 + $0x28] sm:$0xf]  ;;  %v10683_v56 = vrot.slane %v5958_v48, 9 }
 0x19c   :  { %v6216_v47 = vsel %vm13615_vm0, %v6214_v19, %v6215_v3  ;;  %v6223_v11 = vsel %vm13615_vm0, %v6221_v17, %v6222_v42  ;;  %v12623_v60 = vld [vmem:[#allocation2 + $0x24] sm:$0xf]  ;;  %v6228_v58 = vrot.slane %v6226_v38, 4  ;;  %v6229_v35 = vrot.slane %v4592_v1, 5  ;;  %v12625_v63 = vld [vmem:[#allocation2 + $0x30] sm:$0xf] }
 0x19d   :  { %v10372_v36 = vcombine.low %v12623_v60, %v14082_v25  ;;  %v10714_v33 = vcombine.low %v6213_v34, %v6216_v47  ;;  %v14085_v52 = vld [vmem:[#allocation2 + $0x34] sm:$0xf]  ;;  %v10684_v15 = vrot.slane %v5959_v45, 9  ;;  %v6235_v62 = vrot.slane %v6233_v49, 4  ;;  %v4600_v6 = vld [vmem:[#allocation2 + $0x160] sm:$0xf] }
 0x19e   :  { %11779 = vmatmul.mubr.msk.bf16.gmra.mrb[36].mxu0 %vm2029_vm13, %v10712_v40  ;;  %v10373_v10 = vcombine.low %v12625_v63, %v14085_v52  ;;  %v6236_v0 = vrot.slane %v4595_v50, 5  ;;  %v4597_v43 = vld [vmem:[#allocation2 + $0x154] sm:$0xf]  ;;  %v5960_v8 = vld [vmem:[#allocation2 + $0x150] sm:$0xe]  ;;  %v6227_v9 = vsel %vm13615_vm0, %v10683_v56, %v6226_v38  ;;  %v6230_v44 = vsel %vm13615_vm0, %v6228_v58, %v6229_v35 }
 0x19f   :  { %11782 = vmatprep.mubr.msk.bf16.mxu0 %vm2029_vm13, %v10713_v13  ;;  %v6240_v40 = vrot.slane %v4597_v43, 5  ;;  %v5961_v16 = vld [vmem:[#allocation2 + $0x15c] sm:$0xe]  ;;  %v6234_v32 = vsel %vm13615_vm0, %v10684_v15, %v6233_v49  ;;  %v6247_v18 = vrot.slane %v4600_v6, 5  ;;  %v78_v19 = vld [vmem:[%s15969_s0 + $0xf8] sm:$0xf]  ;;  %v10716_v42 = vcombine.low %v6227_v9, %v6230_v44 }
 0x1a0   :  { %v6237_v13 = vsel %vm13615_vm0, %v6235_v62, %v6236_v0  ;;  %v12627_v3 = vld [vmem:[#allocation2 + $0x3c] sm:$0xf]  ;;  %v14103_v54 = vld [vmem:[#allocation2 + $0x40] sm:$0xf]  ;;  %v4601_v21 = vld [vmem:[#allocation2 + $0x164] sm:$0x1] }
 0x1a1   :  { %11479 = vmatmul.mubr.msk.bf16.vlgmr.msra.gmra.mrb[0].mxu1 %vm2029_vm13, %v10370_v14  ;;  %v4598_v14 = vld [vmem:[#allocation2 + $0x158] sm:$0x1]  ;;  %v79_v17 = vld [vmem:[%s15969_s0 + $0xfc] sm:$0xf]  ;;  %v10685_v30 = vrot.slane %v5960_v8, 9  ;;  %v10686_v34 = vrot.slane %v5961_v16, 9  ;;  %v10717_v38 = vcombine.low %v6234_v32, %v6237_v13 }
 0x1a2   :  { %11543 = vmatpush3.bf16.msra.mxu1 %v14006_v29  ;;  %11482 = vmatprep.mubr.msk.bf16.mxu1 %vm2029_vm13, %v10371_v26  ;;  %v10715_v29 = vcombine.low %v6220_v46, %v6223_v11  ;;  %v10374_v26 = vcombine.low %v12627_v3, %v14103_v54  ;;  %v6243_v51 = vrot.slane %v4598_v14, 5  ;;  %v10822_v47 = vld [vmem:[%s15970_s1 + $0xe] sm:$0x3]  ;;  %v6242_v46 = vrot.slane %v6240_v40, 4  ;;  %v12629_v49 = vld [vmem:[#allocation2 + $0x48] sm:$0xf] }
 0x1a3   :  { %v14112_v11 = vld [vmem:[#allocation2 + $0x16c] sm:$0xf]  ;;  %v721_v1 = vshrl.u32 %v78_v19, 16  ;;  %v724_v48 = vshll.u32 %v78_v19, 16  ;;  %v6249_v60 = vrot.slane %v6247_v18, 4  ;;  %v732_v58 = vshll.u32 %v79_v17, 16 }
 0x1a4   :  { %v14114_v50 = vld [vmem:[#allocation2 + $0x4c] sm:$0xf]  ;;  %v6241_v35 = vsel %vm13615_vm0, %v10685_v30, %v6240_v40  ;;  %v6254_v63 = vrot.slane %v14112_v11, 5  ;;  %v1056_v15 = vld [vmem:[#allocation2 + $0x198] sm:$0xf]  ;;  %v14122_v62 = vand.u32 %v10822_v47, %v12862_v4  ;;  %v6244_v0 = vsel %vm13615_vm0, %v6242_v46, %v6243_v51 }
 0x1a5   :  { %v10375_v45 = vcombine.low %v12629_v49, %v14114_v50  ;;  %v723_v56 = vrot.slane %v721_v1, 7  ;;  %v6248_v43 = vsel %vm13615_vm0, %v10686_v34, %v6247_v18  ;;  %v1060_v9 = vld [vmem:[#allocation2 + $0x1a0] sm:$0x1]  ;;  %v4604_v14 = vld [vmem:[#allocation2 + $0x170] sm:$0x1]  ;;  %vm10223_vm1 = vcmask 519168  }
 0x1a6   :  { %11783 = vmatmul.mubr.msk.bf16.gmra.mrb[40].mxu0 %vm2029_vm13, %v10714_v33  ;;  %v729_v33 = vshrl.u32 %v79_v17, 16  ;;  %v5962_v40 = vld [vmem:[#allocation2 + $0x168] sm:$0xe]  ;;  %11872 = vmatprep.subr.bf16.mxu0 %v14122_v62  ;;  %v4607_v19 = vld [vmem:[#allocation2 + $0x17c] sm:$0x1]  ;;  %v6257_v46 = vrot.slane %v4604_v14, 5 }
 0x1a7   :  { %11786 = vmatprep.mubr.msk.bf16.mxu0 %vm2029_vm13, %v10715_v29  ;;  %v4606_v29 = vld [vmem:[#allocation2 + $0x178] sm:$0xf]  ;;  %v726_v6 = vor.u32 %v724_v48, %v723_v56  ;;  %v727_v8 = vrot.slane %v723_v56, 4  ;;  %v5963_v3 = vld [vmem:[#allocation2 + $0x174] sm:$0xe]  ;;  %v10687_v27 = vrot.slane %v5962_v40, 9 }
 0x1a8   :  { %v6261_v16 = vrot.slane %v4606_v29, 5  ;;  %v10530_v34 = vld [vmem:[%s15970_s1 + $0x6] sm:$0x3]  ;;  %v12633_v11 = vld [vmem:[#allocation2 + $0x60] sm:$0xf]  ;;  %v10688_v48 = vrot.slane %v5963_v3, 9 }
 0x1a9   :  { %11483 = vmatmul.mubr.msk.bf16.gmra.mrb[4].mxu1 %vm2029_vm13, %v10372_v36  ;;  %v6250_v36 = vrot.slane %v4601_v21, 5  ;;  %v1057_v18 = vsel %vm13117_vm10, %v726_v6, %v1056_v15  ;;  %v14136_v21 = vld [vmem:[#allocation2 + $0x58] sm:$0xf]  ;;  %v14147_v1 = vld [vmem:[#allocation2 + $0x64] sm:$0xf]  ;;  %v6264_v37 = vrot.slane %v4607_v19, 5 }
 0x1aa   :  { %11486 = vmatprep.mubr.msk.bf16.mxu1 %vm2029_vm13, %v10373_v10  ;;  %v731_v10 = vrot.slane %v729_v33, 7  ;;  %1058 = vst [vmem:[#allocation2 + $0x198] sm:$0xf] %v1057_v18  ;;  %v10377_v20 = vcombine.low %v12633_v11, %v14147_v1  ;;  %v6263_v49 = vrot.slane %v6261_v16, 4  ;;  %v6255_v33 = vsel %vm13615_vm0, %v10687_v27, %v6254_v63  ;;  %v4610_v56 = vld [vmem:[#allocation2 + $0x188] sm:$0x1] }
 0x1ab   :  { %v6251_v44 = vsel %vm13615_vm0, %v6249_v60, %v6250_v36  ;;  %v4612_v60 = vld [vmem:[#allocation2 + $0x190] sm:$0xf]  ;;  %v14151_v36 = vand.u32 %v10530_v34, %v12862_v4  ;;  %v4613_v6 = vld [vmem:[#allocation2 + $0x194] sm:$0x1]  ;;  %v14169_v3 = vld [vmem:[#allocation2 + $0x7c] sm:$0xf] }
 0x1ac   :  { %v734_v32 = vor.u32 %v732_v58, %v731_v10  ;;  %v736_v13 = vrot.slane %v731_v10, 4  ;;  %v10719_v47 = vcombine.low %v6248_v43, %v6251_v44  ;;  %v5964_v58 = vld [vmem:[#allocation2 + $0x180] sm:$0xe]  ;;  %v6262_v10 = vsel %vm13615_vm0, %v10688_v48, %v6261_v16  ;;  %v12635_v44 = vld [vmem:[#allocation2 + $0x6c] sm:$0xf] }
 0x1ad   :  { %v6265_v15 = vsel %vm13615_vm0, %v6263_v49, %v6264_v37  ;;  %v6275_v43 = vrot.slane %v4612_v60, 5  ;;  %11608 = vmatprep.subr.bf16.mxu1 %v14151_v36  ;;  %v14166_v14 = vld [vmem:[#allocation2 + $0x70] sm:$0xf]  ;;  %v12637_v16 = vld [vmem:[#allocation2 + $0x78] sm:$0xf] }
 0x1ae   :  { %11787 = vmatmul.mubr.msk.bf16.gmra.mrb[44].mxu0 %vm2029_vm13, %v10716_v42  ;;  %v10718_v42 = vcombine.low %v6241_v35, %v6244_v0  ;;  %v735_v30 = vsel %vm13108_vm9, %v727_v8, %v734_v32  ;;  %v1061_v51 = vsel %vm13128_vm11, %v736_v13, %v1060_v9  ;;  %v5965_v0 = vld [vmem:[#allocation2 + $0x18c] sm:$0xe]  ;;  %v10689_v8 = vrot.slane %v5964_v58, 9  ;;  %v12639_v11 = vld [vmem:[#allocation2 + $0x84] sm:$0xf] }
 0x1af   :  { %11790 = vmatprep.mubr.msk.bf16.mxu0 %vm2029_vm13, %v10717_v38  ;;  %v6256_v38 = vrot.slane %v6254_v63, 4  ;;  %1059 = vst.msk [vmem:[#allocation2 + $0x19c] sm:$0xf] %vm80_vm2, %v735_v30  ;;  %1062 = vst [vmem:[#allocation2 + $0x1a0] sm:$0x1] %v1061_v51  ;;  %v6271_v9 = vrot.slane %v4610_v56, 5  ;;  %v10378_v40 = vcombine.low %v12635_v44, %v14166_v14  ;;  %v10721_v32 = vcombine.low %v6262_v10, %v6265_v15 }
 0x1b0   :  { %v10690_v19 = vrot.slane %v5965_v0, 9  ;;  %v10379_v18 = vcombine.low %v12637_v16, %v14169_v3  ;;  %v14187_v56 = vld [vmem:[#allocation2 + $0x94] sm:$0xf]  ;;  %v12643_v0 = vld [vmem:[#allocation2 + $0x9c] sm:$0xf] }
 0x1b1   :  { %11487 = vmatmul.mubr.msk.bf16.gmra.mrb[8].mxu1 %vm2029_vm13, %v10374_v26  ;;  %v12631_v26 = vld [vmem:[#allocation2 + $0x54] sm:$0xf]  ;;  %v6258_v29 = vsel %vm13615_vm0, %v6256_v38, %v6257_v46  ;;  %v5966_v46 = vld [vmem:[#allocation2 + $0x198] sm:$0xe] }
 0x1b2   :  { %11490 = vmatprep.mubr.msk.bf16.mxu1 %vm2029_vm13, %v10375_v45  ;;  %v10376_v17 = vcombine.low %v12631_v26, %v14136_v21  ;;  %v4609_v45 = vld [vmem:[#allocation2 + $0x184] sm:$0xf]  ;;  %v10720_v63 = vcombine.low %v6255_v33, %v6258_v29  ;;  %v6277_v26 = vrot.slane %v6275_v43, 4  ;;  %v12641_v29 = vld [vmem:[#allocation2 + $0x90] sm:$0xf] }
 0x1b3   :  { %v6268_v35 = vrot.slane %v4609_v45, 5  ;;  %v10691_v45 = vrot.slane %v5966_v46, 9  ;;  %v10381_v58 = vcombine.low %v12641_v29, %v14187_v56  ;;  %v12649_v16 = vld [vmem:[#allocation2 + $0xd8] sm:$0xf]  ;;  %v14239_v29 = vld [vmem:[#allocation2 + $0x10c] sm:$0xf] }
 0x1b5   :  { %v6270_v13 = vrot.slane %v6268_v35, 4  ;;  %v6269_v30 = vsel %vm13615_vm0, %v10689_v8, %v6268_v35  ;;  %v12645_v8 = vld [vmem:[#allocation2 + $0xa8] sm:$0xf] }
 0x1b6   :  { %11791 = vmatmul.mubr.msk.bf16.gmra.mrb[48].mxu0 %vm2029_vm13, %v10718_v42  ;;  %v4615_v42 = vld [vmem:[#allocation2 + $0x19c] sm:$0xf]  ;;  %v4616_v38 = vld [vmem:[#allocation2 + $0x1a0] sm:$0x1] }
 0x1b7   :  { %11794 = vmatprep.mubr.msk.bf16.mxu0 %vm2029_vm13, %v10719_v47  ;;  %v6272_v51 = vsel %vm13615_vm0, %v6270_v13, %v6271_v9  ;;  %v6282_v34 = vrot.slane %v4615_v42, 5  ;;  %v6276_v47 = vsel %vm13615_vm0, %v10690_v19, %v6275_v43  ;;  %v6285_v33 = vrot.slane %v4616_v38, 5  ;;  %v14198_v43 = vld [vmem:[#allocation2 + $0xa0] sm:$0xf]  ;;  %v14201_v9 = vld [vmem:[#allocation2 + $0xac] sm:$0xf] }
 0x1b8   :  { %v10722_v49 = vcombine.low %v6269_v30, %v6272_v51  ;;  %v10383_v44 = vcombine.low %v12645_v8, %v14201_v9  ;;  %v14208_v13 = vld [vmem:[#allocation2 + $0xb8] sm:$0xf]  ;;  %v12526_v42 = vld [vmem:[#allocation2 + $0x3c] sm:$0xff]   ;;  %v12651_v30 = vld [vmem:[#allocation2 + $0xe4] sm:$0xf] }
 0x1b9   :  { %11491 = vmatmul.mubr.msk.bf16.gmra.mrb[12].mxu1 %vm2029_vm13, %v10376_v17  ;;  %v6278_v17 = vrot.slane %v4613_v6, 5  ;;  %v6284_v60 = vrot.slane %v6282_v34, 4  ;;  %v6283_v35 = vsel %vm13615_vm0, %v10691_v45, %v6282_v34  ;;  %v10382_v6 = vcombine.low %v12643_v0, %v14198_v43  ;;  %v14219_v51 = vld [vmem:[#allocation2 + $0xe8] sm:$0xf]  ;;  %v14222_v38 = vld [vmem:[#allocation2 + $0xf4] sm:$0xf] }
 0x1ba   :  { %11494 = vmatprep.mubr.msk.bf16.mxu1 %vm2029_vm13, %v10377_v20  ;;  %v14184_v20 = vld [vmem:[#allocation2 + $0x88] sm:$0xf]  ;;  %v10386_v34 = vcombine.low %v12651_v30, %v14219_v51  ;;  %v12531_v0 = vld [vmem:[#allocation2 + $0x78] sm:$0xff]  }
 0x1bb   :  { %v6279_v27 = vsel %vm13615_vm0, %v6277_v26, %v6278_v17  ;;  %v10380_v48 = vcombine.low %v12639_v11, %v14184_v20  ;;  %v6286_v10 = vsel %vm13615_vm0, %v6284_v60, %v6285_v33  ;;  %v12525_v17 = vld [vmem:[#allocation2 + $0x30] sm:$0xff]   ;;  %v12529_v60 = vld [vmem:[#allocation2 + $0x60] sm:$0xff]   ;;  %v12657_v33 = vld [vmem:[#allocation2 + $0x108] sm:$0xf] }
 0x1bc   :  { %v10723_v37 = vcombine.low %v6276_v47, %v6279_v27  ;;  %v10724_v15 = vcombine.low %v6283_v35, %v6286_v10  ;;  %v12527_v47 = vld [vmem:[#allocation2 + $0x48] sm:$0xff]   ;;  %v12653_v27 = vld [vmem:[#allocation2 + $0xf0] sm:$0xf]  ;;  %v12659_v35 = vld [vmem:[#allocation2 + $0x114] sm:$0xf] }
 0x1bd   :  { %v10387_v46 = vcombine.low %v12653_v27, %v14222_v38  ;;  %v14246_v10 = vld [vmem:[#allocation2 + $0x118] sm:$0xf] }
 0x1be   :  { %11795 = vmatmul.mubr.msk.bf16.gmra.mrb[52].mxu0 %vm2029_vm13, %v10720_v63  ;;  %v12523_v63 = vld [vmem:[#allocation2 + $0x18] sm:$0xff]   ;;  %16006 = vst [vmem:[#allocation8_spill] sm:$0xff] %v14246_v10 }
 0x1bf   :  { %11798 = vmatprep.mubr.msk.bf16.mxu0 %vm2029_vm13, %v10721_v32  ;;  %v12647_v32 = vld [vmem:[#allocation2 + $0xb4] sm:$0xf]  ;;  %v12666_v30 = vld [vmem:[#allocation2 + $0x138] sm:$0xf] }
 0x1c0   :  { %v10384_v19 = vcombine.low %v12647_v32, %v14208_v13  ;;  %v12532_v32 = vld [vmem:[#allocation2 + $0x84] sm:$0xff]  }
 0x1c1   :  { %11495 = vmatmul.mubr.msk.bf16.gmra.mrb[16].mxu1 %vm2029_vm13, %v10378_v40  ;;  %v12524_v40 = vld [vmem:[#allocation2 + $0x24] sm:$0xff]  }
 0x1c2   :  { %11498 = vmatprep.mubr.msk.bf16.mxu1 %vm2029_vm13, %v10379_v18  ;;  %v14211_v18 = vld [vmem:[#allocation2 + $0xdc] sm:$0xf] }
 0x1c3   :  { %v10385_v26 = vcombine.low %v12649_v16, %v14211_v18  ;;  %v14258_v16 = vld [vmem:[#allocation2 + $0x130] sm:$0xf] }
 0x1c4   :  { %16008 = vst [vmem:[#allocation10_spill] sm:$0xff] %v14258_v16 }
 0x1c6   :  { %11799 = vmatmul.mubr.msk.bf16.gmra.mrb[56].mxu0 %vm2029_vm13, %v10722_v49  ;;  %v12655_v49 = vld [vmem:[#allocation2 + $0xfc] sm:$0xf] }
 0x1c7   :  { %11802 = vmatprep.mubr.msk.bf16.mxu0 %vm2029_vm13, %v10723_v37  ;;  %v14236_v37 = vld [vmem:[#allocation2 + $0x100] sm:$0xf] }
 0x1c8   :  { %v10388_v45 = vcombine.low %v12655_v49, %v14236_v37  ;;  %v3085_v49 = vrot.slane %v14066_v23, 5 }
 0x1c9   :  { %11499 = vmatmul.mubr.msk.bf16.gmra.mrb[20].mxu1 %vm2029_vm13, %v10380_v48  ;;  %v12528_v48 = vld [vmem:[#allocation2 + $0x54] sm:$0xff]  }
 0x1ca   :  { %11502 = vmatprep.mubr.msk.bf16.mxu1 %vm2029_vm13, %v10381_v58  ;;  %v10389_v58 = vcombine.low %v12657_v33, %v14239_v29  ;;  %v12668_v33 = vld [vmem:[#allocation2 + $0x14] sm:$0x1] }
 0x1ce   :  { %11803 = vmatmul.mubr.msk.bf16.gmra.mrb[60].mxu0 %vm2029_vm13, %v10724_v15  ;;  %v10390_v15 = vcombine.low %v12659_v35, %v14246_v10  ;;  %v3092_v35 = vrot.slane %v14082_v25, 5  ;;  %v12676_v25 = vld [vmem:[#allocation2 + $0x2c] sm:$0x1]  ;;  %v2981_v10 = vld [vmem:[#allocation2 + $0x84] sm:$0xe] }
 0x1cf   :  { %11808 = vmatprep.mubr.msk.bf16.mxu0 %vm2029_vm13, %v12523_v63  ;;  %v14249_v63 = vld [vmem:[#allocation2 + $0x124] sm:$0xf] }
 0x1d0   :  { %16007 = vst [vmem:[#allocation9_spill] sm:$0xff] %v14249_v63 }
 0x1d1   :  { %11503 = vmatmul.mubr.msk.bf16.gmra.mrb[24].mxu1 %vm2029_vm13, %v10382_v6  ;;  %v12661_v6 = vld [vmem:[#allocation2 + $0x120] sm:$0xf] }
 0x1d2   :  { %11506 = vmatprep.mubr.msk.bf16.mxu1 %vm2029_vm13, %v10383_v44  ;;  %v10391_v8 = vcombine.low %v12661_v6, %v14249_v63  ;;  %v5035_v44 = vshll.u32 %v14021_v2, 16  ;;  %v12683_v63 = vld [vmem:[#allocation2 + $0x80] sm:$0x1] }
 0x1d6   :  { %11809 = vmatmul.mubr.msk.bf16.vlgmr.msra.gmra.mrb[0].mxu0 %vm2029_vm13, %v12524_v40  ;;  %v5039_v40 = vshrl.u32 %v14021_v2, 16  ;;  %v3078_v2 = vrot.slane %v14061_v24, 5  ;;  %v3087_v24 = vrot.slane %v3085_v49, 4 }
 0x1d7   :  { %11873 = vmatpush3.bf16.msra.mxu0 %v14122_v62  ;;  %11812 = vmatprep.mubr.msk.bf16.mxu0 %vm2029_vm13, %v12525_v17  ;;  %v10919_v62 = vld [vmem:[%s15970_s1 + $0x10] sm:$0x3] }
 0x1d8   :  { %v14233_v11 = vand.u32 %v10919_v62, %v12862_v4  ;;  %v12530_v4 = vld [vmem:[#allocation2 + $0x6c] sm:$0xff]   ;;  %v14266_v27 = vrot.slane %v5039_v40, 4  ;;  %v3071_v62 = vrot.slane %v14038_v22, 5  ;;  %v14281_v22 = vld [vmem:[#allocation2 + $0x154] sm:$0xf] }
 0x1d9   :  { %11507 = vmatmul.mubr.msk.bf16.gmra.mrb[28].mxu1 %vm2029_vm13, %v10384_v19  ;;  %v12663_v19 = vld [vmem:[#allocation2 + $0x12c] sm:$0xf]  ;;  %v12533_v17 = vld [vmem:[#allocation2 + $0x90] sm:$0xff]   ;;  %16013 = vst [vmem:[#allocation15_spill] sm:$0xff] %v14281_v22  ;;  %v14286_v40 = vld [vmem:[#allocation2 + $0x160] sm:$0xf] }
 0x1da   :  { %11510 = vmatprep.mubr.msk.bf16.mxu1 %vm2029_vm13, %v10385_v26  ;;  %16005 = vst [vmem:[#allocation7_spill] sm:$0xff] %v14233_v11  ;;  %11938 = vmatprep.subr.bf16.mxu0 %v14233_v11  ;;  %v10392_v26 = vcombine.low %v12663_v19, %v14258_v16  ;;  %16011 = vst [vmem:[#allocation13_spill] sm:$0xff] %v14266_v27  ;;  %v2973_v19 = vld [vmem:[#allocation2 + $0x24] sm:$0xe]  ;;  %v12682_v16 = vld [vmem:[#allocation2 + $0x74] sm:$0x1] }
 0x1db   :  { %16014 = vst [vmem:[#allocation16_spill] sm:$0xff] %v14286_v40  ;;  %v10436_v11 = vrot.slane %v2973_v19, 9  ;;  %v12536_v19 = vld [vmem:[#allocation2 + $0xb4] sm:$0xff]  }
 0x1de   :  { %11813 = vmatmul.mubr.msk.bf16.gmra.mrb[4].mxu0 %vm2029_vm13, %v12526_v42  ;;  %v14261_v42 = vld [vmem:[#allocation2 + $0x13c] sm:$0xf] }
 0x1df   :  { %11816 = vmatprep.mubr.msk.bf16.mxu0 %vm2029_vm13, %v12527_v47  ;;  %16009 = vst [vmem:[#allocation11_spill] sm:$0xff] %v14261_v42  ;;  %v14264_v47 = vrot.slane %v5035_v44, 5  ;;  %v14284_v44 = vld [vmem:[#allocation2 + $0x15c] sm:$0xf] }
 0x1e1   :  { %11511 = vmatmul.mubr.msk.bf16.gmra.mrb[32].mxu1 %vm2029_vm13, %v10386_v34  ;;  %v10393_v34 = vcombine.low %v12666_v30, %v14261_v42  ;;  %16010 = vst [vmem:[#allocation12_spill] sm:$0xff] %v14264_v47  ;;  %v2974_v42 = vld [vmem:[#allocation2 + $0x30] sm:$0xe] }
 0x1e2   :  { %11514 = vmatprep.mubr.msk.bf16.mxu1 %vm2029_vm13, %v10387_v46  ;;  %v2970_v46 = vld [vmem:[#allocation2] sm:$0xe] }
 0x1e3   :  { %v10433_v30 = vrot.slane %v2970_v46, 9  ;;  %v3141_v46 = vrot.slane %v14169_v3, 5 }
 0x1e6   :  { %11817 = vmatmul.mubr.msk.bf16.gmra.mrb[8].mxu0 %vm2029_vm13, %v12528_v48  ;;  %v2971_v48 = vld [vmem:[#allocation2 + $0xc] sm:$0xe] }
 0x1e7   :  { %11820 = vmatprep.mubr.msk.bf16.mxu0 %vm2029_vm13, %v12529_v60 }
 0x1e9   :  { %11515 = vmatmul.mubr.msk.bf16.gmra.mrb[36].mxu1 %vm2029_vm13, %v10388_v45  ;;  %v12667_v45 = vld [vmem:[#allocation2 + $0x8] sm:$0x1] }
 0x1ea   :  { %11518 = vmatprep.mubr.msk.bf16.mxu1 %vm2029_vm13, %v10389_v58  ;;  %v3074_v60 = vrot.slane %v12667_v45, 5  ;;  %v3081_v58 = vrot.slane %v12668_v33, 5  ;;  %v3080_v45 = vrot.slane %v3078_v2, 4  ;;  %v3073_v33 = vrot.slane %v3071_v62, 4 }
 0x1ee   :  { %11821 = vmatmul.mubr.msk.bf16.gmra.mrb[12].mxu0 %vm2029_vm13, %v12530_v4  ;;  %v2972_v4 = vld [vmem:[#allocation2 + $0x18] sm:$0xe] }
 0x1ef   :  { %11824 = vmatprep.mubr.msk.bf16.mxu0 %vm2029_vm13, %v12531_v0  ;;  %v14278_v0 = vld [vmem:[#allocation2 + $0x148] sm:$0xf] }
 0x1f0   :  { %16012 = vst [vmem:[#allocation14_spill] sm:$0xff] %v14278_v0 }
 0x1f1   :  { %11519 = vmatmul.mubr.msk.bf16.gmra.mrb[40].mxu1 %vm2029_vm13, %v10390_v15  ;;  %v12669_v15 = vld [vmem:[#allocation2 + $0x144] sm:$0xf] }
 0x1f2   :  { %11522 = vmatprep.mubr.msk.bf16.mxu1 %vm2029_vm13, %v10391_v8  ;;  %v10394_v6 = vcombine.low %v12669_v15, %v14278_v0  ;;  %v12671_v8 = vld [vmem:[#allocation2 + $0x150] sm:$0xf]  ;;  %v10435_v15 = vrot.slane %v2972_v4, 9  ;;  %v3095_v0 = vrot.slane %v12676_v25, 5  ;;  %v3099_v4 = vrot.slane %v14085_v52, 5 }
 0x1f3   :  { %v10395_v23 = vcombine.low %v12671_v8, %v14281_v22  ;;  %v12675_v8 = vld [vmem:[#allocation2 + $0x20] sm:$0x1]  ;;  %v3094_v22 = vrot.slane %v3092_v35, 4  ;;  %v14306_v25 = vsel %vm13615_vm0, %v10433_v30, %v3071_v62  ;;  %v14314_v52 = vsel %vm13615_vm0, %v3080_v45, %v3081_v58  ;;  %v12678_v45 = vld [vmem:[#allocation2 + $0x44] sm:$0x1] }
 0x1f4   :  { %v3088_v47 = vrot.slane %v12675_v8, 5  ;;  %v3106_v8 = vrot.slane %v14103_v54, 5  ;;  %v14319_v54 = vsel %vm13615_vm0, %v3073_v33, %v3074_v60  ;;  %v14331_v58 = vsel %vm13615_vm0, %v10436_v11, %v3092_v35  ;;  %v12677_v60 = vld [vmem:[#allocation2 + $0x38] sm:$0x1] }
 0x1f5   :  { %v3109_v33 = vrot.slane %v12678_v45, 5  ;;  %v3127_v45 = vrot.slane %v14147_v1, 5 }
 0x1f6   :  { %11825 = vmatmul.mubr.msk.bf16.gmra.mrb[16].mxu0 %vm2029_vm13, %v12532_v32  ;;  %v12534_v32 = vld [vmem:[#allocation2 + $0x9c] sm:$0xff]   ;;  %v14327_v62 = vsel %vm13615_vm0, %v3087_v24, %v3088_v47  ;;  %v3113_v47 = vrot.slane %v14114_v50, 5  ;;  %v3134_v24 = vrot.slane %v14166_v14, 5 }
 0x1f7   :  { %11828 = vmatprep.mubr.msk.bf16.mxu0 %vm2029_vm13, %v12533_v17  ;;  %v12535_v17 = vld [vmem:[#allocation2 + $0xa8] sm:$0xff]   ;;  %v2978_v50 = vld [vmem:[#allocation2 + $0x60] sm:$0xe] }
 0x1f8   :  { %v3115_v14 = vrot.slane %v3113_v47, 4 }
 0x1f9   :  { %11523 = vmatmul.mubr.msk.bf16.gmra.mrb[44].mxu1 %vm2029_vm13, %v10392_v26  ;;  %v2975_v26 = vld [vmem:[#allocation2 + $0x3c] sm:$0xe] }
 0x1fa   :  { %11526 = vmatprep.mubr.msk.bf16.mxu1 %vm2029_vm13, %v10393_v34  ;;  %v10434_v34 = vrot.slane %v2971_v48, 9  ;;  %v10438_v30 = vrot.slane %v2975_v26, 9  ;;  %v12679_v48 = vld [vmem:[#allocation2 + $0x50] sm:$0x1]  ;;  %v3136_v26 = vrot.slane %v3134_v24, 4 }
 0x1fb   :  { %v3116_v27 = vrot.slane %v12679_v48, 5  ;;  %v12680_v48 = vld [vmem:[#allocation2 + $0x5c] sm:$0x1] }
 0x1fc   :  { %v14355_v11 = vsel %vm13615_vm0, %v10438_v30, %v3106_v8  ;;  %v16015_v30 = vcombine.low %v14284_v44, %v14286_v40  ;;  %v3137_v44 = vrot.slane %v12682_v16, 5  ;;  %v3155_v16 = vrot.slane %v14187_v56, 5 }
 0x1fe   :  { %11829 = vmatmul.mubr.msk.bf16.gmra.mrb[20].mxu0 %vm2029_vm13, %v12534_v32  ;;  %v14310_v32 = vsel %vm13615_vm0, %v10434_v34, %v3078_v2  ;;  %v10437_v2 = vrot.slane %v2974_v42, 9  ;;  %v3101_v34 = vrot.slane %v3099_v4, 4  ;;  %v12537_v42 = vld [vmem:[#allocation2 + $0xc0] sm:$0xff]  }
 0x1ff   :  { %11832 = vmatprep.mubr.msk.bf16.mxu0 %vm2029_vm13, %v12535_v17  ;;  %v3102_v17 = vrot.slane %v12677_v60, 5 }
 0x200   :  { %v14349_v60 = vsel %vm13615_vm0, %v10437_v2, %v3099_v4 }
 0x201   :  { %11527 = vmatmul.mubr.msk.bf16.gmra.mrb[48].mxu1 %vm2029_vm13, %v10394_v6  ;;  %v14323_v6 = vsel %vm13615_vm0, %v10435_v15, %v3085_v49  ;;  %v3108_v49 = vrot.slane %v3106_v8, 4  ;;  %v2976_v15 = vld [vmem:[#allocation2 + $0x48] sm:$0xe]  ;;  %v14361_v4 = vsel %vm13615_vm0, %v3101_v34, %v3102_v17  ;;  %v2980_v8 = vld [vmem:[#allocation2 + $0x78] sm:$0xe] }
 0x202   :  { %11530 = vmatprep.mubr.msk.bf16.mxu1 %vm2029_vm13, %v10395_v23  ;;  %v14335_v23 = vsel %vm13615_vm0, %v3094_v22, %v3095_v0  ;;  %v2977_v0 = vld [vmem:[#allocation2 + $0x54] sm:$0xe]  ;;  %v3120_v22 = vrot.slane %v14136_v21, 5  ;;  %v10439_v35 = vrot.slane %v2976_v15, 9  ;;  %v2979_v21 = vld [vmem:[#allocation2 + $0x6c] sm:$0xe] }
 0x203   :  { %v14365_v1 = vsel %vm13615_vm0, %v3108_v49, %v3109_v33  ;;  %v10440_v2 = vrot.slane %v2977_v0, 9  ;;  %v10441_v15 = vrot.slane %v2978_v50, 9  ;;  %v12681_v17 = vld [vmem:[#allocation2 + $0x68] sm:$0x1]  ;;  %v16016_v49 = vcombine.low %v13917_v12, %v13938_v53  ;;  %v12538_v50 = vld [vmem:[#allocation2 + $0xcc] sm:$0xff]  }
 0x204   :  { %v3122_v3 = vrot.slane %v3120_v22, 4  ;;  %v3130_v34 = vrot.slane %v12681_v17, 5  ;;  %v3129_v33 = vrot.slane %v3127_v45, 4  ;;  %v10442_v0 = vrot.slane %v2979_v21, 9  ;;  %v12539_v21 = vld [vmem:[#allocation2 + $0xf0] sm:$0xff]  }
 0x205   :  { %v10443_v40 = vrot.slane %v2980_v8, 9  ;;  %v14383_v53 = vsel %vm13615_vm0, %v10439_v35, %v3113_v47  ;;  %v2982_v47 = vld [vmem:[#allocation2 + $0x90] sm:$0xe]  ;;  %v14412_v35 = vsel %vm13615_vm0, %v3136_v26, %v3137_v44  ;;  %v12687_v44 = vld [vmem:[#allocation2 + $0xb0] sm:$0x1] }
 0x206   :  { %11833 = vmatmul.mubr.msk.bf16.gmra.mrb[24].mxu0 %vm2029_vm13, %v12536_v19  ;;  %v3123_v19 = vrot.slane %v12680_v48, 5  ;;  %v3148_v48 = vrot.slane %v14184_v20, 5  ;;  %v14392_v20 = vsel %vm13615_vm0, %v10440_v2, %v3120_v22  ;;  %v14404_v56 = vsel %vm13615_vm0, %v3129_v33, %v3130_v34  ;;  %v12685_v33 = vld [vmem:[#allocation2 + $0x98] sm:$0x1]  ;;  %v12688_v12 = vld [vmem:[#allocation2 + $0xbc] sm:$0x1] }
 0x207   :  { %11836 = vmatprep.mubr.msk.bf16.mxu0 %vm2029_vm13, %v12537_v42  ;;  %v3144_v42 = vrot.slane %v12683_v63, 5  ;;  %v14388_v63 = vsel %vm13615_vm0, %v3115_v14, %v3116_v27  ;;  %v14408_v27 = vsel %vm13615_vm0, %v10442_v0, %v3134_v24  ;;  %v10444_v22 = vrot.slane %v2981_v10, 9  ;;  %v2983_v0 = vld [vmem:[#allocation2 + $0x9c] sm:$0xe] }
 0x208   :  { %v14396_v8 = vsel %vm13615_vm0, %v3122_v3, %v3123_v19  ;;  %v14416_v14 = vsel %vm13615_vm0, %v10443_v40, %v3141_v46  ;;  %v3150_v2 = vrot.slane %v3148_v48, 4  ;;  %v12684_v3 = vld [vmem:[#allocation2 + $0x8c] sm:$0x1]  ;;  %v10445_v24 = vrot.slane %v2982_v47, 9 }
 0x209   :  { %11531 = vmatmul.mubr.msk.bf16.gmra.mrb[52].mxu1 %vm2029_vm13, %v16015_v30  ;;  %v3143_v30 = vrot.slane %v3141_v46, 4  ;;  %16017 = vst [vmem:[#allocation17_spill] sm:$0xff] %v14416_v14  ;;  %v3151_v19 = vrot.slane %v12684_v3, 5  ;;  %v3157_v34 = vrot.slane %v3155_v16, 4  ;;  %v3158_v26 = vrot.slane %v12685_v33, 5 }
 0x20a   :  { %11534 = vmatprep.mubr.msk.bf16.mxu1 %vm2029_vm13, %v16016_v49  ;;  %v14400_v49 = vsel %vm13615_vm0, %v10441_v15, %v3127_v45  ;;  %v7516_v15 = vld [vmem:[#allocation2 + $0x18] sm:$0xf]  ;;  %v3162_v10 = vrot.slane %v14198_v43, 5  ;;  %v16019_v40 = vcombine.low %v13952_v61, %v13958_v5  ;;  %v16020_v43 = vcombine.low %v13979_v55, %v13989_v28  ;;  %v2985_v5 = vld [vmem:[#allocation2 + $0xb4] sm:$0xe] }
 0x20b   :  { %v14420_v45 = vsel %vm13615_vm0, %v3143_v30, %v3144_v42  ;;  %v2984_v42 = vld [vmem:[#allocation2 + $0xa8] sm:$0xe]  ;;  %v7613_v47 = vshrl.u32 %v7516_v15, 16  ;;  %v7616_v3 = vshll.u32 %v7516_v15, 16  ;;  %v14451_v55 = vsel %vm13615_vm0, %v3150_v2, %v3151_v19  ;;  %v12686_v33 = vld [vmem:[#allocation2 + $0xa4] sm:$0x1] }
 0x20c   :  { %16018 = vst [vmem:[#allocation18_spill] sm:$0xff] %v14420_v45  ;;  %v10446_v28 = vrot.slane %v2983_v0, 9  ;;  %v14455_v61 = vsel %vm13615_vm0, %v10445_v24, %v3155_v16  ;;  %v3164_v15 = vrot.slane %v3162_v10, 4  ;;  %v3165_v30 = vrot.slane %v12686_v33, 5  ;;  %v7517_v19 = vld [vmem:[#allocation2 + $0x1c] sm:$0xf] }
 0x20d   :  { %v3172_v46 = vrot.slane %v12687_v44, 5  ;;  %v10448_v2 = vrot.slane %v2985_v5, 9  ;;  %v3179_v17 = vrot.slane %v12688_v12, 5  ;;  %v7615_v45 = vrot.slane %v7613_v47, 4  ;;  %v2987_v5 = vld [vmem:[#allocation2 + $0xe4] sm:$0xe] }
 0x20e   :  { %11837 = vmatmul.mubr.msk.bf16.gmra.mrb[28].mxu0 %vm2029_vm13, %v12538_v50  ;;  %v3169_v50 = vrot.slane %v14201_v9, 5  ;;  %v12540_v9 = vld [vmem:[#allocation2 + $0xfc] sm:$0xff]   ;;  %v7618_v14 = vrot.slane %v7616_v3, 5  ;;  %v3183_v44 = vrot.slane %v14211_v18, 5  ;;  %v14473_v12 = vsel %vm13615_vm0, %v3164_v15, %v3165_v30 }
 0x20f   :  { %11840 = vmatprep.mubr.msk.bf16.mxu0 %vm2029_vm13, %v12539_v21  ;;  %v3176_v21 = vrot.slane %v14208_v13, 5  ;;  %v14459_v13 = vsel %vm13615_vm0, %v3157_v34, %v3158_v26  ;;  %v14467_v34 = vsel %vm13615_vm0, %v10446_v28, %v3162_v10  ;;  %v2986_v26 = vld [vmem:[#allocation2 + $0xd8] sm:$0xe]  ;;  %v3190_v47 = vrot.slane %v14219_v51, 5  ;;  %v7520_v28 = vld [vmem:[#allocation2 + $0x28] sm:$0xf] }
 0x210   :  { %v7622_v3 = vshll.u32 %v7517_v19, 16  ;;  %v7626_v33 = vshrl.u32 %v7517_v19, 16  ;;  %v16021_v24 = vshll.u32 %v14030_v59, 16  ;;  %v16023_v10 = vcombine.low %v14008_v31, %v14017_v39 }
 0x211   :  { %11535 = vmatmul.mubr.msk.bf16.gmra.mrb[56].mxu1 %vm2029_vm13, %v16019_v40  ;;  %v14447_v40 = vsel %vm13615_vm0, %v10444_v22, %v3148_v48  ;;  %v10447_v48 = vrot.slane %v2984_v42, 9  ;;  %v3171_v22 = vrot.slane %v3169_v50, 4  ;;  %v3178_v0 = vrot.slane %v3176_v21, 4  ;;  %v7519_v42 = vld [vmem:[#allocation2 + $0x24] sm:$0xf] }
 0x212   :  { %11538 = vmatprep.mubr.msk.bf16.mxu1 %vm2029_vm13, %v16020_v43  ;;  %v12541_v43 = vld [vmem:[#allocation2 + $0x108] sm:$0xff]   ;;  %v14478_v16 = vrot.slane %v16021_v24, 5  ;;  %v14495_v59 = vsel %vm13615_vm0, %v10448_v2, %v3176_v21  ;;  %v16024_v30 = vcombine.low %v14306_v25, %v14319_v54  ;;  %v10449_v39 = vrot.slane %v2986_v26, 9  ;;  %v12542_v2 = vld [vmem:[#allocation2 + $0x114] sm:$0xff]   ;;  %v7522_v26 = vld [vmem:[#allocation2 + $0x30] sm:$0xf] }
 0x213   :  { %v14487_v18 = vsel %vm13615_vm0, %v10447_v48, %v3169_v50  ;;  %v14491_v51 = vsel %vm13615_vm0, %v3171_v22, %v3172_v46  ;;  %v14503_v31 = vsel %vm13615_vm0, %v3178_v0, %v3179_v17  ;;  %v7619_v50 = vor.u32 %v7618_v14, %v7615_v45  ;;  %v12689_v46 = vld [vmem:[#allocation2 + $0xe0] sm:$0x1]  ;;  %v12690_v24 = vld [vmem:[#allocation2 + $0xec] sm:$0x1] }
 0x214   :  { %16022 = vst [vmem:[#allocation19_spill] sm:$0xff] %v14478_v16  ;;  %v3186_v15 = vrot.slane %v12689_v46, 5  ;;  %v10450_v48 = vrot.slane %v2987_v5, 9  ;;  %v7518_v22 = vld [vmem:[#allocation2 + $0x20] sm:$0x1]  ;;  %v7640_v21 = vshll.u32 %v7519_v42, 16  ;;  %v14515_v5 = vsel %vm13615_vm0, %v10449_v39, %v3183_v44 }
 0x215   :  { %v3192_v19 = vrot.slane %v3190_v47, 4  ;;  %v3193_v25 = vrot.slane %v12690_v24, 5  ;;  %v14505_v54 = vrot.slane %v7622_v3, 5  ;;  %v7646_v45 = vshll.u32 %v7520_v28, 16  ;;  %16025 = vst [vmem:[#allocation20_spill] sm:$0xff] %v14515_v5 }
 0x216   :  { %11841 = vmatmul.mubr.msk.bf16.gmra.mrb[32].mxu0 %vm2029_vm13, %v12540_v9  ;;  %v7637_v9 = vshrl.u32 %v7519_v42, 16  ;;  %v7650_v0 = vshrl.u32 %v7520_v28, 16  ;;  %v14517_v3 = vrot.slane %v7619_v50, 4  ;;  %v7523_v46 = vld [vmem:[#allocation2 + $0x34] sm:$0xf]  ;;  %v14525_v14 = vsel %vm13615_vm0, %v10450_v48, %v3190_v47 }
 0x217   :  { %11844 = vmatprep.mubr.msk.bf16.mxu0 %vm2029_vm13, %v12541_v43  ;;  %v3185_v43 = vrot.slane %v3183_v44, 4  ;;  %v7642_v17 = vrot.slane %v7640_v21, 5  ;;  %v7525_v16 = vld [vmem:[#allocation2 + $0x3c] sm:$0xf]  ;;  %v14530_v44 = vsel %vm13615_vm0, %v3192_v19, %v3193_v25  ;;  %v7661_v50 = vshrl.u32 %v7522_v26, 16 }
 0x218   :  { %v7639_v28 = vrot.slane %v7637_v9, 4  ;;  %16027 = vst [vmem:[#allocation22_spill] sm:$0xff] %v14530_v44  ;;  %v7526_v42 = vld [vmem:[#allocation2 + $0x40] sm:$0xf]  ;;  %v14538_v47 = vrot.slane %v7646_v45, 5  ;;  %v7652_v9 = vrot.slane %v7650_v0, 4  ;;  %v16029_v21 = vcombine.low %v14323_v6, %v14327_v62 }
 0x219   :  { %11539 = vmatmul.mubr.msk.bf16.gmra.mrb[60].mxu1 %vm2029_vm13, %v16023_v10  ;;  %v7628_v10 = vrot.slane %v7626_v33, 4  ;;  %v7632_v33 = vshll.u32 %v7518_v22, 16  ;;  %v14521_v24 = vsel %vm13615_vm0, %v3185_v43, %v3186_v15  ;;  %v7664_v22 = vshll.u32 %v7522_v26, 16  ;;  %v12544_v6 = vld [vmem:[#allocation2 + $0x12c] sm:$0xff]  }
 0x21a   :  { %11544 = vmatprep.mubr.msk.bf16.mxu1 %vm2029_vm13, %v16024_v30  ;;  %v12543_v30 = vld [vmem:[#allocation2 + $0x120] sm:$0xff]   ;;  %16026 = vst [vmem:[#allocation21_spill] sm:$0xff] %v14521_v24  ;;  %v16028_v43 = vcombine.low %v14310_v32, %v14314_v52  ;;  %v7670_v15 = vshll.u32 %v7523_v46, 16  ;;  %v7674_v48 = vshrl.u32 %v7523_v46, 16  ;;  %v7521_v52 = vld [vmem:[#allocation2 + $0x2c] sm:$0x1] }
 0x21b   :  { %v7629_v39 = vor.u32 %v7628_v10, %v14505_v54  ;;  %v7685_v19 = vshrl.u32 %v7525_v16, 16  ;;  %v7688_v25 = vshll.u32 %v7525_v16, 16  ;;  %v14551_v10 = vrot.slane %v7632_v33, 5  ;;  %v2988_v0 = vld [vmem:[#allocation2 + $0xf0] sm:$0xe] }
 0x21c   :  { %v7698_v45 = vshrl.u32 %v7526_v42, 16  ;;  %v3197_v26 = vrot.slane %v14222_v38, 5  ;;  %v7663_v46 = vrot.slane %v7661_v50, 4  ;;  %v7656_v16 = vshll.u32 %v7521_v52, 16  ;;  %v2989_v33 = vld [vmem:[#allocation2 + $0xfc] sm:$0xe] }
 0x21d   :  { %v14558_v32 = vrot.slane %v7670_v15, 5  ;;  %v7524_v24 = vld [vmem:[#allocation2 + $0x38] sm:$0x1]  ;;  %v7687_v5 = vrot.slane %v7685_v19, 4  ;;  %v7690_v62 = vrot.slane %v7688_v25, 5  ;;  %v10451_v38 = vrot.slane %v2988_v0, 9 }
 0x21e   :  { %11845 = vmatmul.mubr.msk.bf16.gmra.mrb[36].mxu0 %vm2029_vm13, %v12542_v2  ;;  %v7653_v2 = vor.u32 %v7652_v9, %v14538_v47  ;;  %v3199_v9 = vrot.slane %v3197_v26, 4  ;;  %v10452_v52 = vrot.slane %v2989_v33, 9  ;;  %v3204_v15 = vrot.slane %v14236_v37, 5 }
 0x21f   :  { %11848 = vmatprep.mubr.msk.bf16.mxu0 %vm2029_vm13, %v12543_v30  ;;  %v7643_v30 = vor.u32 %v7642_v17, %v7639_v28  ;;  %v7676_v17 = vrot.slane %v7674_v48, 4  ;;  %v12691_v28 = vld [vmem:[#allocation2 + $0xf8] sm:$0x1]  ;;  %v14575_v25 = vrot.slane %v7656_v16, 5  ;;  %v3211_v0 = vrot.slane %v14239_v29, 5 }
 0x220   :  { %v14573_v19 = vrot.slane %v7653_v2, 4  ;;  %v2990_v2 = vld [vmem:[#allocation2 + $0x108] sm:$0xe]  ;;  %v14602_v29 = vsel %vm13615_vm0, %v10452_v52, %v3204_v15  ;;  %v16032_v52 = vld [vmem:[#allocation8_spill] sm:$0xff] }
 0x221   :  { %11545 = vmatmul.mubr.msk.bf16.vlgmr.msra.gmra.mrb[0].mxu1 %vm2029_vm13, %v16028_v43  ;;  %v7666_v43 = vrot.slane %v7664_v22, 5  ;;  %v14562_v44 = vrot.slane %v7643_v30, 4  ;;  %v7700_v22 = vrot.slane %v7698_v45, 4  ;;  %v7677_v30 = vor.u32 %v7676_v17, %v14558_v32  ;;  %v7529_v17 = vld [vmem:[#allocation2 + $0x4c] sm:$0xf] }
 0x222   :  { %11609 = vmatpush3.bf16.msra.mxu1 %v14151_v36  ;;  %11548 = vmatprep.mubr.msk.bf16.mxu1 %vm2029_vm13, %v16029_v21  ;;  %v7694_v36 = vshll.u32 %v7526_v42, 16  ;;  %v12545_v21 = vld [vmem:[#allocation2 + $0x138] sm:$0xff]   ;;  %v14560_v42 = vrot.slane %v7629_v39, 4  ;;  %v7527_v39 = vld [vmem:[#allocation2 + $0x44] sm:$0x1]  ;;  %v16031_v45 = vcombine.low %v14349_v60, %v14361_v4  ;;  %v14593_v60 = vsel %vm13615_vm0, %v10451_v38, %v3197_v26 }
 0x223   :  { %12004 = vmatprep.subr.bf16.mxu1 %v13084_v7  ;;  %v3200_v7 = vrot.slane %v12691_v28, 5  ;;  %v7667_v48 = vor.u32 %v7666_v43, %v7663_v46  ;;  %v16030_v28 = vcombine.low %v14331_v58, %v14335_v23  ;;  %v12692_v58 = vld [vmem:[#allocation2 + $0x104] sm:$0x1]  ;;  %v7704_v46 = vshll.u32 %v7527_v39, 16  ;;  %v12693_v38 = vld [vmem:[#allocation2 + $0x110] sm:$0x1] }
 0x224   :  { %v14564_v50 = vrot.slane %v7694_v36, 5  ;;  %v7680_v36 = vshll.u32 %v7524_v24, 16  ;;  %v7635_v37 = vsel %vm13144_vm12, %v14560_v42, %v14551_v10  ;;  %v3207_v23 = vrot.slane %v12692_v58, 5  ;;  %v12546_v43 = vld [vmem:[#allocation2 + $0x144] sm:$0xff]  }
 0x225   :  { %v7649_v24 = vsel %vm13144_vm12, %v14562_v44, %v14538_v47  ;;  %v14598_v10 = vsel %vm13615_vm0, %v3199_v9, %v3200_v7  ;;  %v12547_v44 = vld [vmem:[#allocation2 + $0x150] sm:$0xff]   ;;  %v7659_v47 = vsel %vm13144_vm12, %v14573_v19, %v14575_v25  ;;  %v7678_v26 = vrot.slane %v7677_v30, 4 }
 0x226   :  { %11849 = vmatmul.mubr.msk.bf16.gmra.mrb[40].mxu0 %vm2029_vm13, %v12544_v6  ;;  %v7691_v6 = vor.u32 %v7690_v62, %v7687_v5  ;;  %v7701_v4 = vor.u32 %v7700_v22, %v14564_v50  ;;  %v3206_v5 = vrot.slane %v3204_v15, 4  ;;  %v7668_v62 = vrot.slane %v7667_v48, 4  ;;  %v2991_v9 = vld [vmem:[#allocation2 + $0x114] sm:$0xe] }
 0x227   :  { %11852 = vmatprep.mubr.msk.bf16.mxu0 %vm2029_vm13, %v12545_v21  ;;  %v7528_v21 = vld [vmem:[#allocation2 + $0x48] sm:$0xf]  ;;  %v7682_v16 = vrot.slane %v7680_v36, 5  ;;  %v10453_v33 = vrot.slane %v2990_v2, 9  ;;  %v3213_v7 = vrot.slane %v3211_v0, 4  ;;  %v3214_v22 = vrot.slane %v12693_v38, 5 }
 0x228   :  { %v7692_v42 = vrot.slane %v7691_v6, 4  ;;  %v3218_v39 = vrot.slane %v16032_v52, 5  ;;  %v7702_v15 = vrot.slane %v7701_v4, 4  ;;  %v7706_v48 = vrot.slane %v7704_v46, 5  ;;  %v7531_v6 = vld [vmem:[#allocation2 + $0x54] sm:$0xf] }
 0x229   :  { %11549 = vmatmul.mubr.msk.bf16.gmra.mrb[4].mxu1 %vm2029_vm13, %v16030_v28  ;;  %v7530_v28 = vld [vmem:[#allocation2 + $0x50] sm:$0x1]  ;;  %v7712_v58 = vshll.u32 %v7528_v21, 16  ;;  %v14612_v19 = vsel %vm13615_vm0, %v3206_v5, %v3207_v23  ;;  %v7673_v25 = vsel %vm13144_vm12, %v7668_v62, %v14558_v32  ;;  %v7718_v30 = vshll.u32 %v7529_v17, 16  ;;  %v12549_v38 = vld [vmem:[#allocation2 + $0x168] sm:$0xff]  }
 0x22a   :  { %11552 = vmatprep.mubr.msk.bf16.mxu1 %vm2029_vm13, %v16031_v45  ;;  %v7709_v45 = vshrl.u32 %v7528_v21, 16  ;;  %v7722_v36 = vshrl.u32 %v7529_v17, 16  ;;  %v16033_v2 = vcombine.low %v14355_v11, %v14365_v1  ;;  %v7683_v4 = vsel %vm13144_vm12, %v7678_v26, %v7682_v16 }
 0x22b   :  { %v14626_v23 = vsel %vm13615_vm0, %v10453_v33, %v3211_v0  ;;  %v10454_v46 = vrot.slane %v2991_v9, 9  ;;  %v16034_v5 = vcombine.low %v14383_v53, %v14388_v63  ;;  %v7697_v11 = vsel %vm13144_vm12, %v7692_v42, %v14564_v50  ;;  %v12548_v33 = vld [vmem:[#allocation2 + $0x15c] sm:$0xff]   ;;  %v7536_v9 = vld [vmem:[#allocation2 + $0x68] sm:$0x1]  ;;  %v7539_v50 = vld [vmem:[#allocation2 + $0x74] sm:$0x1] }
 0x22c   :  { %v14637_v1 = vsel %vm13615_vm0, %v3213_v7, %v3214_v22  ;;  %v3220_v62 = vrot.slane %v3218_v39, 4  ;;  %v7728_v21 = vshll.u32 %v7530_v28, 16  ;;  %v7707_v0 = vsel %vm13144_vm12, %v7702_v15, %v7706_v48  ;;  %v7532_v7 = vld [vmem:[#allocation2 + $0x58] sm:$0xf]  ;;  %v7535_v28 = vld [vmem:[#allocation2 + $0x64] sm:$0xf] }
 0x22d   :  { %v7714_v26 = vrot.slane %v7712_v58, 5  ;;  %v7733_v16 = vshrl.u32 %v7531_v6, 16  ;;  %v16035_v53 = vsel %vm13144_vm12, %v14517_v3, %v14505_v54  ;;  %v14650_v17 = vrot.slane %v7718_v30, 5  ;;  %v14660_v3 = vld [vmem:[#allocation2 + $0x5c] sm:$0x1] }
 0x22e   :  { %11853 = vmatmul.mubr.msk.bf16.gmra.mrb[44].mxu0 %vm2029_vm13, %v12546_v43  ;;  %v12694_v43 = vld [vmem:[#allocation2 + $0x11c] sm:$0x1]  ;;  %v14646_v63 = vcombine.low %v16035_v53, %v7635_v37  ;;  %v7724_v42 = vrot.slane %v7722_v36, 4  ;;  %v14652_v22 = vcombine.low %v7649_v24, %v7659_v47  ;;  %v14656_v52 = vcombine.low %v7673_v25, %v7683_v4  ;;  %v7534_v37 = vld [vmem:[#allocation2 + $0x60] sm:$0xf] }
 0x22f   :  { %11856 = vmatprep.mubr.msk.bf16.mxu0 %vm2029_vm13, %v12547_v44  ;;  %v3221_v32 = vrot.slane %v12694_v43, 5  ;;  %v7711_v44 = vrot.slane %v7709_v45, 4  ;;  %v14662_v15 = vcombine.low %v7697_v11, %v7707_v0  ;;  %v14666_v48 = vsel %vm13615_vm0, %v10454_v46, %v3218_v39  ;;  %v7537_v45 = vld [vmem:[#allocation2 + $0x6c] sm:$0xf]  ;;  %v2992_v43 = vld [vmem:[#allocation2 + $0x120] sm:$0xe] }
 0x230   :  { %16036 = vst [vmem:[#allocation8_spill] sm:$0xff] %v14666_v48  ;;  %v14672_v47 = vrot.slane %v7728_v21, 5  ;;  %v14674_v25 = vrot.slane %v7733_v16, 4  ;;  %v7736_v30 = vshll.u32 %v7531_v6, 16  ;;  %v7742_v36 = vshll.u32 %v7532_v7, 16 }
 0x231   :  { %11553 = vmatmul.mubr.msk.bf16.gmra.mrb[8].mxu1 %vm2029_vm13, %v16033_v2  ;;  %v14670_v24 = vsel %vm13615_vm0, %v3220_v62, %v3221_v32  ;;  %v7715_v58 = vor.u32 %v7714_v26, %v7711_v44  ;;  %v7538_v2 = vld [vmem:[#allocation2 + $0x70] sm:$0xf]  ;;  %v7725_v4 = vor.u32 %v7724_v42, %v14650_v17  ;;  %v7746_v39 = vshrl.u32 %v7532_v7, 16  ;;  %v16038_v32 = vld [vmem:[#allocation9_spill] sm:$0xff] }
 0x232   :  { %11556 = vmatprep.mubr.msk.bf16.mxu1 %vm2029_vm13, %v16034_v5  ;;  %16037 = vst [vmem:[#allocation23_spill] sm:$0xff] %v14670_v24  ;;  %v7752_v46 = vshll.u32 %v14660_v3, 16  ;;  %v3225_v5 = vrot.slane %v16038_v32, 5  ;;  %v16039_v11 = vcombine.low %v14392_v20, %v14396_v8  ;;  %v7757_v6 = vshrl.u32 %v7534_v37, 16  ;;  %v12550_v3 = vld [vmem:[#allocation2 + $0x174] sm:$0xff]  }
 0x233   :  { %v7760_v62 = vshll.u32 %v7534_v37, 16  ;;  %v7766_v21 = vshll.u32 %v7535_v28, 16  ;;  %v7770_v0 = vshrl.u32 %v7535_v28, 16  ;;  %v16040_v44 = vcombine.low %v14400_v49, %v14404_v56  ;;  %v12695_v28 = vld [vmem:[#allocation2 + $0x128] sm:$0x1] }
 0x234   :  { %v7781_v26 = vshrl.u32 %v7537_v45, 16  ;;  %v7784_v16 = vshll.u32 %v7537_v45, 16  ;;  %v7794_v53 = vshrl.u32 %v7538_v2, 16  ;;  %v7716_v42 = vrot.slane %v7715_v58, 4 }
 0x235   :  { %v7738_v7 = vrot.slane %v7736_v30, 5  ;;  %v14689_v20 = vrot.slane %v7742_v36, 5  ;;  %v10455_v8 = vrot.slane %v2992_v43, 9  ;;  %v7726_v32 = vrot.slane %v7725_v4, 4 }
 0x236   :  { %11857 = vmatmul.mubr.msk.bf16.gmra.mrb[48].mxu0 %vm2029_vm13, %v12548_v33  ;;  %v7790_v33 = vshll.u32 %v7538_v2, 16  ;;  %v7748_v37 = vrot.slane %v7746_v39, 4  ;;  %v3228_v54 = vrot.slane %v12695_v28, 5  ;;  %v7759_v49 = vrot.slane %v7757_v6, 4  ;;  %v12696_v28 = vld [vmem:[#allocation2 + $0x134] sm:$0x1] }
 0x237   :  { %11860 = vmatprep.mubr.msk.bf16.mxu0 %vm2029_vm13, %v12549_v38  ;;  %v12551_v38 = vld [vmem:[#allocation2 + $0x180] sm:$0xff]   ;;  %v7762_v56 = vrot.slane %v7760_v62, 5  ;;  %v7772_v45 = vrot.slane %v7770_v0, 4  ;;  %v7783_v2 = vrot.slane %v7781_v26, 4  ;;  %v7786_v58 = vrot.slane %v7784_v16, 5  ;;  %v16041_v26 = vld [vmem:[#allocation10_spill] sm:$0xff] }
 0x238   :  { %v14693_v30 = vrot.slane %v7790_v33, 5  ;;  %v7796_v36 = vrot.slane %v7794_v53, 4  ;;  %v7721_v4 = vsel %vm13144_vm12, %v7716_v42, %v14650_v17  ;;  %v7739_v39 = vor.u32 %v7738_v7, %v14674_v25  ;;  %v2993_v0 = vld [vmem:[#allocation2 + $0x12c] sm:$0xe]  ;;  %v16044_v7 = vld [vmem:[#allocation18_spill] sm:$0xff] }
 0x239   :  { %11557 = vmatmul.mubr.msk.bf16.gmra.mrb[12].mxu1 %vm2029_vm13, %v16039_v11  ;;  %v3227_v11 = vrot.slane %v3225_v5, 4  ;;  %v14703_v6 = vsel %vm13615_vm0, %v10455_v8, %v3225_v5  ;;  %v7731_v62 = vsel %vm13144_vm12, %v7726_v32, %v14672_v47  ;;  %v3232_v16 = vrot.slane %v16041_v26, 5  ;;  %v16043_v42 = vld [vmem:[#allocation17_spill] sm:$0xff]  ;;  %v16046_v32 = vld [vmem:[#allocation11_spill] sm:$0xff] }
 0x23a   :  { %11560 = vmatprep.mubr.msk.bf16.mxu1 %vm2029_vm13, %v16040_v44  ;;  %v14691_v44 = vrot.slane %v7766_v21, 5  ;;  %v7749_v21 = vor.u32 %v7748_v37, %v14689_v20  ;;  %v7776_v33 = vshll.u32 %v7536_v9, 16  ;;  %v16042_v17 = vcombine.low %v14408_v27, %v14412_v35  ;;  %v2994_v35 = vld [vmem:[#allocation2 + $0x138] sm:$0xe]  ;;  %v12704_v26 = vld [vmem:[#allocation2 + $0x17c] sm:$0x1] }
 0x23b   :  { %v14718_v25 = vsel %vm13615_vm0, %v3227_v11, %v3228_v54  ;;  %v7763_v5 = vor.u32 %v7762_v56, %v7759_v49  ;;  %v7800_v53 = vshll.u32 %v7539_v50, 16  ;;  %v16045_v8 = vcombine.low %v16043_v42, %v16044_v7  ;;  %v7540_v56 = vld [vmem:[#allocation2 + $0x78] sm:$0xf]  ;;  %v12552_v50 = vld [vmem:[#allocation2 + $0x18c] sm:$0xff]  }
 0x23c   :  { %v7773_v47 = vor.u32 %v7772_v45, %v14691_v44  ;;  %v7754_v9 = vrot.slane %v7752_v46, 5  ;;  %v7797_v27 = vor.u32 %v7796_v36, %v14693_v30  ;;  %v14727_v37 = vcombine.low %v7721_v4, %v7731_v62 }
 0x23d   :  { %v7740_v54 = vrot.slane %v7739_v39, 4  ;;  %v10456_v11 = vrot.slane %v2993_v0, 9  ;;  %v3235_v49 = vrot.slane %v12696_v28, 5  ;;  %v7750_v45 = vrot.slane %v7749_v21, 4  ;;  %v12697_v0 = vld [vmem:[#allocation2 + $0x140] sm:$0x1] }
 0x23e   :  { %11861 = vmatmul.mubr.msk.bf16.gmra.mrb[52].mxu0 %vm2029_vm13, %v12550_v3  ;;  %v7787_v3 = vor.u32 %v7786_v58, %v7783_v2  ;;  %v7778_v46 = vrot.slane %v7776_v33, 5  ;;  %v7541_v2 = vld [vmem:[#allocation2 + $0x7c] sm:$0xf]  ;;  %v7764_v36 = vrot.slane %v7763_v5, 4  ;;  %v7774_v42 = vrot.slane %v7773_v47, 4 }
 0x23f   :  { %11864 = vmatprep.mubr.msk.bf16.mxu0 %vm2029_vm13, %v12551_v38  ;;  %v3239_v38 = vrot.slane %v16046_v32, 5  ;;  %v12553_v58 = vld [vmem:[#allocation2 + $0x198] sm:$0xff]   ;;  %v7802_v7 = vrot.slane %v7800_v53, 5  ;;  %v7798_v62 = vrot.slane %v7797_v27, 4  ;;  %v3242_v32 = vrot.slane %v12697_v0, 5  ;;  %v16048_v27 = vld [vmem:[#allocation14_spill] sm:$0xff] }
 0x240   :  { %v7788_v4 = vrot.slane %v7787_v3, 4  ;;  %v2995_v28 = vld [vmem:[#allocation2 + $0x144] sm:$0xe]  ;;  %v7805_v43 = vshrl.u32 %v7540_v56, 16  ;;  %v7808_v24 = vshll.u32 %v7540_v56, 16  ;;  %v7814_v21 = vshll.u32 %v7541_v2, 16 }
 0x241   :  { %11561 = vmatmul.mubr.msk.bf16.gmra.mrb[16].mxu1 %vm2029_vm13, %v16042_v17  ;;  %v3234_v17 = vrot.slane %v3232_v16, 4  ;;  %v3241_v39 = vrot.slane %v3239_v38, 4  ;;  %v7818_v48 = vshrl.u32 %v7541_v2, 16  ;;  %v7745_v33 = vsel %vm13144_vm12, %v7740_v54, %v14689_v20  ;;  %v7543_v54 = vld [vmem:[#allocation2 + $0x84] sm:$0xf] }
 0x242   :  { %11564 = vmatprep.mubr.msk.bf16.mxu1 %vm2029_vm13, %v16045_v8  ;;  %v10457_v8 = vrot.slane %v2994_v35, 9  ;;  %v7755_v5 = vsel %vm13144_vm12, %v7750_v45, %v7754_v9  ;;  %v14739_v47 = vsel %vm13615_vm0, %v10456_v11, %v3232_v16  ;;  %v16047_v3 = vcombine.low %v14447_v40, %v14451_v55  ;;  %v7544_v56 = vld [vmem:[#allocation2 + $0x88] sm:$0xf] }
 0x243   :  { %v14743_v53 = vsel %vm13615_vm0, %v3234_v17, %v3235_v49  ;;  %v7769_v20 = vsel %vm13144_vm12, %v7764_v36, %v14691_v44  ;;  %v7779_v9 = vsel %vm13144_vm12, %v7774_v42, %v7778_v46  ;;  %v10458_v16 = vrot.slane %v2995_v28, 9  ;;  %v12554_v46 = vld [vmem:[#allocation2 + $0x1a4] sm:$0xff]   ;;  %v7549_v28 = vld [vmem:[#allocation2 + $0x9c] sm:$0xf] }
 0x244   :  { %v3246_v35 = vrot.slane %v16048_v27, 5  ;;  %v16049_v11 = vcombine.low %v14455_v61, %v14459_v13  ;;  %v7793_v40 = vsel %vm13144_vm12, %v7788_v4, %v14693_v30  ;;  %v7803_v55 = vsel %vm13144_vm12, %v7798_v62, %v7802_v7  ;;  %v7546_v4 = vld [vmem:[#allocation2 + $0x90] sm:$0xf] }
 0x245   :  { %v14767_v44 = vsel %vm13615_vm0, %v10457_v8, %v3239_v38  ;;  %v14771_v49 = vsel %vm13615_vm0, %v3241_v39, %v3242_v32  ;;  %v7807_v61 = vrot.slane %v7805_v43, 4  ;;  %v7810_v13 = vrot.slane %v7808_v24, 5  ;;  %v12698_v24 = vld [vmem:[#allocation2 + $0x14c] sm:$0x1]  ;;  %v7547_v32 = vld [vmem:[#allocation2 + $0x94] sm:$0xf] }
 0x246   :  { %11865 = vmatmul.mubr.msk.bf16.gmra.mrb[56].mxu0 %vm2029_vm13, %v12552_v50  ;;  %16050 = vst [vmem:[#allocation9_spill] sm:$0xff] %v14767_v44  ;;  %16051 = vst [vmem:[#allocation10_spill] sm:$0xff] %v14771_v49  ;;  %v7542_v50 = vld [vmem:[#allocation2 + $0x80] sm:$0x1]  ;;  %v14773_v45 = vrot.slane %v7814_v21, 5  ;;  %v7820_v17 = vrot.slane %v7818_v48, 4  ;;  %v14775_v30 = vcombine.low %v7745_v33, %v7755_v5  ;;  %v14779_v42 = vcombine.low %v7769_v20, %v7779_v9 }
 0x247   :  { %11868 = vmatprep.mubr.msk.bf16.mxu0 %vm2029_vm13, %v12553_v58  ;;  %v7545_v58 = vld [vmem:[#allocation2 + $0x8c] sm:$0x1]  ;;  %v7829_v38 = vshrl.u32 %v7543_v54, 16  ;;  %v7832_v36 = vshll.u32 %v7543_v54, 16  ;;  %v14783_v7 = vsel %vm13615_vm0, %v10458_v16, %v3246_v35  ;;  %v3248_v43 = vrot.slane %v3246_v35, 4 }
 0x248   :  { %v3249_v8 = vrot.slane %v12698_v24, 5  ;;  %v14785_v48 = vcombine.low %v7793_v40, %v7803_v55  ;;  %v7824_v39 = vshll.u32 %v7542_v50, 16  ;;  %v7838_v0 = vshll.u32 %v7544_v56, 16  ;;  %v7550_v20 = vld [vmem:[#allocation2 + $0xa0] sm:$0xf] }
 0x249   :  { %11565 = vmatmul.mubr.msk.bf16.gmra.mrb[20].mxu1 %vm2029_vm13, %v16047_v3  ;;  %v7811_v21 = vor.u32 %v7810_v13, %v7807_v61  ;;  %v7821_v33 = vor.u32 %v7820_v17, %v14773_v45  ;;  %v7842_v5 = vshrl.u32 %v7544_v56, 16  ;;  %v7848_v3 = vshll.u32 %v7545_v58, 16  ;;  %v7553_v49 = vld [vmem:[#allocation2 + $0xac] sm:$0xf] }
 0x24a   :  { %11568 = vmatprep.mubr.msk.bf16.mxu1 %vm2029_vm13, %v16049_v11  ;;  %v7831_v9 = vrot.slane %v7829_v38, 4  ;;  %v7834_v16 = vrot.slane %v7832_v36, 5  ;;  %v7853_v27 = vshrl.u32 %v7546_v4, 16  ;;  %v7856_v35 = vshll.u32 %v7546_v4, 16  ;;  %v2996_v38 = vld [vmem:[#allocation2 + $0x150] sm:$0xe] }
 0x24b   :  { %v16052_v54 = vcombine.low %v14467_v34, %v14473_v12  ;;  %v7862_v11 = vshll.u32 %v7547_v32, 16  ;;  %v7866_v40 = vshrl.u32 %v7547_v32, 16  ;;  %v7877_v55 = vshrl.u32 %v7549_v28, 16 }
 0x24c   :  { %v7880_v56 = vshll.u32 %v7549_v28, 16  ;;  %v16053_v50 = vcombine.low %v14487_v18, %v14491_v51  ;;  %v14803_v61 = vsel %vm13615_vm0, %v3248_v43, %v3249_v8  ;;  %v14805_v13 = vrot.slane %v7824_v39, 5  ;;  %v2997_v51 = vld [vmem:[#allocation2 + $0x15c] sm:$0xe]  ;;  %v7548_v43 = vld [vmem:[#allocation2 + $0x98] sm:$0x1] }
 0x24d   :  { %v7886_v34 = vshll.u32 %v7550_v20, 16  ;;  %v7890_v12 = vshrl.u32 %v7550_v20, 16  ;;  %v14807_v17 = vrot.slane %v7811_v21, 4  ;;  %v14811_v58 = vrot.slane %v7848_v3, 5  ;;  %v16054_v20 = vld [vmem:[#allocation15_spill] sm:$0xff] }
 0x24e   :  { %11869 = vmatmul.mubr.msk.bf16.gmra.mrb[60].mxu0 %vm2029_vm13, %v12554_v46  ;;  %v7844_v46 = vrot.slane %v7842_v5, 4  ;;  %v14813_v36 = vrot.slane %v7821_v33, 4  ;;  %v7835_v18 = vor.u32 %v7834_v16, %v7831_v9  ;;  %v7855_v24 = vrot.slane %v7853_v27, 4  ;;  %v16055_v27 = vld [vmem:[#allocation16_spill] sm:$0xff] }
 0x24f   :  { %11874 = vmatprep.mubr.msk.bf16.mxu0 %vm2029_vm13, %v14646_v63  ;;  %v14809_v63 = vrot.slane %v7838_v0, 5  ;;  %v7858_v4 = vrot.slane %v7856_v35, 5  ;;  %v14815_v8 = vrot.slane %v7862_v11, 5  ;;  %v7868_v39 = vrot.slane %v7866_v40, 4 }
 0x250   :  { %v7879_v32 = vrot.slane %v7877_v55, 4  ;;  %v7882_v28 = vrot.slane %v7880_v56, 5  ;;  %v10459_v21 = vrot.slane %v2996_v38, 9  ;;  %v3253_v0 = vrot.slane %v16054_v20, 5  ;;  %v16059_v20 = vld [vmem:[#allocation21_spill] sm:$0xff] }
 0x251   :  { %11569 = vmatmul.mubr.msk.bf16.gmra.mrb[24].mxu1 %vm2029_vm13, %v16052_v54  ;;  %v7551_v54 = vld [vmem:[#allocation2 + $0xa4] sm:$0x1]  ;;  %v14818_v5 = vrot.slane %v7886_v34, 5  ;;  %v7892_v3 = vrot.slane %v7890_v12, 4  ;;  %v7845_v33 = vor.u32 %v7844_v46, %v14809_v63  ;;  %v10460_v16 = vrot.slane %v2997_v51, 9  ;;  %v16057_v12 = vld [vmem:[#allocation7_spill] sm:$0xff] }
 0x252   :  { %11572 = vmatprep.mubr.msk.bf16.mxu1 %vm2029_vm13, %v16053_v50  ;;  %v12699_v50 = vld [vmem:[#allocation2 + $0x158] sm:$0x1]  ;;  %v3260_v35 = vrot.slane %v16055_v27, 5  ;;  %v14828_v40 = vrot.slane %v7835_v18, 4  ;;  %v7859_v55 = vor.u32 %v7858_v4, %v7855_v24  ;;  %v7872_v56 = vshll.u32 %v7548_v43, 16  ;;  %v16058_v18 = vld [vmem:[#allocation20_spill] sm:$0xff] }
 0x253   :  { %v3256_v9 = vrot.slane %v12699_v50, 5  ;;  %v16056_v34 = vcombine.low %v14495_v59, %v14503_v31  ;;  %v7869_v46 = vor.u32 %v7868_v39, %v14815_v8  ;;  %v7883_v38 = vor.u32 %v7882_v28, %v7879_v32  ;;  %v12701_v50 = vld [vmem:[#allocation2 + $0x178] sm:$0xf] }
 0x254   :  { %v7896_v51 = vshll.u32 %v7551_v54, 16  ;;  %v16060_v24 = vcombine.low %v16058_v18, %v16059_v20  ;;  %v14848_v59 = vsel %vm13615_vm0, %v10459_v21, %v3253_v0  ;;  %v3255_v31 = vrot.slane %v3253_v0, 4  ;;  %v2999_v54 = vld [vmem:[#allocation2 + $0x174] sm:$0xe]  ;;  %v12702_v21 = vld [vmem:[#allocation2 + $0x164] sm:$0x1] }
 0x255   :  { %v7893_v4 = vor.u32 %v7892_v3, %v14818_v5  ;;  %v7846_v39 = vrot.slane %v7845_v33, 4  ;;  %v14853_v32 = vsel %vm13615_vm0, %v10460_v16, %v3260_v35  ;;  %v3262_v28 = vrot.slane %v3260_v35, 4  ;;  %v12703_v35 = vld [vmem:[#allocation2 + $0x170] sm:$0x1] }
 0x256   :  { %11875 = vmatmul.mubr.msk.bf16.vlgmr.msra.gmra.mrb[0].mxu0 %vm2029_vm13, %v14652_v22  ;;  %v7827_v22 = vsel %vm13144_vm12, %v14813_v36, %v14805_v13  ;;  %v2998_v13 = vld [vmem:[#allocation2 + $0x168] sm:$0xe]  ;;  %v12700_v36 = vld [vmem:[#allocation2 + $0x16c] sm:$0xf]  ;;  %v3274_v27 = vrot.slane %v12701_v50, 5  ;;  %v3263_v0 = vrot.slane %v12702_v21, 5  ;;  %v10491_v21 = vcombine.low %v14783_v7, %v14803_v61 }
 0x257   :  { %11939 = vmatpush3.bf16.msra.mxu0 %v16057_v12  ;;  %11878 = vmatprep.mubr.msk.bf16.mxu0 %vm2029_vm13, %v14656_v52  ;;  %v3267_v43 = vrot.slane %v12700_v36, 5  ;;  %v7841_v52 = vsel %vm13144_vm12, %v14828_v40, %v14809_v63  ;;  %v7860_v3 = vrot.slane %v7859_v55, 4  ;;  %v7552_v12 = vld [vmem:[#allocation2 + $0xa8] sm:$0xf]  ;;  %v7870_v18 = vrot.slane %v7869_v46, 4 }
 0x258   :  { %v7884_v33 = vrot.slane %v7883_v38, 4  ;;  %v7898_v20 = vrot.slane %v7896_v51, 5  ;;  %v7894_v16 = vrot.slane %v7893_v4, 4  ;;  %v3270_v62 = vrot.slane %v12703_v35, 5  ;;  %v16061_v46 = vld [vmem:[#allocation13_spill] sm:$0xff]  ;;  %v16062_v38 = vld [vmem:[#allocation12_spill] sm:$0xff] }
 0x259   :  { %11573 = vmatmul.mubr.msk.bf16.gmra.mrb[28].mxu1 %vm2029_vm13, %v16056_v34  ;;  %v7874_v34 = vrot.slane %v7872_v56, 5  ;;  %v3269_v36 = vrot.slane %v3267_v43, 4  ;;  %v10462_v2 = vrot.slane %v2999_v54, 9  ;;  %v3276_v50 = vrot.slane %v3274_v27, 4  ;;  %v16064_v4 = vld [vmem:[#allocation22_spill] sm:$0xff] }
 0x25a   :  { %11576 = vmatprep.mubr.msk.bf16.mxu1 %vm2029_vm13, %v16060_v24  ;;  %v10461_v24 = vrot.slane %v2998_v13, 9  ;;  %v3277_v11 = vrot.slane %v12704_v26, 5  ;;  %v7901_v44 = vshrl.u32 %v7552_v12, 16  ;;  %v7904_v63 = vshll.u32 %v7552_v12, 16  ;;  %v7572_v7 = vld [vmem:[#allocation2 + $0x110] sm:$0x1] }
 0x25b   :  { %v7851_v40 = vsel %vm13144_vm12, %v7846_v39, %v14811_v58  ;;  %v14866_v55 = vsel %vm13615_vm0, %v3255_v31, %v3256_v9  ;;  %v14870_v56 = vsel %vm13615_vm0, %v3262_v28, %v3263_v0  ;;  %v7865_v26 = vsel %vm13144_vm12, %v7860_v3, %v14815_v8 }
 0x25c   :  { %v16063_v51 = vor.u32 %v16061_v46, %v16062_v38  ;;  %v16065_v58 = vcombine.low %v14525_v14, %v16064_v4  ;;  %v7875_v9 = vsel %vm13144_vm12, %v7870_v18, %v7874_v34  ;;  %v7889_v8 = vsel %vm13144_vm12, %v7884_v33, %v14818_v5 }
 0x25d   :  { %v14893_v31 = vsel %vm13615_vm0, %v10461_v24, %v3267_v43  ;;  %v16066_v13 = vcombine.low %v14593_v60, %v14598_v10  ;;  %v7899_v14 = vsel %vm13144_vm12, %v7894_v16, %v7898_v20  ;;  %v7910_v39 = vshll.u32 %v7553_v49, 16  ;;  %v7554_v60 = vld [vmem:[#allocation2 + $0xb0] sm:$0x1]  ;;  %v7561_v24 = vld [vmem:[#allocation2 + $0xcc] sm:$0xf] }
 0x25e   :  { %11879 = vmatmul.mubr.msk.bf16.gmra.mrb[4].mxu0 %vm2029_vm13, %v14662_v15  ;;  %v14878_v15 = vrot.slane %v16063_v51, 4  ;;  %v7914_v28 = vshrl.u32 %v7553_v49, 16  ;;  %v14907_v5 = vsel %vm13615_vm0, %v10462_v2, %v3274_v27  ;;  %v14911_v43 = vsel %vm13615_vm0, %v3276_v50, %v3277_v11  ;;  %v7555_v11 = vld [vmem:[#allocation2 + $0xb4] sm:$0xf]  ;;  %v7556_v27 = vld [vmem:[#allocation2 + $0xb8] sm:$0xf] }
 0x25f   :  { %11882 = vmatprep.mubr.msk.bf16.mxu0 %vm2029_vm13, %v14727_v37  ;;  %v14903_v37 = vsel %vm13615_vm0, %v3269_v36, %v3270_v62  ;;  %v7903_v10 = vrot.slane %v7901_v44, 4  ;;  %v7906_v54 = vrot.slane %v7904_v63, 5  ;;  %v16067_v62 = vsel %vm13144_vm12, %v14807_v17, %v14773_v45  ;;  %v7557_v45 = vld [vmem:[#allocation2 + $0xbc] sm:$0x1]  ;;  %v7558_v17 = vld [vmem:[#allocation2 + $0xc0] sm:$0xf] }
 0x260   :  { %v14920_v49 = vcombine.low %v16067_v62, %v7827_v22  ;;  %v14922_v0 = vcombine.low %v7841_v52, %v7851_v40  ;;  %v10492_v2 = vcombine.low %v14848_v59, %v14866_v55  ;;  %v10493_v44 = vcombine.low %v14853_v32, %v14870_v56  ;;  %v7559_v22 = vld [vmem:[#allocation2 + $0xc4] sm:$0xf]  ;;  %v7562_v63 = vld [vmem:[#allocation2 + $0xd0] sm:$0xf] }
 0x261   :  { %11577 = vmatmul.mubr.msk.bf16.gmra.mrb[32].mxu1 %vm2029_vm13, %v16065_v58  ;;  %v14928_v3 = vcombine.low %v7865_v26, %v7875_v9  ;;  %v14930_v34 = vcombine.low %v7889_v8, %v7899_v14  ;;  %v10494_v12 = vcombine.low %v14893_v31, %v14903_v37  ;;  %v14936_v18 = vrot.slane %v7910_v39, 5  ;;  %v7564_v62 = vld [vmem:[#allocation2 + $0xf0] sm:$0xf]  ;;  %v7581_v37 = vld [vmem:[#allocation2 + $0x134] sm:$0x1] }
 0x262   :  { %11580 = vmatprep.mubr.msk.bf16.mxu1 %vm2029_vm13, %v16066_v13  ;;  %v7916_v33 = vrot.slane %v7914_v28, 4  ;;  %v7920_v20 = vshll.u32 %v7554_v60, 16  ;;  %v7907_v16 = vor.u32 %v7906_v54, %v7903_v10  ;;  %v7925_v36 = vshrl.u32 %v7555_v11, 16  ;;  %v14953_v28 = vld [vmem:[#allocation2 + $0x180] sm:$0xe] }
 0x263   :  { %v7928_v35 = vshll.u32 %v7555_v11, 16  ;;  %v7934_v50 = vshll.u32 %v7556_v27, 16  ;;  %v7938_v40 = vshrl.u32 %v7556_v27, 16  ;;  %v7944_v26 = vshll.u32 %v7557_v45, 16 }
 0x264   :  { %v7949_v46 = vshrl.u32 %v7558_v17, 16  ;;  %v7952_v51 = vshll.u32 %v7558_v17, 16  ;;  %v16068_v4 = vcombine.low %v14602_v29, %v14612_v19  ;;  %v7958_v58 = vshll.u32 %v7559_v22, 16 }
 0x265   :  { %v7962_v9 = vshrl.u32 %v7559_v22, 16  ;;  %v7973_v8 = vshrl.u32 %v7561_v24, 16  ;;  %v7976_v13 = vshll.u32 %v7561_v24, 16  ;;  %v16069_v14 = vcombine.low %v14626_v23, %v14637_v1  ;;  %v7560_v23 = vld [vmem:[#allocation2 + $0xc8] sm:$0x1] }
 0x266   :  { %11883 = vmatmul.mubr.msk.bf16.gmra.mrb[8].mxu0 %vm2029_vm13, %v14775_v30  ;;  %v7917_v30 = vor.u32 %v7916_v33, %v14936_v18  ;;  %v14951_v39 = vrot.slane %v7920_v20, 5  ;;  %v7982_v29 = vshll.u32 %v7562_v63, 16  ;;  %v7986_v19 = vshrl.u32 %v7562_v63, 16  ;;  %v7563_v33 = vld [vmem:[#allocation2 + $0xd4] sm:$0x1] }
 0x267   :  { %11886 = vmatprep.mubr.msk.bf16.mxu0 %vm2029_vm13, %v14779_v42  ;;  %v14955_v60 = vrot.slane %v7907_v16, 4  ;;  %v7927_v42 = vrot.slane %v7925_v36, 4  ;;  %v7930_v10 = vrot.slane %v7928_v35, 5  ;;  %v14957_v54 = vrot.slane %v7934_v50, 5  ;;  %v7565_v36 = vld [vmem:[#allocation2 + $0xf4] sm:$0xf] }
 0x268   :  { %v7940_v11 = vrot.slane %v7938_v40, 4  ;;  %v14959_v27 = vrot.slane %v7944_v26, 5  ;;  %v7951_v1 = vrot.slane %v7949_v46, 4  ;;  %v7954_v45 = vrot.slane %v7952_v51, 5 }
 0x269   :  { %11581 = vmatmul.mubr.msk.bf16.gmra.mrb[36].mxu1 %vm2029_vm13, %v16068_v4  ;;  %v14961_v17 = vrot.slane %v7958_v58, 5  ;;  %v7964_v22 = vrot.slane %v7962_v9, 4  ;;  %v7975_v20 = vrot.slane %v7973_v8, 4  ;;  %v7978_v24 = vrot.slane %v7976_v13, 5  ;;  %v12706_v58 = vld [vmem:[#allocation2 + $0x188] sm:$0x1] }
 0x26a   :  { %11584 = vmatprep.mubr.msk.bf16.mxu1 %vm2029_vm13, %v16069_v14  ;;  %v14963_v63 = vrot.slane %v7982_v29, 5  ;;  %v7988_v16 = vrot.slane %v7986_v19, 4  ;;  %v7997_v35 = vshrl.u32 %v7564_v62, 16  ;;  %v8000_v50 = vshll.u32 %v7564_v62, 16  ;;  %v12705_v14 = vld [vmem:[#allocation2 + $0x184] sm:$0xf] }
 0x26b   :  { %v14965_v4 = vrot.slane %v7917_v30, 4  ;;  %v7931_v40 = vor.u32 %v7930_v10, %v7927_v42  ;;  %v10463_v26 = vrot.slane %v14953_v28, 9  ;;  %v3281_v46 = vrot.slane %v12705_v14, 5  ;;  %v16070_v29 = vld [vmem:[#allocation8_spill] sm:$0xff]  ;;  %v16071_v19 = vld [vmem:[#allocation23_spill] sm:$0xff] }
 0x26c   :  { %v7941_v51 = vor.u32 %v7940_v11, %v14957_v54  ;;  %v3284_v9 = vrot.slane %v12706_v58, 5  ;;  %v7955_v8 = vor.u32 %v7954_v45, %v7951_v1  ;;  %v7968_v13 = vshll.u32 %v7560_v23, 16  ;;  %v3001_v30 = vld [vmem:[#allocation2 + $0x18c] sm:$0xe] }
 0x26d   :  { %v16072_v52 = vcombine.low %v16070_v29, %v16071_v19  ;;  %v7965_v28 = vor.u32 %v7964_v22, %v14961_v17  ;;  %v7992_v42 = vshll.u32 %v7563_v33, 16  ;;  %v8006_v10 = vshll.u32 %v7565_v36, 16  ;;  %v12707_v33 = vld [vmem:[#allocation2 + $0x190] sm:$0xf]  ;;  %v7567_v19 = vld [vmem:[#allocation2 + $0xfc] sm:$0xf] }
 0x26e   :  { %11887 = vmatmul.mubr.msk.bf16.gmra.mrb[12].mxu0 %vm2029_vm13, %v14785_v48  ;;  %v8010_v48 = vshrl.u32 %v7565_v36, 16  ;;  %v16073_v62 = vcombine.low %v14703_v6, %v14718_v25  ;;  %v7979_v11 = vor.u32 %v7978_v24, %v7975_v20  ;;  %v7989_v23 = vor.u32 %v7988_v16, %v14963_v63 }
 0x26f   :  { %11890 = vmatprep.mubr.msk.bf16.mxu0 %vm2029_vm13, %v14920_v49  ;;  %v7999_v1 = vrot.slane %v7997_v35, 4  ;;  %v8002_v45 = vrot.slane %v8000_v50, 5  ;;  %v7913_v49 = vsel %vm13144_vm12, %v14955_v60, %v14936_v18  ;;  %v3283_v22 = vrot.slane %v3281_v46, 4  ;;  %v7566_v35 = vld [vmem:[#allocation2 + $0xf8] sm:$0x1] }
 0x270   :  { %v3288_v14 = vrot.slane %v12707_v33, 5  ;;  %v7923_v6 = vsel %vm13144_vm12, %v14965_v4, %v14951_v39  ;;  %v7942_v25 = vrot.slane %v7941_v51, 4  ;;  %v10464_v20 = vrot.slane %v3001_v30, 9  ;;  %v12708_v30 = vld [vmem:[#allocation2 + $0x194] sm:$0x1] }
 0x271   :  { %11585 = vmatmul.mubr.msk.bf16.gmra.mrb[40].mxu1 %vm2029_vm13, %v16072_v52  ;;  %v7932_v52 = vrot.slane %v7931_v40, 4  ;;  %v7956_v24 = vrot.slane %v7955_v8, 4  ;;  %v7966_v16 = vrot.slane %v7965_v28, 4  ;;  %v7970_v36 = vrot.slane %v7968_v13, 5  ;;  %v7568_v8 = vld [vmem:[#allocation2 + $0x100] sm:$0xf] }
 0x272   :  { %11588 = vmatprep.mubr.msk.bf16.mxu1 %vm2029_vm13, %v16073_v62  ;;  %v14991_v50 = vrot.slane %v8006_v10, 5  ;;  %v8012_v58 = vrot.slane %v8010_v48, 4  ;;  %v7980_v29 = vrot.slane %v7979_v11, 4  ;;  %v7990_v18 = vrot.slane %v7989_v23, 4  ;;  %v16075_v10 = vld [vmem:[#allocation9_spill] sm:$0xff]  ;;  %v16076_v48 = vld [vmem:[#allocation10_spill] sm:$0xff] }
 0x273   :  { %v7994_v60 = vrot.slane %v7992_v42, 5  ;;  %v8003_v40 = vor.u32 %v8002_v45, %v7999_v1  ;;  %v7937_v62 = vsel %vm13144_vm12, %v7932_v52, %v14957_v54  ;;  %v14998_v39 = vsel %vm13615_vm0, %v10463_v26, %v3281_v46  ;;  %v7570_v33 = vld [vmem:[#allocation2 + $0x108] sm:$0xf] }
 0x274   :  { %v15002_v4 = vsel %vm13615_vm0, %v3283_v22, %v3284_v9  ;;  %v3290_v51 = vrot.slane %v3288_v14, 4  ;;  %v7947_v13 = vsel %vm13144_vm12, %v7942_v25, %v14959_v27  ;;  %v3291_v28 = vrot.slane %v12708_v30, 5  ;;  %v7571_v25 = vld [vmem:[#allocation2 + $0x10c] sm:$0xf] }
 0x275   :  { %v7961_v54 = vsel %vm13144_vm12, %v7956_v24, %v14961_v17  ;;  %v8016_v26 = vshll.u32 %v7566_v35, 16  ;;  %v16074_v46 = vcombine.low %v14739_v47, %v14743_v53  ;;  %v8013_v27 = vor.u32 %v8012_v58, %v14991_v50  ;;  %v7569_v17 = vld [vmem:[#allocation2 + $0x104] sm:$0x1]  ;;  %v7573_v35 = vld [vmem:[#allocation2 + $0x114] sm:$0xf] }
 0x276   :  { %11891 = vmatmul.mubr.msk.bf16.gmra.mrb[16].mxu0 %vm2029_vm13, %v14922_v0  ;;  %v7971_v0 = vsel %vm13144_vm12, %v7966_v16, %v7970_v36  ;;  %v8021_v9 = vshrl.u32 %v7567_v19, 16  ;;  %v8024_v42 = vshll.u32 %v7567_v19, 16  ;;  %v16077_v11 = vcombine.low %v16075_v10, %v16076_v48 }
 0x277   :  { %11894 = vmatprep.mubr.msk.bf16.mxu0 %vm2029_vm13, %v14928_v3  ;;  %v7985_v47 = vsel %vm13144_vm12, %v7980_v29, %v14963_v63  ;;  %v7995_v53 = vsel %vm13144_vm12, %v7990_v18, %v7994_v60  ;;  %v8004_v3 = vrot.slane %v8003_v40, 4  ;;  %v8030_v23 = vshll.u32 %v7568_v8, 16 }
 0x278   :  { %v10835_v1 = vcombine.low %v7913_v49, %v7923_v6  ;;  %v10496_v45 = vcombine.low %v14998_v39, %v15002_v4  ;;  %v15034_v52 = vsel %vm13615_vm0, %v10464_v20, %v3288_v14  ;;  %v8034_v22 = vshrl.u32 %v7568_v8, 16  ;;  %v7574_v49 = vld [vmem:[#allocation2 + $0x118] sm:$0xf]  ;;  %v7576_v14 = vld [vmem:[#allocation2 + $0x120] sm:$0xf] }
 0x279   :  { %11589 = vmatmul.mubr.msk.bf16.gmra.mrb[44].mxu1 %vm2029_vm13, %v16074_v46  ;;  %v10836_v24 = vcombine.low %v7937_v62, %v7947_v13  ;;  %v15038_v63 = vsel %vm13615_vm0, %v3290_v51, %v3291_v28  ;;  %v15040_v16 = vcombine.low %v7961_v54, %v7971_v0  ;;  %v8018_v36 = vrot.slane %v8016_v26, 5  ;;  %v7577_v62 = vld [vmem:[#allocation2 + $0x124] sm:$0xf] }
 0x27a   :  { %11592 = vmatprep.mubr.msk.bf16.mxu1 %vm2029_vm13, %v16077_v11  ;;  %v15042_v6 = vcombine.low %v7985_v47, %v7995_v53  ;;  %v8014_v58 = vrot.slane %v8013_v27, 4  ;;  %v8023_v29 = vrot.slane %v8021_v9, 4  ;;  %v8026_v18 = vrot.slane %v8024_v42, 5  ;;  %v7579_v53 = vld [vmem:[#allocation2 + $0x12c] sm:$0xf] }
 0x27b   :  { %v8009_v20 = vsel %vm13144_vm12, %v8004_v3, %v14991_v50  ;;  %v15047_v60 = vrot.slane %v8030_v23, 5  ;;  %v8040_v40 = vshll.u32 %v7569_v17, 16  ;;  %v8045_v19 = vshrl.u32 %v7570_v33, 16  ;;  %v7575_v3 = vld [vmem:[#allocation2 + $0x11c] sm:$0x1] }
 0x27c   :  { %v8036_v51 = vrot.slane %v8034_v22, 4  ;;  %v8048_v8 = vshll.u32 %v7570_v33, 16  ;;  %v8054_v13 = vshll.u32 %v7571_v25, 16  ;;  %v8058_v30 = vshrl.u32 %v7571_v25, 16  ;;  %v7578_v23 = vld [vmem:[#allocation2 + $0x128] sm:$0x1] }
 0x27d   :  { %v8069_v28 = vshrl.u32 %v7573_v35, 16  ;;  %v8072_v54 = vshll.u32 %v7573_v35, 16  ;;  %v8078_v26 = vshll.u32 %v7574_v49, 16  ;;  %v8082_v46 = vshrl.u32 %v7574_v49, 16  ;;  %v7580_v49 = vld [vmem:[#allocation2 + $0x130] sm:$0xf] }
 0x27e   :  { %11895 = vmatmul.mubr.msk.bf16.gmra.mrb[20].mxu0 %vm2029_vm13, %v14930_v34  ;;  %v8093_v50 = vshrl.u32 %v7576_v14, 16  ;;  %v8096_v0 = vshll.u32 %v7576_v14, 16  ;;  %v8102_v27 = vshll.u32 %v7577_v62, 16  ;;  %v8106_v9 = vshrl.u32 %v7577_v62, 16  ;;  %v7582_v62 = vld [vmem:[#allocation2 + $0x138] sm:$0xf] }
 0x27f   :  { %11898 = vmatprep.mubr.msk.bf16.mxu0 %vm2029_vm13, %v10835_v1  ;;  %v8019_v34 = vsel %vm13144_vm12, %v8014_v58, %v8018_v36  ;;  %v8027_v42 = vor.u32 %v8026_v18, %v8023_v29  ;;  %v15062_v10 = vrot.slane %v8040_v40, 5  ;;  %v8047_v61 = vrot.slane %v8045_v19, 4 }
 0x280   :  { %v8050_v48 = vrot.slane %v8048_v8, 5  ;;  %v15065_v11 = vrot.slane %v8054_v13, 5  ;;  %v8060_v47 = vrot.slane %v8058_v30, 4  ;;  %v8071_v17 = vrot.slane %v8069_v28, 4 }
 0x281   :  { %11593 = vmatmul.mubr.msk.bf16.gmra.mrb[48].mxu1 %vm2029_vm13, %v10491_v21  ;;  %v8037_v21 = vor.u32 %v8036_v51, %v15047_v60  ;;  %v8074_v59 = vrot.slane %v8072_v54, 5  ;;  %v15067_v55 = vrot.slane %v8078_v26, 5  ;;  %v8095_v1 = vrot.slane %v8093_v50, 4 }
 0x282   :  { %11596 = vmatprep.mubr.msk.bf16.mxu1 %vm2029_vm13, %v10492_v2  ;;  %v8084_v2 = vrot.slane %v8082_v46, 4  ;;  %v8098_v22 = vrot.slane %v8096_v0, 5  ;;  %v15069_v33 = vrot.slane %v8102_v27, 5  ;;  %v8108_v25 = vrot.slane %v8106_v9, 4  ;;  %v7583_v46 = vld [vmem:[#allocation2 + $0x13c] sm:$0xf] }
 0x283   :  { %v10839_v36 = vcombine.low %v8009_v20, %v8019_v34  ;;  %v15071_v35 = vrot.slane %v8027_v42, 4  ;;  %v8117_v58 = vshrl.u32 %v7579_v53, 16  ;;  %v8120_v29 = vshll.u32 %v7579_v53, 16 }
 0x284   :  { %v8051_v18 = vor.u32 %v8050_v48, %v8047_v61  ;;  %v8061_v14 = vor.u32 %v8060_v47, %v15065_v11  ;;  %v8064_v40 = vshll.u32 %v7572_v7, 16  ;;  %v8088_v19 = vshll.u32 %v7575_v3, 16 }
 0x285   :  { %v8038_v51 = vrot.slane %v8037_v21, 4  ;;  %v8075_v8 = vor.u32 %v8074_v59, %v8071_v17  ;;  %v8085_v13 = vor.u32 %v8084_v2, %v15067_v55  ;;  %v8112_v30 = vshll.u32 %v7578_v23, 16 }
 0x286   :  { %11899 = vmatmul.mubr.msk.bf16.gmra.mrb[24].mxu0 %vm2029_vm13, %v10836_v24  ;;  %v8099_v20 = vor.u32 %v8098_v22, %v8095_v1  ;;  %v8109_v28 = vor.u32 %v8108_v25, %v15069_v33  ;;  %v8126_v54 = vshll.u32 %v7580_v49, 16  ;;  %v8130_v26 = vshrl.u32 %v7580_v49, 16  ;;  %v7584_v1 = vld [vmem:[#allocation2 + $0x140] sm:$0x1]  ;;  %v7585_v25 = vld [vmem:[#allocation2 + $0x144] sm:$0xf] }
 0x287   :  { %11902 = vmatprep.mubr.msk.bf16.mxu0 %vm2029_vm13, %v15040_v16  ;;  %v8119_v24 = vrot.slane %v8117_v58, 4  ;;  %v8122_v50 = vrot.slane %v8120_v29, 5  ;;  %v8141_v0 = vshrl.u32 %v7582_v62, 16  ;;  %v8144_v32 = vshll.u32 %v7582_v62, 16  ;;  %v7588_v58 = vld [vmem:[#allocation2 + $0x150] sm:$0xf] }
 0x288   :  { %v8052_v56 = vrot.slane %v8051_v18, 4  ;;  %v8066_v27 = vrot.slane %v8064_v40, 5  ;;  %v8090_v9 = vrot.slane %v8088_v19, 5  ;;  %v8076_v16 = vrot.slane %v8075_v8, 4 }
 0x289   :  { %11597 = vmatmul.mubr.msk.bf16.gmra.mrb[52].mxu1 %vm2029_vm13, %v10493_v44  ;;  %v8062_v44 = vrot.slane %v8061_v14, 4  ;;  %v8086_v34 = vrot.slane %v8085_v13, 4  ;;  %v8150_v42 = vshll.u32 %v7583_v46, 16  ;;  %v8154_v7 = vshrl.u32 %v7583_v46, 16 }
 0x28a   :  { %11600 = vmatprep.mubr.msk.bf16.mxu1 %vm2029_vm13, %v10494_v12  ;;  %v8100_v61 = vrot.slane %v8099_v20, 4  ;;  %v8114_v21 = vrot.slane %v8112_v30, 5  ;;  %v15087_v48 = vrot.slane %v8126_v54, 5  ;;  %v8132_v47 = vrot.slane %v8130_v26, 4  ;;  %v7591_v20 = vld [vmem:[#allocation2 + $0x15c] sm:$0xf] }
 0x28b   :  { %v8110_v31 = vrot.slane %v8109_v28, 4  ;;  %v8123_v12 = vor.u32 %v8122_v50, %v8119_v24  ;;  %v8143_v53 = vrot.slane %v8141_v0, 4  ;;  %v8146_v3 = vrot.slane %v8144_v32, 5  ;;  %v12555_v28 = vld [vmem:[#allocation2 + $0xc] sm:$0xff]   ;;  %v7592_v50 = vld [vmem:[#allocation2 + $0x160] sm:$0xf] }
 0x28c   :  { %v10497_v17 = vcombine.low %v15034_v52, %v15038_v63  ;;  %v8033_v59 = vsel %vm13144_vm12, %v15071_v35, %v15047_v60  ;;  %v8043_v2 = vsel %vm13144_vm12, %v8038_v51, %v15062_v10  ;;  %v8057_v23 = vsel %vm13144_vm12, %v8052_v56, %v15065_v11  ;;  %v7586_v10 = vld [vmem:[#allocation2 + $0x148] sm:$0xf] }
 0x28d   :  { %v8067_v52 = vsel %vm13144_vm12, %v8062_v44, %v8066_v27  ;;  %v8081_v63 = vsel %vm13144_vm12, %v8076_v16, %v15067_v55  ;;  %v15108_v60 = vrot.slane %v8150_v42, 5  ;;  %v8156_v22 = vrot.slane %v8154_v7, 4  ;;  %v4572_v27 = vld [vmem:[#allocation2 + $0xf0] sm:$0xf]  ;;  %v7587_v16 = vld [vmem:[#allocation2 + $0x14c] sm:$0x1] }
 0x28e   :  { %11903 = vmatmul.mubr.msk.bf16.gmra.mrb[28].mxu0 %vm2029_vm13, %v15042_v6  ;;  %v16078_v35 = vcombine.low %v14907_v5, %v14911_v43  ;;  %v8091_v6 = vsel %vm13144_vm12, %v8086_v34, %v8090_v9  ;;  %v8105_v11 = vsel %vm13144_vm12, %v8100_v61, %v15069_v33  ;;  %v8133_v55 = vor.u32 %v8132_v47, %v15087_v48 }
 0x28f   :  { %11906 = vmatprep.mubr.msk.bf16.mxu0 %vm2029_vm13, %v10839_v36  ;;  %v8136_v49 = vshll.u32 %v7581_v37, 16  ;;  %v8115_v5 = vsel %vm13144_vm12, %v8110_v31, %v8114_v21  ;;  %v15127_v43 = vrot.slane %v8123_v12, 4  ;;  %v8147_v36 = vor.u32 %v8146_v3, %v8143_v53  ;;  %v16079_v53 = vld [vmem:[#allocation19_spill] sm:$0xff] }
 0x290   :  { %v8160_v29 = vshll.u32 %v7584_v1, 16  ;;  %v8165_v18 = vshrl.u32 %v7585_v25, 16  ;;  %v8168_v14 = vshll.u32 %v7585_v25, 16  ;;  %v8174_v40 = vshll.u32 %v7586_v10, 16  ;;  %v7590_v1 = vld [vmem:[#allocation2 + $0x158] sm:$0x1] }
 0x291   :  { %11601 = vmatmul.mubr.msk.bf16.gmra.mrb[56].mxu1 %vm2029_vm13, %v16078_v35  ;;  %v8178_v33 = vshrl.u32 %v7586_v10, 16  ;;  %v10840_v19 = vcombine.low %v8033_v59, %v8043_v2  ;;  %v10841_v62 = vcombine.low %v8057_v23, %v8067_v52  ;;  %v8157_v51 = vor.u32 %v8156_v22, %v15108_v60  ;;  %v12556_v10 = vld [vmem:[#allocation2 + $0x18] sm:$0xff]  }
 0x292   :  { %11604 = vmatprep.mubr.msk.bf16.mxu1 %vm2029_vm13, %v10496_v45  ;;  %v8189_v8 = vshrl.u32 %v7588_v58, 16  ;;  %v10842_v13 = vcombine.low %v8081_v63, %v8091_v6  ;;  %v15130_v39 = vcombine.low %v8105_v11, %v8115_v5  ;;  %v15132_v4 = vrot.slane %v8136_v49, 5  ;;  %v7589_v45 = vld [vmem:[#allocation2 + $0x154] sm:$0xf]  ;;  %v12557_v49 = vld [vmem:[#allocation2 + $0x24] sm:$0xff]  }
 0x293   :  { %v8192_v30 = vshll.u32 %v7588_v58, 16  ;;  %v8129_v54 = vsel %vm13144_vm12, %v15127_v43, %v15087_v48  ;;  %v8134_v26 = vrot.slane %v8133_v55, 4  ;;  %v15138_v46 = vrot.slane %v8147_v36, 4  ;;  %v7594_v55 = vld [vmem:[#allocation2 + $0x168] sm:$0xf] }
 0x294   :  { %v15140_v24 = vrot.slane %v8160_v29, 5  ;;  %v8167_v0 = vrot.slane %v8165_v18, 4  ;;  %v8170_v32 = vrot.slane %v8168_v14, 5  ;;  %v15142_v56 = vrot.slane %v8174_v40, 5  ;;  %v7595_v36 = vld [vmem:[#allocation2 + $0x16c] sm:$0xf] }
 0x295   :  { %v8180_v44 = vrot.slane %v8178_v33, 4  ;;  %v8158_v9 = vrot.slane %v8157_v51, 4  ;;  %v8191_v34 = vrot.slane %v8189_v8, 4  ;;  %v8198_v42 = vshll.u32 %v7589_v45, 16 }
 0x296   :  { %11907 = vmatmul.mubr.msk.bf16.gmra.mrb[32].mxu0 %vm2029_vm13, %v10840_v19  ;;  %v8202_v7 = vshrl.u32 %v7589_v45, 16  ;;  %v8194_v61 = vrot.slane %v8192_v30, 5  ;;  %v8213_v21 = vshrl.u32 %v7591_v20, 16  ;;  %v8216_v48 = vshll.u32 %v7591_v20, 16  ;;  %v7593_v19 = vld [vmem:[#allocation2 + $0x164] sm:$0x1] }
 0x297   :  { %11910 = vmatprep.mubr.msk.bf16.mxu0 %vm2029_vm13, %v10841_v62  ;;  %v8222_v47 = vshll.u32 %v7592_v50, 16  ;;  %v8226_v31 = vshrl.u32 %v7592_v50, 16  ;;  %v5026_v37 = vshrl.u32 %v4572_v27, 16  ;;  %v5029_v12 = vshll.u32 %v4572_v27, 16 }
 0x298   :  { %v5048_v3 = vsel %vm13144_vm12, %v14878_v15, %v16079_v53  ;;  %v8171_v59 = vor.u32 %v8170_v32, %v8167_v0  ;;  %v8181_v2 = vor.u32 %v8180_v44, %v15142_v56  ;;  %v8184_v23 = vshll.u32 %v7587_v16, 16  ;;  %v7596_v32 = vld [vmem:[#allocation2 + $0x170] sm:$0x1]  ;;  %v7598_v44 = vld [vmem:[#allocation2 + $0x178] sm:$0xf] }
 0x299   :  { %11605 = vmatmul.mubr.msk.bf16.gmra.mrb[60].mxu1 %vm2029_vm13, %v10497_v17  ;;  %v8139_v17 = vsel %vm13144_vm12, %v8134_v26, %v15132_v4  ;;  %v15156_v52 = vrot.slane %v8198_v42, 5  ;;  %v8204_v63 = vrot.slane %v8202_v7, 4  ;;  %v5028_v22 = vrot.slane %v5026_v37, 4 }
 0x29a   :  { %11610 = vmatprep.mubr.msk.bf16.mxu1 %vm2029_vm13, %v12555_v28  ;;  %v5031_v25 = vrot.slane %v5029_v12, 5  ;;  %v8153_v15 = vsel %vm13144_vm12, %v15138_v46, %v15108_v60  ;;  %v8163_v35 = vsel %vm13144_vm12, %v8158_v9, %v15140_v24  ;;  %v8195_v6 = vor.u32 %v8194_v61, %v8191_v34  ;;  %v16080_v28 = vld [vmem:[#allocation6_spill] sm:$0xff]  ;;  %v7600_v61 = vld [vmem:[#allocation2 + $0x180] sm:$0xf] }
 0x29b   :  { %v8215_v11 = vrot.slane %v8213_v21, 4  ;;  %v8218_v58 = vrot.slane %v8216_v48, 5  ;;  %v15165_v5 = vrot.slane %v8222_v47, 5  ;;  %v8228_v43 = vrot.slane %v8226_v31, 4  ;;  %v7597_v24 = vld [vmem:[#allocation2 + $0x174] sm:$0xf] }
 0x29c   :  { %v5032_v29 = vor.u32 %v5031_v25, %v5028_v22  ;;  %v8172_v18 = vrot.slane %v8171_v59, 4  ;;  %v8182_v14 = vrot.slane %v8181_v2, 4  ;;  %v8186_v40 = vrot.slane %v8184_v23, 5  ;;  %v12558_v9 = vld [vmem:[#allocation2 + $0x30] sm:$0xff]   ;;  %v7601_v31 = vld [vmem:[#allocation2 + $0x184] sm:$0xf] }
 0x29d   :  { %v8208_v33 = vshll.u32 %v7590_v1, 16  ;;  %v8205_v60 = vor.u32 %v8204_v63, %v15156_v52  ;;  %v8237_v62 = vshrl.u32 %v7594_v55, 16  ;;  %v8240_v51 = vshll.u32 %v7594_v55, 16 }
 0x29e   :  { %11911 = vmatmul.mubr.msk.bf16.gmra.mrb[36].mxu0 %vm2029_vm13, %v10842_v13  ;;  %v5033_v8 = vrot.slane %v5032_v29, 4  ;;  %v10844_v4 = vcombine.low %v8129_v54, %v8139_v17  ;;  %v8196_v45 = vrot.slane %v8195_v6, 4  ;;  %v8246_v30 = vshll.u32 %v7595_v36, 16 }
 0x29f   :  { %11914 = vmatprep.mubr.msk.bf16.mxu0 %vm2029_vm13, %v15130_v39  ;;  %v8250_v20 = vshrl.u32 %v7595_v36, 16  ;;  %v8219_v26 = vor.u32 %v8218_v58, %v8215_v11  ;;  %v8229_v13 = vor.u32 %v8228_v43, %v15165_v5  ;;  %v8232_v46 = vshll.u32 %v7593_v19, 16 }
 0x2a0   :  { %v5038_v50 = vsel %vm13144_vm12, %v5033_v8, %v16062_v38  ;;  %v10845_v0 = vcombine.low %v8153_v15, %v8163_v35  ;;  %v8177_v39 = vsel %vm13144_vm12, %v8172_v18, %v15142_v56  ;;  %v8210_v54 = vrot.slane %v8208_v33, 5  ;;  %v12559_v56 = vld [vmem:[#allocation2 + $0x3c] sm:$0xff]   ;;  %v7603_v18 = vld [vmem:[#allocation2 + $0x18c] sm:$0xf]  ;;  %v7602_v33 = vld [vmem:[#allocation2 + $0x188] sm:$0x1] }
 0x2a1   :  { %11611 = vmatmul.mubr.msk.bf16.vlgmr.msra.gmra.mrb[0].mxu1 %vm2029_vm13, %v12556_v10  ;;  %v15181_v27 = vcombine.low %v5038_v50, %v5048_v3  ;;  %v8187_v16 = vsel %vm13144_vm12, %v8182_v14, %v8186_v40  ;;  %v8206_v34 = vrot.slane %v8205_v60, 4  ;;  %v8239_v42 = vrot.slane %v8237_v62, 4  ;;  %v12560_v62 = vld [vmem:[#allocation2 + $0x48] sm:$0xff]   ;;  %v7607_v50 = vld [vmem:[#allocation2 + $0x19c] sm:$0xf] }
 0x2a2   :  { %12005 = vmatpush3.bf16.msra.mxu1 %v16080_v28  ;;  %11614 = vmatprep.mubr.msk.bf16.mxu1 %vm2029_vm13, %v12557_v49  ;;  %v8242_v7 = vrot.slane %v8240_v51, 5  ;;  %v15185_v21 = vrot.slane %v8246_v30, 5  ;;  %v8252_v38 = vrot.slane %v8250_v20, 4  ;;  %v8261_v48 = vshrl.u32 %v7597_v24, 16  ;;  %v7599_v49 = vld [vmem:[#allocation2 + $0x17c] sm:$0x1] }
 0x2a3   :  { %v8264_v47 = vshll.u32 %v7597_v24, 16  ;;  %v8201_v37 = vsel %vm13144_vm12, %v8196_v45, %v15156_v52  ;;  %v8220_v12 = vrot.slane %v8219_v26, 4  ;;  %v8230_v53 = vrot.slane %v8229_v13, 4  ;;  %v7604_v45 = vld [vmem:[#allocation2 + $0x190] sm:$0xf]  ;;  %v12561_v30 = vld [vmem:[#allocation2 + $0x54] sm:$0xff]  }
 0x2a4   :  { %v8234_v3 = vrot.slane %v8232_v46, 5  ;;  %v8270_v17 = vshll.u32 %v7598_v44, 16  ;;  %v8274_v59 = vshrl.u32 %v7598_v44, 16  ;;  %v8285_v2 = vshrl.u32 %v7600_v61, 16  ;;  %v7606_v24 = vld [vmem:[#allocation2 + $0x198] sm:$0xf] }
 0x2a5   :  { %v8288_v23 = vshll.u32 %v7600_v61, 16  ;;  %v8211_v1 = vsel %vm13144_vm12, %v8206_v34, %v8210_v54  ;;  %v8256_v63 = vshll.u32 %v7596_v32, 16  ;;  %v8294_v22 = vshll.u32 %v7601_v31, 16 }
 0x2a6   :  { %11915 = vmatmul.mubr.msk.bf16.gmra.mrb[40].mxu0 %vm2029_vm13, %v10844_v4  ;;  %v8298_v25 = vshrl.u32 %v7601_v31, 16  ;;  %v8243_v52 = vor.u32 %v8242_v7, %v8239_v42  ;;  %v8253_v10 = vor.u32 %v8252_v38, %v15185_v21  ;;  %v8263_v15 = vrot.slane %v8261_v48, 4 }
 0x2a7   :  { %11918 = vmatprep.mubr.msk.bf16.mxu0 %vm2029_vm13, %v10845_v0  ;;  %v8266_v35 = vrot.slane %v8264_v47, 5  ;;  %v10846_v6 = vcombine.low %v8177_v39, %v8187_v16  ;;  %v8225_v11 = vsel %vm13144_vm12, %v8220_v12, %v15165_v5  ;;  %v8235_v55 = vsel %vm13144_vm12, %v8230_v53, %v8234_v3  ;;  %v7605_v12 = vld [vmem:[#allocation2 + $0x194] sm:$0x1] }
 0x2a8   :  { %v15202_v58 = vrot.slane %v8270_v17, 5  ;;  %v8276_v43 = vrot.slane %v8274_v59, 4  ;;  %v8287_v36 = vrot.slane %v8285_v2, 4  ;;  %v8290_v29 = vrot.slane %v8288_v23, 5  ;;  %v12562_v17 = vld [vmem:[#allocation2 + $0x60] sm:$0xff]   ;;  %v12563_v59 = vld [vmem:[#allocation2 + $0x6c] sm:$0xff]  }
 0x2a9   :  { %11615 = vmatmul.mubr.msk.bf16.gmra.mrb[4].mxu1 %vm2029_vm13, %v12558_v9  ;;  %v10847_v14 = vcombine.low %v8201_v37, %v8211_v1  ;;  %v8258_v40 = vrot.slane %v8256_v63, 5  ;;  %v15204_v19 = vrot.slane %v8294_v22, 5  ;;  %v8300_v60 = vrot.slane %v8298_v25, 4  ;;  %v7609_v23 = vld [vmem:[#allocation2 + $0x1a4] sm:$0xf] }
 0x2aa   :  { %11618 = vmatprep.mubr.msk.bf16.mxu1 %vm2029_vm13, %v12559_v56  ;;  %v8244_v51 = vrot.slane %v8243_v52, 4  ;;  %v8254_v8 = vrot.slane %v8253_v10, 4  ;;  %v8267_v5 = vor.u32 %v8266_v35, %v8263_v15  ;;  %v8280_v4 = vshll.u32 %v7599_v49, 16  ;;  %v7610_v52 = vld [vmem:[#allocation2 + $0x1a8] sm:$0xf] }
 0x2ab   :  { %v10848_v20 = vcombine.low %v8225_v11, %v8235_v55  ;;  %v8277_v28 = vor.u32 %v8276_v43, %v15202_v58  ;;  %v8291_v26 = vor.u32 %v8290_v29, %v8287_v36  ;;  %v8304_v13 = vshll.u32 %v7602_v33, 16 }
 0x2ac   :  { %v8309_v46 = vshrl.u32 %v7603_v18, 16  ;;  %v8301_v0 = vor.u32 %v8300_v60, %v15204_v19  ;;  %v8312_v39 = vshll.u32 %v7603_v18, 16  ;;  %v8318_v54 = vshll.u32 %v7604_v45, 16 }
 0x2ad   :  { %v8322_v32 = vshrl.u32 %v7604_v45, 16  ;;  %v8249_v44 = vsel %vm13144_vm12, %v8244_v51, %v15185_v21  ;;  %v8259_v9 = vsel %vm13144_vm12, %v8254_v8, %v8258_v40  ;;  %v8268_v16 = vrot.slane %v8267_v5, 4  ;;  %v12564_v5 = vld [vmem:[#allocation2 + $0x78] sm:$0xff]  }
 0x2ae   :  { %11919 = vmatmul.mubr.msk.bf16.gmra.mrb[44].mxu0 %vm2029_vm13, %v10846_v6  ;;  %v8282_v34 = vrot.slane %v8280_v4, 5  ;;  %v8333_v42 = vshrl.u32 %v7606_v24, 16  ;;  %v8336_v7 = vshll.u32 %v7606_v24, 16  ;;  %v8342_v61 = vshll.u32 %v7607_v50, 16  ;;  %v7608_v6 = vld [vmem:[#allocation2 + $0x1a0] sm:$0x1] }
 0x2af   :  { %11922 = vmatprep.mubr.msk.bf16.mxu0 %vm2029_vm13, %v10847_v14  ;;  %v8346_v38 = vshrl.u32 %v7607_v50, 16  ;;  %v8278_v48 = vrot.slane %v8277_v28, 4  ;;  %v8292_v47 = vrot.slane %v8291_v26, 4  ;;  %v8306_v31 = vrot.slane %v8304_v13, 5  ;;  %v12565_v28 = vld [vmem:[#allocation2 + $0x84] sm:$0xff]  }
 0x2b0   :  { %v8311_v56 = vrot.slane %v8309_v46, 4  ;;  %v8302_v37 = vrot.slane %v8301_v0, 4  ;;  %v8314_v53 = vrot.slane %v8312_v39, 5  ;;  %v8320_v3 = vrot.slane %v8318_v54, 5  ;;  %v7611_v24 = vld [vmem:[#allocation2 + $0x1ac] sm:$0x1] }
 0x2b1   :  { %11619 = vmatmul.mubr.msk.bf16.gmra.mrb[8].mxu1 %vm2029_vm13, %v12560_v62  ;;  %v8324_v21 = vrot.slane %v8322_v32, 4  ;;  %v10849_v2 = vcombine.low %v8249_v44, %v8259_v9  ;;  %v8335_v1 = vrot.slane %v8333_v42, 4  ;;  %v8338_v63 = vrot.slane %v8336_v7, 5  ;;  %v8930_v42 = vld [vmem:[#allocation2 + $0x18] sm:$0xe] }
 0x2b2   :  { %11622 = vmatprep.mubr.msk.bf16.mxu1 %vm2029_vm13, %v12561_v30  ;;  %v8344_v22 = vrot.slane %v8342_v61, 5  ;;  %v8348_v25 = vrot.slane %v8346_v38, 4  ;;  %v8273_v10 = vsel %vm13144_vm12, %v8268_v16, %v15202_v58  ;;  %v8283_v15 = vsel %vm13144_vm12, %v8278_v48, %v8282_v34  ;;  %v12709_v16 = vld [vmem:[#allocation2 + $0x1c] sm:$0xf]  ;;  %v12566_v61 = vld [vmem:[#allocation2 + $0x90] sm:$0xff]  }
 0x2b3   :  { %v8328_v35 = vshll.u32 %v7605_v12, 16  ;;  %v8297_v11 = vsel %vm13144_vm12, %v8292_v47, %v15204_v19  ;;  %v8307_v55 = vsel %vm13144_vm12, %v8302_v37, %v8306_v31  ;;  %v8315_v49 = vor.u32 %v8314_v53, %v8311_v56  ;;  %v12567_v56 = vld [vmem:[#allocation2 + $0x9c] sm:$0xff]  }
 0x2b4   :  { %v8325_v43 = vor.u32 %v8324_v21, %v8320_v3  ;;  %v8357_v58 = vshrl.u32 %v7609_v23, 16  ;;  %v8360_v36 = vshll.u32 %v7609_v23, 16  ;;  %v8366_v29 = vshll.u32 %v7610_v52, 16  ;;  %v12710_v53 = vld [vmem:[#allocation2 + $0x20] sm:$0x1] }
 0x2b5   :  { %v8370_v18 = vshrl.u32 %v7610_v52, 16  ;;  %v8339_v14 = vor.u32 %v8338_v63, %v8335_v1  ;;  %v8349_v40 = vor.u32 %v8348_v25, %v8344_v22  ;;  %v8352_v33 = vshll.u32 %v7608_v6, 16  ;;  %v8931_v63 = vld [vmem:[#allocation2 + $0x24] sm:$0xe]  ;;  %v8932_v52 = vld [vmem:[#allocation2 + $0x30] sm:$0xe] }
 0x2b6   :  { %11923 = vmatmul.mubr.msk.bf16.gmra.mrb[48].mxu0 %vm2029_vm13, %v10848_v20  ;;  %v10850_v60 = vcombine.low %v8273_v10, %v8283_v15  ;;  %v10851_v19 = vcombine.low %v8297_v11, %v8307_v55  ;;  %v8316_v62 = vrot.slane %v8315_v49, 4  ;;  %v8326_v51 = vrot.slane %v8325_v43, 4  ;;  %v12568_v15 = vld [vmem:[#allocation2 + $0xa8] sm:$0xff]   ;;  %v12569_v43 = vld [vmem:[#allocation2 + $0xb4] sm:$0xff]  }
 0x2b7   :  { %11926 = vmatprep.mubr.msk.bf16.mxu0 %vm2029_vm13, %v10849_v2  ;;  %v8330_v8 = vrot.slane %v8328_v35, 5  ;;  %v8359_v4 = vrot.slane %v8357_v58, 4  ;;  %v8362_v45 = vrot.slane %v8360_v36, 5  ;;  %v8368_v30 = vrot.slane %v8366_v29, 5  ;;  %v12713_v55 = vld [vmem:[#allocation2 + $0x2c] sm:$0x1] }
 0x2b8   :  { %v8372_v20 = vrot.slane %v8370_v18, 4  ;;  %v8340_v26 = vrot.slane %v8339_v14, 4  ;;  %v8350_v13 = vrot.slane %v8349_v40, 4  ;;  %v8354_v46 = vrot.slane %v8352_v33, 5  ;;  %v12714_v29 = vld [vmem:[#allocation2 + $0x38] sm:$0x1] }
 0x2b9   :  { %11623 = vmatmul.mubr.msk.bf16.gmra.mrb[12].mxu1 %vm2029_vm13, %v12562_v17  ;;  %v8321_v50 = vsel %vm13144_vm12, %v8316_v62, %v8320_v3  ;;  %v8331_v0 = vsel %vm13144_vm12, %v8326_v51, %v8330_v8  ;;  %v8363_v39 = vor.u32 %v8362_v45, %v8359_v4  ;;  %v8376_v32 = vshll.u32 %v7611_v24, 16  ;;  %v12715_v33 = vld [vmem:[#allocation2 + $0x40] sm:$0xf]  ;;  %v8933_v51 = vld [vmem:[#allocation2 + $0x3c] sm:$0xe] }
 0x2ba   :  { %11626 = vmatprep.mubr.msk.bf16.mxu1 %vm2029_vm13, %v12563_v59  ;;  %v8373_v54 = vor.u32 %v8372_v20, %v8368_v30  ;;  %v8345_v44 = vsel %vm13144_vm12, %v8340_v26, %v8344_v22  ;;  %v8355_v9 = vsel %vm13144_vm12, %v8350_v13, %v8354_v46  ;;  %v9060_v34 = vrot.slane %v12709_v16, 5  ;;  %v12711_v59 = vld [vmem:[#allocation2 + $0x28] sm:$0xf]  ;;  %v12712_v22 = vld [vmem:[#allocation2 + $0x34] sm:$0xf] }
 0x2bb   :  { %v10852_v7 = vcombine.low %v8321_v50, %v8331_v0  ;;  %v10853_v38 = vcombine.low %v8345_v44, %v8355_v9  ;;  %v8364_v48 = vrot.slane %v8363_v39, 4  ;;  %v8378_v31 = vrot.slane %v8376_v32, 5  ;;  %v12716_v8 = vld [vmem:[#allocation2 + $0x4c] sm:$0xf]  ;;  %v8934_v4 = vld [vmem:[#allocation2 + $0x48] sm:$0xe] }
 0x2bc   :  { %v8374_v47 = vrot.slane %v8373_v54, 4  ;;  %v10887_v37 = vrot.slane %v8930_v42, 9  ;;  %v9062_v12 = vrot.slane %v9060_v34, 4  ;;  %v9063_v3 = vrot.slane %v12710_v53, 5  ;;  %v12571_v20 = vld [vmem:[#allocation2 + $0xe4] sm:$0xff]  }
 0x2bd   :  { %v8369_v21 = vsel %vm13144_vm12, %v8364_v48, %v8368_v30  ;;  %v9067_v2 = vrot.slane %v12711_v59, 5  ;;  %v9074_v25 = vrot.slane %v12712_v22, 5  ;;  %v10888_v6 = vrot.slane %v8931_v63, 9  ;;  %v12570_v30 = vld [vmem:[#allocation2 + $0xc0] sm:$0xff]   ;;  %v12718_v39 = vld [vmem:[#allocation2 + $0x50] sm:$0x1] }
 0x2be   :  { %11927 = vmatmul.mubr.msk.bf16.gmra.mrb[52].mxu0 %vm2029_vm13, %v10850_v60  ;;  %v8379_v17 = vsel %vm13144_vm12, %v8374_v47, %v8378_v31  ;;  %v9061_v23 = vsel %vm13615_vm0, %v10887_v37, %v9060_v34  ;;  %v9064_v1 = vsel %vm13615_vm0, %v9062_v12, %v9063_v3  ;;  %v9070_v49 = vrot.slane %v12713_v55, 5  ;;  %v12717_v46 = vld [vmem:[#allocation2 + $0x44] sm:$0x1]  ;;  %v8935_v32 = vld [vmem:[#allocation2 + $0x54] sm:$0xe]  ;;  %v12573_v22 = vld [vmem:[#allocation2 + $0xfc] sm:$0xff]  }
 0x2bf   :  { %11930 = vmatprep.mubr.msk.bf16.mxu0 %vm2029_vm13, %v10851_v19  ;;  %v10854_v10 = vcombine.low %v8369_v21, %v8379_v17  ;;  %v10920_v35 = vcombine.low %v9061_v23, %v9064_v1  ;;  %v9069_v11 = vrot.slane %v9067_v2, 4  ;;  %v10889_v58 = vrot.slane %v8932_v52, 9  ;;  %v12719_v44 = vld [vmem:[#allocation2 + $0x58] sm:$0xf]  ;;  %v12720_v16 = vld [vmem:[#allocation2 + $0x64] sm:$0xf] }
 0x2c0   :  { %v9076_v36 = vrot.slane %v9074_v25, 4  ;;  %v9077_v18 = vrot.slane %v12714_v29, 5  ;;  %v9068_v14 = vsel %vm13615_vm0, %v10888_v6, %v9067_v2  ;;  %v9081_v60 = vrot.slane %v12715_v33, 5  ;;  %v12722_v21 = vld [vmem:[#allocation2 + $0x68] sm:$0x1]  ;;  %v12572_v59 = vld [vmem:[#allocation2 + $0xf0] sm:$0xff]  }
 0x2c1   :  { %11627 = vmatmul.mubr.msk.bf16.gmra.mrb[16].mxu1 %vm2029_vm13, %v12564_v5  ;;  %v9071_v40 = vsel %vm13615_vm0, %v9069_v11, %v9070_v49  ;;  %v9075_v19 = vsel %vm13615_vm0, %v10889_v58, %v9074_v25  ;;  %v9088_v5 = vrot.slane %v12716_v8, 5  ;;  %v10890_v26 = vrot.slane %v8933_v51, 9  ;;  %v8937_v23 = vld [vmem:[#allocation2 + $0x6c] sm:$0xe]  ;;  %v12723_v1 = vld [vmem:[#allocation2 + $0x70] sm:$0xf] }
 0x2c2   :  { %11630 = vmatprep.mubr.msk.bf16.mxu1 %vm2029_vm13, %v12565_v28  ;;  %v9078_v62 = vsel %vm13615_vm0, %v9076_v36, %v9077_v18  ;;  %v10921_v45 = vcombine.low %v9068_v14, %v9071_v40  ;;  %v9083_v13 = vrot.slane %v9081_v60, 4  ;;  %v9084_v24 = vrot.slane %v12717_v46, 5  ;;  %v8939_v6 = vld [vmem:[#allocation2 + $0x84] sm:$0xe]  ;;  %v12725_v11 = vld [vmem:[#allocation2 + $0x88] sm:$0xf] }
 0x2c3   :  { %v10922_v28 = vcombine.low %v9075_v19, %v9078_v62  ;;  %v10891_v50 = vrot.slane %v8934_v4, 9  ;;  %v9090_v0 = vrot.slane %v9088_v5, 4  ;;  %v9091_v54 = vrot.slane %v12718_v39, 5  ;;  %v8940_v36 = vld [vmem:[#allocation2 + $0x90] sm:$0xe] }
 0x2c4   :  { %v9095_v9 = vrot.slane %v12719_v44, 5  ;;  %v9102_v34 = vrot.slane %v12720_v16, 5  ;;  %v9082_v42 = vsel %vm13615_vm0, %v10890_v26, %v9081_v60  ;;  %v9105_v17 = vrot.slane %v12722_v21, 5  ;;  %v12726_v29 = vld [vmem:[#allocation2 + $0x94] sm:$0xf] }
 0x2c5   :  { %v9089_v48 = vsel %vm13615_vm0, %v10891_v50, %v9088_v5  ;;  %v9092_v47 = vsel %vm13615_vm0, %v9090_v0, %v9091_v54  ;;  %v9109_v63 = vrot.slane %v12723_v1, 5  ;;  %v9123_v55 = vrot.slane %v12725_v11, 5  ;;  %v12727_v33 = vld [vmem:[#allocation2 + $0x74] sm:$0x1]  ;;  %v8941_v19 = vld [vmem:[#allocation2 + $0x9c] sm:$0xe] }
 0x2c6   :  { %11931 = vmatmul.mubr.msk.bf16.gmra.mrb[56].mxu0 %vm2029_vm13, %v10852_v7  ;;  %v9085_v7 = vsel %vm13615_vm0, %v9083_v13, %v9084_v24  ;;  %v9097_v31 = vrot.slane %v9095_v9, 4  ;;  %v9104_v3 = vrot.slane %v9102_v34, 4  ;;  %v10924_v2 = vcombine.low %v9089_v48, %v9092_v47  ;;  %v12728_v62 = vld [vmem:[#allocation2 + $0xa0] sm:$0xf]  ;;  %v12731_v24 = vld [vmem:[#allocation2 + $0x8c] sm:$0x1] }
 0x2c7   :  { %11934 = vmatprep.mubr.msk.bf16.mxu0 %vm2029_vm13, %v10853_v38  ;;  %v8936_v38 = vld [vmem:[#allocation2 + $0x60] sm:$0xe]  ;;  %v10923_v12 = vcombine.low %v9082_v42, %v9085_v7  ;;  %v10894_v58 = vrot.slane %v8937_v23, 9  ;;  %v9130_v18 = vrot.slane %v12726_v29, 5  ;;  %v9111_v40 = vrot.slane %v9109_v63, 4  ;;  %v12574_v0 = vld [vmem:[#allocation2 + $0x108] sm:$0xff]  }
 0x2c8   :  { %v10893_v53 = vrot.slane %v8936_v38, 9  ;;  %v9112_v60 = vrot.slane %v12727_v33, 5  ;;  %v9137_v51 = vrot.slane %v12728_v62, 5  ;;  %v12729_v5 = vld [vmem:[#allocation2 + $0x80] sm:$0x1]  ;;  %v9125_v46 = vrot.slane %v9123_v55, 4 }
 0x2c9   :  { %11631 = vmatmul.mubr.msk.bf16.gmra.mrb[20].mxu1 %vm2029_vm13, %v12566_v61  ;;  %v10892_v61 = vrot.slane %v8935_v32, 9  ;;  %v9119_v4 = vrot.slane %v12729_v5, 5  ;;  %v9126_v50 = vrot.slane %v12731_v24, 5  ;;  %v10897_v39 = vrot.slane %v8940_v36, 9  ;;  %v12732_v32 = vld [vmem:[#allocation2 + $0x98] sm:$0x1] }
 0x2ca   :  { %11634 = vmatprep.mubr.msk.bf16.mxu1 %vm2029_vm13, %v12567_v56  ;;  %v12721_v56 = vld [vmem:[#allocation2 + $0x5c] sm:$0x1]  ;;  %v9103_v49 = vsel %vm13615_vm0, %v10893_v53, %v9102_v34  ;;  %v9132_v54 = vrot.slane %v9130_v18, 4  ;;  %v9133_v44 = vrot.slane %v12732_v32, 5  ;;  %v9139_v16 = vrot.slane %v9137_v51, 4  ;;  %v12575_v47 = vld [vmem:[#allocation2 + $0x114] sm:$0xff]  }
 0x2cb   :  { %v9098_v37 = vrot.slane %v12721_v56, 5  ;;  %v9096_v25 = vsel %vm13615_vm0, %v10892_v61, %v9095_v9  ;;  %v10898_v9 = vrot.slane %v8941_v19, 9  ;;  %v12733_v34 = vld [vmem:[#allocation2 + $0xa4] sm:$0x1]  ;;  %v8943_v61 = vld [vmem:[#allocation2 + $0xb4] sm:$0xe]  ;;  %v9113_v56 = vsel %vm13615_vm0, %v9111_v40, %v9112_v60 }
 0x2cc   :  { %v9140_v42 = vrot.slane %v12733_v34, 5  ;;  %v12734_v38 = vld [vmem:[#allocation2 + $0xb8] sm:$0xf]  ;;  %v15310_v23 = vsel %vm13615_vm0, %v10897_v39, %v9130_v18  ;;  %v15314_v1 = vsel %vm13615_vm0, %v9132_v54, %v9133_v44  ;;  %v8944_v11 = vld [vmem:[#allocation2 + $0xc0] sm:$0xe] }
 0x2cd   :  { %v9099_v52 = vsel %vm13615_vm0, %v9097_v31, %v9098_v37  ;;  %v9151_v48 = vrot.slane %v12734_v38, 5  ;;  %v9110_v31 = vsel %vm13615_vm0, %v10894_v58, %v9109_v63  ;;  %v15318_v63 = vsel %vm13615_vm0, %v10898_v9, %v9137_v51  ;;  %v12738_v29 = vld [vmem:[#allocation2 + $0xd0] sm:$0xf]  ;;  %v12576_v5 = vld [vmem:[#allocation2 + $0x120] sm:$0xff]   ;;  %v4578_v39 = vld [vmem:[#allocation2 + $0x108] sm:$0xf] }
 0x2ce   :  { %11935 = vmatmul.mubr.msk.bf16.gmra.mrb[60].mxu0 %vm2029_vm13, %v10854_v10  ;;  %v8938_v10 = vld [vmem:[#allocation2 + $0x78] sm:$0xe]  ;;  %v10925_v14 = vcombine.low %v9096_v25, %v9099_v52  ;;  %v15324_v25 = vsel %vm13615_vm0, %v9139_v16, %v9140_v42  ;;  %v10927_v36 = vcombine.low %v9110_v31, %v9113_v56  ;;  %v9165_v18 = vrot.slane %v12738_v29, 5  ;;  %v12741_v42 = vld [vmem:[#allocation2 + $0x100] sm:$0xf] }
 0x2cf   :  { %11940 = vmatprep.mubr.msk.bf16.mxu0 %vm2029_vm13, %v10920_v35  ;;  %v10895_v8 = vrot.slane %v8938_v10, 9  ;;  %v9153_v10 = vrot.slane %v9151_v48, 4  ;;  %v10930_v62 = vcombine.low %v15310_v23, %v15314_v1  ;;  %v10931_v51 = vcombine.low %v15318_v63, %v15324_v25  ;;  %v12578_v29 = vld [vmem:[#allocation2 + $0x138] sm:$0xff]   ;;  %v8949_v1 = vld [vmem:[#allocation2 + $0x114] sm:$0xe] }
 0x2d0   :  { %v9167_v32 = vrot.slane %v9165_v18, 4  ;;  %v5074_v31 = vshrl.u32 %v4578_v39, 16  ;;  %v5077_v56 = vshll.u32 %v4578_v39, 16 }
 0x2d1   :  { %11635 = vmatmul.mubr.msk.bf16.gmra.mrb[24].mxu1 %vm2029_vm13, %v12568_v15  ;;  %v12724_v15 = vld [vmem:[#allocation2 + $0x7c] sm:$0xf] }
 0x2d2   :  { %11638 = vmatprep.mubr.msk.bf16.mxu1 %vm2029_vm13, %v12569_v43  ;;  %v9116_v35 = vrot.slane %v12724_v15, 5  ;;  %v9106_v43 = vsel %vm13615_vm0, %v9104_v3, %v9105_v17  ;;  %v12736_v15 = vld [vmem:[#allocation2 + $0xbc] sm:$0x1] }
 0x2d3   :  { %v10926_v26 = vcombine.low %v9103_v49, %v9106_v43 }
 0x2d4   :  { %v9118_v13 = vrot.slane %v9116_v35, 4  ;;  %v9117_v3 = vsel %vm13615_vm0, %v10895_v8, %v9116_v35  ;;  %v9154_v35 = vrot.slane %v12736_v15, 5  ;;  %v8945_v8 = vld [vmem:[#allocation2 + $0xcc] sm:$0xe] }
 0x2d5   :  { %v10902_v54 = vrot.slane %v8945_v8, 9  ;;  %v12579_v8 = vld [vmem:[#allocation2 + $0x144] sm:$0xff]  }
 0x2d6   :  { %11941 = vmatmul.mubr.msk.bf16.vlgmr.msra.gmra.mrb[0].mxu0 %vm2029_vm13, %v10921_v45  ;;  %v10896_v45 = vrot.slane %v8939_v6, 9  ;;  %v9120_v21 = vsel %vm13615_vm0, %v9118_v13, %v9119_v4  ;;  %v12577_v4 = vld [vmem:[#allocation2 + $0x12c] sm:$0xff]  }
 0x2d7   :  { %11944 = vmatprep.mubr.msk.bf16.mxu0 %vm2029_vm13, %v10922_v28  ;;  %v10928_v60 = vcombine.low %v9117_v3, %v9120_v21 }
 0x2d8   :  { %v15301_v17 = vsel %vm13615_vm0, %v10896_v45, %v9123_v55  ;;  %v12737_v55 = vld [vmem:[#allocation2 + $0xc4] sm:$0xf] }
 0x2d9   :  { %11639 = vmatmul.mubr.msk.bf16.gmra.mrb[28].mxu1 %vm2029_vm13, %v12570_v30  ;;  %v8942_v30 = vld [vmem:[#allocation2 + $0xa8] sm:$0xe]  ;;  %v9158_v49 = vrot.slane %v12737_v55, 5  ;;  %v8946_v55 = vld [vmem:[#allocation2 + $0xf0] sm:$0xe] }
 0x2da   :  { %11642 = vmatprep.mubr.msk.bf16.mxu1 %vm2029_vm13, %v12571_v20  ;;  %v12730_v20 = vld [vmem:[#allocation2 + $0xac] sm:$0xf]  ;;  %v10899_v7 = vrot.slane %v8942_v30, 9 }
 0x2db   :  { %v9144_v28 = vrot.slane %v12730_v20, 5  ;;  %v15349_v20 = vsel %vm13615_vm0, %v9153_v10, %v9154_v35  ;;  %v9160_v13 = vrot.slane %v9158_v49, 4  ;;  %v12744_v10 = vld [vmem:[#allocation2 + $0xec] sm:$0x1]  ;;  %v12745_v35 = vld [vmem:[#allocation2 + $0xf4] sm:$0xf] }
 0x2dc   :  { %v5021_v15 = vshll.u32 %v12744_v10, 16 }
 0x2dd   :  { %v9146_v37 = vrot.slane %v9144_v28, 4  ;;  %v15328_v52 = vsel %vm13615_vm0, %v10899_v7, %v9144_v28  ;;  %v10901_v28 = vrot.slane %v8944_v11, 9  ;;  %v5059_v7 = vshll.u32 %v12741_v42, 16 }
 0x2de   :  { %11945 = vmatmul.mubr.msk.bf16.gmra.mrb[4].mxu0 %vm2029_vm13, %v10923_v12  ;;  %v12735_v12 = vld [vmem:[#allocation2 + $0xb0] sm:$0x1]  ;;  %v9172_v11 = vrot.slane %v12745_v35, 5 }
 0x2df   :  { %11948 = vmatprep.mubr.msk.bf16.mxu0 %vm2029_vm13, %v10924_v2  ;;  %v9147_v53 = vrot.slane %v12735_v12, 5  ;;  %v4569_v2 = vld [vmem:[#allocation2 + $0xe4] sm:$0xf]  ;;  %v15358_v38 = vsel %vm13615_vm0, %v10901_v28, %v9158_v49  ;;  %v8947_v28 = vld [vmem:[#allocation2 + $0xfc] sm:$0xe] }
 0x2e0   :  { %v5002_v43 = vshrl.u32 %v4569_v2, 16  ;;  %v5005_v58 = vshll.u32 %v4569_v2, 16  ;;  %v9174_v39 = vrot.slane %v9172_v11, 4 }
 0x2e1   :  { %11643 = vmatmul.mubr.msk.bf16.gmra.mrb[32].mxu1 %vm2029_vm13, %v12572_v59  ;;  %v15305_v59 = vsel %vm13615_vm0, %v9125_v46, %v9126_v50  ;;  %v15333_v6 = vsel %vm13615_vm0, %v9146_v37, %v9147_v53  ;;  %v12740_v46 = vld [vmem:[#allocation2 + $0xc8] sm:$0x1]  ;;  %v12743_v53 = vld [vmem:[#allocation2 + $0x10c] sm:$0xf] }
 0x2e2   :  { %11646 = vmatprep.mubr.msk.bf16.mxu1 %vm2029_vm13, %v12573_v22  ;;  %v10900_v22 = vrot.slane %v8943_v61, 9  ;;  %v10929_v19 = vcombine.low %v15301_v17, %v15305_v59  ;;  %v10932_v45 = vcombine.low %v15328_v52, %v15333_v6  ;;  %v9161_v24 = vrot.slane %v12740_v46, 5  ;;  %v12749_v17 = vld [vmem:[#allocation2 + $0x110] sm:$0x1] }
 0x2e3   :  { %v5004_v50 = vrot.slane %v5002_v43, 4  ;;  %v5063_v61 = vshrl.u32 %v12741_v42, 16  ;;  %v5083_v3 = vshll.u32 %v12743_v53, 16  ;;  %v5087_v21 = vshrl.u32 %v12743_v53, 16 }
 0x2e4   :  { %v15345_v30 = vsel %vm13615_vm0, %v10900_v22, %v9151_v48  ;;  %v12742_v48 = vld [vmem:[#allocation2 + $0xd4] sm:$0x1]  ;;  %v15363_v37 = vsel %vm13615_vm0, %v9160_v13, %v9161_v24  ;;  %v15386_v24 = vrot.slane %v5021_v15, 5  ;;  %v5093_v59 = vshll.u32 %v12749_v17, 16 }
 0x2e5   :  { %v10933_v2 = vcombine.low %v15345_v30, %v15349_v20  ;;  %v5089_v13 = vrot.slane %v5087_v21, 4  ;;  %v12752_v21 = vld [vmem:[#allocation2 + $0x104] sm:$0x1] }
 0x2e6   :  { %11949 = vmatmul.mubr.msk.bf16.gmra.mrb[8].mxu0 %vm2029_vm13, %v10925_v14  ;;  %v12739_v14 = vld [vmem:[#allocation2 + $0xe8] sm:$0xf] }
 0x2e7   :  { %11952 = vmatprep.mubr.msk.bf16.mxu0 %vm2029_vm13, %v10926_v26  ;;  %v5011_v40 = vshll.u32 %v12739_v14, 16  ;;  %v5015_v33 = vshrl.u32 %v12739_v14, 16  ;;  %v4575_v26 = vld [vmem:[#allocation2 + $0xfc] sm:$0xf]  ;;  %v10934_v14 = vcombine.low %v15358_v38, %v15363_v37 }
 0x2e8   :  { %v5050_v16 = vshrl.u32 %v4575_v26, 16  ;;  %v5053_v34 = vshll.u32 %v4575_v26, 16  ;;  %v15382_v26 = vrot.slane %v5083_v3, 5 }
 0x2e9   :  { %11647 = vmatmul.mubr.msk.bf16.gmra.mrb[36].mxu1 %vm2029_vm13, %v12574_v0  ;;  %v5007_v0 = vrot.slane %v5005_v58, 5  ;;  %v15351_v44 = vrot.slane %v5011_v40, 5  ;;  %v5017_v9 = vrot.slane %v5015_v33, 4  ;;  %v15368_v58 = vrot.slane %v5059_v7, 5 }
 0x2ea   :  { %11650 = vmatprep.mubr.msk.bf16.mxu1 %vm2029_vm13, %v12575_v47  ;;  %v9168_v47 = vrot.slane %v12742_v48, 5  ;;  %v5052_v49 = vrot.slane %v5050_v16, 4  ;;  %v5055_v43 = vrot.slane %v5053_v34, 5  ;;  %v15374_v40 = vsel %vm13615_vm0, %v10902_v54, %v9165_v18  ;;  %v12746_v18 = vld [vmem:[#allocation2 + $0x100] sm:$0xf] }
 0x2eb   :  { %v5008_v12 = vor.u32 %v5007_v0, %v5004_v50  ;;  %v5018_v22 = vor.u32 %v5017_v9, %v15351_v44  ;;  %v5076_v33 = vrot.slane %v5074_v31, 4  ;;  %v10903_v50 = vrot.slane %v8946_v55, 9  ;;  %v12747_v9 = vld [vmem:[#allocation2 + $0x104] sm:$0x1]  ;;  %v12748_v34 = vld [vmem:[#allocation2 + $0xf8] sm:$0x1] }
 0x2ec   :  { %v9179_v0 = vrot.slane %v12746_v18, 5  ;;  %v5056_v54 = vor.u32 %v5055_v43, %v5052_v49  ;;  %v5069_v16 = vshll.u32 %v12747_v9, 16  ;;  %v9175_v42 = vrot.slane %v12748_v34, 5  ;;  %v12750_v31 = vld [vmem:[#allocation2 + $0x10c] sm:$0xf]  ;;  %v12580_v49 = vld [vmem:[#allocation2 + $0x150] sm:$0xff]  }
 0x2ed   :  { %v15384_v46 = vrot.slane %v5018_v22, 4  ;;  %v10904_v7 = vrot.slane %v8947_v28, 9  ;;  %v9186_v23 = vrot.slane %v12750_v31, 5  ;;  %v15410_v53 = vsel %vm13615_vm0, %v10903_v50, %v9172_v11  ;;  %v4581_v55 = vld [vmem:[#allocation2 + $0x114] sm:$0xf] }
 0x2ee   :  { %11953 = vmatmul.mubr.msk.bf16.gmra.mrb[12].mxu0 %vm2029_vm13, %v10927_v36  ;;  %v5065_v36 = vrot.slane %v5063_v61, 4  ;;  %v9181_v3 = vrot.slane %v9179_v0, 4  ;;  %v9182_v22 = vrot.slane %v12752_v21, 5  ;;  %v5071_v15 = vrot.slane %v5069_v16, 5  ;;  %v12754_v11 = vld [vmem:[#allocation2 + $0x11c] sm:$0x1] }
 0x2ef   :  { %11956 = vmatprep.mubr.msk.bf16.mxu0 %vm2029_vm13, %v10928_v60  ;;  %v5079_v60 = vrot.slane %v5077_v56, 5  ;;  %v9188_v28 = vrot.slane %v9186_v23, 4  ;;  %v15418_v50 = vsel %vm13615_vm0, %v10904_v7, %v9179_v0  ;;  %v5098_v18 = vshrl.u32 %v4581_v55, 16  ;;  %v12755_v9 = vld [vmem:[#allocation2 + $0x118] sm:$0xf] }
 0x2f0   :  { %v5107_v16 = vshll.u32 %v12755_v9, 16  ;;  %v5111_v34 = vshrl.u32 %v12755_v9, 16  ;;  %v4584_v0 = vld [vmem:[#allocation2 + $0x120] sm:$0xf] }
 0x2f1   :  { %11651 = vmatmul.mubr.msk.bf16.gmra.mrb[40].mxu1 %vm2029_vm13, %v12576_v5  ;;  %v15378_v5 = vsel %vm13615_vm0, %v9167_v32, %v9168_v47  ;;  %v5066_v32 = vor.u32 %v5065_v36, %v15368_v58  ;;  %v5080_v61 = vor.u32 %v5079_v60, %v5076_v33  ;;  %v5090_v47 = vor.u32 %v5089_v13, %v15382_v26 }
 0x2f2   :  { %11654 = vmatprep.mubr.msk.bf16.mxu1 %vm2029_vm13, %v12577_v4  ;;  %v15380_v4 = vrot.slane %v5008_v12, 4  ;;  %v5024_v12 = vsel %vm13144_vm12, %v15384_v46, %v15386_v24  ;;  %v5095_v36 = vrot.slane %v5093_v59, 5  ;;  %v10906_v60 = vrot.slane %v8949_v1, 9 }
 0x2f3   :  { %v5067_v10 = vrot.slane %v5066_v32, 4  ;;  %v5081_v43 = vrot.slane %v5080_v61, 4  ;;  %v9196_v46 = vrot.slane %v12754_v11, 5  ;;  %v15414_v24 = vsel %vm13615_vm0, %v9174_v39, %v9175_v42 }
 0x2f4   :  { %v5014_v48 = vsel %vm13144_vm12, %v15380_v4, %v15351_v44  ;;  %v5057_v44 = vrot.slane %v5056_v54, 4  ;;  %v5091_v4 = vrot.slane %v5090_v47, 4  ;;  %v5101_v54 = vshll.u32 %v4581_v55, 16  ;;  %v12756_v47 = vld [vmem:[#allocation2 + $0x124] sm:$0xf] }
 0x2f5   :  { %v15426_v32 = vsel %vm13615_vm0, %v9181_v3, %v9182_v22  ;;  %v5072_v63 = vsel %vm13144_vm12, %v5067_v10, %v5071_v15  ;;  %v5100_v42 = vrot.slane %v5098_v18, 4  ;;  %v5122_v61 = vshrl.u32 %v4584_v0, 16  ;;  %v12757_v3 = vld [vmem:[#allocation2 + $0x11c] sm:$0x1]  ;;  %v12583_v22 = vld [vmem:[#allocation2 + $0x174] sm:$0xff]  }
 0x2f6   :  { %11957 = vmatmul.mubr.msk.bf16.gmra.mrb[16].mxu0 %vm2029_vm13, %v10929_v19  ;;  %v8948_v19 = vld [vmem:[#allocation2 + $0x108] sm:$0xe]  ;;  %v5062_v39 = vsel %vm13144_vm12, %v5057_v44, %v15368_v58  ;;  %v5086_v58 = vsel %vm13144_vm12, %v5081_v43, %v15382_v26  ;;  %v5096_v52 = vsel %vm13144_vm12, %v5091_v4, %v5095_v36  ;;  %v5103_v7 = vrot.slane %v5101_v54, 5  ;;  %v4587_v55 = vld [vmem:[#allocation2 + $0x12c] sm:$0xf] }
 0x2f7   :  { %11960 = vmatprep.mubr.msk.bf16.mxu0 %vm2029_vm13, %v10930_v62  ;;  %v12751_v62 = vld [vmem:[#allocation2 + $0x118] sm:$0xf]  ;;  %v10905_v35 = vrot.slane %v8948_v19, 9  ;;  %v5125_v17 = vshll.u32 %v4584_v0, 16  ;;  %v15460_v59 = vrot.slane %v5107_v16, 5  ;;  %v5113_v19 = vrot.slane %v5111_v34, 4 }
 0x2f8   :  { %v9193_v56 = vrot.slane %v12751_v62, 5  ;;  %v5131_v26 = vshll.u32 %v12756_v47, 16  ;;  %v5135_v31 = vshrl.u32 %v12756_v47, 16  ;;  %v10935_v1 = vcombine.low %v15374_v40, %v15378_v5  ;;  %v8950_v4 = vld [vmem:[#allocation2 + $0x120] sm:$0xe] }
 0x2f9   :  { %11655 = vmatmul.mubr.msk.bf16.gmra.mrb[44].mxu1 %vm2029_vm13, %v12578_v29  ;;  %v12753_v29 = vld [vmem:[#allocation2 + $0x110] sm:$0x1]  ;;  %v15440_v25 = vsel %vm13615_vm0, %v10905_v35, %v9186_v23  ;;  %v12582_v23 = vld [vmem:[#allocation2 + $0x168] sm:$0xff]   ;;  %v15464_v62 = vcombine.low %v5014_v48, %v5024_v12  ;;  %v5117_v21 = vshll.u32 %v12757_v3, 16  ;;  %v10937_v44 = vcombine.low %v15418_v50, %v15426_v32  ;;  %v12761_v16 = vld [vmem:[#allocation2 + $0x13c] sm:$0xf] }
 0x2fa   :  { %11658 = vmatprep.mubr.msk.bf16.mxu1 %vm2029_vm13, %v12579_v8  ;;  %v9189_v33 = vrot.slane %v12753_v29, 5  ;;  %v12581_v8 = vld [vmem:[#allocation2 + $0x15c] sm:$0xff]   ;;  %v9195_v13 = vrot.slane %v9193_v56, 4  ;;  %v15470_v10 = vcombine.low %v5062_v39, %v5072_v63  ;;  %v15472_v15 = vcombine.low %v5086_v58, %v5096_v52  ;;  %v12585_v52 = vld [vmem:[#allocation2 + $0x18c] sm:$0xff]  }
 0x2fb   :  { %v5104_v5 = vor.u32 %v5103_v7, %v5100_v42  ;;  %v5124_v48 = vrot.slane %v5122_v61, 4  ;;  %v5127_v12 = vrot.slane %v5125_v17, 5  ;;  %v5114_v43 = vor.u32 %v5113_v19, %v15460_v59  ;;  %v12584_v58 = vld [vmem:[#allocation2 + $0x180] sm:$0xff]   ;;  %v12762_v7 = vld [vmem:[#allocation2 + $0x128] sm:$0x1] }
 0x2fc   :  { %v15454_v6 = vsel %vm13615_vm0, %v9188_v28, %v9189_v33  ;;  %v15483_v36 = vrot.slane %v5131_v26, 5  ;;  %v5137_v29 = vrot.slane %v5135_v31, 4  ;;  %v12758_v33 = vld [vmem:[#allocation2 + $0x128] sm:$0x1]  ;;  %v12759_v28 = vld [vmem:[#allocation2 + $0x124] sm:$0xf] }
 0x2fd   :  { %v10938_v35 = vcombine.low %v15440_v25, %v15454_v6  ;;  %v9200_v30 = vrot.slane %v12759_v28, 5  ;;  %v5146_v20 = vshrl.u32 %v4587_v55, 16  ;;  %v5105_v39 = vrot.slane %v5104_v5, 4  ;;  %v8951_v47 = vld [vmem:[#allocation2 + $0x12c] sm:$0xe] }
 0x2fe   :  { %11961 = vmatmul.mubr.msk.bf16.gmra.mrb[20].mxu0 %vm2029_vm13, %v10931_v51  ;;  %v15444_v51 = vsel %vm13615_vm0, %v10906_v60, %v9193_v56  ;;  %v10936_v56 = vcombine.low %v15410_v53, %v15414_v24  ;;  %v5141_v60 = vshll.u32 %v12758_v33, 16  ;;  %v5128_v9 = vor.u32 %v5127_v12, %v5124_v48  ;;  %v8952_v53 = vld [vmem:[#allocation2 + $0x138] sm:$0xe]  ;;  %v12766_v24 = vld [vmem:[#allocation2 + $0x13c] sm:$0xf] }
 0x2ff   :  { %11964 = vmatprep.mubr.msk.bf16.mxu0 %vm2029_vm13, %v10932_v45  ;;  %v15458_v45 = vsel %vm13615_vm0, %v9195_v13, %v9196_v46  ;;  %v12760_v13 = vld [vmem:[#allocation2 + $0x130] sm:$0xf]  ;;  %v5179_v34 = vshll.u32 %v12761_v16, 16  ;;  %v5183_v38 = vshrl.u32 %v12761_v16, 16  ;;  %v5115_v37 = vrot.slane %v5114_v43, 4 }
 0x300   :  { %v10939_v40 = vcombine.low %v15444_v51, %v15458_v45  ;;  %v5155_v11 = vshll.u32 %v12760_v13, 16  ;;  %v5159_v46 = vshrl.u32 %v12760_v13, 16  ;;  %v15492_v0 = vrot.slane %v5141_v60, 5  ;;  %v12765_v60 = vld [vmem:[#allocation2 + $0x134] sm:$0x1] }
 0x301   :  { %11659 = vmatmul.mubr.msk.bf16.gmra.mrb[48].mxu1 %vm2029_vm13, %v12580_v49  ;;  %v4590_v49 = vld [vmem:[#allocation2 + $0x138] sm:$0xf]  ;;  %v10907_v63 = vrot.slane %v8950_v4, 9  ;;  %v9202_v42 = vrot.slane %v9200_v30, 4  ;;  %v9203_v61 = vrot.slane %v12762_v7, 5  ;;  %v5148_v17 = vrot.slane %v5146_v20, 4 }
 0x302   :  { %11662 = vmatprep.mubr.msk.bf16.mxu1 %vm2029_vm13, %v12581_v8  ;;  %v5119_v8 = vrot.slane %v5117_v21, 5  ;;  %v5170_v18 = vshrl.u32 %v4590_v49, 16  ;;  %v5173_v54 = vshll.u32 %v4590_v49, 16  ;;  %v15494_v26 = vrot.slane %v5155_v11, 5  ;;  %v12763_v49 = vld [vmem:[#allocation2 + $0x130] sm:$0xf] }
 0x303   :  { %v5161_v31 = vrot.slane %v5159_v46, 4  ;;  %v5110_v21 = vsel %vm13144_vm12, %v5105_v39, %v15460_v59  ;;  %v5185_v5 = vrot.slane %v5183_v38, 4  ;;  %v9207_v43 = vrot.slane %v12763_v49, 5  ;;  %v4593_v13 = vld [vmem:[#allocation2 + $0x144] sm:$0xf] }
 0x304   :  { %v5175_v3 = vrot.slane %v5173_v54, 5  ;;  %v5120_v48 = vsel %vm13144_vm12, %v5115_v37, %v5119_v8  ;;  %v15515_v59 = vsel %vm13615_vm0, %v10907_v63, %v9200_v30  ;;  %v9210_v8 = vrot.slane %v12765_v60, 5  ;;  %v12768_v38 = vld [vmem:[#allocation2 + $0x148] sm:$0xf]  ;;  %v4596_v49 = vld [vmem:[#allocation2 + $0x150] sm:$0xf] }
 0x305   :  { %v15520_v28 = vsel %vm13615_vm0, %v9202_v42, %v9203_v61  ;;  %v5162_v20 = vor.u32 %v5161_v31, %v15494_v26  ;;  %v15523_v11 = vcombine.low %v5110_v21, %v5120_v48  ;;  %v9221_v37 = vrot.slane %v12768_v38, 5  ;;  %v12770_v21 = vld [vmem:[#allocation2 + $0x14c] sm:$0x1]  ;;  %v4602_v38 = vld [vmem:[#allocation2 + $0x168] sm:$0xf] }
 0x306   :  { %11965 = vmatmul.mubr.msk.bf16.gmra.mrb[24].mxu0 %vm2029_vm13, %v10933_v2  ;;  %v5149_v2 = vshll.u32 %v4587_v55, 16  ;;  %v15501_v55 = vrot.slane %v5179_v34, 5  ;;  %v8953_v34 = vld [vmem:[#allocation2 + $0x144] sm:$0xe]  ;;  %v5197_v42 = vshll.u32 %v4593_v13, 16  ;;  %v5218_v60 = vshrl.u32 %v4596_v49, 16 }
 0x307   :  { %11968 = vmatprep.mubr.msk.bf16.mxu0 %vm2029_vm13, %v10934_v14  ;;  %v5138_v14 = vor.u32 %v5137_v29, %v15483_v36  ;;  %v12764_v29 = vld [vmem:[#allocation2 + $0x134] sm:$0x1] }
 0x308   :  { %v5151_v19 = vrot.slane %v5149_v2, 5  ;;  %v5165_v33 = vshll.u32 %v12764_v29, 16  ;;  %v5186_v46 = vor.u32 %v5185_v5, %v15501_v55  ;;  %v12771_v5 = vld [vmem:[#allocation2 + $0x148] sm:$0xf] }
 0x309   :  { %11663 = vmatmul.mubr.msk.bf16.gmra.mrb[52].mxu1 %vm2029_vm13, %v12582_v23  ;;  %v5172_v23 = vrot.slane %v5170_v18, 4  ;;  %v15506_v12 = vrot.slane %v5138_v14, 4  ;;  %v12767_v18 = vld [vmem:[#allocation2 + $0x140] sm:$0x1]  ;;  %v12586_v14 = vld [vmem:[#allocation2 + $0x198] sm:$0xff]   ;;  %v5203_v48 = vshll.u32 %v12771_v5, 16 }
 0x30a   :  { %11666 = vmatprep.mubr.msk.bf16.mxu1 %vm2029_vm13, %v12583_v22  ;;  %v15499_v22 = vrot.slane %v5128_v9, 4  ;;  %v5152_v4 = vor.u32 %v5151_v19, %v5148_v17  ;;  %v5189_v54 = vshll.u32 %v12767_v18, 16  ;;  %v9209_v9 = vrot.slane %v9207_v43, 4  ;;  %v12769_v17 = vld [vmem:[#allocation2 + $0x140] sm:$0x1] }
 0x30b   :  { %v5176_v2 = vor.u32 %v5175_v3, %v5172_v23  ;;  %v5144_v39 = vsel %vm13144_vm12, %v15506_v12, %v15492_v0  ;;  %v5167_v16 = vrot.slane %v5165_v33, 5  ;;  %v9217_v19 = vrot.slane %v12769_v17, 5  ;;  %v12772_v33 = vld [vmem:[#allocation2 + $0x14c] sm:$0x1] }
 0x30c   :  { %v5134_v30 = vsel %vm13144_vm12, %v15499_v22, %v15483_v36  ;;  %v5153_v63 = vrot.slane %v5152_v4, 4  ;;  %v5163_v36 = vrot.slane %v5162_v20, 4  ;;  %v5187_v0 = vrot.slane %v5186_v46, 4  ;;  %v8954_v46 = vld [vmem:[#allocation2 + $0x150] sm:$0xe] }
 0x30d   :  { %v5177_v7 = vrot.slane %v5176_v2, 4  ;;  %v5191_v31 = vrot.slane %v5189_v54, 5  ;;  %v10910_v23 = vrot.slane %v8953_v34, 9  ;;  %v9223_v3 = vrot.slane %v9221_v37, 4  ;;  %v4599_v34 = vld [vmem:[#allocation2 + $0x15c] sm:$0xf] }
 0x30e   :  { %11969 = vmatmul.mubr.msk.bf16.gmra.mrb[28].mxu0 %vm2029_vm13, %v10935_v1  ;;  %v10908_v1 = vrot.slane %v8951_v47, 9  ;;  %v9224_v22 = vrot.slane %v12770_v21, 5  ;;  %v5207_v12 = vshrl.u32 %v12771_v5, 16  ;;  %v5158_v50 = vsel %vm13144_vm12, %v5153_v63, %v15494_v26  ;;  %v12774_v63 = vld [vmem:[#allocation2 + $0x158] sm:$0x1] }
 0x30f   :  { %11972 = vmatprep.mubr.msk.bf16.mxu0 %vm2029_vm13, %v10936_v56  ;;  %v9214_v56 = vrot.slane %v12766_v24, 5  ;;  %v5168_v29 = vsel %vm13144_vm12, %v5163_v36, %v5167_v16  ;;  %v5182_v25 = vsel %vm13144_vm12, %v5177_v7, %v15501_v55  ;;  %v5192_v26 = vsel %vm13144_vm12, %v5187_v0, %v5191_v31  ;;  %v12775_v7 = vld [vmem:[#allocation2 + $0x154] sm:$0xf] }
 0x310   :  { %v15536_v47 = vsel %vm13615_vm0, %v10908_v1, %v9207_v43  ;;  %v15549_v43 = vsel %vm13615_vm0, %v9209_v9, %v9210_v8  ;;  %v5213_v1 = vshll.u32 %v12772_v33, 16  ;;  %v15577_v55 = vsel %vm13615_vm0, %v9223_v3, %v9224_v22 }
 0x311   :  { %11667 = vmatmul.mubr.msk.bf16.gmra.mrb[56].mxu1 %vm2029_vm13, %v12584_v58  ;;  %v10909_v58 = vrot.slane %v8952_v53, 9  ;;  %v9216_v61 = vrot.slane %v9214_v56, 4  ;;  %v15579_v8 = vrot.slane %v5203_v48, 5  ;;  %v5209_v4 = vrot.slane %v5207_v12, 4  ;;  %v12778_v12 = vld [vmem:[#allocation2 + $0x158] sm:$0x1] }
 0x312   :  { %11670 = vmatprep.mubr.msk.bf16.mxu1 %vm2029_vm13, %v12585_v52  ;;  %v5194_v52 = vshrl.u32 %v4593_v13, 16  ;;  %v5221_v20 = vshll.u32 %v4596_v49, 16  ;;  %v15581_v2 = vcombine.low %v5134_v30, %v5144_v39  ;;  %v10940_v53 = vcombine.low %v15515_v59, %v15520_v28 }
 0x313   :  { %v15563_v6 = vsel %vm13615_vm0, %v10909_v58, %v9214_v56  ;;  %v12773_v56 = vld [vmem:[#allocation2 + $0x154] sm:$0xf]  ;;  %v10941_v18 = vcombine.low %v15536_v47, %v15549_v43  ;;  %v15587_v54 = vcombine.low %v5158_v50, %v5168_v29  ;;  %v15589_v9 = vcombine.low %v5182_v25, %v5192_v26  ;;  %v8955_v43 = vld [vmem:[#allocation2 + $0x15c] sm:$0xe]  ;;  %v12779_v50 = vld [vmem:[#allocation2 + $0x160] sm:$0xf] }
 0x314   :  { %v5196_v32 = vrot.slane %v5194_v52, 4  ;;  %v5227_v13 = vshll.u32 %v12773_v56, 16  ;;  %v15595_v39 = vrot.slane %v5213_v1, 5  ;;  %v15597_v59 = vrot.slane %v5218_v60, 4  ;;  %v8956_v60 = vld [vmem:[#allocation2 + $0x168] sm:$0xe] }
 0x315   :  { %v5231_v28 = vshrl.u32 %v12773_v56, 16  ;;  %v5237_v58 = vshll.u32 %v12774_v63, 16  ;;  %v10911_v52 = vrot.slane %v8954_v46, 9  ;;  %v9228_v51 = vrot.slane %v12775_v7, 5  ;;  %v8957_v7 = vld [vmem:[#allocation2 + $0x174] sm:$0xe] }
 0x316   :  { %11973 = vmatmul.mubr.msk.bf16.gmra.mrb[32].mxu0 %vm2029_vm13, %v10937_v44  ;;  %v5199_v44 = vrot.slane %v5197_v42, 5  ;;  %v15611_v36 = vrot.slane %v5227_v13, 5  ;;  %v5242_v45 = vshrl.u32 %v4599_v34, 16  ;;  %v5266_v47 = vshrl.u32 %v4602_v38, 16 }
 0x317   :  { %11976 = vmatprep.mubr.msk.bf16.mxu0 %vm2029_vm13, %v10938_v35  ;;  %v15567_v35 = vsel %vm13615_vm0, %v9216_v61, %v9217_v19  ;;  %v12776_v61 = vld [vmem:[#allocation2 + $0x160] sm:$0xf]  ;;  %v5233_v0 = vrot.slane %v5231_v28, 4  ;;  %v5269_v31 = vshll.u32 %v4602_v38, 16  ;;  %v15617_v5 = vrot.slane %v5237_v58, 5 }
 0x318   :  { %v5200_v24 = vor.u32 %v5199_v44, %v5196_v32  ;;  %v10942_v16 = vcombine.low %v15563_v6, %v15567_v35  ;;  %v5251_v17 = vshll.u32 %v12776_v61, 16  ;;  %v5255_v19 = vshrl.u32 %v12776_v61, 16  ;;  %v12782_v28 = vld [vmem:[#allocation2 + $0x164] sm:$0x1] }
 0x319   :  { %11671 = vmatmul.mubr.msk.bf16.gmra.mrb[60].mxu1 %vm2029_vm13, %v12586_v14  ;;  %v15604_v14 = vrot.slane %v5221_v20, 5  ;;  %v15621_v48 = vsel %vm13615_vm0, %v10911_v52, %v9228_v51  ;;  %v9231_v49 = vrot.slane %v12778_v12, 5  ;;  %v9235_v32 = vrot.slane %v12779_v50, 5  ;;  %v12784_v52 = vld [vmem:[#allocation2 + $0x170] sm:$0x1] }
 0x31a   :  { %11708 = vmatprep.mubr.msk.bf16.mxu1 %vm2029_vm13, %v15464_v62  ;;  %v15573_v62 = vsel %vm13615_vm0, %v10910_v23, %v9221_v37  ;;  %v5210_v37 = vor.u32 %v5209_v4, %v15579_v8  ;;  %v15609_v42 = vrot.slane %v5200_v24, 4  ;;  %v5244_v44 = vrot.slane %v5242_v45, 4  ;;  %v12780_v4 = vld [vmem:[#allocation2 + $0x16c] sm:$0xf]  ;;  %v12786_v50 = vld [vmem:[#allocation2 + $0x178] sm:$0xf] }
 0x31b   :  { %v10943_v30 = vcombine.low %v15573_v62, %v15577_v55  ;;  %v5224_v22 = vor.u32 %v15604_v14, %v15597_v59  ;;  %v15623_v25 = vrot.slane %v5251_v17, 5  ;;  %v5257_v6 = vrot.slane %v5255_v19, 4  ;;  %v12787_v55 = vld [vmem:[#allocation2 + $0x17c] sm:$0x1] }
 0x31c   :  { %v5211_v21 = vrot.slane %v5210_v37, 4  ;;  %v5268_v35 = vrot.slane %v5266_v47, 4  ;;  %v5271_v26 = vrot.slane %v5269_v31, 5  ;;  %v9242_v20 = vrot.slane %v12780_v4, 5  ;;  %v12783_v37 = vld [vmem:[#allocation2 + $0x170] sm:$0x1] }
 0x31d   :  { %v5234_v56 = vor.u32 %v5233_v0, %v15611_v36  ;;  %v10912_v13 = vrot.slane %v8955_v43, 9  ;;  %v5258_v38 = vor.u32 %v5257_v6, %v15623_v25  ;;  %v5285_v14 = vshll.u32 %v12783_v37, 16  ;;  %v12785_v47 = vld [vmem:[#allocation2 + $0x178] sm:$0xf]  ;;  %v4605_v31 = vld [vmem:[#allocation2 + $0x174] sm:$0xf] }
 0x31e   :  { %11977 = vmatmul.mubr.msk.bf16.gmra.mrb[36].mxu0 %vm2029_vm13, %v10939_v40  ;;  %v5245_v40 = vshll.u32 %v4599_v34, 16  ;;  %v5216_v24 = vsel %vm13144_vm12, %v5211_v21, %v15595_v39  ;;  %v12781_v34 = vld [vmem:[#allocation2 + $0x164] sm:$0x1]  ;;  %v10913_v63 = vrot.slane %v8956_v60, 9  ;;  %v9244_v58 = vrot.slane %v9242_v20, 4 }
 0x31f   :  { %11980 = vmatprep.mubr.msk.bf16.mxu0 %vm2029_vm13, %v10940_v53  ;;  %v5206_v53 = vsel %vm13144_vm12, %v15609_v42, %v15579_v8  ;;  %v9238_v59 = vrot.slane %v12781_v34, 5  ;;  %v5261_v8 = vshll.u32 %v12782_v28, 16  ;;  %v9245_v42 = vrot.slane %v12784_v52, 5  ;;  %v12790_v28 = vld [vmem:[#allocation2 + $0x184] sm:$0xf] }
 0x320   :  { %v5247_v29 = vrot.slane %v5245_v40, 5  ;;  %v5225_v45 = vrot.slane %v5224_v22, 4  ;;  %v5235_v40 = vrot.slane %v5234_v56, 4  ;;  %v9249_v0 = vrot.slane %v12785_v47, 5  ;;  %v12791_v37 = vld [vmem:[#allocation2 + $0x188] sm:$0x1] }
 0x321   :  { %11709 = vmatmul.mubr.msk.bf16.vlgmr.msra.gmra.mrb[32].mxu1 %vm2029_vm13, %v15181_v27  ;;  %v12777_v27 = vld [vmem:[#allocation2 + $0x16c] sm:$0xf]  ;;  %v5263_v19 = vrot.slane %v5261_v8, 5  ;;  %v10914_v21 = vrot.slane %v8957_v7, 9  ;;  %v9243_v22 = vsel %vm13615_vm0, %v10913_v63, %v9242_v20  ;;  %v5293_v43 = vshll.u32 %v4605_v31, 16 }
 0x322   :  { %11712 = vmatprep.mubr.msk.bf16.mxu1 %vm2029_vm13, %v15470_v10  ;;  %v5275_v23 = vshll.u32 %v12777_v27, 16  ;;  %v5279_v3 = vshrl.u32 %v12777_v27, 16  ;;  %v9230_v10 = vrot.slane %v9228_v51, 4  ;;  %v5248_v39 = vor.u32 %v5247_v29, %v5244_v44 }
 0x323   :  { %v15645_v51 = vcombine.low %v5206_v53, %v5216_v24  ;;  %v5303_v44 = vshrl.u32 %v12786_v50, 16  ;;  %v5230_v29 = vsel %vm13144_vm12, %v5225_v45, %v15611_v36  ;;  %v5240_v6 = vsel %vm13144_vm12, %v5235_v40, %v15617_v5  ;;  %v8958_v53 = vld [vmem:[#allocation2 + $0x180] sm:$0xe]  ;;  %v4611_v45 = vld [vmem:[#allocation2 + $0x18c] sm:$0xf] }
 0x324   :  { %v15625_v33 = vrot.slane %v5275_v23, 5  ;;  %v5281_v1 = vrot.slane %v5279_v3, 4  ;;  %v9232_v46 = vsel %vm13615_vm0, %v9230_v10, %v9231_v49  ;;  %v5249_v27 = vrot.slane %v5248_v39, 4 }
 0x325   :  { %v10944_v61 = vcombine.low %v15621_v48, %v9232_v46  ;;  %v5259_v23 = vrot.slane %v5258_v38, 4  ;;  %v5287_v3 = vrot.slane %v5285_v14, 5  ;;  %v9246_v48 = vsel %vm13615_vm0, %v9244_v58, %v9245_v42 }
 0x326   :  { %11981 = vmatmul.mubr.msk.bf16.gmra.mrb[40].mxu0 %vm2029_vm13, %v10941_v18  ;;  %v9237_v18 = vrot.slane %v9235_v32, 4  ;;  %v5290_v49 = vshrl.u32 %v4605_v31, 16  ;;  %v9251_v62 = vrot.slane %v9249_v0, 4  ;;  %v10946_v20 = vcombine.low %v9243_v22, %v9246_v48  ;;  %v8960_v48 = vld [vmem:[#allocation2 + $0x198] sm:$0xe] }
 0x327   :  { %11984 = vmatprep.mubr.msk.bf16.mxu0 %vm2029_vm13, %v10942_v16  ;;  %v5282_v16 = vor.u32 %v5281_v1, %v15625_v33  ;;  %v5264_v36 = vsel %vm13144_vm12, %v5259_v23, %v5263_v19  ;;  %v12788_v1 = vld [vmem:[#allocation2 + $0x184] sm:$0xf]  ;;  %v5295_v24 = vrot.slane %v5293_v43, 5  ;;  %v5323_v8 = vshll.u32 %v12790_v28, 16  ;;  %v12792_v19 = vld [vmem:[#allocation2 + $0x190] sm:$0xf] }
 0x328   :  { %v9239_v17 = vsel %vm13615_vm0, %v9237_v18, %v9238_v59  ;;  %v9256_v60 = vrot.slane %v12788_v1, 5  ;;  %v12789_v18 = vld [vmem:[#allocation2 + $0x17c] sm:$0x1]  ;;  %v10915_v39 = vrot.slane %v8958_v53, 9  ;;  %v9259_v14 = vrot.slane %v12791_v37, 5 }
 0x329   :  { %11713 = vmatmul.mubr.msk.bf16.gmra.mrb[36].mxu1 %vm2029_vm13, %v15472_v15  ;;  %v5272_v15 = vor.u32 %v5271_v26, %v5268_v35  ;;  %v5283_v12 = vrot.slane %v5282_v16, 4  ;;  %v4608_v26 = vld [vmem:[#allocation2 + $0x180] sm:$0xf]  ;;  %v5309_v34 = vshll.u32 %v12789_v18, 16  ;;  %v10621_v63 = vcombine.low %v5230_v29, %v5240_v6 }
 0x32a   :  { %11716 = vmatprep.mubr.msk.bf16.mxu1 %vm2029_vm13, %v15523_v11  ;;  %v9236_v11 = vsel %vm13615_vm0, %v10912_v13, %v9235_v32  ;;  %v5299_v32 = vshll.u32 %v12786_v50, 16  ;;  %v5305_v13 = vrot.slane %v5303_v44, 4  ;;  %v5317_v59 = vshll.u32 %v4608_v26, 16 }
 0x32b   :  { %v5273_v10 = vrot.slane %v5272_v15, 4  ;;  %v10945_v35 = vcombine.low %v9236_v11, %v9239_v17  ;;  %v5288_v4 = vsel %vm13144_vm12, %v5283_v12, %v5287_v3  ;;  %v9258_v38 = vrot.slane %v9256_v60, 4  ;;  %v8959_v17 = vld [vmem:[#allocation2 + $0x18c] sm:$0xe] }
 0x32c   :  { %v15685_v56 = vrot.slane %v5299_v32, 5  ;;  %v5327_v7 = vshrl.u32 %v12790_v28, 16  ;;  %v15697_v40 = vrot.slane %v5309_v34, 5  ;;  %v5319_v11 = vrot.slane %v5317_v59, 5  ;;  %v12795_v32 = vld [vmem:[#allocation2 + $0x188] sm:$0x1] }
 0x32d   :  { %v5278_v5 = vsel %vm13144_vm12, %v5273_v10, %v15625_v33  ;;  %v5314_v33 = vshrl.u32 %v4608_v26, 16  ;;  %v9263_v47 = vrot.slane %v12792_v19, 5  ;;  %v9257_v31 = vsel %vm13615_vm0, %v10915_v39, %v9256_v60  ;;  %v12794_v10 = vld [vmem:[#allocation2 + $0x190] sm:$0xf]  ;;  %v12797_v26 = vld [vmem:[#allocation2 + $0x1a0] sm:$0x1] }
 0x32e   :  { %11985 = vmatmul.mubr.msk.bf16.gmra.mrb[44].mxu0 %vm2029_vm13, %v10943_v30  ;;  %v9252_v30 = vrot.slane %v12787_v55, 5  ;;  %v15689_v16 = vcombine.low %v5278_v5, %v5288_v4  ;;  %v5306_v42 = vor.u32 %v5305_v13, %v15685_v56  ;;  %v5338_v3 = vshrl.u32 %v4611_v45, 16  ;;  %v12798_v34 = vld [vmem:[#allocation2 + $0x1a8] sm:$0xf] }
 0x32f   :  { %11988 = vmatprep.mubr.msk.bf16.mxu0 %vm2029_vm13, %v10944_v61  ;;  %v5316_v61 = vrot.slane %v5314_v33, 4  ;;  %v5347_v12 = vshll.u32 %v12794_v10, 16  ;;  %v5351_v22 = vshrl.u32 %v12794_v10, 16  ;;  %v5329_v50 = vrot.slane %v5327_v7, 4  ;;  %v12799_v33 = vld [vmem:[#allocation2 + $0x19c] sm:$0xf] }
 0x330   :  { %v9253_v46 = vsel %vm13615_vm0, %v9251_v62, %v9252_v30  ;;  %v5307_v43 = vrot.slane %v5306_v42, 4  ;;  %v5333_v44 = vshll.u32 %v12795_v32, 16  ;;  %v9265_v6 = vrot.slane %v9263_v47, 4  ;;  %v12796_v62 = vld [vmem:[#allocation2 + $0x194] sm:$0x1] }
 0x331   :  { %11717 = vmatmul.mubr.msk.bf16.gmra.mrb[40].mxu1 %vm2029_vm13, %v15581_v2  ;;  %v5254_v2 = vsel %vm13144_vm12, %v5249_v27, %v15623_v25  ;;  %v5292_v25 = vrot.slane %v5290_v49, 4  ;;  %v12793_v27 = vld [vmem:[#allocation2 + $0x19c] sm:$0xf]  ;;  %v9266_v55 = vrot.slane %v12796_v62, 5  ;;  %v5320_v30 = vor.u32 %v5319_v11, %v5316_v61 }
 0x332   :  { %11720 = vmatprep.mubr.msk.bf16.mxu1 %vm2029_vm13, %v15587_v54  ;;  %v15683_v54 = vsel %vm13615_vm0, %v10914_v21, %v9249_v0  ;;  %v10622_v15 = vcombine.low %v5254_v2, %v5264_v36  ;;  %v15701_v0 = vrot.slane %v5323_v8, 5  ;;  %v9270_v23 = vrot.slane %v12793_v27, 5 }
 0x333   :  { %v10947_v58 = vcombine.low %v15683_v54, %v9253_v46  ;;  %v5296_v52 = vor.u32 %v5295_v24, %v5292_v25  ;;  %v5341_v21 = vshll.u32 %v4611_v45, 16  ;;  %v10917_v2 = vrot.slane %v8960_v48, 9 }
 0x334   :  { %v9272_v36 = vrot.slane %v9270_v23, 4  ;;  %v9273_v1 = vrot.slane %v12797_v26, 5  ;;  %v5340_v60 = vrot.slane %v5338_v3, 4  ;;  %v5349_v4 = vrot.slane %v5347_v12, 5 }
 0x335   :  { %v5297_v49 = vrot.slane %v5296_v52, 4  ;;  %v5343_v5 = vrot.slane %v5341_v21, 5  ;;  %v5312_v53 = vsel %vm13144_vm12, %v5307_v43, %v15697_v40  ;;  %v5330_v25 = vor.u32 %v5329_v50, %v15701_v0 }
 0x336   :  { %11989 = vmatmul.mubr.msk.bf16.gmra.mrb[48].mxu0 %vm2029_vm13, %v10945_v35  ;;  %v4614_v35 = vld [vmem:[#allocation2 + $0x198] sm:$0xf]  ;;  %v9267_v13 = vsel %vm13615_vm0, %v9265_v6, %v9266_v55  ;;  %v5371_v59 = vshll.u32 %v12799_v33, 16  ;;  %v5375_v28 = vshrl.u32 %v12799_v33, 16  ;;  %v9271_v8 = vsel %vm13615_vm0, %v10917_v2, %v9270_v23 }
 0x337   :  { %11992 = vmatprep.mubr.msk.bf16.mxu0 %vm2029_vm13, %v10946_v20  ;;  %v5353_v20 = vrot.slane %v5351_v22, 4  ;;  %v5302_v54 = vsel %vm13144_vm12, %v5297_v49, %v15685_v56  ;;  %v5362_v46 = vshrl.u32 %v4614_v35, 16  ;;  %v5365_v18 = vshll.u32 %v4614_v35, 16 }
 0x338   :  { %v9277_v56 = vrot.slane %v12798_v34, 5  ;;  %v9274_v39 = vsel %vm13615_vm0, %v9272_v36, %v9273_v1  ;;  %v5335_v37 = vrot.slane %v5333_v44, 5  ;;  %v10624_v42 = vcombine.low %v5302_v54, %v5312_v53 }
 0x339   :  { %11721 = vmatmul.mubr.msk.bf16.gmra.mrb[44].mxu1 %vm2029_vm13, %v15589_v9  ;;  %v9260_v9 = vsel %vm13615_vm0, %v9258_v38, %v9259_v14  ;;  %v8961_v38 = vld [vmem:[#allocation2 + $0x1a4] sm:$0xe]  ;;  %v5344_v14 = vor.u32 %v5343_v5, %v5340_v60  ;;  %v5321_v7 = vrot.slane %v5320_v30, 4  ;;  %v5331_v45 = vrot.slane %v5330_v25, 4 }
 0x33a   :  { %11724 = vmatprep.mubr.msk.bf16.mxu1 %vm2029_vm13, %v15645_v51  ;;  %v10916_v51 = vrot.slane %v8959_v17, 9  ;;  %v10948_v29 = vcombine.low %v9257_v31, %v9260_v9  ;;  %v10918_v61 = vrot.slane %v8961_v38, 9  ;;  %v9279_v11 = vrot.slane %v9277_v56, 4  ;;  %v12801_v17 = vld [vmem:[#allocation2 + $0x1ac] sm:$0x1] }
 0x33b   :  { %v9280_v19 = vrot.slane %v12801_v17, 5  ;;  %v5367_v31 = vrot.slane %v5365_v18, 5  ;;  %v5373_v9 = vrot.slane %v5371_v59, 5  ;;  %v5377_v27 = vrot.slane %v5375_v28, 4 }
 0x33c   :  { %v9264_v24 = vsel %vm13615_vm0, %v10916_v51, %v9263_v47  ;;  %v5364_v47 = vrot.slane %v5362_v46, 4  ;;  %v5345_v23 = vrot.slane %v5344_v14, 4  ;;  %v5326_v10 = vsel %vm13144_vm12, %v5321_v7, %v15701_v0 }
 0x33d   :  { %v10949_v40 = vcombine.low %v9264_v24, %v9267_v13  ;;  %v9278_v12 = vsel %vm13615_vm0, %v10918_v61, %v9277_v56  ;;  %v9281_v22 = vsel %vm13615_vm0, %v9279_v11, %v9280_v19  ;;  %v5336_v48 = vsel %vm13144_vm12, %v5331_v45, %v5335_v37 }
 0x33e   :  { %11993 = vmatmul.mubr.msk.bf16.gmra.mrb[52].mxu0 %vm2029_vm13, %v10947_v58  ;;  %v12800_v58 = vld [vmem:[#allocation2 + $0x194] sm:$0x1]  ;;  %v5368_v49 = vor.u32 %v5367_v31, %v5364_v47  ;;  %v5378_v43 = vor.u32 %v5377_v27, %v5373_v9  ;;  %v5350_v0 = vsel %vm13144_vm12, %v5345_v23, %v5349_v4  ;;  %v10951_v32 = vcombine.low %v9278_v12, %v9281_v22 }
 0x33f   :  { %11996 = vmatprep.mubr.msk.bf16.mxu0 %vm2029_vm13, %v10948_v29  ;;  %v5357_v52 = vshll.u32 %v12800_v58, 16  ;;  %v10625_v44 = vcombine.low %v5326_v10, %v5336_v48 }
 0x340   :  { %v5369_v41 = vrot.slane %v5368_v49, 4  ;;  %v5379_v6 = vrot.slane %v5378_v43, 4 }
 0x341   :  { %11725 = vmatmul.mubr.msk.bf16.gmra.mrb[48].mxu1 %vm2029_vm13, %v10621_v63  ;;  %v5354_v63 = vor.u32 %v5353_v20, %v5349_v4  ;;  %v5359_v21 = vrot.slane %v5357_v52, 5 }
 0x342   :  { %11728 = vmatprep.mubr.msk.bf16.mxu1 %vm2029_vm13, %v10622_v15  ;;  %v10950_v15 = vcombine.low %v9271_v8, %v9274_v39  ;;  %v5374_v55 = vsel %vm13144_vm12, %v5369_v41, %v5373_v9 }
 0x343   :  { %v5355_v3 = vrot.slane %v5354_v63, 4 }
 0x345   :  { %v5360_v51 = vsel %vm13144_vm12, %v5355_v3, %v5359_v21 }
 0x346   :  { %11997 = vmatmul.mubr.msk.bf16.gmra.mrb[56].mxu0 %vm2029_vm13, %v10949_v40  ;;  %v10626_v29 = vcombine.low %v5350_v0, %v5360_v51 }
 0x347   :  { %12000 = vmatprep.mubr.msk.bf16.mxu0 %vm2029_vm13, %v10950_v15 }
 0x349   :  { %11729 = vmatmul.mubr.msk.bf16.gmra.mrb[52].mxu1 %vm2029_vm13, %v15689_v16  ;;  %v12802_v16 = vld [vmem:[#allocation2 + $0x1a0] sm:$0x1] }
 0x34a   :  { %11732 = vmatprep.mubr.msk.bf16.mxu1 %vm2029_vm13, %v10624_v42  ;;  %v5381_v50 = vshll.u32 %v12802_v16, 16  ;;  %v15795_v42 = vld [vmem:[%s15971_s2] ss:$0 sm:$0xff]  ;;  %s12829_s2 = smov [#allocation3]  }
 0x34b   :  { %s10293_s23 = sshll.u32 %s12829_s2, 4  ;;  %s10294_s23 = int_to_ptr.vmem [resolvable:$true] %s10293_s23 }
 0x34c   :  { %v5383_v62 = vrot.slane %v5381_v50, 5  ;;  %s12803_s24 = scalar_lea.vmem %s10294_s23, 4096  ;;  %p12808_p1 = scmp.lt.s32.totalorder %s10294_s23, %s10294_s23 }
 0x34d   :  { %p12804_p0 = scmp.ne.s32.totalorder %s10294_s23, %s12803_s24  ;;  %p12809_p2 = scmp.lt.s32.totalorder %s12803_s24, %s12803_s24 }
 0x34e   :  { %12001 = vmatmul.mubr.msk.bf16.gmra.mrb[60].mxu0 %vm2029_vm13, %v10951_v32  ;;  %v5384_v30 = vsel %vm13144_vm12, %v5379_v6, %v5383_v62 }
 0x34f   :  { %v10627_v35 = vcombine.low %v5374_v55, %v5384_v30  ;;  %p12810_p3 = por %p12809_p2, %p12808_p1 }
 0x351   :  { %11733 = vmatmul.mubr.msk.bf16.gmra.mrb[56].mxu1 %vm2029_vm13, %v10625_v44  ;;  %p12811_p4 = pnand %p12810_p3, %p12804_p0 }
 0x352   :  { %11736 = vmatprep.mubr.msk.bf16.mxu1 %vm2029_vm13, %v10626_v29 }
 0x359   :  { %11737 = vmatmul.mubr.msk.bf16.gmra.mrb[60].mxu1 %vm2029_vm13, %v10627_v35 }
 0x374   :  { %v11612_v2 = vpop.f32.mrb[0].mxu1 }
 0x375   :  { %v4202_v36 = vpop.f32.mrb[1].mxu1 }
 0x376   :  { %v11613_v26 = vpop.f32.mrb[2].mxu1 }
 0x377   :  { %v4205_v1 = vpop.f32.mrb[3].mxu1 }
 0x37c   :  { %v11616_v60 = vpop.f32.mrb[4].mxu1 }
 0x37d   :  { %v4218_v5 = vpop.f32.mrb[5].mxu1 }
 0x37e   :  { %v11617_v4 = vpop.f32.mrb[6].mxu1 }
 0x37f   :  { %v4221_v20 = vpop.f32.mrb[7].mxu1 }
 0x384   :  { %v15752_v54 = vpop.f32.mrb[8].mxu1 }
 0x385   :  { %v15754_v53 = vpop.f32.mrb[9].mxu1 }
 0x386   :  { %v15756_v25 = vpop.f32.mrb[10].mxu1 }
 0x387   :  { %v15758_v24 = vpop.f32.mrb[11].mxu1 }
 0x38c   :  { %v15760_v57 = vpop.f32.mrb[12].mxu1 }
 0x38d   :  { %v15762_v13 = vpop.f32.mrb[13].mxu1 }
 0x38e   :  { %v15764_v46 = vpop.f32.mrb[14].mxu1 }
 0x38f   :  { %v15766_v18 = vpop.f32.mrb[15].mxu1 }
 0x394   :  { %v15768_v34 = vpop.f32.mrb[16].mxu1 }
 0x395   :  { %v15770_v56 = vpop.f32.mrb[17].mxu1 }
 0x396   :  { %v15772_v33 = vpop.f32.mrb[18].mxu1 }
 0x397   :  { %v15774_v59 = vpop.f32.mrb[19].mxu1 }
 0x39c   :  { %v15776_v28 = vpop.f32.mrb[20].mxu1 }
 0x39d   :  { %v15778_v8 = vpop.f32.mrb[21].mxu1 }
 0x39e   :  { %v15780_v39 = vpop.f32.mrb[22].mxu1 }
 0x39f   :  { %v15782_v38 = vpop.f32.mrb[23].mxu1 }
 0x3a4   :  { %v15784_v37 = vpop.f32.mrb[24].mxu1 }
 0x3a5   :  { %v15786_v14 = vpop.f32.mrb[25].mxu1 }
 0x3a6   :  { %v15788_v63 = vpop.f32.mrb[26].mxu1 }
 0x3a7   :  { %v15790_v58 = vpop.f32.mrb[27].mxu1 }
 0x3a9   :  { %v11942_v52 = vpop.f32.mrb[0].mxu0 }
 0x3aa   :  { %v12006_v45 = vadd.f32 %v11942_v52, %v11612_v2  ;;  %v9513_v40 = vpop.f32.mrb[1].mxu0 }
 0x3ab   :  { %v12007_v61 = vadd.f32 %v9513_v40, %v4202_v36  ;;  %v11943_v11 = vpop.f32.mrb[2].mxu0 }
 0x3ac   :  { %v15797_v7 = vpop.f32.mrb[28].mxu1  ;;  %v9841_v19 = vadd.f32 %v12006_v45, %v15795_v42  ;;  %v12008_v47 = vadd.f32 %v11943_v11, %v11613_v26  ;;  %v9516_v31 = vpop.f32.mrb[3].mxu0 }
 0x3ad   :  { %v15799_v15 = vpop.f32.mrb[29].mxu1  ;;  %v9839_v27 = vadd.f32 %v12007_v61, %v15795_v42  ;;  %v12009_v23 = vadd.f32 %v9516_v31, %v4205_v1 }
 0x3ae   :  { %v15801_v17 = vpop.f32.mrb[30].mxu1  ;;  %v9905_v3 = vmax.f32 %v9841_v19, 0.0  ;;  %v9842_v21 = vadd.f32 %v12008_v47, %v15795_v42 }
 0x3af   :  { %v15804_v9 = vpop.f32.mrb[31].mxu1  ;;  %v9903_v10 = vmax.f32 %v9839_v27, 0.0  ;;  %v9840_v12 = vadd.f32 %v12009_v23, %v15795_v42 }
 0x3b0   :  { %v11051_v22 = vpack.c.bf16 %v9905_v3, %v9905_v3  ;;  %v9906_v48 = vmax.f32 %v9842_v21, 0.0 }
 0x3b1   :  { %v11049_v49 = vpack.c.bf16 %v9903_v10, %v9903_v10  ;;  %v9904_v43 = vmax.f32 %v9840_v12, 0.0  ;;  %v11946_v16 = vpop.f32.mrb[4].mxu0 }
 0x3b2   :  { %10226 = vst.msk [vmem:[#allocation3 + $0x8] sm:$0xf] %vm10223_vm1, %v11051_v22  ;;  %v11052_v50 = vpack.c.bf16 %v9906_v48, %v9906_v48  ;;  %v12010_v0 = vadd.f32 %v11946_v16, %v11616_v60  ;;  %v9529_v51 = vpop.f32.mrb[5].mxu0 }
 0x3b3   :  { %10224 = vst.msk [vmem:[#allocation3] sm:$0xf] %vm10223_vm1, %v11049_v49  ;;  %v11050_v32 = vpack.c.bf16 %v9904_v43, %v9904_v43  ;;  %v12011_v44 = vadd.f32 %v9529_v51, %v4218_v5  ;;  %v11947_v29 = vpop.f32.mrb[6].mxu0 }
 0x3b4   :  { %10227 = vst.msk [vmem:[#allocation3 + $0xc] sm:$0xf] %vm10223_vm1, %v11052_v50  ;;  %v9845_v41 = vadd.f32 %v12010_v0, %v15795_v42  ;;  %v12012_v6 = vadd.f32 %v11947_v29, %v11617_v4  ;;  %v9532_v62 = vpop.f32.mrb[7].mxu0 }
 0x3b5   :  { %10225 = vst.msk [vmem:[#allocation3 + $0x4] sm:$0xf] %vm10223_vm1, %v11050_v32  ;;  %v9843_v55 = vadd.f32 %v12011_v44, %v15795_v42  ;;  %v12013_v30 = vadd.f32 %v9532_v62, %v4221_v20 }
 0x3b6   :  { %v9909_v35 = vmax.f32 %v9845_v41, 0.0  ;;  %v9846_v2 = vadd.f32 %v12012_v6, %v15795_v42 }
 0x3b7   :  { %v9907_v36 = vmax.f32 %v9843_v55, 0.0  ;;  %v9844_v26 = vadd.f32 %v12013_v30, %v15795_v42 }
 0x3b8   :  { %v11055_v1 = vpack.c.bf16 %v9909_v35, %v9909_v35  ;;  %v9910_v60 = vmax.f32 %v9846_v2, 0.0 }
 0x3b9   :  { %v11053_v5 = vpack.c.bf16 %v9907_v36, %v9907_v36  ;;  %v9908_v52 = vmax.f32 %v9844_v26, 0.0  ;;  %v11950_v45 = vpop.f32.mrb[8].mxu0 }
 0x3ba   :  { %10230 = vst.msk [vmem:[#allocation3 + $0x18] sm:$0xf] %vm10223_vm1, %v11055_v1  ;;  %v11056_v4 = vpack.c.bf16 %v9910_v60, %v9910_v60  ;;  %v12014_v40 = vadd.f32 %v11950_v45, %v15752_v54  ;;  %v9545_v61 = vpop.f32.mrb[9].mxu0 }
 0x3bb   :  { %10228 = vst.msk [vmem:[#allocation3 + $0x10] sm:$0xf] %vm10223_vm1, %v11053_v5  ;;  %v11054_v20 = vpack.c.bf16 %v9908_v52, %v9908_v52  ;;  %v12015_v11 = vadd.f32 %v9545_v61, %v15754_v53  ;;  %v11951_v19 = vpop.f32.mrb[10].mxu0 }
 0x3bc   :  { %10231 = vst.msk [vmem:[#allocation3 + $0x1c] sm:$0xf] %vm10223_vm1, %v11056_v4  ;;  %v9849_v47 = vadd.f32 %v12014_v40, %v15795_v42  ;;  %v12016_v31 = vadd.f32 %v11951_v19, %v15756_v25  ;;  %v9548_v27 = vpop.f32.mrb[11].mxu0 }
 0x3bd   :  { %10229 = vst.msk [vmem:[#allocation3 + $0x14] sm:$0xf] %vm10223_vm1, %v11054_v20  ;;  %v9847_v23 = vadd.f32 %v12015_v11, %v15795_v42  ;;  %v12017_v54 = vadd.f32 %v9548_v27, %v15758_v24 }
 0x3be   :  { %v9913_v3 = vmax.f32 %v9849_v47, 0.0  ;;  %v9850_v21 = vadd.f32 %v12016_v31, %v15795_v42 }
 0x3bf   :  { %v9911_v10 = vmax.f32 %v9847_v23, 0.0  ;;  %v9848_v53 = vadd.f32 %v12017_v54, %v15795_v42 }
 0x3c0   :  { %v11059_v12 = vpack.c.bf16 %v9913_v3, %v9913_v3  ;;  %v9914_v22 = vmax.f32 %v9850_v21, 0.0 }
 0x3c1   :  { %v11057_v48 = vpack.c.bf16 %v9911_v10, %v9911_v10  ;;  %v9912_v49 = vmax.f32 %v9848_v53, 0.0  ;;  %v11954_v43 = vpop.f32.mrb[12].mxu0 }
 0x3c2   :  { %10234 = vst.msk [vmem:[#allocation3 + $0x28] sm:$0xf] %vm10223_vm1, %v11059_v12  ;;  %v11060_v25 = vpack.c.bf16 %v9914_v22, %v9914_v22  ;;  %v12018_v16 = vadd.f32 %v11954_v43, %v15760_v57  ;;  %v9561_v50 = vpop.f32.mrb[13].mxu0 }
 0x3c3   :  { %10232 = vst.msk [vmem:[#allocation3 + $0x20] sm:$0xf] %vm10223_vm1, %v11057_v48  ;;  %v11058_v24 = vpack.c.bf16 %v9912_v49, %v9912_v49  ;;  %v12019_v0 = vadd.f32 %v9561_v50, %v15762_v13  ;;  %v11955_v51 = vpop.f32.mrb[14].mxu0 }
 0x3c4   :  { %10235 = vst.msk [vmem:[#allocation3 + $0x2c] sm:$0xf] %vm10223_vm1, %v11060_v25  ;;  %v9853_v32 = vadd.f32 %v12018_v16, %v15795_v42  ;;  %v12020_v44 = vadd.f32 %v11955_v51, %v15764_v46  ;;  %v9564_v29 = vpop.f32.mrb[15].mxu0 }
 0x3c5   :  { %10233 = vst.msk [vmem:[#allocation3 + $0x24] sm:$0xf] %vm10223_vm1, %v11058_v24  ;;  %v9851_v41 = vadd.f32 %v12019_v0, %v15795_v42  ;;  %v12021_v57 = vadd.f32 %v9564_v29, %v15766_v18 }
 0x3c6   :  { %v9917_v6 = vmax.f32 %v9853_v32, 0.0  ;;  %v9854_v62 = vadd.f32 %v12020_v44, %v15795_v42 }
 0x3c7   :  { %v9915_v55 = vmax.f32 %v9851_v41, 0.0  ;;  %v9852_v13 = vadd.f32 %v12021_v57, %v15795_v42 }
 0x3c8   :  { %v11063_v30 = vpack.c.bf16 %v9917_v6, %v9917_v6  ;;  %v9918_v35 = vmax.f32 %v9854_v62, 0.0 }
 0x3c9   :  { %v11061_v2 = vpack.c.bf16 %v9915_v55, %v9915_v55  ;;  %v9916_v36 = vmax.f32 %v9852_v13, 0.0  ;;  %v11958_v26 = vpop.f32.mrb[16].mxu0 }
 0x3ca   :  { %10238 = vst.msk [vmem:[#allocation3 + $0x38] sm:$0xf] %vm10223_vm1, %v11063_v30  ;;  %v11064_v46 = vpack.c.bf16 %v9918_v35, %v9918_v35  ;;  %v12022_v1 = vadd.f32 %v11958_v26, %v15768_v34  ;;  %v9577_v60 = vpop.f32.mrb[17].mxu0 }
 0x3cb   :  { %10236 = vst.msk [vmem:[#allocation3 + $0x30] sm:$0xf] %vm10223_vm1, %v11061_v2  ;;  %v11062_v18 = vpack.c.bf16 %v9916_v36, %v9916_v36  ;;  %v12023_v5 = vadd.f32 %v9577_v60, %v15770_v56  ;;  %v11959_v52 = vpop.f32.mrb[18].mxu0 }
 0x3cc   :  { %10239 = vst.msk [vmem:[#allocation3 + $0x3c] sm:$0xf] %vm10223_vm1, %v11064_v46  ;;  %v9857_v45 = vadd.f32 %v12022_v1, %v15795_v42  ;;  %v12024_v4 = vadd.f32 %v11959_v52, %v15772_v33  ;;  %v9580_v40 = vpop.f32.mrb[19].mxu0 }
 0x3cd   :  { %10237 = vst.msk [vmem:[#allocation3 + $0x34] sm:$0xf] %vm10223_vm1, %v11062_v18  ;;  %v9855_v61 = vadd.f32 %v12023_v5, %v15795_v42  ;;  %v12025_v34 = vadd.f32 %v9580_v40, %v15774_v59 }
 0x3ce   :  { %v9921_v20 = vmax.f32 %v9857_v45, 0.0  ;;  %v9858_v11 = vadd.f32 %v12024_v4, %v15795_v42 }
 0x3cf   :  { %v9919_v19 = vmax.f32 %v9855_v61, 0.0  ;;  %v9856_v56 = vadd.f32 %v12025_v34, %v15795_v42 }
 0x3d0   :  { %v11067_v47 = vpack.c.bf16 %v9921_v20, %v9921_v20  ;;  %v9922_v31 = vmax.f32 %v9858_v11, 0.0 }
 0x3d1   :  { %v11065_v27 = vpack.c.bf16 %v9919_v19, %v9919_v19  ;;  %v9920_v23 = vmax.f32 %v9856_v56, 0.0  ;;  %v11962_v54 = vpop.f32.mrb[20].mxu0 }
 0x3d2   :  { %10242 = vst.msk [vmem:[#allocation3 + $0x48] sm:$0xf] %vm10223_vm1, %v11067_v47  ;;  %v11068_v33 = vpack.c.bf16 %v9922_v31, %v9922_v31  ;;  %v12026_v3 = vadd.f32 %v11962_v54, %v15776_v28  ;;  %v9593_v21 = vpop.f32.mrb[21].mxu0 }
 0x3d3   :  { %10240 = vst.msk [vmem:[#allocation3 + $0x40] sm:$0xf] %vm10223_vm1, %v11065_v27  ;;  %v11066_v59 = vpack.c.bf16 %v9920_v23, %v9920_v23  ;;  %v12027_v10 = vadd.f32 %v9593_v21, %v15778_v8  ;;  %v11963_v53 = vpop.f32.mrb[22].mxu0 }
 0x3d4   :  { %10243 = vst.msk [vmem:[#allocation3 + $0x4c] sm:$0xf] %vm10223_vm1, %v11068_v33  ;;  %v9861_v12 = vadd.f32 %v12026_v3, %v15795_v42  ;;  %v12028_v22 = vadd.f32 %v11963_v53, %v15780_v39  ;;  %v9596_v48 = vpop.f32.mrb[23].mxu0 }
 0x3d5   :  { %10241 = vst.msk [vmem:[#allocation3 + $0x44] sm:$0xf] %vm10223_vm1, %v11066_v59  ;;  %v9859_v49 = vadd.f32 %v12027_v10, %v15795_v42  ;;  %v12029_v28 = vadd.f32 %v9596_v48, %v15782_v38 }
 0x3d6   :  { %v9925_v43 = vmax.f32 %v9861_v12, 0.0  ;;  %v9862_v25 = vadd.f32 %v12028_v22, %v15795_v42 }
 0x3d7   :  { %v9923_v16 = vmax.f32 %v9859_v49, 0.0  ;;  %v9860_v8 = vadd.f32 %v12029_v28, %v15795_v42 }
 0x3d8   :  { %v11071_v50 = vpack.c.bf16 %v9925_v43, %v9925_v43  ;;  %v9926_v24 = vmax.f32 %v9862_v25, 0.0 }
 0x3d9   :  { %v11069_v0 = vpack.c.bf16 %v9923_v16, %v9923_v16  ;;  %v9924_v51 = vmax.f32 %v9860_v8, 0.0  ;;  %v11966_v32 = vpop.f32.mrb[24].mxu0 }
 0x3da   :  { %10246 = vst.msk [vmem:[#allocation3 + $0x58] sm:$0xf] %vm10223_vm1, %v11071_v50  ;;  %v11072_v39 = vpack.c.bf16 %v9926_v24, %v9926_v24  ;;  %v12030_v44 = vadd.f32 %v11966_v32, %v15784_v37  ;;  %v9609_v29 = vpop.f32.mrb[25].mxu0 }
 0x3db   :  { %10244 = vst.msk [vmem:[#allocation3 + $0x50] sm:$0xf] %vm10223_vm1, %v11069_v0  ;;  %v11070_v38 = vpack.c.bf16 %v9924_v51, %v9924_v51  ;;  %v12031_v41 = vadd.f32 %v9609_v29, %v15786_v14  ;;  %v11967_v57 = vpop.f32.mrb[26].mxu0 }
 0x3dc   :  { %10247 = vst.msk [vmem:[#allocation3 + $0x5c] sm:$0xf] %vm10223_vm1, %v11072_v39  ;;  %v9865_v6 = vadd.f32 %v12030_v44, %v15795_v42  ;;  %v12032_v62 = vadd.f32 %v11967_v57, %v15788_v63  ;;  %v9612_v55 = vpop.f32.mrb[27].mxu0 }
 0x3dd   :  { %10245 = vst.msk [vmem:[#allocation3 + $0x54] sm:$0xf] %vm10223_vm1, %v11070_v38  ;;  %v9863_v13 = vadd.f32 %v12031_v41, %v15795_v42  ;;  %v12033_v37 = vadd.f32 %v9612_v55, %v15790_v58 }
 0x3de   :  { %v9929_v30 = vmax.f32 %v9865_v6, 0.0  ;;  %v9866_v35 = vadd.f32 %v12032_v62, %v15795_v42 }
 0x3df   :  { %v9927_v2 = vmax.f32 %v9863_v13, 0.0  ;;  %v9864_v14 = vadd.f32 %v12033_v37, %v15795_v42 }
 0x3e0   :  { %v11075_v36 = vpack.c.bf16 %v9929_v30, %v9929_v30  ;;  %v9930_v26 = vmax.f32 %v9866_v35, 0.0 }
 0x3e1   :  { %v11073_v46 = vpack.c.bf16 %v9927_v2, %v9927_v2  ;;  %v9928_v1 = vmax.f32 %v9864_v14, 0.0  ;;  %v11970_v60 = vpop.f32.mrb[28].mxu0 }
 0x3e2   :  { %10250 = vst.msk [vmem:[#allocation3 + $0x68] sm:$0xf] %vm10223_vm1, %v11075_v36  ;;  %v11076_v63 = vpack.c.bf16 %v9930_v26, %v9930_v26  ;;  %v12034_v18 = vadd.f32 %v11970_v60, %v15797_v7  ;;  %v9625_v5 = vpop.f32.mrb[29].mxu0 }
 0x3e3   :  { %10248 = vst.msk [vmem:[#allocation3 + $0x60] sm:$0xf] %vm10223_vm1, %v11073_v46  ;;  %v11074_v58 = vpack.c.bf16 %v9928_v1, %v9928_v1  ;;  %v12035_v52 = vadd.f32 %v9625_v5, %v15799_v15  ;;  %v11971_v45 = vpop.f32.mrb[30].mxu0 }
 0x3e4   :  { %10251 = vst.msk [vmem:[#allocation3 + $0x6c] sm:$0xf] %vm10223_vm1, %v11076_v63  ;;  %v9869_v4 = vadd.f32 %v12034_v18, %v15795_v42  ;;  %v12036_v40 = vadd.f32 %v11971_v45, %v15801_v17  ;;  %v9628_v61 = vpop.f32.mrb[31].mxu0 }
 0x3e5   :  { %10249 = vst.msk [vmem:[#allocation3 + $0x64] sm:$0xf] %vm10223_vm1, %v11074_v58  ;;  %v9867_v34 = vadd.f32 %v12035_v52, %v15795_v42  ;;  %v12037_v7 = vadd.f32 %v9628_v61, %v15804_v9 }
 0x3e6   :  { %v9933_v20 = vmax.f32 %v9869_v4, 0.0  ;;  %v9870_v11 = vadd.f32 %v12036_v40, %v15795_v42 }
 0x3e7   :  { %v9931_v19 = vmax.f32 %v9867_v34, 0.0  ;;  %v9868_v15 = vadd.f32 %v12037_v7, %v15795_v42 }
 0x3e8   :  { %v11079_v56 = vpack.c.bf16 %v9933_v20, %v9933_v20  ;;  %v9934_v47 = vmax.f32 %v9870_v11, 0.0 }
 0x3e9   :  { %v11077_v31 = vpack.c.bf16 %v9931_v19, %v9931_v19  ;;  %v9932_v27 = vmax.f32 %v9868_v15, 0.0  ;;  %v11974_v23 = vpop.f32.mrb[32].mxu0 }
 0x3ea   :  { %10254 = vst.msk [vmem:[#allocation3 + $0x78] sm:$0xf] %vm10223_vm1, %v11079_v56  ;;  %v11080_v17 = vpack.c.bf16 %v9934_v47, %v9934_v47  ;;  %v9641_v54 = vpop.f32.mrb[33].mxu0 }
 0x3eb   :  { %10252 = vst.msk [vmem:[#allocation3 + $0x70] sm:$0xf] %vm10223_vm1, %v11077_v31  ;;  %v11078_v33 = vpack.c.bf16 %v9932_v27, %v9932_v27  ;;  %v11975_v3 = vpop.f32.mrb[34].mxu0 }
 0x3ec   :  { %10255 = vst.msk [vmem:[#allocation3 + $0x7c] sm:$0xf] %vm10223_vm1, %v11080_v17  ;;  %v9644_v9 = vpop.f32.mrb[35].mxu0 }
 0x3ed   :  { %10253 = vst.msk [vmem:[#allocation3 + $0x74] sm:$0xf] %vm10223_vm1, %v11078_v33 }
 0x3f1   :  { %v11978_v21 = vpop.f32.mrb[36].mxu0 }
 0x3f2   :  { %v9657_v10 = vpop.f32.mrb[37].mxu0 }
 0x3f3   :  { %v11979_v22 = vpop.f32.mrb[38].mxu0 }
 0x3f4   :  { %v11710_v59 = vpop.f32.mrb[32].mxu1  ;;  %v9660_v28 = vpop.f32.mrb[39].mxu0 }
 0x3f5   :  { %v5744_v53 = vpop.f32.mrb[33].mxu1  ;;  %v12038_v12 = vadd.f32 %v11974_v23, %v11710_v59 }
 0x3f6   :  { %v11711_v48 = vpop.f32.mrb[34].mxu1  ;;  %v12039_v49 = vadd.f32 %v9641_v54, %v5744_v53 }
 0x3f7   :  { %v9873_v43 = vadd.f32 %v12038_v12, %v15795_v42  ;;  %v5747_v25 = vpop.f32.mrb[35].mxu1  ;;  %v12040_v16 = vadd.f32 %v11975_v3, %v11711_v48 }
 0x3f8   :  { %v9871_v8 = vadd.f32 %v12039_v49, %v15795_v42  ;;  %v12041_v50 = vadd.f32 %v9644_v9, %v5747_v25 }
 0x3f9   :  { %v9937_v24 = vmax.f32 %v9873_v43, 0.0  ;;  %v9874_v0 = vadd.f32 %v12040_v16, %v15795_v42  ;;  %v11982_v29 = vpop.f32.mrb[40].mxu0 }
 0x3fa   :  { %v9935_v51 = vmax.f32 %v9871_v8, 0.0  ;;  %v9872_v32 = vadd.f32 %v12041_v50, %v15795_v42  ;;  %v9673_v6 = vpop.f32.mrb[41].mxu0 }
 0x3fb   :  { %v11083_v39 = vpack.c.bf16 %v9937_v24, %v9937_v24  ;;  %v9938_v44 = vmax.f32 %v9874_v0, 0.0  ;;  %v11983_v37 = vpop.f32.mrb[42].mxu0 }
 0x3fc   :  { %v11081_v38 = vpack.c.bf16 %v9935_v51, %v9935_v51  ;;  %v9936_v41 = vmax.f32 %v9872_v32, 0.0  ;;  %v11714_v57 = vpop.f32.mrb[36].mxu1  ;;  %v9676_v14 = vpop.f32.mrb[43].mxu0 }
 0x3fd   :  { %10258 = vst.msk [vmem:[#allocation3 + $0x88] sm:$0xf] %vm10223_vm1, %v11083_v39  ;;  %v11084_v62 = vpack.c.bf16 %v9938_v44, %v9938_v44  ;;  %v5760_v55 = vpop.f32.mrb[37].mxu1  ;;  %v12042_v13 = vadd.f32 %v11978_v21, %v11714_v57 }
 0x3fe   :  { %10256 = vst.msk [vmem:[#allocation3 + $0x80] sm:$0xf] %vm10223_vm1, %v11081_v38  ;;  %v11082_v30 = vpack.c.bf16 %v9936_v41, %v9936_v41  ;;  %v11715_v35 = vpop.f32.mrb[38].mxu1  ;;  %v12043_v2 = vadd.f32 %v9657_v10, %v5760_v55 }
 0x3ff   :  { %10259 = vst.msk [vmem:[#allocation3 + $0x8c] sm:$0xf] %vm10223_vm1, %v11084_v62  ;;  %v9877_v36 = vadd.f32 %v12042_v13, %v15795_v42  ;;  %v5763_v26 = vpop.f32.mrb[39].mxu1  ;;  %v12044_v46 = vadd.f32 %v11979_v22, %v11715_v35 }
 0x400   :  { %10257 = vst.msk [vmem:[#allocation3 + $0x84] sm:$0xf] %vm10223_vm1, %v11082_v30  ;;  %v9875_v1 = vadd.f32 %v12043_v2, %v15795_v42  ;;  %v12045_v60 = vadd.f32 %v9660_v28, %v5763_v26 }
 0x401   :  { %v9941_v63 = vmax.f32 %v9877_v36, 0.0  ;;  %v9878_v18 = vadd.f32 %v12044_v46, %v15795_v42  ;;  %v11986_v4 = vpop.f32.mrb[44].mxu0 }
 0x402   :  { %v9939_v5 = vmax.f32 %v9875_v1, 0.0  ;;  %v9876_v58 = vadd.f32 %v12045_v60, %v15795_v42  ;;  %v9689_v7 = vpop.f32.mrb[45].mxu0 }
 0x403   :  { %v11087_v52 = vpack.c.bf16 %v9941_v63, %v9941_v63  ;;  %v9942_v45 = vmax.f32 %v9878_v18, 0.0  ;;  %v11987_v15 = vpop.f32.mrb[46].mxu0 }
 0x404   :  { %v11085_v40 = vpack.c.bf16 %v9939_v5, %v9939_v5  ;;  %v9940_v61 = vmax.f32 %v9876_v58, 0.0  ;;  %v11718_v34 = vpop.f32.mrb[40].mxu1  ;;  %v9692_v27 = vpop.f32.mrb[47].mxu0 }
 0x405   :  { %10262 = vst.msk [vmem:[#allocation3 + $0x98] sm:$0xf] %vm10223_vm1, %v11087_v52  ;;  %v11088_v20 = vpack.c.bf16 %v9942_v45, %v9942_v45  ;;  %v5776_v11 = vpop.f32.mrb[41].mxu1  ;;  %v12046_v19 = vadd.f32 %v11982_v29, %v11718_v34 }
 0x406   :  { %10260 = vst.msk [vmem:[#allocation3 + $0x90] sm:$0xf] %vm10223_vm1, %v11085_v40  ;;  %v11086_v56 = vpack.c.bf16 %v9940_v61, %v9940_v61  ;;  %v11719_v47 = vpop.f32.mrb[42].mxu1  ;;  %v12047_v31 = vadd.f32 %v9673_v6, %v5776_v11 }
 0x407   :  { %10263 = vst.msk [vmem:[#allocation3 + $0x9c] sm:$0xf] %vm10223_vm1, %v11088_v20  ;;  %v9881_v23 = vadd.f32 %v12046_v19, %v15795_v42  ;;  %v5779_v17 = vpop.f32.mrb[43].mxu1  ;;  %v12048_v54 = vadd.f32 %v11983_v37, %v11719_v47 }
 0x408   :  { %10261 = vst.msk [vmem:[#allocation3 + $0x94] sm:$0xf] %vm10223_vm1, %v11086_v56  ;;  %v9879_v33 = vadd.f32 %v12047_v31, %v15795_v42  ;;  %v12049_v3 = vadd.f32 %v9676_v14, %v5779_v17 }
 0x409   :  { %v9945_v9 = vmax.f32 %v9881_v23, 0.0  ;;  %v9882_v21 = vadd.f32 %v12048_v54, %v15795_v42  ;;  %v11990_v22 = vpop.f32.mrb[48].mxu0 }
 0x40a   :  { %v9943_v59 = vmax.f32 %v9879_v33, 0.0  ;;  %v9880_v10 = vadd.f32 %v12049_v3, %v15795_v42  ;;  %v9705_v43 = vpop.f32.mrb[49].mxu0 }
 0x40b   :  { %v11091_v53 = vpack.c.bf16 %v9945_v9, %v9945_v9  ;;  %v9946_v12 = vmax.f32 %v9882_v21, 0.0  ;;  %v11991_v50 = vpop.f32.mrb[50].mxu0 }
 0x40c   :  { %v11089_v48 = vpack.c.bf16 %v9943_v59, %v9943_v59  ;;  %v9944_v49 = vmax.f32 %v9880_v10, 0.0  ;;  %v11722_v28 = vpop.f32.mrb[44].mxu1  ;;  %v9708_v32 = vpop.f32.mrb[51].mxu0 }
 0x40d   :  { %10266 = vst.msk [vmem:[#allocation3 + $0xa8] sm:$0xf] %vm10223_vm1, %v11091_v53  ;;  %v11092_v25 = vpack.c.bf16 %v9946_v12, %v9946_v12  ;;  %v5792_v16 = vpop.f32.mrb[45].mxu1  ;;  %v12050_v8 = vadd.f32 %v11986_v4, %v11722_v28 }
 0x40e   :  { %10264 = vst.msk [vmem:[#allocation3 + $0xa0] sm:$0xf] %vm10223_vm1, %v11089_v48  ;;  %v11090_v24 = vpack.c.bf16 %v9944_v49, %v9944_v49  ;;  %v11723_v0 = vpop.f32.mrb[46].mxu1  ;;  %v12051_v51 = vadd.f32 %v9689_v7, %v5792_v16 }
 0x40f   :  { %10267 = vst.msk [vmem:[#allocation3 + $0xac] sm:$0xf] %vm10223_vm1, %v11092_v25  ;;  %v9885_v39 = vadd.f32 %v12050_v8, %v15795_v42  ;;  %v5795_v44 = vpop.f32.mrb[47].mxu1  ;;  %v12052_v29 = vadd.f32 %v11987_v15, %v11723_v0 }
 0x410   :  { %10265 = vst.msk [vmem:[#allocation3 + $0xa4] sm:$0xf] %vm10223_vm1, %v11090_v24  ;;  %v9883_v38 = vadd.f32 %v12051_v51, %v15795_v42  ;;  %v12053_v41 = vadd.f32 %v9692_v27, %v5795_v44 }
 0x411   :  { %v9949_v57 = vmax.f32 %v9885_v39, 0.0  ;;  %v9886_v6 = vadd.f32 %v12052_v29, %v15795_v42  ;;  %v11994_v30 = vpop.f32.mrb[52].mxu0 }
 0x412   :  { %v9947_v62 = vmax.f32 %v9883_v38, 0.0  ;;  %v9884_v55 = vadd.f32 %v12053_v41, %v15795_v42  ;;  %v9721_v36 = vpop.f32.mrb[53].mxu0 }
 0x413   :  { %v11095_v13 = vpack.c.bf16 %v9949_v57, %v9949_v57  ;;  %v9950_v37 = vmax.f32 %v9886_v6, 0.0  ;;  %v11995_v60 = vpop.f32.mrb[54].mxu0 }
 0x414   :  { %v11093_v35 = vpack.c.bf16 %v9947_v62, %v9947_v62  ;;  %v9948_v2 = vmax.f32 %v9884_v55, 0.0  ;;  %v11726_v14 = vpop.f32.mrb[48].mxu1  ;;  %v9724_v58 = vpop.f32.mrb[55].mxu0 }
 0x415   :  { %10270 = vst.msk [vmem:[#allocation3 + $0xb8] sm:$0xf] %vm10223_vm1, %v11095_v13  ;;  %v11096_v26 = vpack.c.bf16 %v9950_v37, %v9950_v37  ;;  %v5808_v46 = vpop.f32.mrb[49].mxu1  ;;  %v12054_v1 = vadd.f32 %v11990_v22, %v11726_v14 }
 0x416   :  { %10268 = vst.msk [vmem:[#allocation3 + $0xb0] sm:$0xf] %vm10223_vm1, %v11093_v35  ;;  %v11094_v63 = vpack.c.bf16 %v9948_v2, %v9948_v2  ;;  %v11727_v18 = vpop.f32.mrb[50].mxu1  ;;  %v12055_v5 = vadd.f32 %v9705_v43, %v5808_v46 }
 0x417   :  { %10271 = vst.msk [vmem:[#allocation3 + $0xbc] sm:$0xf] %vm10223_vm1, %v11096_v26  ;;  %v9889_v52 = vadd.f32 %v12054_v1, %v15795_v42  ;;  %v5811_v45 = vpop.f32.mrb[51].mxu1  ;;  %v12056_v4 = vadd.f32 %v11991_v50, %v11727_v18 }
 0x418   :  { %10269 = vst.msk [vmem:[#allocation3 + $0xb4] sm:$0xf] %vm10223_vm1, %v11094_v63  ;;  %v9887_v40 = vadd.f32 %v12055_v5, %v15795_v42  ;;  %v12057_v61 = vadd.f32 %v9708_v32, %v5811_v45 }
 0x419   :  { %v9953_v34 = vmax.f32 %v9889_v52, 0.0  ;;  %v9890_v7 = vadd.f32 %v12056_v4, %v15795_v42  ;;  %v11998_v56 = vpop.f32.mrb[56].mxu0 }
 0x41a   :  { %v9951_v20 = vmax.f32 %v9887_v40, 0.0  ;;  %v9888_v11 = vadd.f32 %v12057_v61, %v15795_v42  ;;  %v9737_v23 = vpop.f32.mrb[57].mxu0 }
 0x41b   :  { %v11099_v19 = vpack.c.bf16 %v9953_v34, %v9953_v34  ;;  %v9954_v15 = vmax.f32 %v9890_v7, 0.0  ;;  %v11999_v3 = vpop.f32.mrb[58].mxu0 }
 0x41c   :  { %v11097_v47 = vpack.c.bf16 %v9951_v20, %v9951_v20  ;;  %v9952_v31 = vmax.f32 %v9888_v11, 0.0  ;;  %v11730_v27 = vpop.f32.mrb[52].mxu1  ;;  %v9740_v10 = vpop.f32.mrb[59].mxu0 }
 0x41d   :  { %10274 = vst.msk [vmem:[#allocation3 + $0xc8] sm:$0xf] %vm10223_vm1, %v11099_v19  ;;  %v11100_v17 = vpack.c.bf16 %v9954_v15, %v9954_v15  ;;  %v5824_v54 = vpop.f32.mrb[53].mxu1  ;;  %v12058_v33 = vadd.f32 %v11994_v30, %v11730_v27 }
 0x41e   :  { %10272 = vst.msk [vmem:[#allocation3 + $0xc0] sm:$0xf] %vm10223_vm1, %v11097_v47  ;;  %v11098_v9 = vpack.c.bf16 %v9952_v31, %v9952_v31  ;;  %v11731_v21 = vpop.f32.mrb[54].mxu1  ;;  %v12059_v59 = vadd.f32 %v9721_v36, %v5824_v54 }
 0x41f   :  { %10275 = vst.msk [vmem:[#allocation3 + $0xcc] sm:$0xf] %vm10223_vm1, %v11100_v17  ;;  %v9893_v53 = vadd.f32 %v12058_v33, %v15795_v42  ;;  %v5827_v12 = vpop.f32.mrb[55].mxu1  ;;  %v12060_v22 = vadd.f32 %v11995_v60, %v11731_v21 }
 0x420   :  { %10273 = vst.msk [vmem:[#allocation3 + $0xc4] sm:$0xf] %vm10223_vm1, %v11098_v9  ;;  %v9891_v48 = vadd.f32 %v12059_v59, %v15795_v42  ;;  %v12061_v49 = vadd.f32 %v9724_v58, %v5827_v12 }
 0x421   :  { %v9957_v28 = vmax.f32 %v9893_v53, 0.0  ;;  %v9894_v43 = vadd.f32 %v12060_v22, %v15795_v42  ;;  %v12002_v24 = vpop.f32.mrb[60].mxu0 }
 0x422   :  { %v9955_v25 = vmax.f32 %v9891_v48, 0.0  ;;  %v9892_v16 = vadd.f32 %v12061_v49, %v15795_v42  ;;  %v9753_v39 = vpop.f32.mrb[61].mxu0 }
 0x423   :  { %v11103_v8 = vpack.c.bf16 %v9957_v28, %v9957_v28  ;;  %v9958_v50 = vmax.f32 %v9894_v43, 0.0  ;;  %v12003_v41 = vpop.f32.mrb[62].mxu0 }
 0x424   :  { %v11101_v0 = vpack.c.bf16 %v9955_v25, %v9955_v25  ;;  %v9956_v51 = vmax.f32 %v9892_v16, 0.0  ;;  %v11734_v32 = vpop.f32.mrb[56].mxu1  ;;  %v9756_v55 = vpop.f32.mrb[63].mxu0 }
 0x425   :  { %10278 = vst.msk [vmem:[#allocation3 + $0xd8] sm:$0xf] %vm10223_vm1, %v11103_v8  ;;  %v11104_v44 = vpack.c.bf16 %v9958_v50, %v9958_v50  ;;  %v5840_v29 = vpop.f32.mrb[57].mxu1  ;;  %v12062_v38 = vadd.f32 %v11998_v56, %v11734_v32 }
 0x426   :  { %10276 = vst.msk [vmem:[#allocation3 + $0xd0] sm:$0xf] %vm10223_vm1, %v11101_v0  ;;  %v11102_v57 = vpack.c.bf16 %v9956_v51, %v9956_v51  ;;  %v11735_v6 = vpop.f32.mrb[58].mxu1  ;;  %v12063_v62 = vadd.f32 %v9737_v23, %v5840_v29 }
 0x427   :  { %10279 = vst.msk [vmem:[#allocation3 + $0xdc] sm:$0xf] %vm10223_vm1, %v11104_v44  ;;  %v9897_v13 = vadd.f32 %v12062_v38, %v15795_v42  ;;  %v5843_v37 = vpop.f32.mrb[59].mxu1  ;;  %v12064_v30 = vadd.f32 %v11999_v3, %v11735_v6 }
 0x428   :  { %10277 = vst.msk [vmem:[#allocation3 + $0xd4] sm:$0xf] %vm10223_vm1, %v11102_v57  ;;  %v9895_v35 = vadd.f32 %v12063_v62, %v15795_v42  ;;  %v12065_v2 = vadd.f32 %v9740_v10, %v5843_v37 }
 0x429   :  { %v9961_v14 = vmax.f32 %v9897_v13, 0.0  ;;  %v9898_v36 = vadd.f32 %v12064_v30, %v15795_v42 }
 0x42a   :  { %v9959_v26 = vmax.f32 %v9895_v35, 0.0  ;;  %v9896_v46 = vadd.f32 %v12065_v2, %v15795_v42 }
 0x42b   :  { %v11107_v1 = vpack.c.bf16 %v9961_v14, %v9961_v14  ;;  %v9962_v60 = vmax.f32 %v9898_v36, 0.0 }
 0x42c   :  { %v11105_v63 = vpack.c.bf16 %v9959_v26, %v9959_v26  ;;  %v9960_v18 = vmax.f32 %v9896_v46, 0.0  ;;  %v11738_v5 = vpop.f32.mrb[60].mxu1 }
 0x42d   :  { %10282 = vst.msk [vmem:[#allocation3 + $0xe8] sm:$0xf] %vm10223_vm1, %v11107_v1  ;;  %v11108_v58 = vpack.c.bf16 %v9962_v60, %v9962_v60  ;;  %v5856_v52 = vpop.f32.mrb[61].mxu1  ;;  %v12066_v45 = vadd.f32 %v12002_v24, %v11738_v5 }
 0x42e   :  { %10280 = vst.msk [vmem:[#allocation3 + $0xe0] sm:$0xf] %vm10223_vm1, %v11105_v63  ;;  %v11106_v4 = vpack.c.bf16 %v9960_v18, %v9960_v18  ;;  %v11739_v40 = vpop.f32.mrb[62].mxu1  ;;  %v12067_v61 = vadd.f32 %v9753_v39, %v5856_v52 }
 0x42f   :  { %10283 = vst.msk [vmem:[#allocation3 + $0xec] sm:$0xf] %vm10223_vm1, %v11108_v58  ;;  %v9901_v34 = vadd.f32 %v12066_v45, %v15795_v42  ;;  %v5859_v7 = vpop.f32.mrb[63].mxu1  ;;  %v12068_v20 = vadd.f32 %v12003_v41, %v11739_v40 }
 0x430   :  { %10281 = vst.msk [vmem:[#allocation3 + $0xe4] sm:$0xf] %vm10223_vm1, %v11106_v4  ;;  %v9899_v11 = vadd.f32 %v12067_v61, %v15795_v42  ;;  %v12069_v19 = vadd.f32 %v9756_v55, %v5859_v7 }
 0x431   :  { %v9965_v15 = vmax.f32 %v9901_v34, 0.0  ;;  %v9902_v56 = vadd.f32 %v12068_v20, %v15795_v42 }
 0x432   :  { %v9963_v47 = vmax.f32 %v9899_v11, 0.0  ;;  %v9900_v31 = vadd.f32 %v12069_v19, %v15795_v42 }
 0x433   :  { %v11111_v27 = vpack.c.bf16 %v9965_v15, %v9965_v15  ;;  %v9966_v23 = vmax.f32 %v9902_v56, 0.0 }
 0x434   :  { %v11109_v17 = vpack.c.bf16 %v9963_v47, %v9963_v47  ;;  %v9964_v54 = vmax.f32 %v9900_v31, 0.0 }
 0x435   :  { %10286 = vst.msk [vmem:[#allocation3 + $0xf8] sm:$0xf] %vm10223_vm1, %v11111_v27  ;;  %v11112_v33 = vpack.c.bf16 %v9966_v23, %v9966_v23 }
 0x436   :  { %10284 = vst.msk [vmem:[#allocation3 + $0xf0] sm:$0xf] %vm10223_vm1, %v11109_v17  ;;  %v11110_v3 = vpack.c.bf16 %v9964_v54, %v9964_v54 }
 0x437   :  { %10287 = vst.msk [vmem:[#allocation3 + $0xfc] sm:$0xf] %vm10223_vm1, %v11112_v33 }
 0x438   :  { %10285 = vst.msk [vmem:[#allocation3 + $0xf4] sm:$0xf] %vm10223_vm1, %v11110_v3 }
 0x439   :  { %12814 = shalt.err (!%p12811_p4)
}
 0x43a   :  { %s12815_s27 = scalar_lea.hbm %s15972_s3, 4096 }
 0x43b   :  { %p12816_p5 = scmp.ne.s32.totalorder %s15972_s3, %s12815_s27  ;;  %p12819_p6 = scmp.lt.u32.totalorder %s12815_s27, %s15972_s3 }
 0x43d   :  { %p12821_p7 = pnand %p12819_p6, %p12816_p5 }
 0x43f   :  { %12824 = shalt.err (!%p12821_p7)
}
 0x440   :  { %s12830_s5 = smov 64   ;;  %s12831_s6 = smov 4  }
 0x441   :  { %10299 = dma.vmem_to_hbm [thread:$0]  %s10294_s23, 4096, %s15972_s3, [#allocation4], %s12830_s5, %s12830_s5, %s12831_s6  }
 0x442   :  { %12825 = dma.done.wait [#allocation4], 4096  }
 0x443   :  { %12826 = vsyncadd [#allocation4], 4294963200 }
 0x444   :  { %10303 = vsyncpa [#allocation4], 1 }

</bundles_post_ra>
